<compile_context>
chip_gen: v5e
topology: v5e:2x2
jax: 0.10.0
libtpu: 0.0.40
codegen_flags: <defaults>
</compile_context>

<pallas_src>
from functools import lru_cache, partial

import numpy as np
import jax
import jax.numpy as jnp
from jax.experimental import pallas as pl
from jax.experimental.pallas import tpu as pltpu

M_SHOT = 5
N_WAY = 5
RESNET_OUT_H = 4


def _episode_scores(sup, qry, pool, pos):
    """One episode. sup: [S, K] f32, qry: [Q, K] f32, pool: [S, n_way] f32.

    K = C * P with k = c * P + p (native NCHW flatten), P = `pos` = H*W.
    """
    K = sup.shape[-1]

    def per_position_inv_norm(x):
        # Sum x*x over the C channel slots {p, p+P, p+2P, ...} of every lane with a
        # log2(C) cyclic roll-and-add tree.  Result: the per-position sum-of-squares
        # already broadcast over the [N, K] layout (every lane with the same k % P
        # holds the same value) -- no gsel matmul, no broadcast matmul.
        ss = x * x
        shift = pos
        while shift < K:                      # static Python loop (6 iters for C=64)
            ss = ss + pltpu.roll(ss, shift, axis=1)
            shift *= 2
        return jax.lax.rsqrt(jnp.maximum(ss, 1e-16))

    # bf16 elementwise normalize (bf16-native VPU on v6e/v7x; compiler inserts
    # converts on v5e where the VPU is nowhere near the bottleneck anyway).
    sup_n = sup.astype(jnp.bfloat16) * per_position_inv_norm(sup).astype(jnp.bfloat16)
    qry_n = qry.astype(jnp.bfloat16) * per_position_inv_norm(qry).astype(jnp.bfloat16)

    # One lane-dense bf16 MXU matmul: cosine summed over (C, spatial) -> [Q, S].
    cos_qs = jax.lax.dot_general(qry_n, sup_n, (((1,), (1,)), ((), ())),
                                 preferred_element_type=jnp.float32)

    # Class average-pool (already includes 1/(shots*H*W)): [Q, S] @ [S, n_way].
    return jnp.dot(cos_qs, pool, preferred_element_type=jnp.float32)


def _innerproduct_kernel(sup_ref, qry_ref, pool_ref, out_ref, *, pos):
    # sup_ref : [EB, S, K]      (K = C*H*W, lane-dense, k = c*P + p)
    # qry_ref : [EB, Q, K]
    # pool_ref: [S, n_way]      class-average-pool matrix (carries 1/(shots*P))
    # out_ref : [EB, Q, n_way]
    eb = sup_ref.shape[0]
    pool = pool_ref[...]

    def body(e, carry):
        sup = sup_ref[e].astype(jnp.float32)
        qry = qry_ref[e].astype(jnp.float32)
        out_ref[e] = _episode_scores(sup, qry, pool, pos)
        return carry

    jax.lax.fori_loop(0, eb, body, 0, unroll=True)


@lru_cache(maxsize=None)
def _pool_matrix(S, n_way, shots, P):
    cls = np.arange(S)[:, None] // shots == np.arange(n_way)[None, :]
    return np.where(cls, np.float32(1.0 / (shots * P)), np.float32(0.0)).astype(np.float32)


@partial(jax.jit, static_argnames=("n_way", "shots", "episodes_per_step"))
def innerproduct_similarity_batched(support, query, *, n_way=N_WAY, shots=M_SHOT,
                                    episodes_per_step=8):
    """Batched episodes. support: [B, S, C, H, W], query: [B, Q, C, H, W].

    Returns scores [B, Q, n_way, 1, 1].
    """
    B, S, C, H, W = support.shape
    Q = query.shape[1]
    P = H * W
    K = C * P
    assert S == n_way * shots
    assert C & (C - 1) == 0, "roll-and-add channel reduction needs power-of-two C"
    # TODO(synk): non-power-of-two C would need a selection-matmul fallback.

    # Free NCHW flattens (no wrapper transposes / extra HBM round trips).
    sup_flat = support.reshape(B, S, K).astype(jnp.float32)
    qry_flat = query.reshape(B, Q, K).astype(jnp.float32)

    eb = min(episodes_per_step, B)          # static under jit
    pad = (-B) % eb
    if pad:                                  # zero episodes: clamp -> cos = 0, harmless
        sup_flat = jnp.concatenate(
            [sup_flat, jnp.zeros((pad, S, K), sup_flat.dtype)], axis=0)
        qry_flat = jnp.concatenate(
            [qry_flat, jnp.zeros((pad, Q, K), qry_flat.dtype)], axis=0)
    nb = (B + pad) // eb

    # Host-built constant, cached and baked into the executable under jit.
    pool = jnp.asarray(_pool_matrix(S, n_way, shots, P))

    # VMEM budget: eb*(S+Q)*K*4B, double-buffered -> ~2.3 MiB at eb=8; far under the
    # 32 MiB scoped default on every generation (incl. v7x's 64 MiB physical VMEM).
    # TODO(synk): for many thousands of episodes, pack scores into a lane-dense
    # (>=128-wide) output slab to avoid masked vst on the 5-wide last dim.
    score = pl.pallas_call(
        partial(_innerproduct_kernel, pos=P),
        out_shape=jax.ShapeDtypeStruct((B + pad, Q, n_way), jnp.float32),
        grid=(nb,),
        in_specs=[pl.BlockSpec((eb, S, K), lambda b: (b, 0, 0)),
                  pl.BlockSpec((eb, Q, K), lambda b: (b, 0, 0)),
                  pl.BlockSpec((S, n_way), lambda b: (0, 0))],
        out_specs=pl.BlockSpec((eb, Q, n_way), lambda b: (b, 0, 0)),
        compiler_params=pltpu.CompilerParams(
            dimension_semantics=("parallel",)),   # episodes shard across v7x's 2 TCs
    )(sup_flat, qry_flat, pool)

    if pad:
        score = score[:B]
    return score.reshape(B, Q, n_way, 1, 1)


def innerproduct_similarity(support_features, query_features,
                            n_way=N_WAY, shots=M_SHOT):
    """Original module signature: support [S, C, H, W], query [Q, C, H, W]."""
    score = innerproduct_similarity_batched(
        support_features[None], query_features[None],
        n_way=n_way, shots=shots, episodes_per_step=1)
    return score[0]                               # [Q, n_way, 1, 1]


def reference_forward(support, query, n_way=N_WAY, shots=M_SHOT):
    """Pure-JAX replica of the PyTorch forward (for verification)."""
    sup = support[None]                     # [1, S, C, H, W]
    qry = query[:, None]                    # [Q, 1, C, H, W]
    num = jnp.sum(sup * qry, axis=2)
    den = jnp.maximum(jnp.linalg.norm(sup, axis=2) * jnp.linalg.norm(qry, axis=2),
                      1e-8)
    cos = num / den                         # [Q, S, H, W]
    Q_, S_, H, W = cos.shape
    score = cos.reshape(Q_, S_ // shots, shots, H, W).mean(axis=(2, 3, 4))
    return score.reshape(Q_, S_ // shots, 1, 1)


if __name__ == "__main__":
    key = jax.random.PRNGKey(0)
    k1, k2 = jax.random.split(key)

    B = 6                         # episodes (exercises padding + a 2-step parallel grid)
    S = N_WAY * M_SHOT            # 25 support features per episode
    Q = 10                        # 10 query features per episode
    C = 64                        # feature channels
    H = W = RESNET_OUT_H          # 4x4 spatial map

    support = jax.random.normal(k1, (B, S, C, H, W), dtype=jnp.float32)
    query = jax.random.normal(k2, (B, Q, C, H, W), dtype=jnp.float32)

    # Batched-episode path (grid axis, "parallel" dimension semantics).
    out_b = innerproduct_similarity_batched(support, query, episodes_per_step=4)
    out_b = jax.block_until_ready(out_b)
    ref_b = jax.vmap(reference_forward)(support, query)
    assert out_b.shape == (B, Q, N_WAY, 1, 1), out_b.shape
    # bf16 MXU operands => looser tolerance than a pure-f32 reference.
    assert jnp.allclose(out_b, ref_b, atol=5e-3, rtol=1e-2), \
        f"max abs err {jnp.max(jnp.abs(out_b - ref_b))}"

    # Single-episode path (original PyTorch module signature).
    out_1 = innerproduct_similarity(support[0], query[0])
    out_1 = jax.block_until_ready(out_1)
    ref_1 = reference_forward(support[0], query[0])
    assert out_1.shape == (Q, N_WAY, 1, 1), out_1.shape
    assert jnp.allclose(out_1, ref_1, atol=5e-3, rtol=1e-2), \
        f"max abs err {jnp.max(jnp.abs(out_1 - ref_1))}"

    print("KERNEL_OK")
</pallas_src>

<mosaic_0001>
module attributes {stable_mosaic.version = 11 : i64} {
  func.func @_innerproduct_kernel(%arg0: i32, %arg1: memref<4x25x1024xf32, #tpu.memory_space<vmem>>, %arg2: memref<4x10x1024xf32, #tpu.memory_space<vmem>>, %arg3: memref<25x5xf32, #tpu.memory_space<vmem>>, %arg4: memref<4x10x5xf32, #tpu.memory_space<vmem>>) attributes {dimension_semantics = [#tpu.dimension_semantics<parallel>], iteration_bounds = array<i64: 2>, scalar_prefetch = 0 : i64, scratch_operands = 0 : i64, tpu.core_type = #tpu.core_type<tc>, window_params = [{transform_indices = @transform_0, window_bounds = array<i64: 4, 25, 1024>}, {transform_indices = @transform_1, window_bounds = array<i64: 4, 10, 1024>}, {pipeline_mode = #tpu.pipeline_mode<synchronous>, transform_indices = @transform_2, window_bounds = array<i64: 25, 5>}, {transform_indices = @transform_3, window_bounds = array<i64: 4, 10, 5>}]} {
    %c0 = arith.constant 0 : index
    %c0_0 = arith.constant 0 : index
    %0 = vector.load %arg3[%c0, %c0_0] : memref<25x5xf32, #tpu.memory_space<vmem>>, vector<25x5xf32>
    %c0_i32 = arith.constant 0 : i32
    %1 = arith.index_cast %c0_i32 : i32 to index
    %c0_1 = arith.constant 0 : index
    %c0_2 = arith.constant 0 : index
    %2 = vector.load %arg1[%1, %c0_1, %c0_2] : memref<4x25x1024xf32, #tpu.memory_space<vmem>>, vector<1x25x1024xf32>
    %3 = vector.shape_cast %2 : vector<1x25x1024xf32> to vector<25x1024xf32>
    %4 = arith.index_cast %c0_i32 : i32 to index
    %c0_3 = arith.constant 0 : index
    %c0_4 = arith.constant 0 : index
    %5 = vector.load %arg2[%4, %c0_3, %c0_4] : memref<4x10x1024xf32, #tpu.memory_space<vmem>>, vector<1x10x1024xf32>
    %6 = vector.shape_cast %5 : vector<1x10x1024xf32> to vector<10x1024xf32>
    %7 = arith.truncf %3 : vector<25x1024xf32> to vector<25x1024xbf16>
    %8 = arith.mulf %3, %3 : vector<25x1024xf32>
    %c16_i32 = arith.constant 16 : i32
    %9 = tpu.dynamic_rotate %8 by %c16_i32 dim 1 : vector<25x1024xf32>, i32 -> vector<25x1024xf32>
    %10 = arith.addf %8, %9 : vector<25x1024xf32>
    %c32_i32 = arith.constant 32 : i32
    %11 = tpu.dynamic_rotate %10 by %c32_i32 dim 1 : vector<25x1024xf32>, i32 -> vector<25x1024xf32>
    %12 = arith.addf %10, %11 : vector<25x1024xf32>
    %c64_i32 = arith.constant 64 : i32
    %13 = tpu.dynamic_rotate %12 by %c64_i32 dim 1 : vector<25x1024xf32>, i32 -> vector<25x1024xf32>
    %14 = arith.addf %12, %13 : vector<25x1024xf32>
    %c128_i32 = arith.constant 128 : i32
    %15 = tpu.dynamic_rotate %14 by %c128_i32 dim 1 : vector<25x1024xf32>, i32 -> vector<25x1024xf32>
    %16 = arith.addf %14, %15 : vector<25x1024xf32>
    %c256_i32 = arith.constant 256 : i32
    %17 = tpu.dynamic_rotate %16 by %c256_i32 dim 1 : vector<25x1024xf32>, i32 -> vector<25x1024xf32>
    %18 = arith.addf %16, %17 : vector<25x1024xf32>
    %c512_i32 = arith.constant 512 : i32
    %19 = tpu.dynamic_rotate %18 by %c512_i32 dim 1 : vector<25x1024xf32>, i32 -> vector<25x1024xf32>
    %20 = arith.addf %18, %19 : vector<25x1024xf32>
    %cst = arith.constant 1.000000e-16 : f32
    %21 = vector.broadcast %cst : f32 to vector<25x1024xf32>
    %22 = arith.maximumf %20, %21 : vector<25x1024xf32>
    %23 = math.rsqrt %22 : vector<25x1024xf32>
    %24 = arith.truncf %23 : vector<25x1024xf32> to vector<25x1024xbf16>
    %25 = arith.mulf %7, %24 : vector<25x1024xbf16>
    %26 = arith.truncf %6 : vector<10x1024xf32> to vector<10x1024xbf16>
    %27 = arith.mulf %6, %6 : vector<10x1024xf32>
    %c16_i32_5 = arith.constant 16 : i32
    %28 = tpu.dynamic_rotate %27 by %c16_i32_5 dim 1 : vector<10x1024xf32>, i32 -> vector<10x1024xf32>
    %29 = arith.addf %27, %28 : vector<10x1024xf32>
    %c32_i32_6 = arith.constant 32 : i32
    %30 = tpu.dynamic_rotate %29 by %c32_i32_6 dim 1 : vector<10x1024xf32>, i32 -> vector<10x1024xf32>
    %31 = arith.addf %29, %30 : vector<10x1024xf32>
    %c64_i32_7 = arith.constant 64 : i32
    %32 = tpu.dynamic_rotate %31 by %c64_i32_7 dim 1 : vector<10x1024xf32>, i32 -> vector<10x1024xf32>
    %33 = arith.addf %31, %32 : vector<10x1024xf32>
    %c128_i32_8 = arith.constant 128 : i32
    %34 = tpu.dynamic_rotate %33 by %c128_i32_8 dim 1 : vector<10x1024xf32>, i32 -> vector<10x1024xf32>
    %35 = arith.addf %33, %34 : vector<10x1024xf32>
    %c256_i32_9 = arith.constant 256 : i32
    %36 = tpu.dynamic_rotate %35 by %c256_i32_9 dim 1 : vector<10x1024xf32>, i32 -> vector<10x1024xf32>
    %37 = arith.addf %35, %36 : vector<10x1024xf32>
    %c512_i32_10 = arith.constant 512 : i32
    %38 = tpu.dynamic_rotate %37 by %c512_i32_10 dim 1 : vector<10x1024xf32>, i32 -> vector<10x1024xf32>
    %39 = arith.addf %37, %38 : vector<10x1024xf32>
    %cst_11 = arith.constant 1.000000e-16 : f32
    %40 = vector.broadcast %cst_11 : f32 to vector<10x1024xf32>
    %41 = arith.maximumf %39, %40 : vector<10x1024xf32>
    %42 = math.rsqrt %41 : vector<10x1024xf32>
    %43 = arith.truncf %42 : vector<10x1024xf32> to vector<10x1024xbf16>
    %44 = arith.mulf %26, %43 : vector<10x1024xbf16>
    %cst_12 = arith.constant dense<0.000000e+00> : vector<10x25xf32>
    %45 = tpu.matmul %44, %25, %cst_12 {dimension_numbers = #tpu.dot_dimension_numbers<[1], [1], [0], [0], [0, 0, 1, 0], [], []>} : vector<10x1024xbf16>, vector<25x1024xbf16>, vector<10x25xf32> -> vector<10x25xf32>
    %cst_13 = arith.constant dense<0.000000e+00> : vector<10x5xf32>
    %46 = tpu.matmul %45, %0, %cst_13 {dimension_numbers = #tpu.dot_dimension_numbers<[1], [0], [0], [1], [0, 0, 1, 1], [], []>} : vector<10x25xf32>, vector<25x5xf32>, vector<10x5xf32> -> vector<10x5xf32>
    %47 = arith.index_cast %c0_i32 : i32 to index
    %c0_14 = arith.constant 0 : index
    %c0_15 = arith.constant 0 : index
    %48 = vector.load %arg4[%47, %c0_14, %c0_15] : memref<4x10x5xf32, #tpu.memory_space<vmem>>, vector<1x10x5xf32>
    %49 = vector.shape_cast %48 : vector<1x10x5xf32> to vector<10x5xf32>
    %50 = vector.shape_cast %46 : vector<10x5xf32> to vector<1x10x5xf32>
    tpu.vector_store %arg4[%47, %c0_14, %c0_15], %50 {strides = array<i32>} : memref<4x10x5xf32, #tpu.memory_space<vmem>>, vector<1x10x5xf32>,
    %c1_i32 = arith.constant 1 : i32
    %51 = arith.index_cast %c1_i32 : i32 to index
    %c0_16 = arith.constant 0 : index
    %c0_17 = arith.constant 0 : index
    %52 = vector.load %arg1[%51, %c0_16, %c0_17] : memref<4x25x1024xf32, #tpu.memory_space<vmem>>, vector<1x25x1024xf32>
    %53 = vector.shape_cast %52 : vector<1x25x1024xf32> to vector<25x1024xf32>
    %54 = arith.index_cast %c1_i32 : i32 to index
    %c0_18 = arith.constant 0 : index
    %c0_19 = arith.constant 0 : index
    %55 = vector.load %arg2[%54, %c0_18, %c0_19] : memref<4x10x1024xf32, #tpu.memory_space<vmem>>, vector<1x10x1024xf32>
    %56 = vector.shape_cast %55 : vector<1x10x1024xf32> to vector<10x1024xf32>
    %57 = arith.truncf %53 : vector<25x1024xf32> to vector<25x1024xbf16>
    %58 = arith.mulf %53, %53 : vector<25x1024xf32>
    %c16_i32_20 = arith.constant 16 : i32
    %59 = tpu.dynamic_rotate %58 by %c16_i32_20 dim 1 : vector<25x1024xf32>, i32 -> vector<25x1024xf32>
    %60 = arith.addf %58, %59 : vector<25x1024xf32>
    %c32_i32_21 = arith.constant 32 : i32
    %61 = tpu.dynamic_rotate %60 by %c32_i32_21 dim 1 : vector<25x1024xf32>, i32 -> vector<25x1024xf32>
    %62 = arith.addf %60, %61 : vector<25x1024xf32>
    %c64_i32_22 = arith.constant 64 : i32
    %63 = tpu.dynamic_rotate %62 by %c64_i32_22 dim 1 : vector<25x1024xf32>, i32 -> vector<25x1024xf32>
    %64 = arith.addf %62, %63 : vector<25x1024xf32>
    %c128_i32_23 = arith.constant 128 : i32
    %65 = tpu.dynamic_rotate %64 by %c128_i32_23 dim 1 : vector<25x1024xf32>, i32 -> vector<25x1024xf32>
    %66 = arith.addf %64, %65 : vector<25x1024xf32>
    %c256_i32_24 = arith.constant 256 : i32
    %67 = tpu.dynamic_rotate %66 by %c256_i32_24 dim 1 : vector<25x1024xf32>, i32 -> vector<25x1024xf32>
    %68 = arith.addf %66, %67 : vector<25x1024xf32>
    %c512_i32_25 = arith.constant 512 : i32
    %69 = tpu.dynamic_rotate %68 by %c512_i32_25 dim 1 : vector<25x1024xf32>, i32 -> vector<25x1024xf32>
    %70 = arith.addf %68, %69 : vector<25x1024xf32>
    %cst_26 = arith.constant 1.000000e-16 : f32
    %71 = vector.broadcast %cst_26 : f32 to vector<25x1024xf32>
    %72 = arith.maximumf %70, %71 : vector<25x1024xf32>
    %73 = math.rsqrt %72 : vector<25x1024xf32>
    %74 = arith.truncf %73 : vector<25x1024xf32> to vector<25x1024xbf16>
    %75 = arith.mulf %57, %74 : vector<25x1024xbf16>
    %76 = arith.truncf %56 : vector<10x1024xf32> to vector<10x1024xbf16>
    %77 = arith.mulf %56, %56 : vector<10x1024xf32>
    %c16_i32_27 = arith.constant 16 : i32
    %78 = tpu.dynamic_rotate %77 by %c16_i32_27 dim 1 : vector<10x1024xf32>, i32 -> vector<10x1024xf32>
    %79 = arith.addf %77, %78 : vector<10x1024xf32>
    %c32_i32_28 = arith.constant 32 : i32
    %80 = tpu.dynamic_rotate %79 by %c32_i32_28 dim 1 : vector<10x1024xf32>, i32 -> vector<10x1024xf32>
    %81 = arith.addf %79, %80 : vector<10x1024xf32>
    %c64_i32_29 = arith.constant 64 : i32
    %82 = tpu.dynamic_rotate %81 by %c64_i32_29 dim 1 : vector<10x1024xf32>, i32 -> vector<10x1024xf32>
    %83 = arith.addf %81, %82 : vector<10x1024xf32>
    %c128_i32_30 = arith.constant 128 : i32
    %84 = tpu.dynamic_rotate %83 by %c128_i32_30 dim 1 : vector<10x1024xf32>, i32 -> vector<10x1024xf32>
    %85 = arith.addf %83, %84 : vector<10x1024xf32>
    %c256_i32_31 = arith.constant 256 : i32
    %86 = tpu.dynamic_rotate %85 by %c256_i32_31 dim 1 : vector<10x1024xf32>, i32 -> vector<10x1024xf32>
    %87 = arith.addf %85, %86 : vector<10x1024xf32>
    %c512_i32_32 = arith.constant 512 : i32
    %88 = tpu.dynamic_rotate %87 by %c512_i32_32 dim 1 : vector<10x1024xf32>, i32 -> vector<10x1024xf32>
    %89 = arith.addf %87, %88 : vector<10x1024xf32>
    %cst_33 = arith.constant 1.000000e-16 : f32
    %90 = vector.broadcast %cst_33 : f32 to vector<10x1024xf32>
    %91 = arith.maximumf %89, %90 : vector<10x1024xf32>
    %92 = math.rsqrt %91 : vector<10x1024xf32>
    %93 = arith.truncf %92 : vector<10x1024xf32> to vector<10x1024xbf16>
    %94 = arith.mulf %76, %93 : vector<10x1024xbf16>
    %cst_34 = arith.constant dense<0.000000e+00> : vector<10x25xf32>
    %95 = tpu.matmul %94, %75, %cst_34 {dimension_numbers = #tpu.dot_dimension_numbers<[1], [1], [0], [0], [0, 0, 1, 0], [], []>} : vector<10x1024xbf16>, vector<25x1024xbf16>, vector<10x25xf32> -> vector<10x25xf32>
    %cst_35 = arith.constant dense<0.000000e+00> : vector<10x5xf32>
    %96 = tpu.matmul %95, %0, %cst_35 {dimension_numbers = #tpu.dot_dimension_numbers<[1], [0], [0], [1], [0, 0, 1, 1], [], []>} : vector<10x25xf32>, vector<25x5xf32>, vector<10x5xf32> -> vector<10x5xf32>
    %97 = arith.index_cast %c1_i32 : i32 to index
    %c0_36 = arith.constant 0 : index
    %c0_37 = arith.constant 0 : index
    %98 = vector.load %arg4[%97, %c0_36, %c0_37] : memref<4x10x5xf32, #tpu.memory_space<vmem>>, vector<1x10x5xf32>
    %99 = vector.shape_cast %98 : vector<1x10x5xf32> to vector<10x5xf32>
    %100 = vector.shape_cast %96 : vector<10x5xf32> to vector<1x10x5xf32>
    tpu.vector_store %arg4[%97, %c0_36, %c0_37], %100 {strides = array<i32>} : memref<4x10x5xf32, #tpu.memory_space<vmem>>, vector<1x10x5xf32>,
    %c2_i32 = arith.constant 2 : i32
    %101 = arith.index_cast %c2_i32 : i32 to index
    %c0_38 = arith.constant 0 : index
    %c0_39 = arith.constant 0 : index
    %102 = vector.load %arg1[%101, %c0_38, %c0_39] : memref<4x25x1024xf32, #tpu.memory_space<vmem>>, vector<1x25x1024xf32>
    %103 = vector.shape_cast %102 : vector<1x25x1024xf32> to vector<25x1024xf32>
    %104 = arith.index_cast %c2_i32 : i32 to index
    %c0_40 = arith.constant 0 : index
    %c0_41 = arith.constant 0 : index
    %105 = vector.load %arg2[%104, %c0_40, %c0_41] : memref<4x10x1024xf32, #tpu.memory_space<vmem>>, vector<1x10x1024xf32>
    %106 = vector.shape_cast %105 : vector<1x10x1024xf32> to vector<10x1024xf32>
    %107 = arith.truncf %103 : vector<25x1024xf32> to vector<25x1024xbf16>
    %108 = arith.mulf %103, %103 : vector<25x1024xf32>
    %c16_i32_42 = arith.constant 16 : i32
    %109 = tpu.dynamic_rotate %108 by %c16_i32_42 dim 1 : vector<25x1024xf32>, i32 -> vector<25x1024xf32>
    %110 = arith.addf %108, %109 : vector<25x1024xf32>
    %c32_i32_43 = arith.constant 32 : i32
    %111 = tpu.dynamic_rotate %110 by %c32_i32_43 dim 1 : vector<25x1024xf32>, i32 -> vector<25x1024xf32>
    %112 = arith.addf %110, %111 : vector<25x1024xf32>
    %c64_i32_44 = arith.constant 64 : i32
    %113 = tpu.dynamic_rotate %112 by %c64_i32_44 dim 1 : vector<25x1024xf32>, i32 -> vector<25x1024xf32>
    %114 = arith.addf %112, %113 : vector<25x1024xf32>
    %c128_i32_45 = arith.constant 128 : i32
    %115 = tpu.dynamic_rotate %114 by %c128_i32_45 dim 1 : vector<25x1024xf32>, i32 -> vector<25x1024xf32>
    %116 = arith.addf %114, %115 : vector<25x1024xf32>
    %c256_i32_46 = arith.constant 256 : i32
    %117 = tpu.dynamic_rotate %116 by %c256_i32_46 dim 1 : vector<25x1024xf32>, i32 -> vector<25x1024xf32>
    %118 = arith.addf %116, %117 : vector<25x1024xf32>
    %c512_i32_47 = arith.constant 512 : i32
    %119 = tpu.dynamic_rotate %118 by %c512_i32_47 dim 1 : vector<25x1024xf32>, i32 -> vector<25x1024xf32>
    %120 = arith.addf %118, %119 : vector<25x1024xf32>
    %cst_48 = arith.constant 1.000000e-16 : f32
    %121 = vector.broadcast %cst_48 : f32 to vector<25x1024xf32>
    %122 = arith.maximumf %120, %121 : vector<25x1024xf32>
    %123 = math.rsqrt %122 : vector<25x1024xf32>
    %124 = arith.truncf %123 : vector<25x1024xf32> to vector<25x1024xbf16>
    %125 = arith.mulf %107, %124 : vector<25x1024xbf16>
    %126 = arith.truncf %106 : vector<10x1024xf32> to vector<10x1024xbf16>
    %127 = arith.mulf %106, %106 : vector<10x1024xf32>
    %c16_i32_49 = arith.constant 16 : i32
    %128 = tpu.dynamic_rotate %127 by %c16_i32_49 dim 1 : vector<10x1024xf32>, i32 -> vector<10x1024xf32>
    %129 = arith.addf %127, %128 : vector<10x1024xf32>
    %c32_i32_50 = arith.constant 32 : i32
    %130 = tpu.dynamic_rotate %129 by %c32_i32_50 dim 1 : vector<10x1024xf32>, i32 -> vector<10x1024xf32>
    %131 = arith.addf %129, %130 : vector<10x1024xf32>
    %c64_i32_51 = arith.constant 64 : i32
    %132 = tpu.dynamic_rotate %131 by %c64_i32_51 dim 1 : vector<10x1024xf32>, i32 -> vector<10x1024xf32>
    %133 = arith.addf %131, %132 : vector<10x1024xf32>
    %c128_i32_52 = arith.constant 128 : i32
    %134 = tpu.dynamic_rotate %133 by %c128_i32_52 dim 1 : vector<10x1024xf32>, i32 -> vector<10x1024xf32>
    %135 = arith.addf %133, %134 : vector<10x1024xf32>
    %c256_i32_53 = arith.constant 256 : i32
    %136 = tpu.dynamic_rotate %135 by %c256_i32_53 dim 1 : vector<10x1024xf32>, i32 -> vector<10x1024xf32>
    %137 = arith.addf %135, %136 : vector<10x1024xf32>
    %c512_i32_54 = arith.constant 512 : i32
    %138 = tpu.dynamic_rotate %137 by %c512_i32_54 dim 1 : vector<10x1024xf32>, i32 -> vector<10x1024xf32>
    %139 = arith.addf %137, %138 : vector<10x1024xf32>
    %cst_55 = arith.constant 1.000000e-16 : f32
    %140 = vector.broadcast %cst_55 : f32 to vector<10x1024xf32>
    %141 = arith.maximumf %139, %140 : vector<10x1024xf32>
    %142 = math.rsqrt %141 : vector<10x1024xf32>
    %143 = arith.truncf %142 : vector<10x1024xf32> to vector<10x1024xbf16>
    %144 = arith.mulf %126, %143 : vector<10x1024xbf16>
    %cst_56 = arith.constant dense<0.000000e+00> : vector<10x25xf32>
    %145 = tpu.matmul %144, %125, %cst_56 {dimension_numbers = #tpu.dot_dimension_numbers<[1], [1], [0], [0], [0, 0, 1, 0], [], []>} : vector<10x1024xbf16>, vector<25x1024xbf16>, vector<10x25xf32> -> vector<10x25xf32>
    %cst_57 = arith.constant dense<0.000000e+00> : vector<10x5xf32>
    %146 = tpu.matmul %145, %0, %cst_57 {dimension_numbers = #tpu.dot_dimension_numbers<[1], [0], [0], [1], [0, 0, 1, 1], [], []>} : vector<10x25xf32>, vector<25x5xf32>, vector<10x5xf32> -> vector<10x5xf32>
    %147 = arith.index_cast %c2_i32 : i32 to index
    %c0_58 = arith.constant 0 : index
    %c0_59 = arith.constant 0 : index
    %148 = vector.load %arg4[%147, %c0_58, %c0_59] : memref<4x10x5xf32, #tpu.memory_space<vmem>>, vector<1x10x5xf32>
    %149 = vector.shape_cast %148 : vector<1x10x5xf32> to vector<10x5xf32>
    %150 = vector.shape_cast %146 : vector<10x5xf32> to vector<1x10x5xf32>
    tpu.vector_store %arg4[%147, %c0_58, %c0_59], %150 {strides = array<i32>} : memref<4x10x5xf32, #tpu.memory_space<vmem>>, vector<1x10x5xf32>,
    %c3_i32 = arith.constant 3 : i32
    %151 = arith.index_cast %c3_i32 : i32 to index
    %c0_60 = arith.constant 0 : index
    %c0_61 = arith.constant 0 : index
    %152 = vector.load %arg1[%151, %c0_60, %c0_61] : memref<4x25x1024xf32, #tpu.memory_space<vmem>>, vector<1x25x1024xf32>
    %153 = vector.shape_cast %152 : vector<1x25x1024xf32> to vector<25x1024xf32>
    %154 = arith.index_cast %c3_i32 : i32 to index
    %c0_62 = arith.constant 0 : index
    %c0_63 = arith.constant 0 : index
    %155 = vector.load %arg2[%154, %c0_62, %c0_63] : memref<4x10x1024xf32, #tpu.memory_space<vmem>>, vector<1x10x1024xf32>
    %156 = vector.shape_cast %155 : vector<1x10x1024xf32> to vector<10x1024xf32>
    %157 = arith.truncf %153 : vector<25x1024xf32> to vector<25x1024xbf16>
    %158 = arith.mulf %153, %153 : vector<25x1024xf32>
    %c16_i32_64 = arith.constant 16 : i32
    %159 = tpu.dynamic_rotate %158 by %c16_i32_64 dim 1 : vector<25x1024xf32>, i32 -> vector<25x1024xf32>
    %160 = arith.addf %158, %159 : vector<25x1024xf32>
    %c32_i32_65 = arith.constant 32 : i32
    %161 = tpu.dynamic_rotate %160 by %c32_i32_65 dim 1 : vector<25x1024xf32>, i32 -> vector<25x1024xf32>
    %162 = arith.addf %160, %161 : vector<25x1024xf32>
    %c64_i32_66 = arith.constant 64 : i32
    %163 = tpu.dynamic_rotate %162 by %c64_i32_66 dim 1 : vector<25x1024xf32>, i32 -> vector<25x1024xf32>
    %164 = arith.addf %162, %163 : vector<25x1024xf32>
    %c128_i32_67 = arith.constant 128 : i32
    %165 = tpu.dynamic_rotate %164 by %c128_i32_67 dim 1 : vector<25x1024xf32>, i32 -> vector<25x1024xf32>
    %166 = arith.addf %164, %165 : vector<25x1024xf32>
    %c256_i32_68 = arith.constant 256 : i32
    %167 = tpu.dynamic_rotate %166 by %c256_i32_68 dim 1 : vector<25x1024xf32>, i32 -> vector<25x1024xf32>
    %168 = arith.addf %166, %167 : vector<25x1024xf32>
    %c512_i32_69 = arith.constant 512 : i32
    %169 = tpu.dynamic_rotate %168 by %c512_i32_69 dim 1 : vector<25x1024xf32>, i32 -> vector<25x1024xf32>
    %170 = arith.addf %168, %169 : vector<25x1024xf32>
    %cst_70 = arith.constant 1.000000e-16 : f32
    %171 = vector.broadcast %cst_70 : f32 to vector<25x1024xf32>
    %172 = arith.maximumf %170, %171 : vector<25x1024xf32>
    %173 = math.rsqrt %172 : vector<25x1024xf32>
    %174 = arith.truncf %173 : vector<25x1024xf32> to vector<25x1024xbf16>
    %175 = arith.mulf %157, %174 : vector<25x1024xbf16>
    %176 = arith.truncf %156 : vector<10x1024xf32> to vector<10x1024xbf16>
    %177 = arith.mulf %156, %156 : vector<10x1024xf32>
    %c16_i32_71 = arith.constant 16 : i32
    %178 = tpu.dynamic_rotate %177 by %c16_i32_71 dim 1 : vector<10x1024xf32>, i32 -> vector<10x1024xf32>
    %179 = arith.addf %177, %178 : vector<10x1024xf32>
    %c32_i32_72 = arith.constant 32 : i32
    %180 = tpu.dynamic_rotate %179 by %c32_i32_72 dim 1 : vector<10x1024xf32>, i32 -> vector<10x1024xf32>
    %181 = arith.addf %179, %180 : vector<10x1024xf32>
    %c64_i32_73 = arith.constant 64 : i32
    %182 = tpu.dynamic_rotate %181 by %c64_i32_73 dim 1 : vector<10x1024xf32>, i32 -> vector<10x1024xf32>
    %183 = arith.addf %181, %182 : vector<10x1024xf32>
    %c128_i32_74 = arith.constant 128 : i32
    %184 = tpu.dynamic_rotate %183 by %c128_i32_74 dim 1 : vector<10x1024xf32>, i32 -> vector<10x1024xf32>
    %185 = arith.addf %183, %184 : vector<10x1024xf32>
    %c256_i32_75 = arith.constant 256 : i32
    %186 = tpu.dynamic_rotate %185 by %c256_i32_75 dim 1 : vector<10x1024xf32>, i32 -> vector<10x1024xf32>
    %187 = arith.addf %185, %186 : vector<10x1024xf32>
    %c512_i32_76 = arith.constant 512 : i32
    %188 = tpu.dynamic_rotate %187 by %c512_i32_76 dim 1 : vector<10x1024xf32>, i32 -> vector<10x1024xf32>
    %189 = arith.addf %187, %188 : vector<10x1024xf32>
    %cst_77 = arith.constant 1.000000e-16 : f32
    %190 = vector.broadcast %cst_77 : f32 to vector<10x1024xf32>
    %191 = arith.maximumf %189, %190 : vector<10x1024xf32>
    %192 = math.rsqrt %191 : vector<10x1024xf32>
    %193 = arith.truncf %192 : vector<10x1024xf32> to vector<10x1024xbf16>
    %194 = arith.mulf %176, %193 : vector<10x1024xbf16>
    %cst_78 = arith.constant dense<0.000000e+00> : vector<10x25xf32>
    %195 = tpu.matmul %194, %175, %cst_78 {dimension_numbers = #tpu.dot_dimension_numbers<[1], [1], [0], [0], [0, 0, 1, 0], [], []>} : vector<10x1024xbf16>, vector<25x1024xbf16>, vector<10x25xf32> -> vector<10x25xf32>
    %cst_79 = arith.constant dense<0.000000e+00> : vector<10x5xf32>
    %196 = tpu.matmul %195, %0, %cst_79 {dimension_numbers = #tpu.dot_dimension_numbers<[1], [0], [0], [1], [0, 0, 1, 1], [], []>} : vector<10x25xf32>, vector<25x5xf32>, vector<10x5xf32> -> vector<10x5xf32>
    %197 = arith.index_cast %c3_i32 : i32 to index
    %c0_80 = arith.constant 0 : index
    %c0_81 = arith.constant 0 : index
    %198 = vector.load %arg4[%197, %c0_80, %c0_81] : memref<4x10x5xf32, #tpu.memory_space<vmem>>, vector<1x10x5xf32>
    %199 = vector.shape_cast %198 : vector<1x10x5xf32> to vector<10x5xf32>
    %200 = vector.shape_cast %196 : vector<10x5xf32> to vector<1x10x5xf32>
    tpu.vector_store %arg4[%197, %c0_80, %c0_81], %200 {strides = array<i32>} : memref<4x10x5xf32, #tpu.memory_space<vmem>>, vector<1x10x5xf32>,
    %c4_i32 = arith.constant 4 : i32
    return
  }
  func.func @transform_0(%arg0: i32) -> (i32, i32, i32) {
    %c0_i32 = arith.constant 0 : i32
    %c0_i32_0 = arith.constant 0 : i32
    %c0_i32_1 = arith.constant 0 : i32
    return %arg0, %c0_i32, %c0_i32_0 : i32, i32, i32
  }
  func.func @transform_1(%arg0: i32) -> (i32, i32, i32) {
    %c0_i32 = arith.constant 0 : i32
    %c0_i32_0 = arith.constant 0 : i32
    %c0_i32_1 = arith.constant 0 : i32
    return %arg0, %c0_i32, %c0_i32_0 : i32, i32, i32
  }
  func.func @transform_2(%arg0: i32) -> (i32, i32) {
    %c0_i32 = arith.constant 0 : i32
    %c0_i32_0 = arith.constant 0 : i32
    %c0_i32_1 = arith.constant 0 : i32
    return %c0_i32, %c0_i32_0 : i32, i32
  }
  func.func @transform_3(%arg0: i32) -> (i32, i32, i32) {
    %c0_i32 = arith.constant 0 : i32
    %c0_i32_0 = arith.constant 0 : i32
    %c0_i32_1 = arith.constant 0 : i32
    return %arg0, %c0_i32, %c0_i32_0 : i32, i32, i32
  }
}

</mosaic_0001>

<bundles_post_ra>
// kernel: innerproduct_similarity_batched.1
= control target key start
LH: loop header
LB: loop body
LE: loop exit
PB: predicated region body
PF: predicated region fallthrough
CT: control target
= control target key end

     0   :  { %s6265_s12 = smov 0   ;;  %s15077_s0 = inlined_call_operand.vmem [shape: f32[8,25,1024], index: 0, kind: input, shape index: {}]   ;;  %s15078_s1 = inlined_call_operand.vmem [shape: f32[8,10,1024], index: 1, kind: input, shape index: {}]   ;;  %s15079_s2 = inlined_call_operand.vmem [shape: f32[25,5], index: 2, kind: input, shape index: {}]   ;;  %s15080_s3 = inlined_call_operand.vmem [shape: f32[8,10,5], index: 3, kind: output, shape index: {}]  }
   0x1 LB: > { %s5816_s13 = sadd.s32 4294967295, %s6240_s12   ;;  %p5820_p0 = scmp.ge.s32.totalorder %s6240_s12, 1  ;;  %s6240_s12 = sphi %s6265_s12, %s13_s12  }
   0x2   : > { %p151_p1 = scmp.lt.s32.totalorder %s6240_s12, 3 }
   0x4   : > { %p152_p2 = pnand %p5820_p0, %p151_p1 }
   0x6   : > { %155 = sbr.rel (%p152_p2) target bundleno = 3303 (0xce7), region = 32 }
   0xb   : > { %s5821_s14 = sshll.u32 %s5816_s13, 2  ;;  %s6242_s19 = smov 16  }
   0xc   : > { %p184_p3 = scmp.lt.s32.totalorder %s5821_s14, 7  ;;  %s6243_s20 = smov 32  }
   0xd   : > { %s6244_s21 = smov 64  }
   0xe   : > { %s16447_s14 = smov (!%p184_p3, %s5821_s14), 7 }
   0xf   : > { %s5994_s15 = sshll.u32 %s16447_s14, 8  ;;  %s5995_s22 = sshll.u32 %s16447_s14, 7 }
  0x10   : > { %s6279_s18 = scalar_lea.vmem %s15077_s0, %s5994_s15  ;;  %s7006_s25 = scalar_lea.vmem %s15078_s1, %s5995_s22 }
  0x11   : > { %v225_v0 = vld [vmem:[%s6279_s18 + $0x80] sm:$0xff]  ;;  %v226_v1 = vld [vmem:[%s6279_s18 + $0x88] sm:$0xff]  ;;  %v219_v13 = vld [vmem:[%s6279_s18 + $0x50] sm:$0xff]  ;;  %s5996_s7 = sshll.u32 %s16447_s14, 4 }
  0x12   : > { %v210_v2 = vld [vmem:[%s6279_s18 + $0x8] sm:$0xff]  ;;  %v6284_v3 = vmul.f32 %v225_v0, %v225_v0  ;;  %v6286_v4 = vpack.c.bf16 %v226_v1, %v225_v0  ;;  %v209_v6 = vld [vmem:[%s6279_s18] sm:$0xff]  ;;  %v220_v14 = vld [vmem:[%s6279_s18 + $0x58] sm:$0xff]  ;;  %v6331_v25 = vmul.f32 %v226_v1, %v226_v1  ;;  %v6353_v36 = vmul.f32 %v219_v13, %v219_v13  ;;  %s9192_s10 = scalar_lea.vmem %s15080_s3, %s5996_s7 }
  0x13   : > { %v6288_v5 = vmul.f32 %v210_v2, %v210_v2  ;;  %v6291_v7 = vmul.f32 %v209_v6, %v209_v6  ;;  %v6293_v8 = vpack.c.bf16 %v210_v2, %v209_v6  ;;  %v218_v9 = vld [vmem:[%s6279_s18 + $0x48] sm:$0xff]  ;;  %v217_v10 = vld [vmem:[%s6279_s18 + $0x40] sm:$0xff]  ;;  %v211_v15 = vld [vmem:[%s6279_s18 + $0x10] sm:$0xff]  ;;  %v6309_v16 = vpack.c.bf16 %v220_v14, %v219_v13 }
  0x14   : > { %15426 = vst [vmem:[#allocation2_spill] sm:$0xff] %v6286_v4  ;;  %309 = vrot.lane.b32.xlu1 %v6284_v3, %s6242_s19  ;;  %v6301_v11 = vpack.c.bf16 %v218_v9, %v217_v10  ;;  %v233_v12 = vld [vmem:[%s6279_s18 + $0xc0] sm:$0x1]  ;;  %v212_v17 = vld [vmem:[%s6279_s18 + $0x18] sm:$0xff]  ;;  %v6316_v20 = vmul.f32 %v218_v9, %v218_v9  ;;  %v6318_v21 = vmul.f32 %v217_v10, %v217_v10  ;;  %v234_v22 = vld [vmem:[%s6279_s18 + $0xc8] sm:$0x1] }
  0x15   : > { %15427 = vst [vmem:[#allocation3_spill] sm:$0xff] %v6293_v8  ;;  %313 = vrot.lane.b32.xlu2 %v6288_v5, %s6242_s19  ;;  %305 = vrot.lane.b32.xlu0 %v6291_v7, %s6242_s19  ;;  %v6312_v18 = vpack.c.bf16 %v212_v17, %v211_v15  ;;  %v6314_v19 = vmul.f32 %v233_v12, %v233_v12  ;;  %v213_v26 = vld [vmem:[%s6279_s18 + $0x20] sm:$0xff]  ;;  %v214_v27 = vld [vmem:[%s6279_s18 + $0x28] sm:$0xff] }
  0x16   : > { %15428 = vst [vmem:[#allocation4_spill] sm:$0xff] %v6301_v11  ;;  %v6327_v23 = vmul.f32 %v234_v22, %v234_v22  ;;  %v6329_v24 = vmul.f32 %v211_v15, %v211_v15  ;;  %v227_v28 = vld [vmem:[%s6279_s18 + $0x90] sm:$0xff]  ;;  %v6340_v29 = vpack.c.bf16 %v214_v27, %v213_v26  ;;  %v229_v31 = vld [vmem:[%s6279_s18 + $0xa0] sm:$0xff]  ;;  %v230_v32 = vld [vmem:[%s6279_s18 + $0xa8] sm:$0xff]  ;;  %v6370_v44 = vmul.f32 %v220_v14, %v220_v14 }
  0x17   : > { %15429 = vst [vmem:[#allocation5_spill] sm:$0xff] %v6309_v16  ;;  %v235_v30 = vld [vmem:[%s6279_s18 + $0xd0] sm:$0x1]  ;;  %v6347_v33 = vpack.c.bf16 %v230_v32, %v229_v31  ;;  %v6349_v34 = vmul.f32 %v227_v28, %v227_v28  ;;  %v221_v37 = vld [vmem:[%s6279_s18 + $0x60] sm:$0xff]  ;;  %v238_v39 = vld [vmem:[%s6279_s18 + $0xe8] sm:$0x1]  ;;  %v6374_v46 = vmul.f32 %v212_v17, %v212_v17  ;;  %v6387_v51 = vmul.f32 %v213_v26, %v213_v26 }
  0x18   : > { %15430 = vst [vmem:[#allocation6_spill] sm:$0xff] %v6312_v18  ;;  %v6351_v35 = vmul.f32 %v235_v30, %v235_v30  ;;  %v237_v38 = vld [vmem:[%s6279_s18 + $0xe0] sm:$0x1]  ;;  %v222_v40 = vld [vmem:[%s6279_s18 + $0x68] sm:$0xff]  ;;  %v228_v43 = vld [vmem:[%s6279_s18 + $0x98] sm:$0xff]  ;;  %v6389_v52 = vmul.f32 %v221_v37, %v221_v37  ;;  %v6409_v61 = vmul.f32 %v214_v27, %v214_v27  ;;  %v6411_v62 = vmul.f32 %v229_v31, %v229_v31 }
  0x19   : > { %15431 = vst [vmem:[#allocation7_spill] sm:$0xff] %v6340_v29  ;;  %v6363_v41 = vpack.c.bf16 %v238_v39, %v237_v38  ;;  %v6365_v42 = vpack.c.bf16 %v222_v40, %v221_v37  ;;  %v6372_v45 = vmul.f32 %v228_v43, %v228_v43  ;;  %v215_v47 = vld [vmem:[%s6279_s18 + $0x30] sm:$0xff]  ;;  %v216_v48 = vld [vmem:[%s6279_s18 + $0x38] sm:$0xff]  ;;  %v6407_v60 = vmul.f32 %v237_v38, %v237_v38 }
  0x1a   : > { %15432 = vst [vmem:[#allocation8_spill] sm:$0xff] %v6347_v33  ;;  %v236_v49 = vld [vmem:[%s6279_s18 + $0xd8] sm:$0x1]  ;;  %v6385_v50 = vpack.c.bf16 %v216_v48, %v215_v47  ;;  %v223_v54 = vld [vmem:[%s6279_s18 + $0x70] sm:$0xff]  ;;  %v6423_v2 = vmul.f32 %v230_v32, %v230_v32  ;;  %v6425_v6 = vmul.f32 %v238_v39, %v238_v39  ;;  %v6427_v9 = vmul.f32 %v222_v40, %v222_v40 }
  0x1b   : > { %15433 = vst [vmem:[#allocation9_spill] sm:$0xff] %v6363_v41  ;;  %v6391_v53 = vmul.f32 %v236_v49, %v236_v49  ;;  %v224_v55 = vld [vmem:[%s6279_s18 + $0x78] sm:$0xff]  ;;  %v239_v57 = vld [vmem:[%s6279_s18 + $0xf0] sm:$0x1]  ;;  %v6435_v10 = vmul.f32 %v223_v54, %v223_v54  ;;  %v6439_v13 = vmul.f32 %v215_v47, %v215_v47  ;;  %v6447_v14 = vmul.f32 %v216_v48, %v216_v48 }
  0x1c   : > { %311 = vrot.lane.b32.xlu1 %v6314_v19, %s6242_s19  ;;  %15434 = vst [vmem:[#allocation10_spill] sm:$0xff] %v6365_v42  ;;  %v6399_v56 = vpack.c.bf16 %v224_v55, %v223_v54  ;;  %v240_v58 = vld [vmem:[%s6279_s18 + $0xf8] sm:$0x1]  ;;  %v231_v63 = vld [vmem:[%s6279_s18 + $0xb0] sm:$0xff]  ;;  %v6449_v15 = vmul.f32 %v224_v55, %v224_v55  ;;  %v6451_v17 = vmul.f32 %v239_v57, %v239_v57 }
  0x1d   : > { %315 = vrot.lane.b32.xlu2 %v6316_v20, %s6242_s19  ;;  %307 = vrot.lane.b32.xlu0 %v6318_v21, %s6242_s19  ;;  %15435 = vst [vmem:[#allocation11_spill] sm:$0xff] %v6385_v50  ;;  %v6405_v59 = vpack.c.bf16 %v240_v58, %v239_v57  ;;  %v232_v0 = vld [vmem:[%s6279_s18 + $0xb8] sm:$0xff]  ;;  %v6437_v12 = vmul.f32 %v231_v63, %v231_v63 }
  0x1e   : > { %15436 = vst [vmem:[#allocation12_spill] sm:$0xff] %v6399_v56  ;;  %v6419_v1 = vpack.c.bf16 %v232_v0, %v231_v63  ;;  %v6459_v22 = vmul.f32 %v240_v58, %v240_v58  ;;  %v6461_v26 = vmul.f32 %v232_v0, %v232_v0  ;;  %v369_v0 = vlaneseq }
  0x1f   : > { %15437 = vst [vmem:[#allocation13_spill] sm:$0xff] %v6405_v59 }
  0x20   : > { %15438 = vst [vmem:[#allocation14_spill] sm:$0xff] %v6419_v1  ;;  %v6495_v29 = vand.u32 127, %v369_v0 }
  0x21   : > { %15439 = vst [vmem:[#allocation15_spill] sm:$0xff] %v6449_v15 }
  0x22   : > { %15440 = vst [vmem:[#allocation16_spill] sm:$0xff] %v6461_v26  ;;  %vm15330_vm0 = vcmp.lt.s32.totalorder %v6495_v29, 16  ;;  %vm15329_vm1 = vcmp.lt.s32.totalorder %v6495_v29, 32  ;;  %vm15220_vm2 = vcmp.lt.s32.totalorder %v6495_v29, 64 }
  0x24   : > { %319 = vrot.lane.b32.xlu1 %v6327_v23, %s6242_s19 }
  0x25   : > { %321 = vrot.lane.b32.xlu2 %v6329_v24, %s6242_s19  ;;  %317 = vrot.lane.b32.xlu0 %v6331_v25, %s6242_s19 }
  0x2c   : > { %325 = vrot.lane.b32.xlu1 %v6349_v34, %s6242_s19 }
  0x2d   : > { %327 = vrot.lane.b32.xlu2 %v6351_v35, %s6242_s19  ;;  %323 = vrot.lane.b32.xlu0 %v6353_v36, %s6242_s19 }
  0x34   : > { %331 = vrot.lane.b32.xlu1 %v6370_v44, %s6242_s19 }
  0x35   : > { %333 = vrot.lane.b32.xlu2 %v6372_v45, %s6242_s19  ;;  %329 = vrot.lane.b32.xlu0 %v6374_v46, %s6242_s19 }
  0x3c   : > { %337 = vrot.lane.b32.xlu1 %v6387_v51, %s6242_s19 }
  0x3d   : > { %339 = vrot.lane.b32.xlu2 %v6389_v52, %s6242_s19  ;;  %335 = vrot.lane.b32.xlu0 %v6391_v53, %s6242_s19 }
  0x44   : > { %343 = vrot.lane.b32.xlu1 %v6407_v60, %s6242_s19 }
  0x45   : > { %345 = vrot.lane.b32.xlu2 %v6409_v61, %s6242_s19  ;;  %341 = vrot.lane.b32.xlu0 %v6411_v62, %s6242_s19 }
  0x4c   : > { %349 = vrot.lane.b32.xlu1 %v6423_v2, %s6242_s19 }
  0x4d   : > { %351 = vrot.lane.b32.xlu2 %v6425_v6, %s6242_s19  ;;  %347 = vrot.lane.b32.xlu0 %v6427_v9, %s6242_s19 }
  0x54   : > { %355 = vrot.lane.b32.xlu1 %v6435_v10, %s6242_s19 }
  0x55   : > { %357 = vrot.lane.b32.xlu2 %v6437_v12, %s6242_s19  ;;  %353 = vrot.lane.b32.xlu0 %v6439_v13, %s6242_s19 }
  0x5c   : > { %361 = vrot.lane.b32.xlu1 %v6447_v14, %s6242_s19 }
  0x5d   : > { %363 = vrot.lane.b32.xlu2 %v6449_v15, %s6242_s19  ;;  %359 = vrot.lane.b32.xlu0 %v6451_v17, %s6242_s19 }
  0x64   : > { %367 = vrot.lane.b32.xlu1 %v6459_v22, %s6242_s19 }
  0x65   : > { %365 = vrot.lane.b32.xlu0 %v6461_v26, %s6242_s19 }
  0x6f   : > { %v6467_v27 = vpop.permute.xlu2 %313 }
  0x77   : > { %v6469_v28 = vpop.permute.xlu2 %315 }
  0x7f   : > { %v6471_v30 = vpop.permute.xlu2 %321 }
  0x86   : > { %v310_v31 = vpop.permute.xlu1 %309 }
  0x87   : > { %v6473_v32 = vpop.permute.xlu2 %327  ;;  %v306_v37 = vpop.permute.xlu0 %305 }
  0x88   : > { %v396_v0 = vsel %vm15330_vm0, %v306_v37, %v6467_v27 }
  0x89   : > { %v6520_v8 = vadd.f32 %v396_v0, %v6288_v5 }
  0x8b   : > { %15443 = vst [vmem:[#allocation19_spill] sm:$0xff] %v6520_v8 }
  0x8e   : > { %v312_v38 = vpop.permute.xlu1 %311 }
  0x8f   : > { %v6475_v39 = vpop.permute.xlu2 %333  ;;  %v308_v40 = vpop.permute.xlu0 %307 }
  0x96   : > { %v6477_v43 = vpop.permute.xlu1 %319 }
  0x97   : > { %v6479_v47 = vpop.permute.xlu2 %339  ;;  %v318_v48 = vpop.permute.xlu0 %317 }
  0x9e   : > { %v6481_v49 = vpop.permute.xlu1 %325 }
  0x9f   : > { %v6483_v54 = vpop.permute.xlu2 %345  ;;  %v324_v55 = vpop.permute.xlu0 %323  ;;  %v394_v5 = vsel %vm15330_vm0, %v318_v48, %v6481_v49 }
  0xa6   : > { %v6485_v57 = vpop.permute.xlu1 %331 }
  0xa7   : > { %v6487_v58 = vpop.permute.xlu2 %351  ;;  %v330_v63 = vpop.permute.xlu0 %329 }
  0xae   : > { %v6489_v56 = vpop.permute.xlu1 %337 }
  0xaf   : > { %v6491_v50 = vpop.permute.xlu2 %357  ;;  %v6493_v42 = vpop.permute.xlu0 %335 }
  0xb6   : > { %v6498_v59 = vpop.permute.xlu1 %343 }
  0xb7   : > { %v6500_v1 = vpop.permute.xlu2 %363  ;;  %v6505_v33 = vpop.permute.xlu0 %341 }
  0xb8   : > { %15441 = vst [vmem:[#allocation17_spill] sm:$0xff] %v6500_v1  ;;  %v401_v41 = vsel %vm15330_vm0, %v6500_v1, %v308_v40  ;;  %v6547_v1 = vadd.f32 %v394_v5, %v6349_v34 }
  0xb9   : > { %v6508_v16 = vadd.f32 %v401_v41, %v6318_v21  ;;  %v399_v21 = vsel %vm15330_vm0, %v312_v38, %v6477_v43 }
  0xbb   : > { %15442 = vst [vmem:[#allocation18_spill] sm:$0xff] %v6508_v16  ;;  %438 = vrot.lane.b32.xlu0 %v6508_v16, %s6243_s20  ;;  %v6532_v16 = vadd.f32 %v399_v21, %v6327_v23  ;;  %v389_v23 = vsel %vm15330_vm0, %v324_v55, %v6485_v57 }
  0xbc   : > { %v6567_v34 = vadd.f32 %v389_v23, %v6370_v44 }
  0xbd   : > { %15444 = vst [vmem:[#allocation20_spill] sm:$0xff] %v6532_v16 }
  0xbe   : > { %v6515_v18 = vpop.permute.xlu1 %349 }
  0xbf   : > { %v6517_v11 = vpop.permute.xlu0 %347 }
  0xc3   : > { %444 = vrot.lane.b32.xlu0 %v6520_v8, %s6243_s20 }
  0xc6   : > { %v6527_v41 = vpop.permute.xlu1 %355 }
  0xc7   : > { %v6529_v4 = vpop.permute.xlu0 %353 }
  0xcb   : > { %450 = vrot.lane.b32.xlu0 %v6532_v16, %s6243_s20 }
  0xce   : > { %v362_v0 = vpop.permute.xlu1 %361 }
  0xcf   : > { %v400_v8 = vsel %vm15330_vm0, %v362_v0, %v306_v37  ;;  %v6541_v15 = vpop.permute.xlu0 %359 }
  0xd0   : > { %v6544_v26 = vadd.f32 %v400_v8, %v6291_v7 }
  0xd2   : > { %436 = vrot.lane.b32.xlu2 %v6544_v26, %s6243_s20 }
  0xd3   : > { %456 = vrot.lane.b32.xlu0 %v6547_v1, %s6243_s20 }
  0xd6   : > { %v368_v21 = vpop.permute.xlu1 %367 }
  0xd7   : > { %v403_v37 = vsel %vm15330_vm0, %v368_v21, %v312_v38  ;;  %v6558_v16 = vpop.permute.xlu0 %365  ;;  %v398_v38 = vsel %vm15330_vm0, %v310_v31, %v318_v48 }
  0xd8   : > { %v402_v7 = vsel %vm15330_vm0, %v6558_v16, %v310_v31  ;;  %v6564_v8 = vadd.f32 %v403_v37, %v6314_v19  ;;  %v384_v19 = vsel %vm15330_vm0, %v330_v63, %v6489_v56  ;;  %v6587_v44 = vadd.f32 %v398_v38, %v6331_v25 }
  0xd9   : > { %v6570_v5 = vadd.f32 %v402_v7, %v6284_v3  ;;  %v397_v3 = vsel %vm15330_vm0, %v308_v40, %v6469_v28  ;;  %v6590_v23 = vadd.f32 %v384_v19, %v6387_v51  ;;  %v393_v25 = vsel %vm15330_vm0, %v6469_v28, %v324_v55 }
  0xda   : > { %442 = vrot.lane.b32.xlu2 %v6564_v8, %s6243_s20  ;;  %v6593_v37 = vadd.f32 %v397_v3, %v6316_v20  ;;  %v387_v51 = vsel %vm15330_vm0, %v6493_v42, %v6498_v59  ;;  %v392_v20 = vsel %vm15330_vm0, %v6467_v27, %v6471_v30  ;;  %v6613_v31 = vadd.f32 %v393_v25, %v6353_v36 }
  0xdb   : > { %462 = vrot.lane.b32.xlu0 %v6567_v34, %s6243_s20  ;;  %440 = vrot.lane.b32.xlu1 %v6570_v5, %s6243_s20  ;;  %v6616_v40 = vadd.f32 %v387_v51, %v6407_v60  ;;  %v6619_v48 = vadd.f32 %v392_v20, %v6329_v24  ;;  %v388_v36 = vsel %vm15330_vm0, %v6471_v30, %v330_v63 }
  0xdc   : > { %v382_v60 = vsel %vm15330_vm0, %v6505_v33, %v6515_v18  ;;  %v395_v24 = vsel %vm15330_vm0, %v6477_v43, %v6473_v32  ;;  %v6639_v27 = vadd.f32 %v388_v36, %v6374_v46  ;;  %v391_v46 = vsel %vm15330_vm0, %v6473_v32, %v6493_v42 }
  0xdd   : > { %v6642_v28 = vadd.f32 %v382_v60, %v6423_v2  ;;  %v6645_v55 = vadd.f32 %v395_v24, %v6351_v35  ;;  %v377_v35 = vsel %vm15330_vm0, %v6517_v11, %v6527_v41  ;;  %v390_v2 = vsel %vm15330_vm0, %v6481_v49, %v6475_v39 }
  0xde   : > { %v6666_v30 = vadd.f32 %v391_v46, %v6391_v53  ;;  %v6669_v43 = vadd.f32 %v377_v35, %v6435_v10  ;;  %v6672_v63 = vadd.f32 %v390_v2, %v6372_v45  ;;  %v386_v42 = vsel %vm15330_vm0, %v6475_v39, %v6505_v33 }
  0xdf   : > { %v372_v53 = vsel %vm15330_vm0, %v6529_v4, %v362_v0  ;;  %v385_v45 = vsel %vm15330_vm0, %v6485_v57, %v6479_v47  ;;  %v6692_v10 = vadd.f32 %v386_v42, %v6411_v62  ;;  %v381_v33 = vsel %vm15330_vm0, %v6479_v47, %v6517_v11 }
  0xe0   : > { %v6695_v32 = vadd.f32 %v372_v53, %v6447_v14  ;;  %v6698_v49 = vadd.f32 %v385_v45, %v6389_v52  ;;  %v375_v62 = vsel %vm15330_vm0, %v6541_v15, %v368_v21  ;;  %v380_v52 = vsel %vm15330_vm0, %v6489_v56, %v6483_v54 }
  0xe1   : > { %v6718_v14 = vadd.f32 %v381_v33, %v6427_v9  ;;  %v6721_v39 = vadd.f32 %v375_v62, %v6459_v22  ;;  %v6724_v57 = vadd.f32 %v380_v52, %v6409_v61  ;;  %v376_v11 = vsel %vm15330_vm0, %v6483_v54, %v6529_v4  ;;  %v15446_v22 = vld [vmem:[#allocation17_spill] sm:$0xff] }
  0xe2   : > { %448 = vrot.lane.b32.xlu2 %v6587_v44, %s6243_s20  ;;  %v383_v56 = vsel %vm15330_vm0, %v6498_v59, %v6487_v58  ;;  %v6741_v61 = vadd.f32 %v376_v11, %v6439_v13  ;;  %v379_v4 = vsel %vm15330_vm0, %v6487_v58, %v6541_v15  ;;  %v378_v59 = vsel %vm15330_vm0, %v6515_v18, %v6491_v50 }
  0xe3   : > { %468 = vrot.lane.b32.xlu0 %v6590_v23, %s6243_s20  ;;  %446 = vrot.lane.b32.xlu1 %v6593_v37, %s6243_s20  ;;  %15445 = vst [vmem:[#allocation21_spill] sm:$0xff] %v6721_v39  ;;  %v6744_v9 = vadd.f32 %v383_v56, %v6425_v6  ;;  %v6759_v13 = vadd.f32 %v379_v4, %v6451_v17  ;;  %v15447_v17 = vld [vmem:[#allocation16_spill] sm:$0xff] }
  0xe4   : > { %v6762_v6 = vadd.f32 %v378_v59, %v6437_v12  ;;  %v374_v15 = vsel %vm15330_vm0, %v6491_v50, %v6558_v16  ;;  %v373_v18 = vsel %vm15330_vm0, %v6527_v41, %v15446_v22  ;;  %v15448_v12 = vld [vmem:[#allocation15_spill] sm:$0xff] }
  0xe5   : > { %v6777_v47 = vadd.f32 %v374_v15, %v15447_v17  ;;  %v6780_v54 = vadd.f32 %v373_v18, %v15448_v12 }
  0xea   : > { %454 = vrot.lane.b32.xlu2 %v6613_v31, %s6243_s20 }
  0xeb   : > { %474 = vrot.lane.b32.xlu0 %v6616_v40, %s6243_s20  ;;  %452 = vrot.lane.b32.xlu1 %v6619_v48, %s6243_s20 }
  0xf2   : > { %460 = vrot.lane.b32.xlu2 %v6639_v27, %s6243_s20 }
  0xf3   : > { %480 = vrot.lane.b32.xlu0 %v6642_v28, %s6243_s20  ;;  %458 = vrot.lane.b32.xlu1 %v6645_v55, %s6243_s20 }
  0xfa   : > { %466 = vrot.lane.b32.xlu2 %v6666_v30, %s6243_s20 }
  0xfb   : > { %486 = vrot.lane.b32.xlu0 %v6669_v43, %s6243_s20  ;;  %464 = vrot.lane.b32.xlu1 %v6672_v63, %s6243_s20 }
 0x102   : > { %472 = vrot.lane.b32.xlu2 %v6692_v10, %s6243_s20 }
 0x103   : > { %492 = vrot.lane.b32.xlu0 %v6695_v32, %s6243_s20  ;;  %470 = vrot.lane.b32.xlu1 %v6698_v49, %s6243_s20 }
 0x10a   : > { %478 = vrot.lane.b32.xlu2 %v6718_v14, %s6243_s20 }
 0x10b   : > { %498 = vrot.lane.b32.xlu0 %v6721_v39, %s6243_s20  ;;  %476 = vrot.lane.b32.xlu1 %v6724_v57, %s6243_s20 }
 0x112   : > { %484 = vrot.lane.b32.xlu2 %v6741_v61, %s6243_s20 }
 0x113   : > { %482 = vrot.lane.b32.xlu1 %v6744_v9, %s6243_s20 }
 0x11a   : > { %490 = vrot.lane.b32.xlu2 %v6759_v13, %s6243_s20 }
 0x11b   : > { %488 = vrot.lane.b32.xlu1 %v6762_v6, %s6243_s20 }
 0x122   : > { %496 = vrot.lane.b32.xlu2 %v6777_v47, %s6243_s20 }
 0x123   : > { %494 = vrot.lane.b32.xlu1 %v6780_v54, %s6243_s20 }
 0x12c   : > { %v6786_v58 = vpop.permute.xlu2 %436 }
 0x12d   : > { %v439_v16 = vpop.permute.xlu0 %438 }
 0x134   : > { %v6788_v50 = vpop.permute.xlu2 %442 }
 0x135   : > { %v6790_v0 = vpop.permute.xlu0 %444 }
 0x13c   : > { %v6792_v41 = vpop.permute.xlu2 %448 }
 0x13d   : > { %v6794_v21 = vpop.permute.xlu0 %450 }
 0x144   : > { %v6796_v7 = vpop.permute.xlu2 %454 }
 0x145   : > { %v6798_v38 = vpop.permute.xlu0 %456 }
 0x14c   : > { %v6800_v19 = vpop.permute.xlu2 %460 }
 0x14d   : > { %v6802_v3 = vpop.permute.xlu0 %462  ;;  %v441_v25 = vpop.permute.xlu1 %440 }
 0x154   : > { %v6804_v51 = vpop.permute.xlu2 %466 }
 0x155   : > { %v6806_v20 = vpop.permute.xlu0 %468  ;;  %v447_v36 = vpop.permute.xlu1 %446 }
 0x15c   : > { %v6808_v60 = vpop.permute.xlu2 %472 }
 0x15d   : > { %v6810_v24 = vpop.permute.xlu0 %474  ;;  %v453_v46 = vpop.permute.xlu1 %452 }
 0x164   : > { %v6812_v35 = vpop.permute.xlu2 %478 }
 0x165   : > { %v6814_v2 = vpop.permute.xlu0 %480  ;;  %v459_v42 = vpop.permute.xlu1 %458 }
 0x16c   : > { %v6816_v53 = vpop.permute.xlu2 %484 }
 0x16d   : > { %v6818_v45 = vpop.permute.xlu0 %486  ;;  %v465_v33 = vpop.permute.xlu1 %464 }
 0x174   : > { %v6821_v62 = vpop.permute.xlu2 %490 }
 0x175   : > { %v6823_v52 = vpop.permute.xlu0 %492  ;;  %v471_v11 = vpop.permute.xlu1 %470 }
 0x176   : > { %v529_v56 = vsel %vm15329_vm1, %v6823_v52, %v6786_v58 }
 0x177   : > { %v6830_v4 = vadd.f32 %v529_v56, %v6544_v26  ;;  %v527_v56 = vsel %vm15329_vm1, %v441_v25, %v6792_v41 }
 0x179   : > { %15449 = vst [vmem:[#allocation17_spill] sm:$0xff] %v6830_v4  ;;  %565 = vrot.lane.b32.xlu1 %v6830_v4, %s6244_s21  ;;  %v526_v4 = vsel %vm15329_vm1, %v439_v16, %v447_v36 }
 0x17c   : > { %v6834_v59 = vpop.permute.xlu2 %496 }
 0x17d   : > { %v6836_v15 = vpop.permute.xlu0 %498  ;;  %v477_v22 = vpop.permute.xlu1 %476  ;;  %v531_v18 = vsel %vm15329_vm1, %v6834_v59, %v441_v25  ;;  %v522_v25 = vsel %vm15329_vm1, %v447_v36, %v6796_v7  ;;  %v517_v36 = vsel %vm15329_vm1, %v453_v46, %v6800_v19 }
 0x17e   : > { %v532_v17 = vsel %vm15329_vm1, %v6836_v15, %v6788_v50  ;;  %v6846_v26 = vadd.f32 %v531_v18, %v6570_v5  ;;  %v6863_v5 = vadd.f32 %v526_v4, %v6593_v37  ;;  %v521_v18 = vsel %vm15329_vm1, %v6790_v0, %v453_v46 }
 0x17f   : > { %v6849_v12 = vadd.f32 %v532_v17, %v6564_v8  ;;  %v6866_v8 = vadd.f32 %v527_v56, %v6587_v44  ;;  %v6881_v37 = vadd.f32 %v521_v18, %v6619_v48  ;;  %v6884_v44 = vadd.f32 %v522_v25, %v6613_v31  ;;  %v15451_v18 = vld [vmem:[#allocation18_spill] sm:$0xff] }
 0x180   : > { %569 = vrot.lane.b32.xlu0 %v6846_v26, %s6244_s21  ;;  %v524_v4 = vsel %vm15329_vm1, %v6794_v21, %v459_v42  ;;  %v6905_v25 = vadd.f32 %v517_v36, %v6639_v27  ;;  %v519_v27 = vsel %vm15329_vm1, %v6798_v38, %v465_v33 }
 0x181   : > { %15450 = vst [vmem:[#allocation16_spill] sm:$0xff] %v6849_v12  ;;  %571 = vrot.lane.b32.xlu1 %v6849_v12, %s6244_s21  ;;  %v6902_v48 = vadd.f32 %v524_v4, %v6645_v55  ;;  %v520_v55 = vsel %vm15329_vm1, %v459_v42, %v6804_v51  ;;  %v6927_v46 = vadd.f32 %v519_v27, %v6672_v63  ;;  %v15452_v4 = vld [vmem:[#allocation19_spill] sm:$0xff] }
 0x182   : > { %v6930_v36 = vadd.f32 %v520_v55, %v6666_v30  ;;  %v515_v63 = vsel %vm15329_vm1, %v465_v33, %v6808_v60  ;;  %v514_v30 = vsel %vm15329_vm1, %v6802_v3, %v471_v11 }
 0x183   : > { %v6955_v42 = vadd.f32 %v515_v63, %v6692_v10  ;;  %v509_v10 = vsel %vm15329_vm1, %v6806_v20, %v477_v22  ;;  %v513_v63 = vsel %vm15329_vm1, %v6800_v19, %v6806_v20 }
 0x185   : > { %v6860_v39 = vpop.permute.xlu1 %482 }
 0x188   : > { %575 = vrot.lane.b32.xlu0 %v6863_v5, %s6244_s21 }
 0x189   : > { %577 = vrot.lane.b32.xlu1 %v6866_v8, %s6244_s21 }
 0x18d   : > { %v6878_v17 = vpop.permute.xlu1 %488 }
 0x190   : > { %581 = vrot.lane.b32.xlu0 %v6881_v37, %s6244_s21 }
 0x191   : > { %583 = vrot.lane.b32.xlu1 %v6884_v44, %s6244_s21 }
 0x195   : > { %v6896_v56 = vpop.permute.xlu1 %494 }
 0x196   : > { %v530_v31 = vsel %vm15329_vm1, %v6896_v56, %v439_v16  ;;  %v525_v16 = vsel %vm15329_vm1, %v6786_v58, %v6790_v0  ;;  %v528_v58 = vsel %vm15329_vm1, %v6788_v50, %v6794_v21  ;;  %v6952_v0 = vadd.f32 %v514_v30, %v6698_v49 }
 0x197   : > { %v6908_v12 = vadd.f32 %v530_v31, %v15451_v18  ;;  %v6933_v31 = vadd.f32 %v525_v16, %v15452_v4  ;;  %v15453_v18 = vld [vmem:[#allocation20_spill] sm:$0xff]  ;;  %v510_v49 = vsel %vm15329_vm1, %v471_v11, %v6812_v35  ;;  %v523_v50 = vsel %vm15329_vm1, %v6792_v41, %v6798_v38  ;;  %v244_v16 = vld [vmem:[%s7006_s25 + $0x18] sm:$0xff] }
 0x198   : > { %587 = vrot.lane.b32.xlu0 %v6902_v48, %s6244_s21  ;;  %v6958_v55 = vadd.f32 %v528_v58, %v15453_v18  ;;  %v6977_v21 = vadd.f32 %v509_v10, %v6724_v57  ;;  %v6980_v33 = vadd.f32 %v510_v49, %v6718_v14  ;;  %v6983_v27 = vadd.f32 %v523_v50, %v6547_v1 }
 0x199   : > { %589 = vrot.lane.b32.xlu1 %v6905_v25, %s6244_s21  ;;  %567 = vrot.lane.b32.xlu2 %v6908_v12, %s6244_s21  ;;  %v505_v57 = vsel %vm15329_vm1, %v477_v22, %v6816_v53  ;;  %v512_v1 = vsel %vm15329_vm1, %v6810_v24, %v6860_v39  ;;  %v518_v14 = vsel %vm15329_vm1, %v6796_v7, %v6802_v3  ;;  %v249_v7 = vld [vmem:[%s7006_s25 + $0x40] sm:$0x3]  ;;  %v250_v3 = vld [vmem:[%s7006_s25 + $0x48] sm:$0x3] }
 0x19a   : > { %v7009_v41 = vadd.f32 %v512_v1, %v6744_v9  ;;  %v7012_v38 = vadd.f32 %v505_v57, %v6741_v61  ;;  %v7015_v11 = vadd.f32 %v518_v14, %v6567_v34  ;;  %v7025_v22 = vpack.c.bf16 %v250_v3, %v249_v7  ;;  %v243_v9 = vld [vmem:[%s7006_s25 + $0x10] sm:$0xff]  ;;  %v252_v57 = vld [vmem:[%s7006_s25 + $0x58] sm:$0x3] }
 0x19b   : > { %v7029_v61 = vpack.c.bf16 %v244_v16, %v243_v9  ;;  %v508_v34 = vsel %vm15329_vm1, %v6860_v39, %v6821_v62  ;;  %v507_v4 = vsel %vm15329_vm1, %v6814_v2, %v6878_v17  ;;  %v7050_v18 = vadd.f32 %v513_v63, %v6590_v23  ;;  %v251_v1 = vld [vmem:[%s7006_s25 + $0x50] sm:$0x3]  ;;  %v15468_v63 = vld [vmem:[#allocation21_spill] sm:$0xff] }
 0x19c   : > { %15454 = vst [vmem:[#allocation15_spill] sm:$0xff] %v7025_v22  ;;  %v7044_v30 = vadd.f32 %v507_v4, %v6762_v6  ;;  %v7047_v58 = vadd.f32 %v508_v34, %v6759_v13  ;;  %v503_v39 = vsel %vm15329_vm1, %v6878_v17, %v6834_v59  ;;  %v502_v23 = vsel %vm15329_vm1, %v6818_v45, %v6896_v56  ;;  %v242_v59 = vld [vmem:[%s7006_s25 + $0x8] sm:$0xff] }
 0x19d   : > { %15455 = vst [vmem:[#allocation18_spill] sm:$0xff] %v7029_v61  ;;  %v516_v13 = vsel %vm15329_vm1, %v6804_v51, %v6810_v24  ;;  %v7071_v6 = vadd.f32 %v502_v23, %v6780_v54  ;;  %v7074_v19 = vadd.f32 %v503_v39, %v6777_v47  ;;  %v241_v51 = vld [vmem:[%s7006_s25] sm:$0xff]  ;;  %v511_v47 = vsel %vm15329_vm1, %v6808_v60, %v6814_v2  ;;  %v255_v60 = vld [vmem:[%s7006_s25 + $0x70] sm:$0x3]  ;;  %v256_v2 = vld [vmem:[%s7006_s25 + $0x78] sm:$0x3] }
 0x19e   : > { %v7077_v20 = vadd.f32 %v516_v13, %v6616_v40  ;;  %v7090_v54 = vmul.f32 %v241_v51, %v241_v51  ;;  %v7092_v40 = vmul.f32 %v249_v7, %v249_v7  ;;  %v7095_v24 = vadd.f32 %v511_v47, %v6642_v28  ;;  %v246_v7 = vld [vmem:[%s7006_s25 + $0x28] sm:$0xff] }
 0x19f   : > { %v7102_v17 = vpack.c.bf16 %v242_v59, %v241_v51  ;;  %v506_v28 = vsel %vm15329_vm1, %v6812_v35, %v6818_v45  ;;  %v7112_v56 = vmul.f32 %v250_v3, %v250_v3  ;;  %v7114_v49 = vmul.f32 %v243_v9, %v243_v9  ;;  %v245_v3 = vld [vmem:[%s7006_s25 + $0x20] sm:$0xff]  ;;  %v254_v4 = vld [vmem:[%s7006_s25 + $0x68] sm:$0x3] }
 0x1a0   : > { %593 = vrot.lane.b32.xlu0 %v6927_v46, %s6244_s21  ;;  %15456 = vst [vmem:[#allocation19_spill] sm:$0xff] %v7090_v54  ;;  %v7116_v10 = vpack.c.bf16 %v256_v2, %v255_v60  ;;  %v7119_v50 = vadd.f32 %v506_v28, %v6669_v43  ;;  %v7127_v14 = vpack.c.bf16 %v252_v57, %v251_v1  ;;  %v248_v28 = vld [vmem:[%s7006_s25 + $0x38] sm:$0xff] }
 0x1a1   : > { %595 = vrot.lane.b32.xlu1 %v6930_v36, %s6244_s21  ;;  %573 = vrot.lane.b32.xlu2 %v6933_v31, %s6244_s21  ;;  %15457 = vst [vmem:[#allocation20_spill] sm:$0xff] %v7092_v40  ;;  %v501_v43 = vsel %vm15329_vm1, %v6816_v53, %v6823_v52  ;;  %v7135_v35 = vmul.f32 %v244_v16, %v244_v16  ;;  %v253_v53 = vld [vmem:[%s7006_s25 + $0x60] sm:$0x3] }
 0x1a2   : > { %15458 = vst [vmem:[#allocation22_spill] sm:$0xff] %v7102_v17  ;;  %v7137_v45 = vmul.f32 %v252_v57, %v252_v57  ;;  %v7141_v9 = vpack.c.bf16 %v246_v7, %v245_v3  ;;  %v7144_v34 = vadd.f32 %v501_v43, %v6695_v32  ;;  %v504_v52 = vsel %vm15329_vm1, %v6821_v62, %v6836_v15  ;;  %v247_v62 = vld [vmem:[%s7006_s25 + $0x30] sm:$0xff] }
 0x1a3   : > { %15459 = vst [vmem:[#allocation23_spill] sm:$0xff] %v7112_v56  ;;  %v7157_v16 = vmul.f32 %v253_v53, %v253_v53  ;;  %v7159_v32 = vmul.f32 %v246_v7, %v246_v7  ;;  %v7163_v39 = vadd.f32 %v504_v52, %v15468_v63  ;;  %v7165_v23 = vpack.c.bf16 %v254_v4, %v253_v53 }
 0x1a4   : > { %15460 = vst [vmem:[#allocation24_spill] sm:$0xff] %v7114_v49  ;;  %v7176_v13 = vmul.f32 %v247_v62, %v247_v62  ;;  %v7178_v51 = vmul.f32 %v255_v60, %v255_v60  ;;  %v7180_v47 = vmul.f32 %v242_v59, %v242_v59  ;;  %v7183_v57 = vpack.c.bf16 %v248_v28, %v247_v62 }
 0x1a5   : > { %15461 = vst [vmem:[#allocation25_spill] sm:$0xff] %v7116_v10  ;;  %v7197_v59 = vmul.f32 %v256_v2, %v256_v2  ;;  %v7199_v53 = vmul.f32 %v251_v1, %v251_v1  ;;  %v7205_v10 = vmul.f32 %v245_v3, %v245_v3  ;;  %v7213_v22 = vmul.f32 %v248_v28, %v248_v28 }
 0x1a6   : > { %15462 = vst [vmem:[#allocation26_spill] sm:$0xff] %v7127_v14 }
 0x1a7   : > { %15463 = vst [vmem:[#allocation27_spill] sm:$0xff] %v7135_v35 }
 0x1a8   : > { %599 = vrot.lane.b32.xlu0 %v6952_v0, %s6244_s21  ;;  %15464 = vst [vmem:[#allocation28_spill] sm:$0xff] %v7137_v45 }
 0x1a9   : > { %601 = vrot.lane.b32.xlu1 %v6955_v42, %s6244_s21  ;;  %579 = vrot.lane.b32.xlu2 %v6958_v55, %s6244_s21  ;;  %15465 = vst [vmem:[#allocation29_spill] sm:$0xff] %v7141_v9  ;;  %v7209_v9 = vmul.f32 %v254_v4, %v254_v4 }
 0x1aa   : > { %15466 = vst [vmem:[#allocation30_spill] sm:$0xff] %v7157_v16 }
 0x1ab   : > { %15467 = vst [vmem:[#allocation31_spill] sm:$0xff] %v7159_v32 }
 0x1ac   : > { %15469 = vst [vmem:[#allocation21_spill] sm:$0xff] %v7163_v39 }
 0x1ad   : > { %15470 = vst [vmem:[#allocation32_spill] sm:$0xff] %v7165_v23 }
 0x1ae   : > { %15471 = vst [vmem:[#allocation33_spill] sm:$0xff] %v7176_v13 }
 0x1af   : > { %15472 = vst [vmem:[#allocation34_spill] sm:$0xff] %v7178_v51 }
 0x1b0   : > { %605 = vrot.lane.b32.xlu0 %v6977_v21, %s6244_s21  ;;  %15473 = vst [vmem:[#allocation35_spill] sm:$0xff] %v7180_v47 }
 0x1b1   : > { %607 = vrot.lane.b32.xlu1 %v6980_v33, %s6244_s21  ;;  %585 = vrot.lane.b32.xlu2 %v6983_v27, %s6244_s21  ;;  %15474 = vst [vmem:[#allocation36_spill] sm:$0xff] %v7183_v57 }
 0x1b2   : > { %15475 = vst [vmem:[#allocation37_spill] sm:$0xff] %v7197_v59 }
 0x1b3   : > { %15476 = vst [vmem:[#allocation38_spill] sm:$0xff] %v7199_v53 }
 0x1b4   : > { %15477 = vst [vmem:[#allocation39_spill] sm:$0xff] %v7205_v10 }
 0x1b5   : > { %15478 = vst [vmem:[#allocation40_spill] sm:$0xff] %v7209_v9 }
 0x1b6   : > { %15479 = vst [vmem:[#allocation41_spill] sm:$0xff] %v7213_v22 }
 0x1b8   : > { %611 = vrot.lane.b32.xlu0 %v7009_v41, %s6244_s21 }
 0x1b9   : > { %613 = vrot.lane.b32.xlu1 %v7012_v38, %s6244_s21  ;;  %591 = vrot.lane.b32.xlu2 %v7015_v11, %s6244_s21 }
 0x1c0   : > { %617 = vrot.lane.b32.xlu0 %v7044_v30, %s6244_s21 }
 0x1c1   : > { %619 = vrot.lane.b32.xlu1 %v7047_v58, %s6244_s21  ;;  %597 = vrot.lane.b32.xlu2 %v7050_v18, %s6244_s21 }
 0x1c8   : > { %623 = vrot.lane.b32.xlu0 %v7071_v6, %s6244_s21 }
 0x1c9   : > { %625 = vrot.lane.b32.xlu1 %v7074_v19, %s6244_s21  ;;  %603 = vrot.lane.b32.xlu2 %v7077_v20, %s6244_s21 }
 0x1d0   : > { %1078 = vrot.lane.b32.xlu0 %v7090_v54, %s6242_s19 }
 0x1d1   : > { %1080 = vrot.lane.b32.xlu1 %v7092_v40, %s6242_s19  ;;  %609 = vrot.lane.b32.xlu2 %v7095_v24, %s6244_s21 }
 0x1d8   : > { %1084 = vrot.lane.b32.xlu0 %v7112_v56, %s6242_s19 }
 0x1d9   : > { %1086 = vrot.lane.b32.xlu1 %v7114_v49, %s6242_s19  ;;  %615 = vrot.lane.b32.xlu2 %v7119_v50, %s6244_s21 }
 0x1e0   : > { %1090 = vrot.lane.b32.xlu0 %v7135_v35, %s6242_s19 }
 0x1e1   : > { %1092 = vrot.lane.b32.xlu1 %v7137_v45, %s6242_s19  ;;  %621 = vrot.lane.b32.xlu2 %v7144_v34, %s6244_s21 }
 0x1e8   : > { %1096 = vrot.lane.b32.xlu0 %v7157_v16, %s6242_s19 }
 0x1e9   : > { %1098 = vrot.lane.b32.xlu1 %v7159_v32, %s6242_s19  ;;  %627 = vrot.lane.b32.xlu2 %v7163_v39, %s6244_s21 }
 0x1eb   : > { %v7174_v15 = vpop.permute.xlu1 %565 }
 0x1f0   : > { %1102 = vrot.lane.b32.xlu0 %v7176_v13, %s6242_s19 }
 0x1f1   : > { %1104 = vrot.lane.b32.xlu1 %v7178_v51, %s6242_s19  ;;  %1082 = vrot.lane.b32.xlu2 %v7180_v47, %s6242_s19 }
 0x1f2   : > { %v7193_v7 = vpop.permute.xlu0 %569 }
 0x1f3   : > { %v7191_v43 = vpop.permute.xlu1 %571  ;;  %v7195_v60 = vpop.permute.xlu2 %567 }
 0x1f8   : > { %1108 = vrot.lane.b32.xlu0 %v7197_v59, %s6242_s19 }
 0x1f9   : > { %1088 = vrot.lane.b32.xlu2 %v7199_v53, %s6242_s19 }
 0x1fa   : > { %v576_v63 = vpop.permute.xlu0 %575 }
 0x1fb   : > { %v578_v52 = vpop.permute.xlu1 %577  ;;  %v574_v62 = vpop.permute.xlu2 %573  ;;  %v655_v49 = vsel %vm15220_vm2, %v7195_v60, %v576_v63 }
 0x1fc   : > { %v654_v56 = vsel %vm15220_vm2, %v7174_v15, %v574_v62 }
 0x201   : > { %1094 = vrot.lane.b32.xlu2 %v7205_v10, %s6242_s19  ;;  %v7239_v10 = vadd.f32 %v655_v49, %v6863_v5 }
 0x202   : > { %v582_v23 = vpop.permute.xlu0 %581 }
 0x203   : > { %v584_v57 = vpop.permute.xlu1 %583  ;;  %v580_v2 = vpop.permute.xlu2 %579  ;;  %v650_v28 = vsel %vm15220_vm2, %v574_v62, %v582_v23 }
 0x204   : > { %v651_v35 = vsel %vm15220_vm2, %v576_v63, %v584_v57  ;;  %v657_v54 = vsel %vm15220_vm2, %v7191_v43, %v580_v2  ;;  %v7242_v63 = vadd.f32 %v654_v56, %v6933_v31 }
 0x205   : > { %v7229_v40 = vadd.f32 %v651_v35, %v6884_v44  ;;  %v7252_v47 = vadd.f32 %v657_v54, %v6958_v55 }
 0x209   : > { %1100 = vrot.lane.b32.xlu2 %v7209_v9, %s6242_s19  ;;  %v664_v9 = vadd.f32 %v650_v28, %v6881_v37  ;;  %v7256_v37 = vadd.f32 %v7229_v40, %v7239_v10 }
 0x20a   : > { %v588_v14 = vpop.permute.xlu0 %587 }
 0x20b   : > { %v590_v1 = vpop.permute.xlu1 %589  ;;  %v586_v61 = vpop.permute.xlu2 %585  ;;  %v7261_v56 = vadd.f32 %v664_v9, %v7242_v63  ;;  %v653_v49 = vsel %vm15220_vm2, %v580_v2, %v588_v14 }
 0x20c   : > { %v646_v44 = vsel %vm15220_vm2, %v582_v23, %v590_v1  ;;  %v652_v5 = vsel %vm15220_vm2, %v578_v52, %v586_v61 }
 0x20d   : > { %v680_v28 = vadd.f32 %v652_v5, %v6983_v27 }
 0x211   : > { %1106 = vrot.lane.b32.xlu2 %v7213_v22, %s6242_s19  ;;  %v656_v22 = vsel %vm15220_vm2, %v7193_v7, %v578_v52 }
 0x212   : > { %v594_v17 = vpop.permute.xlu0 %593  ;;  %v7249_v53 = vadd.f32 %v656_v22, %v6866_v8  ;;  %v665_v22 = vadd.f32 %v646_v44, %v6905_v25 }
 0x213   : > { %v596_v3 = vpop.permute.xlu1 %595  ;;  %v592_v59 = vpop.permute.xlu2 %591  ;;  %v648_v23 = vsel %vm15220_vm2, %v586_v61, %v594_v17 }
 0x214   : > { %v647_v54 = vsel %vm15220_vm2, %v584_v57, %v592_v59  ;;  %v649_v57 = vsel %vm15220_vm2, %v588_v14, %v596_v3 }
 0x21a   : > { %v600_v13 = vpop.permute.xlu0 %599 }
 0x21b   : > { %v602_v51 = vpop.permute.xlu1 %601  ;;  %v598_v32 = vpop.permute.xlu2 %597  ;;  %v643_v55 = vsel %vm15220_vm2, %v592_v59, %v600_v13  ;;  %v7291_v59 = vadd.f32 %v653_v49, %v6902_v48  ;;  %v7305_v48 = vadd.f32 %v649_v57, %v6930_v36 }
 0x21c   : > { %v644_v8 = vsel %vm15220_vm2, %v594_v17, %v602_v51  ;;  %v642_v52 = vsel %vm15220_vm2, %v590_v1, %v598_v32  ;;  %v674_v17 = vadd.f32 %v643_v55, %v6952_v0 }
 0x21d   : > { %v682_v61 = vadd.f32 %v644_v8, %v6955_v42  ;;  %v666_v1 = vadd.f32 %v642_v52, %v7050_v18 }
 0x21f   : > { %v698_v36 = vadd.f32 %v666_v1, %v665_v22 }
 0x222   : > { %v606_v4 = vpop.permute.xlu0 %605 }
 0x223   : > { %v608_v16 = vpop.permute.xlu1 %607  ;;  %v604_v45 = vpop.permute.xlu2 %603  ;;  %v638_v39 = vsel %vm15220_vm2, %v598_v32, %v606_v4  ;;  %v681_v32 = vadd.f32 %v648_v23, %v6927_v46 }
 0x224   : > { %v639_v2 = vsel %vm15220_vm2, %v600_v13, %v608_v16  ;;  %v673_v13 = vadd.f32 %v647_v54, %v7015_v11  ;;  %v667_v42 = vadd.f32 %v638_v39, %v6977_v21 }
 0x225   : > { %v675_v14 = vadd.f32 %v639_v2, %v6980_v33  ;;  %v714_v44 = vadd.f32 %v682_v61, %v681_v32  ;;  %v713_v2 = vadd.f32 %v681_v32, %v680_v28 }
 0x226   : > { %v706_v33 = vadd.f32 %v674_v17, %v673_v13  ;;  %v699_v8 = vadd.f32 %v667_v42, %v666_v1 }
 0x227   : > { %v7321_v49 = vadd.f32 %v675_v14, %v674_v17 }
 0x22a   : > { %v612_v62 = vpop.permute.xlu0 %611 }
 0x22b   : > { %v7246_v35 = vpop.permute.xlu1 %613  ;;  %v610_v31 = vpop.permute.xlu2 %609  ;;  %v641_v46 = vsel %vm15220_vm2, %v604_v45, %v612_v62 }
 0x22c   : > { %v634_v25 = vsel %vm15220_vm2, %v606_v4, %v7246_v35  ;;  %v640_v27 = vsel %vm15220_vm2, %v602_v51, %v610_v31  ;;  %v645_v4 = vsel %vm15220_vm2, %v596_v3, %v604_v45  ;;  %v7302_v51 = vadd.f32 %v680_v28, %v7249_v53 }
 0x22d   : > { %v668_v0 = vadd.f32 %v634_v25, %v7012_v38  ;;  %v683_v11 = vadd.f32 %v640_v27, %v7095_v24  ;;  %v690_v39 = vadd.f32 %v645_v4, %v7077_v20  ;;  %v691_v54 = vadd.f32 %v641_v46, %v7009_v41 }
 0x22e   : > { %v697_v20 = vadd.f32 %v665_v22, %v664_v9  ;;  %v730_v25 = vadd.f32 %v698_v36, %v7261_v56  ;;  %v746_v41 = vadd.f32 %v714_v44, %v7302_v51 }
 0x22f   : > { %v700_v55 = vadd.f32 %v668_v0, %v667_v42  ;;  %v715_v23 = vadd.f32 %v683_v11, %v682_v61  ;;  %v7349_v61 = vadd.f32 %v691_v54, %v690_v39 }
 0x230   : > { %v731_v22 = vadd.f32 %v699_v8, %v697_v20 }
 0x231   : > { %v732_v57 = vadd.f32 %v700_v55, %v698_v36 }
 0x232   : > { %v618_v3 = vpop.permute.xlu0 %617 }
 0x233   : > { %v7310_v18 = vpop.permute.xlu1 %619  ;;  %v616_v5 = vpop.permute.xlu2 %615  ;;  %v636_v38 = vsel %vm15220_vm2, %v610_v31, %v618_v3 }
 0x234   : > { %v637_v21 = vsel %vm15220_vm2, %v612_v62, %v7310_v18  ;;  %v635_v24 = vsel %vm15220_vm2, %v608_v16, %v616_v5  ;;  %v684_v45 = vadd.f32 %v636_v38, %v7044_v30  ;;  %v7332_v16 = vadd.f32 %v7291_v59, %v7252_v47 }
 0x235   : > { %v7325_v62 = vadd.f32 %v635_v24, %v7119_v50  ;;  %v7328_v31 = vadd.f32 %v637_v21, %v7047_v58  ;;  %v7335_v30 = vadd.f32 %v673_v13, %v7229_v40  ;;  %v7340_v50 = vadd.f32 %v706_v33, %v7256_v37 }
 0x236   : > { %v716_v52 = vadd.f32 %v684_v45, %v683_v11  ;;  %v7343_v58 = vadd.f32 %v690_v39, %v7305_v48  ;;  %v747_v40 = vadd.f32 %v715_v23, %v713_v2 }
 0x237   : > { %v7347_v9 = vadd.f32 %v7321_v49, %v7335_v30  ;;  %v708_v28 = vadd.f32 %v7325_v62, %v675_v14  ;;  %v7353_v17 = vadd.f32 %v7328_v31, %v691_v54 }
 0x238   : > { %v748_v27 = vadd.f32 %v716_v52, %v714_v44 }
 0x239   : > { %v740_v39 = vadd.f32 %v708_v28, %v706_v33 }
 0x23a   : > { %v624_v32 = vpop.permute.xlu0 %623 }
 0x23b   : > { %v626_v13 = vpop.permute.xlu1 %625  ;;  %v622_v1 = vpop.permute.xlu2 %621  ;;  %v631_v11 = vsel %vm15220_vm2, %v616_v5, %v624_v32  ;;  %v659_v14 = vsel %vm15220_vm2, %v624_v32, %v7195_v60 }
 0x23c   : > { %v632_v4 = vsel %vm15220_vm2, %v618_v3, %v626_v13  ;;  %v660_v42 = vsel %vm15220_vm2, %v626_v13, %v7193_v7  ;;  %v630_v46 = vsel %vm15220_vm2, %v7246_v35, %v622_v1  ;;  %v658_v44 = vsel %vm15220_vm2, %v622_v1, %v7174_v15  ;;  %v15480_v7 = vld [vmem:[#allocation17_spill] sm:$0xff] }
 0x23d   : > { %v678_v3 = vadd.f32 %v660_v42, %v6846_v26  ;;  %v685_v21 = vadd.f32 %v632_v4, %v7074_v19  ;;  %v662_v38 = vadd.f32 %v658_v44, %v15480_v7  ;;  %v669_v5 = vadd.f32 %v630_v46, %v7144_v34 }
 0x23e   : > { %v670_v36 = vadd.f32 %v659_v14, %v6908_v12  ;;  %v677_v60 = vadd.f32 %v631_v11, %v7071_v6 }
 0x23f   : > { %v710_v24 = vadd.f32 %v685_v21, %v678_v3  ;;  %v711_v35 = vadd.f32 %v7249_v53, %v678_v3  ;;  %v717_v54 = vadd.f32 %v685_v21, %v684_v45  ;;  %v694_v13 = vadd.f32 %v669_v5, %v662_v38 }
 0x240   : > { %v695_v15 = vadd.f32 %v7242_v63, %v662_v38  ;;  %v701_v32 = vadd.f32 %v669_v5, %v668_v0  ;;  %v702_v26 = vadd.f32 %v677_v60, %v670_v36 }
 0x241   : > { %v742_v1 = vadd.f32 %v716_v52, %v710_v24  ;;  %v743_v19 = vadd.f32 %v717_v54, %v711_v35  ;;  %v744_v4 = vadd.f32 %v7302_v51, %v710_v24  ;;  %v745_v42 = vadd.f32 %v713_v2, %v711_v35  ;;  %v15482_v24 = vld [vmem:[#allocation21_spill] sm:$0xff] }
 0x242   : > { %v726_v34 = vadd.f32 %v700_v55, %v694_v13  ;;  %v727_v46 = vadd.f32 %v701_v32, %v695_v15  ;;  %v728_v12 = vadd.f32 %v7261_v56, %v694_v13  ;;  %v729_v6 = vadd.f32 %v697_v20, %v695_v15  ;;  %v7383_v44 = vpop.permute.xlu0 %1078 }
 0x243   : > { %v733_v33 = vadd.f32 %v701_v32, %v699_v8  ;;  %v749_v11 = vadd.f32 %v717_v54, %v715_v23  ;;  %v766_v14 = vadd.f32 %v746_v41, %v742_v1  ;;  %v767_v53 = vadd.f32 %v747_v40, %v743_v19  ;;  %v7381_v45 = vpop.permute.xlu1 %1080  ;;  %v628_v21 = vpop.permute.xlu2 %627 }
 0x244   : > { %v758_v63 = vadd.f32 %v730_v25, %v726_v34  ;;  %v759_v0 = vadd.f32 %v731_v22, %v727_v46  ;;  %v760_v52 = vadd.f32 %v732_v57, %v728_v12  ;;  %v768_v3 = vadd.f32 %v748_v27, %v744_v4 }
 0x245   : > { %v761_v51 = vadd.f32 %v733_v33, %v729_v6  ;;  %v769_v2 = vadd.f32 %v749_v11, %v745_v42  ;;  %v7385_v55 = vmax.f32 %v766_v14, 1e-16  ;;  %v7387_v7 = vmax.f32 %v767_v53, 1e-16 }
 0x246   : > { %v7389_v56 = vmax.f32 %v758_v63, 1e-16  ;;  %v7391_v8 = vmax.f32 %v759_v0, 1e-16  ;;  %v7393_v23 = vmax.f32 %v760_v52, 1e-16  ;;  %v703_v20 = vadd.f32 %v7239_v10, %v670_v36 }
 0x247   : > { %v7396_v41 = vmax.f32 %v761_v51, 1e-16  ;;  %v7398_v25 = vmax.f32 %v768_v3, 1e-16  ;;  %v7400_v22 = vmax.f32 %v769_v2, 1e-16  ;;  %6008 = vrsqrt.f32 %v7385_v55 }
 0x248   : > { %6010 = vrsqrt.f32 %v7389_v56  ;;  %v709_v57 = vadd.f32 %v677_v60, %v7325_v62  ;;  %v734_v40 = vadd.f32 %v708_v28, %v702_v26  ;;  %v736_v27 = vadd.f32 %v7256_v37, %v702_v26  ;;  %v15481_v60 = vld [vmem:[#allocation16_spill] sm:$0xff] }
 0x249   : > { %6012 = vrsqrt.f32 %v7391_v8  ;;  %v737_v38 = vadd.f32 %v7335_v30, %v703_v20  ;;  %v633_v10 = vsel %vm15220_vm2, %v7310_v18, %v628_v21  ;;  %v661_v5 = vsel %vm15220_vm2, %v628_v21, %v7191_v43 }
 0x24a   : > { %6014 = vrsqrt.f32 %v7393_v23  ;;  %v735_v36 = vadd.f32 %v709_v57, %v703_v20  ;;  %v741_v62 = vadd.f32 %v709_v57, %v7321_v49  ;;  %v762_v28 = vadd.f32 %v7340_v50, %v734_v40  ;;  %v7420_v54 = vpop.permute.xlu0 %1084 }
 0x24b   : > { %6016 = vrsqrt.f32 %v7396_v41  ;;  %v764_v37 = vadd.f32 %v740_v39, %v736_v27  ;;  %v686_v30 = vadd.f32 %v661_v5, %v15481_v60  ;;  %v693_v35 = vadd.f32 %v633_v10, %v15482_v24  ;;  %v7426_v15 = vpop.permute.xlu1 %1086  ;;  %v1083_v49 = vpop.permute.xlu2 %1082 }
 0x24c   : > { %6018 = vrsqrt.f32 %v7387_v7  ;;  %v763_v43 = vadd.f32 %v7347_v9, %v735_v36  ;;  %v765_v18 = vadd.f32 %v741_v62, %v737_v38  ;;  %v7424_v13 = vmax.f32 %v762_v28, 1e-16 }
 0x24d   : > { %v7428_v50 = vpop.eup %6008  ;;  %6020 = vrsqrt.f32 %v7398_v25  ;;  %v7431_v39 = vmax.f32 %v764_v37, 1e-16  ;;  %v718_v32 = vadd.f32 %v693_v35, %v686_v30  ;;  %v719_v26 = vadd.f32 %v7252_v47, %v686_v30  ;;  %v15484_v37 = vld [vmem:[#allocation35_spill] sm:$0xff] }
 0x24e   : > { %v7434_v1 = vpop.eup %6010  ;;  %v721_v9 = vadd.f32 %v7305_v48, %v7291_v59  ;;  %6022 = vrsqrt.f32 %v7400_v22  ;;  %v7439_v19 = vmax.f32 %v763_v43, 1e-16  ;;  %v7441_v4 = vmax.f32 %v765_v18, 1e-16 }
 0x24f   : > { %v7443_v42 = vpop.eup %6012  ;;  %v754_v34 = vadd.f32 %v7343_v58, %v7332_v16  ;;  %6024 = vrsqrt.f32 %v7424_v13  ;;  %v725_v47 = vadd.f32 %v693_v35, %v7328_v31  ;;  %v750_v46 = vadd.f32 %v7353_v17, %v718_v32 }
 0x250   : > { %15483 = vst [vmem:[#allocation17_spill] sm:$0xff] %v7441_v4  ;;  %v7450_v12 = vpop.eup %6014  ;;  %v756_v59 = vadd.f32 %v7353_v17, %v7343_v58  ;;  %6026 = vrsqrt.f32 %v7439_v19  ;;  %v752_v48 = vadd.f32 %v7332_v16, %v718_v32  ;;  %v753_v6 = vadd.f32 %v721_v9, %v719_v26 }
 0x251   : > { %v7456_v33 = vpop.eup %6016  ;;  %v755_v11 = vadd.f32 %v7349_v61, %v721_v9  ;;  %6028 = vrsqrt.f32 %v7431_v39  ;;  %v751_v14 = vadd.f32 %v725_v47, %v719_v26  ;;  %v757_v31 = vadd.f32 %v725_v47, %v7349_v61 }
 0x252   : > { %v7461_v53 = vpop.eup %6018  ;;  %6030 = vrsqrt.f32 %v7441_v4  ;;  %v770_v63 = vadd.f32 %v754_v34, %v750_v46  ;;  %v772_v58 = vadd.f32 %v756_v59, %v752_v48  ;;  %v871_v16 = vmul.f32 %v7428_v50, %v7385_v55  ;;  %v1091_v3 = vpop.permute.xlu0 %1090  ;;  %v6200_v48 = vld [vmem:[%s6279_s18 + $0xc0] sm:$0x1] }
 0x253   : > { %v7464_v17 = vpop.eup %6020  ;;  %v771_v0 = vadd.f32 %v755_v11, %v751_v14  ;;  %v773_v52 = vadd.f32 %v757_v31, %v753_v6  ;;  %v7472_v51 = vmul.f32 %v7434_v1, %v7389_v56  ;;  %v1122_v20 = vsel %vm15330_vm0, %v7383_v44, %v1083_v49  ;;  %v1089_v57 = vpop.permute.xlu2 %1088  ;;  %v6201_v6 = vld [vmem:[%s6279_s18 + $0xc8] sm:$0x1] }
 0x254   : > { %v7468_v21 = vpop.eup %6022  ;;  %v7474_v61 = vmax.f32 %v770_v63, 1e-16  ;;  %v7476_v2 = vmax.f32 %v772_v58, 1e-16  ;;  %v7485_v27 = vmul.f32 %v7443_v42, %v7391_v8  ;;  %v7489_v38 = vmul.f32 %v7450_v12, %v7393_v23  ;;  %v7507_v30 = vpop.permute.xlu1 %1092  ;;  %v15492_v63 = vld [vmem:[#allocation38_spill] sm:$0xff] }
 0x255   : > { %v7481_v40 = vpop.eup %6024  ;;  %v7491_v10 = vmax.f32 %v771_v0, 1e-16  ;;  %v7493_v5 = vmax.f32 %v773_v52, 1e-16  ;;  %v7499_v62 = vmul.f32 %v7456_v33, %v7396_v41  ;;  %v881_v28 = vmul.f32 %v7461_v53, %v7387_v7  ;;  %15486 = vst [vmem:[#allocation21_spill] sm:$0xff] %v7507_v30 }
 0x256   : > { %v7495_v36 = vpop.eup %6026  ;;  %6032 = vrsqrt.f32 %v7474_v61  ;;  %v7505_v60 = vadd.f32 %v1122_v20, %v15484_v37  ;;  %v891_v35 = vmul.f32 %v7464_v17, %v7398_v25  ;;  %v7515_v43 = vmul.f32 %v7468_v21, %v7400_v22 }
 0x257   : > { %v7509_v24 = vpop.eup %6028  ;;  %6034 = vrsqrt.f32 %v7491_v10  ;;  %v7521_v18 = vsel %vm15330_vm0, %v1083_v49, %v7426_v15  ;;  %v7527_v26 = vmul.f32 %v7481_v40, %v7424_v13  ;;  %v7534_v9 = vsel %vm15330_vm0, %v7381_v45, %v7420_v54 }
 0x258   : > { %15485 = vst [vmem:[#allocation16_spill] sm:$0xff] %v7505_v60  ;;  %v7523_v32 = vpop.eup %6030  ;;  %6036 = vrsqrt.f32 %v7476_v2  ;;  %1146 = vrot.lane.b32.xlu0 %v7505_v60, %s6243_s20  ;;  %v1121_v49 = vsel %vm15330_vm0, %v7420_v54, %v1089_v57  ;;  %v7543_v34 = vmul.f32 %v7495_v36, %v7439_v19  ;;  %v7549_v47 = vsel %vm15330_vm0, %v1089_v57, %v7507_v30 }
 0x259   : > { %15487 = vst [vmem:[#allocation35_spill] sm:$0xff] %v7521_v18  ;;  %6038 = vrsqrt.f32 %v7493_v5  ;;  %v872_v46 = vmul.f32 %v7428_v50, %v871_v16  ;;  %v7554_v59 = vmul.f32 %v7509_v24, %v7431_v39  ;;  %v7559_v54 = vsel %vm15330_vm0, %v7426_v15, %v1091_v3 }
 0x25a   : > { %15488 = vst [vmem:[#allocation42_spill] sm:$0xff] %v7523_v32  ;;  %v7563_v11 = vpack.c.bf16 %v6201_v6, %v6200_v48  ;;  %v882_v14 = vmul.f32 %v7461_v53, %v881_v28  ;;  %v7568_v31 = vmul.f32 %v7523_v32, %v7441_v4  ;;  %v7571_v58 = vadd.f32 %v1121_v49, %v15492_v63  ;;  %v7573_v16 = vpop.permute.xlu0 %1096 }
 0x25b   : > { %15489 = vst [vmem:[#allocation43_spill] sm:$0xff] %v7534_v9  ;;  %v873_v0 = vmul.f32 0.5, %v872_v46  ;;  %vm876_vm3 = vweird.f32 %v7385_v55  ;;  %v7578_v52 = vpop.permute.xlu2 %1094  ;;  %vm877_vm4 = vweird.f32 %v7428_v50  ;;  %vm886_vm5 = vweird.f32 %v7387_v7 }
 0x25c   : > { %15490 = vst [vmem:[#allocation44_spill] sm:$0xff] %v7549_v47  ;;  %v7576_v15 = vpop.eup %6032  ;;  %v883_v20 = vmul.f32 0.5, %v882_v14  ;;  %vm887_vm6 = vweird.f32 %v7461_v53  ;;  %v1116_v37 = vsel %vm15330_vm0, %v1091_v3, %v7578_v52  ;;  %vm916_vm7 = vweird.f32 %v7474_v61  ;;  %v15495_v14 = vld [vmem:[#allocation2_spill] sm:$0xff]  ;;  %v15496_v47 = vld [vmem:[#allocation39_spill] sm:$0xff]  ;;  %vm878_vm9 = vmor %vm876_vm3, %vm877_vm4 }
 0x25d   : > { %15491 = vst [vmem:[#allocation45_spill] sm:$0xff] %v7559_v54  ;;  %v7583_v57 = vpop.eup %6034  ;;  %v911_v28 = vmul.f32 %v7576_v15, %v7474_v61  ;;  %v874_v49 = vsub.f32 1.5, %v873_v0  ;;  %vm926_vm8 = vweird.f32 %v7491_v10  ;;  %v974_v63 = vunpack.c.l.bf16 %v15495_v14  ;;  %vm888_vm11 = vmor %vm886_vm5, %vm887_vm6 }
 0x25e   : > { %15493 = vst [vmem:[#allocation38_spill] sm:$0xff] %v7571_v58  ;;  %v7591_v46 = vpop.eup %6036  ;;  %v921_v48 = vmul.f32 %v7583_v57, %v7491_v10  ;;  %v884_v6 = vsub.f32 1.5, %v883_v20  ;;  %v7601_v54 = vadd.f32 %v1116_v37, %v15496_v47  ;;  %vm917_vm10 = vweird.f32 %v7576_v15 }
 0x25f   : > { %15494 = vst [vmem:[#allocation46_spill] sm:$0xff] %v7578_v52  ;;  %v7598_v30 = vpop.eup %6038  ;;  %v875_v3 = vmul.f32 %v7428_v50, %v874_v49  ;;  %v912_v0 = vmul.f32 %v7576_v15, %v911_v28  ;;  %v975_v52 = vunpack.c.h.bf16 %v15495_v14  ;;  %v931_v20 = vmul.f32 %v7591_v46, %v7476_v2  ;;  %vm918_vm15 = vmor %vm916_vm7, %vm917_vm10 }
 0x260   : > { %1152 = vrot.lane.b32.xlu0 %v7571_v58, %s6243_s20  ;;  %v885_v47 = vmul.f32 %v7461_v53, %v884_v6  ;;  %v922_v28 = vmul.f32 %v7583_v57, %v921_v48  ;;  %v941_v37 = vmul.f32 %v7598_v30, %v7493_v5  ;;  %vm927_vm12 = vweird.f32 %v7583_v57 }
 0x261   : > { %v879_v49 = vsel %vm878_vm9, %v7428_v50, %v875_v3  ;;  %v913_v55 = vmul.f32 0.5, %v912_v0  ;;  %v983_v48 = vunpack.c.h.bf16 %v7563_v11  ;;  %v892_v60 = vmul.f32 %v7464_v17, %v891_v35  ;;  %v6202_v50 = vld [vmem:[%s6279_s18 + $0x90] sm:$0xff]  ;;  %v6203_v3 = vld [vmem:[%s6279_s18 + $0x98] sm:$0xff]  ;;  %vm928_vm4 = vmor %vm926_vm8, %vm927_vm12 }
 0x262   : > { %v889_v6 = vsel %vm888_vm11, %v7461_v53, %v885_v47  ;;  %v923_v14 = vmul.f32 0.5, %v922_v28  ;;  %v7632_v9 = vpack.c.bf16 %v6203_v3, %v6202_v50  ;;  %v902_v7 = vmul.f32 %v7468_v21, %v7515_v43  ;;  %v7638_v4 = vpop.permute.xlu0 %1102  ;;  %v6204_v47 = vld [vmem:[%s6279_s18 + $0xd0] sm:$0x1]  ;;  %v6205_v28 = vld [vmem:[%s6279_s18 + $0xd8] sm:$0x1] }
 0x263   : > { %v914_v58 = vsub.f32 1.5, %v913_v55  ;;  %v7628_v18 = vpack.c.bf16 %v889_v6, %v879_v49  ;;  %v7636_v0 = vpop.permute.xlu2 %1100  ;;  %v7642_v32 = vpack.c.bf16 %v6205_v28, %v6204_v47  ;;  %v893_v35 = vmul.f32 0.5, %v892_v60  ;;  %v15497_v50 = vld [vmem:[#allocation40_spill] sm:$0xff] }
 0x264   : > { %v924_v53 = vsub.f32 1.5, %v923_v14  ;;  %vm896_vm13 = vweird.f32 %v7398_v25  ;;  %v1115_v49 = vsel %vm15330_vm0, %v7573_v16, %v7636_v0  ;;  %vm897_vm14 = vweird.f32 %v7464_v17 }
 0x265   : > { %v915_v55 = vmul.f32 %v7576_v15, %v914_v58  ;;  %v998_v43 = vunpack.c.l.bf16 %v7628_v18  ;;  %v999_v6 = vunpack.c.h.bf16 %v7628_v18  ;;  %v894_v14 = vsub.f32 1.5, %v893_v35  ;;  %vm7683_vm6 = vmor %vm896_vm13, %vm897_vm14 }
 0x266   : > { %v925_v60 = vmul.f32 %v7583_v57, %v924_v53  ;;  %vm906_vm3 = vweird.f32 %v7400_v22  ;;  %v7660_v3 = vadd.f32 %v1115_v49, %v15497_v50  ;;  %v903_v47 = vmul.f32 0.5, %v902_v7 }
 0x267   : > { %v919_v58 = vsel %vm918_vm15, %v7576_v15, %v915_v55  ;;  %v1022_v61 = vmul.f32 %v998_v43, %v974_v63  ;;  %v895_v28 = vmul.f32 %v7464_v17, %v894_v14  ;;  %vm907_vm5 = vweird.f32 %v7468_v21 }
 0x268   : > { %1158 = vrot.lane.b32.xlu0 %v7601_v54, %s6243_s20  ;;  %v929_v53 = vsel %vm928_vm4, %v7583_v57, %v925_v60  ;;  %v932_v15 = vmul.f32 %v7591_v46, %v931_v20  ;;  %v1023_v10 = vmul.f32 %v999_v6, %v975_v52  ;;  %v904_v57 = vsub.f32 1.5, %v903_v47  ;;  %vm908_vm10 = vmor %vm906_vm3, %vm907_vm5 }
 0x269   : > { %v7675_v35 = vpack.c.bf16 %v929_v53, %v919_v58  ;;  %vm936_vm7 = vweird.f32 %v7476_v2  ;;  %v899_v20 = vsel %vm7683_vm6, %v7464_v17, %v895_v28  ;;  %vm937_vm8 = vweird.f32 %v7591_v46 }
 0x26a   : > { %v933_v7 = vmul.f32 0.5, %v932_v15  ;;  %v942_v52 = vmul.f32 %v7598_v30, %v941_v37  ;;  %v905_v55 = vmul.f32 %v7468_v21, %v904_v57  ;;  %vm946_vm9 = vweird.f32 %v7493_v5  ;;  %vm7721_vm12 = vmor %vm936_vm7, %vm937_vm8 }
 0x26b   : > { %v1002_v49 = vunpack.c.l.bf16 %v7675_v35  ;;  %v1003_v25 = vunpack.c.h.bf16 %v7675_v35  ;;  %vm947_vm11 = vweird.f32 %v7598_v30  ;;  %v976_v14 = vunpack.c.l.bf16 %v7632_v9  ;;  %v1107_v37 = vpop.permute.xlu2 %1106 }
 0x26c   : > { %v934_v60 = vsub.f32 1.5, %v933_v7  ;;  %v943_v17 = vmul.f32 0.5, %v942_v52  ;;  %v15500_v50 = vunpack.c.l.bf16 %v7563_v11  ;;  %v909_v53 = vsel %vm908_vm10, %v7468_v21, %v905_v55  ;;  %v7715_v7 = vpop.permute.xlu0 %1108  ;;  %vm948_vm13 = vmor %vm946_vm9, %vm947_vm11  ;;  %v15503_v55 = vld [vmem:[#allocation19_spill] sm:$0xff] }
 0x26d   : > { %v1031_v47 = vmul.f32 %v1003_v25, %v983_v48  ;;  %v984_v22 = vunpack.c.l.bf16 %v7642_v32  ;;  %v7712_v63 = vpack.c.bf16 %v909_v53, %v899_v20  ;;  %v977_v57 = vunpack.c.h.bf16 %v7632_v9 }
 0x26e   : > { %v1030_v58 = vmul.f32 %v1002_v49, %v15500_v50  ;;  %v935_v28 = vmul.f32 %v7591_v46, %v934_v60  ;;  %v944_v15 = vsub.f32 1.5, %v943_v17  ;;  %v1110_v21 = vsel %vm15330_vm0, %v7638_v4, %v1107_v37  ;;  %v15504_v50 = vld [vmem:[#allocation41_spill] sm:$0xff] }
 0x26f   : > { %v1047_v52 = vpack.c.bf16 %v1031_v47, %v1023_v10  ;;  %v1124_v9 = vsel %vm15330_vm0, %v1107_v37, %v7383_v44  ;;  %v1000_v10 = vunpack.c.l.bf16 %v7712_v63  ;;  %v1001_v20 = vunpack.c.h.bf16 %v7712_v63 }
 0x270   : > { %v1046_v11 = vpack.c.bf16 %v1030_v58, %v1022_v61  ;;  %1164 = vrot.lane.b32.xlu0 %v7660_v3, %s6243_s20  ;;  %v939_v61 = vsel %vm7721_vm12, %v7591_v46, %v935_v28  ;;  %v945_v2 = vmul.f32 %v7598_v30, %v944_v15  ;;  %v985_v44 = vunpack.c.h.bf16 %v7642_v32 }
 0x271   : > { %1470 = vmatpush.bf16.xpose.msra.mxu1 %v1047_v52  ;;  %v1125_v46 = vsel %vm15330_vm0, %v7715_v7, %v7381_v45  ;;  %v7749_v60 = vadd.f32 %v1124_v9, %v15503_v55  ;;  %vm796_vm14 = vweird.f32 %v7389_v56  ;;  %v1024_v37 = vmul.f32 %v1000_v10, %v976_v14  ;;  %v15505_v45 = vld [vmem:[#allocation20_spill] sm:$0xff] }
 0x272   : > { %1456 = vmatpush.bf16.xpose.msra.mxu0 %v1046_v11  ;;  %v949_v17 = vsel %vm948_vm13, %v7598_v30, %v945_v2  ;;  %v1025_v5 = vmul.f32 %v1001_v20, %v977_v57  ;;  %v7758_v32 = vadd.f32 %v1110_v21, %v15504_v50  ;;  %v7765_v47 = vadd.f32 %v1125_v46, %v15505_v45  ;;  %v15511_v56 = vld [vmem:[#allocation4_spill] sm:$0xff] }
 0x273   : > { %v7760_v58 = vpack.c.bf16 %v949_v17, %v939_v61  ;;  %1142 = vrot.lane.b32.xlu1 %v7749_v60, %s6243_s20  ;;  %v792_v30 = vmul.f32 %v7434_v1, %v7472_v51  ;;  %vm797_vm15 = vweird.f32 %v7434_v1  ;;  %v802_v14 = vmul.f32 %v7443_v42, %v7485_v27 }
 0x274   : > { %vm806_vm3 = vweird.f32 %v7391_v8  ;;  %vm807_vm4 = vweird.f32 %v7443_v42  ;;  %v832_v53 = vmul.f32 %v7481_v40, %v7527_v26  ;;  %1144 = vrot.lane.b32.xlu2 %v7765_v47, %s6243_s20  ;;  %vm836_vm5 = vweird.f32 %v7424_v13  ;;  %vm7797_vm9 = vmor %vm796_vm14, %vm797_vm15 }
 0x275   : > { %v1004_v28 = vunpack.c.l.bf16 %v7760_v58  ;;  %v1005_v15 = vunpack.c.h.bf16 %v7760_v58  ;;  %v793_v51 = vmul.f32 0.5, %v792_v30  ;;  %v803_v57 = vmul.f32 0.5, %v802_v14  ;;  %vm7807_vm10 = vmor %vm806_vm3, %vm807_vm4 }
 0x276   : > { %v833_v11 = vmul.f32 0.5, %v832_v53  ;;  %vm837_vm6 = vweird.f32 %v7481_v40  ;;  %v842_v27 = vmul.f32 %v7495_v36, %v7543_v34  ;;  %vm846_vm7 = vweird.f32 %v7439_v19 }
 0x277   : > { %v1032_v26 = vmul.f32 %v1004_v28, %v984_v22  ;;  %v1033_v52 = vmul.f32 %v1005_v15, %v985_v44  ;;  %v794_v48 = vsub.f32 1.5, %v793_v51  ;;  %v804_v21 = vsub.f32 1.5, %v803_v57  ;;  %v15508_v44 = vld [vmem:[#allocation3_spill] sm:$0xff]  ;;  %vm7820_vm11 = vmor %vm836_vm5, %vm837_vm6  ;;  %v15514_v22 = vld [vmem:[#allocation42_spill] sm:$0xff] }
 0x278   : > { %1170 = vrot.lane.b32.xlu0 %v7758_v32, %s6243_s20  ;;  %v834_v9 = vsub.f32 1.5, %v833_v11  ;;  %v843_v61 = vmul.f32 0.5, %v842_v27  ;;  %vm847_vm8 = vweird.f32 %v7495_v36  ;;  %v958_v55 = vunpack.c.l.bf16 %v15508_v44 }
 0x279   : > { %v1048_v2 = vpack.c.bf16 %v1032_v26, %v1024_v37  ;;  %v1049_v46 = vpack.c.bf16 %v1033_v52, %v1025_v5  ;;  %v795_v34 = vmul.f32 %v7434_v1, %v794_v48  ;;  %v805_v17 = vmul.f32 %v7443_v42, %v804_v21  ;;  %vm848_vm13 = vmor %vm846_vm7, %vm847_vm8 }
 0x27a   : > { %v835_v5 = vmul.f32 %v7481_v40, %v834_v9  ;;  %v844_v50 = vsub.f32 1.5, %v843_v61  ;;  %v966_v45 = vunpack.c.l.bf16 %v15511_v56  ;;  %v959_v14 = vunpack.c.h.bf16 %v15508_v44 }
 0x27b   : > { %1484 = vmatpush.bf16.xpose.msra.mxu2 %v1048_v2  ;;  %1498 = vmatpush.bf16.xpose.msra.mxu3 %v1049_v46  ;;  %v799_v30 = vsel %vm7797_vm9, %v7434_v1, %v795_v34  ;;  %v967_v53 = vunpack.c.h.bf16 %v15511_v56  ;;  %v812_v51 = vmul.f32 %v7450_v12, %v7489_v38  ;;  %v809_v57 = vsel %vm7807_vm10, %v7443_v42, %v805_v17 }
 0x27c   : > { %v839_v1 = vsel %vm7820_vm11, %v7481_v40, %v835_v5  ;;  %v845_v13 = vmul.f32 %v7495_v36, %v844_v50  ;;  %vm816_vm12 = vweird.f32 %v7393_v23  ;;  %v7840_v11 = vpack.c.bf16 %v809_v57, %v799_v30  ;;  %v15517_v5 = vld [vmem:[#allocation17_spill] sm:$0xff] }
 0x27d   : > { %v813_v38 = vmul.f32 0.5, %v812_v51  ;;  %vm817_vm14 = vweird.f32 %v7450_v12  ;;  %v822_v42 = vmul.f32 %v7456_v33, %v7499_v62  ;;  %vm826_vm15 = vweird.f32 %v7396_v41 }
 0x27e   : > { %v849_v27 = vsel %vm848_vm13, %v7495_v36, %v845_v13  ;;  %vm827_vm3 = vweird.f32 %v7456_v33  ;;  %v852_v40 = vmul.f32 %v7509_v24, %v7554_v59  ;;  %v990_v19 = vunpack.c.l.bf16 %v7840_v11  ;;  %vm7873_vm6 = vmor %vm816_vm12, %vm817_vm14 }
 0x27f   : > { %v7850_v26 = vpack.c.bf16 %v849_v27, %v839_v1  ;;  %v991_v52 = vunpack.c.h.bf16 %v7840_v11  ;;  %v814_v48 = vsub.f32 1.5, %v813_v38  ;;  %v823_v21 = vmul.f32 0.5, %v822_v42  ;;  %vm828_vm9 = vmor %vm826_vm15, %vm827_vm3  ;;  %v15522_v42 = vld [vmem:[#allocation8_spill] sm:$0xff] }
 0x280   : > { %v853_v9 = vmul.f32 0.5, %v852_v40  ;;  %vm856_vm4 = vweird.f32 %v7431_v39  ;;  %vm857_vm5 = vweird.f32 %v7509_v24  ;;  %v1006_v62 = vmul.f32 %v990_v19, %v958_v55  ;;  %v15523_v40 = vld [vmem:[#allocation9_spill] sm:$0xff] }
 0x281   : > { %v994_v36 = vunpack.c.l.bf16 %v7850_v26  ;;  %v995_v59 = vunpack.c.h.bf16 %v7850_v26  ;;  %v1007_v61 = vmul.f32 %v991_v52, %v959_v14  ;;  %v815_v2 = vmul.f32 %v7450_v12, %v814_v48  ;;  %vm7892_vm10 = vmor %vm856_vm4, %vm857_vm5  ;;  %v15525_v55 = vld [vmem:[#allocation13_spill] sm:$0xff] }
 0x282   : > { %v824_v46 = vsub.f32 1.5, %v823_v21  ;;  %v854_v34 = vsub.f32 1.5, %v853_v9  ;;  %v862_v44 = vmul.f32 %v15514_v22, %v7568_v31  ;;  %vm866_vm7 = vweird.f32 %v15517_v5 }
 0x283   : > { %v1014_v17 = vmul.f32 %v994_v36, %v966_v45  ;;  %v1015_v37 = vmul.f32 %v995_v59, %v967_v53  ;;  %vm867_vm8 = vweird.f32 %v15514_v22  ;;  %v819_v31 = vsel %vm7873_vm6, %v7450_v12, %v815_v2  ;;  %v15520_v12 = vld [vmem:[#allocation6_spill] sm:$0xff]  ;;  %v15521_v53 = vld [vmem:[#allocation5_spill] sm:$0xff] }
 0x284   : > { %v825_v50 = vmul.f32 %v7456_v33, %v824_v46  ;;  %v855_v23 = vmul.f32 %v7509_v24, %v854_v34  ;;  %v863_v56 = vmul.f32 0.5, %v862_v44  ;;  %v960_v14 = vunpack.c.l.bf16 %v15520_v12  ;;  %vm868_vm11 = vmor %vm866_vm7, %vm867_vm8 }
 0x285   : > { %v1038_v45 = vpack.c.bf16 %v1014_v17, %v1006_v62  ;;  %v1039_v30 = vpack.c.bf16 %v1015_v37, %v1007_v61  ;;  %v968_v51 = vunpack.c.l.bf16 %v15521_v53  ;;  %v961_v13 = vunpack.c.h.bf16 %v15520_v12 }
 0x286   : > { %v829_v41 = vsel %vm828_vm9, %v7456_v33, %v825_v50  ;;  %v859_v57 = vsel %vm7892_vm10, %v7509_v24, %v855_v23  ;;  %v864_v1 = vsub.f32 1.5, %v863_v56  ;;  %v969_v38 = vunpack.c.h.bf16 %v15521_v53  ;;  %v15524_v24 = vld [vmem:[#allocation14_spill] sm:$0xff]  ;;  %v15529_v53 = vld [vmem:[#allocation35_spill] sm:$0xff] }
 0x287   : > { %1457 = vmatpush.bf16.xpose.msra.mxu0 %v1038_v45  ;;  %1471 = vmatpush.bf16.xpose.msra.mxu1 %v1039_v30  ;;  %v7903_v39 = vpack.c.bf16 %v829_v41, %v819_v31  ;;  %v978_v27 = vunpack.c.l.bf16 %v15522_v42  ;;  %v986_v48 = vunpack.c.l.bf16 %v15523_v40  ;;  %v979_v33 = vunpack.c.h.bf16 %v15522_v42  ;;  %v15527_v30 = vld [vmem:[#allocation43_spill] sm:$0xff]  ;;  %v15531_v42 = vld [vmem:[#allocation10_spill] sm:$0xff] }
 0x288   : > { %v865_v21 = vmul.f32 %v15514_v22, %v864_v1  ;;  %v987_v9 = vunpack.c.h.bf16 %v15523_v40  ;;  %v980_v62 = vunpack.c.l.bf16 %v15524_v24  ;;  %v988_v5 = vunpack.c.l.bf16 %v15525_v55 }
 0x289   : > { %v992_v61 = vunpack.c.l.bf16 %v7903_v39  ;;  %v993_v2 = vunpack.c.h.bf16 %v7903_v39  ;;  %v1026_v46 = vmul.f32 %v998_v43, %v978_v27  ;;  %v1034_v34 = vmul.f32 %v1002_v49, %v986_v48 }
 0x28a   : > { %v869_v44 = vsel %vm868_vm11, %v15514_v22, %v865_v21  ;;  %v1027_v17 = vmul.f32 %v999_v6, %v979_v33  ;;  %v1035_v37 = vmul.f32 %v1003_v25, %v987_v9  ;;  %v1028_v43 = vmul.f32 %v1000_v10, %v980_v62  ;;  %v15526_v25 = vld [vmem:[#allocation23_spill] sm:$0xff]  ;;  %v15528_v10 = vld [vmem:[#allocation24_spill] sm:$0xff] }
 0x28b   : > { %v953_v31 = vpack.c.bf16 %v869_v44, %v859_v57  ;;  %v1008_v50 = vmul.f32 %v992_v61, %v960_v14  ;;  %v1009_v23 = vmul.f32 %v993_v2, %v961_v13  ;;  %v1050_v56 = vpack.c.bf16 %v1034_v34, %v1026_v46 }
 0x28c   : > { %v1051_v45 = vpack.c.bf16 %v1035_v37, %v1027_v17  ;;  %v1036_v49 = vmul.f32 %v1004_v28, %v988_v5  ;;  %v981_v22 = vunpack.c.h.bf16 %v15524_v24  ;;  %v989_v35 = vunpack.c.h.bf16 %v15525_v55  ;;  %v15530_v28 = vld [vmem:[#allocation7_spill] sm:$0xff]  ;;  %v15533_v24 = vld [vmem:[#allocation12_spill] sm:$0xff]  ;;  %v15535_v37 = vld [vmem:[#allocation45_spill] sm:$0xff] }
 0x28d   : > { %v996_v18 = vunpack.c.l.bf16 %v953_v31  ;;  %v997_v6 = vunpack.c.h.bf16 %v953_v31  ;;  %v7936_v8 = vadd.f32 %v15527_v30, %v15526_v25  ;;  %v7942_v41 = vadd.f32 %v15529_v53, %v15528_v10  ;;  %v15534_v17 = vld [vmem:[#allocation27_spill] sm:$0xff]  ;;  %v15536_v5 = vld [vmem:[#allocation28_spill] sm:$0xff]  ;;  %v15542_v30 = vld [vmem:[#allocation33_spill] sm:$0xff] }
 0x28e   : > { %v1052_v12 = vpack.c.bf16 %v1036_v49, %v1028_v43  ;;  %v1029_v14 = vmul.f32 %v1001_v20, %v981_v22  ;;  %v962_v57 = vunpack.c.l.bf16 %v15530_v28  ;;  %v1037_v39 = vmul.f32 %v1005_v15, %v989_v35  ;;  %v15537_v31 = vld [vmem:[#allocation44_spill] sm:$0xff]  ;;  %v15540_v49 = vld [vmem:[#allocation30_spill] sm:$0xff] }
 0x28f   : > { %1512 = vmatpush.bf16.xpose.msrb.mxu0 %v1050_v56  ;;  %1526 = vmatpush.bf16.xpose.msrb.mxu1 %v1051_v45  ;;  %v1016_v1 = vmul.f32 %v996_v18, %v968_v51  ;;  %v1017_v13 = vmul.f32 %v997_v6, %v969_v38  ;;  %v970_v27 = vunpack.c.l.bf16 %v15531_v42  ;;  %v963_v20 = vunpack.c.h.bf16 %v15530_v28  ;;  %v15532_v51 = vld [vmem:[#allocation11_spill] sm:$0xff]  ;;  %v15538_v56 = vld [vmem:[#allocation21_spill] sm:$0xff] }
 0x290   : > { %1148 = vrot.lane.b32.xlu1 %v7936_v8, %s6243_s20  ;;  %1150 = vrot.lane.b32.xlu2 %v7942_v41, %s6243_s20  ;;  %v1010_v63 = vmul.f32 %v990_v19, %v962_v57  ;;  %v971_v40 = vunpack.c.h.bf16 %v15531_v42  ;;  %v964_v38 = vunpack.c.l.bf16 %v15532_v51  ;;  %v1053_v15 = vpack.c.bf16 %v1037_v39, %v1029_v14  ;;  %v15543_v14 = vld [vmem:[#allocation34_spill] sm:$0xff]  ;;  %v15545_v42 = vld [vmem:[#allocation16_spill] sm:$0xff] }
 0x291   : > { %v1040_v48 = vpack.c.bf16 %v1016_v1, %v1008_v50  ;;  %v1041_v58 = vpack.c.bf16 %v1017_v13, %v1009_v23  ;;  %v1018_v21 = vmul.f32 %v994_v36, %v970_v27  ;;  %v1011_v33 = vmul.f32 %v991_v52, %v963_v20 }
 0x292   : > { %v1019_v9 = vmul.f32 %v995_v59, %v971_v40  ;;  %v972_v19 = vunpack.c.l.bf16 %v15533_v24  ;;  %v1012_v62 = vmul.f32 %v992_v61, %v964_v38  ;;  %v965_v34 = vunpack.c.h.bf16 %v15532_v51  ;;  %v1099_v59 = vpop.permute.xlu1 %1098 }
 0x293   : > { %1485 = vmatpush.bf16.xpose.msra.mxu2 %v1040_v48  ;;  %1499 = vmatpush.bf16.xpose.msra.mxu3 %v1041_v58  ;;  %v1042_v46 = vpack.c.bf16 %v1018_v21, %v1010_v63  ;;  %v973_v44 = vunpack.c.h.bf16 %v15533_v24  ;;  %v1129_v55 = vadd.f32 %v15535_v37, %v15534_v17  ;;  %v7970_v50 = vadd.f32 %v15537_v31, %v15536_v5  ;;  %v15546_v21 = vld [vmem:[#allocation38_spill] sm:$0xff]  ;;  %v5842_v24 = vld [vmem:[%s6279_s18 + $0x148] sm:$0xff] }
 0x294   : > { %v1043_v11 = vpack.c.bf16 %v1019_v9, %v1011_v33  ;;  %v1020_v52 = vmul.f32 %v996_v18, %v972_v19  ;;  %v1013_v26 = vmul.f32 %v993_v2, %v965_v34  ;;  %v1117_v45 = vsel %vm15330_vm0, %v15538_v56, %v7573_v16  ;;  %v15539_v2 = vld [vmem:[#allocation46_spill] sm:$0xff]  ;;  %v15541_v18 = vld [vmem:[#allocation31_spill] sm:$0xff] }
 0x295   : > { %v1021_v36 = vmul.f32 %v997_v6, %v973_v44  ;;  %v1114_v43 = vsel %vm15330_vm0, %v15539_v2, %v1099_v59  ;;  %v1138_v22 = vadd.f32 %v1117_v45, %v15540_v49  ;;  %v1112_v16 = vsel %vm15330_vm0, %v1099_v59, %v7638_v4  ;;  %v15544_v4 = vld [vmem:[#allocation37_spill] sm:$0xff]  ;;  %v5841_v9 = vld [vmem:[%s6279_s18 + $0x140] sm:$0xff] }
 0x296   : > { %v1044_v61 = vpack.c.bf16 %v1020_v52, %v1012_v62  ;;  %v7984_v6 = vadd.f32 %v1114_v43, %v15541_v18  ;;  %v8047_v19 = vpack.c.bf16 %v5842_v24, %v5841_v9  ;;  %v5849_v37 = vld [vmem:[%s6279_s18 + $0x180] sm:$0xff] }
 0x297   : > { %1513 = vmatpush.bf16.xpose.msrb.mxu0 %v1042_v46  ;;  %1527 = vmatpush.bf16.xpose.msrb.mxu1 %v1043_v11  ;;  %v1045_v23 = vpack.c.bf16 %v1021_v36, %v1013_v26  ;;  %v8065_v11 = vld [vmem:[%s6279_s18 + $0x188] sm:$0xff] }
 0x298   : > { %1154 = vrot.lane.b32.xlu1 %v1129_v55, %s6243_s20  ;;  %1156 = vrot.lane.b32.xlu2 %v7970_v50, %s6243_s20  ;;  %15547 = vst [vmem:[#allocation2_spill] sm:$0xff] %v8047_v19  ;;  %v8068_v52 = vpack.c.bf16 %v8065_v11, %v5849_v37 }
 0x29a   : > { %v1105_v35 = vpop.permute.xlu1 %1104  ;;  %15548 = vst [vmem:[#allocation39_spill] sm:$0xff] %v8068_v52 }
 0x29b   : > { %1540 = vmatpush.bf16.xpose.msrb.mxu2 %v1052_v12  ;;  %1554 = vmatpush.bf16.xpose.msrb.mxu3 %v1053_v15  ;;  %v1113_v25 = vsel %vm15330_vm0, %v7636_v0, %v1105_v35  ;;  %v1132_v12 = vadd.f32 %v1112_v16, %v15542_v30  ;;  %v1111_v53 = vsel %vm15330_vm0, %v1105_v35, %v7715_v7  ;;  %v5834_v35 = vld [vmem:[%s6279_s18 + $0x108] sm:$0xff]  ;;  %v5833_v16 = vld [vmem:[%s6279_s18 + $0x100] sm:$0xff] }
 0x29c   : > { %v7997_v10 = vadd.f32 %v1113_v25, %v15543_v14  ;;  %v1141_v28 = vadd.f32 %v1111_v53, %v15544_v4  ;;  %v8116_v25 = vpack.c.bf16 %v5834_v35, %v5833_v16  ;;  %v8121_v30 = vmul.f32 %v5849_v37, %v5849_v37  ;;  %v5851_v53 = vld [vmem:[%s6279_s18 + $0x190] sm:$0xff]  ;;  %v5852_v4 = vld [vmem:[%s6279_s18 + $0x198] sm:$0xff]  ;;  %v5861_v37 = vld [vmem:[%s6279_s18 + $0x1e0] sm:$0x1] }
 0x29e   : > { %15549 = vst [vmem:[#allocation40_spill] sm:$0xff] %v8116_v25 }
 0x29f   : > { %15550 = vst [vmem:[#allocation19_spill] sm:$0xff] %v8121_v30 }
 0x2a0   : > { %1160 = vrot.lane.b32.xlu1 %v1138_v22, %s6243_s20  ;;  %1162 = vrot.lane.b32.xlu2 %v7984_v6, %s6243_s20 }
 0x2a3   : > { %1541 = vmatpush.bf16.xpose.msrb.mxu2 %v1044_v61  ;;  %1555 = vmatpush.bf16.xpose.msrb.mxu3 %v1045_v23 }
 0x2a8   : > { %1166 = vrot.lane.b32.xlu1 %v1132_v12, %s6243_s20  ;;  %1168 = vrot.lane.b32.xlu2 %v7997_v10, %s6243_s20 }
 0x2b0   : > { %1172 = vrot.lane.b32.xlu1 %v1141_v28, %s6243_s20 }
 0x2ca   : > { %v8007_v57 = vpop.permute.xlu0 %1146 }
 0x2ce   : > { %v1145_v51 = vpop.permute.xlu2 %1144 }
 0x2d2   : > { %v8009_v0 = vpop.permute.xlu0 %1152 }
 0x2da   : > { %v8011_v1 = vpop.permute.xlu0 %1158 }
 0x2e2   : > { %v8013_v13 = vpop.permute.xlu0 %1164 }
 0x2e5   : > { %v1143_v39 = vpop.permute.xlu1 %1142 }
 0x2e6   : > { %v1186_v7 = vsel %vm15329_vm1, %v1143_v39, %v8007_v57 }
 0x2e7   : > { %v8019_v27 = vadd.f32 %v1186_v7, %v15545_v42  ;;  %v8145_v42 = vmul.f32 %v5842_v24, %v5842_v24 }
 0x2e9   : > { %1210 = vrot.lane.b32.xlu1 %v8019_v27, %s6244_s21  ;;  %15553 = vst [vmem:[#allocation3_spill] sm:$0xff] %v8145_v42 }
 0x2ea   : > { %v1171_v63 = vpop.permute.xlu0 %1170  ;;  %v1151_v15 = vpop.permute.xlu2 %1150 }
 0x2eb   : > { %v1188_v20 = vsel %vm15329_vm1, %v1171_v63, %v1143_v39  ;;  %v5857_v39 = vld [vmem:[%s6279_s18 + $0x1c0] sm:$0x1] }
 0x2ec   : > { %v8026_v40 = vadd.f32 %v1188_v20, %v7749_v60 }
 0x2ee   : > { %1206 = vrot.lane.b32.xlu2 %v8026_v40, %s6244_s21 }
 0x2f2   : > { %v1157_v17 = vpop.permute.xlu2 %1156 }
 0x2fa   : > { %v1163_v61 = vpop.permute.xlu2 %1162 }
 0x302   : > { %v1149_v38 = vpop.permute.xlu1 %1148  ;;  %v1169_v45 = vpop.permute.xlu2 %1168 }
 0x303   : > { %v1185_v48 = vsel %vm15329_vm1, %v1149_v38, %v8009_v0  ;;  %v1187_v58 = vsel %vm15329_vm1, %v1145_v51, %v1149_v38  ;;  %v1177_v24 = vsel %vm15329_vm1, %v8013_v13, %v1169_v45 }
 0x304   : > { %v8036_v33 = vadd.f32 %v1185_v48, %v15546_v21  ;;  %v8039_v60 = vadd.f32 %v1187_v58, %v7936_v8  ;;  %v5837_v58 = vld [vmem:[%s6279_s18 + $0x120] sm:$0xff] }
 0x306   : > { %1216 = vrot.lane.b32.xlu1 %v8036_v33, %s6244_s21  ;;  %1212 = vrot.lane.b32.xlu2 %v8039_v60, %s6244_s21 }
 0x30a   : > { %v1155_v62 = vpop.permute.xlu1 %1154 }
 0x30b   : > { %v1180_v46 = vsel %vm15329_vm1, %v1155_v62, %v8011_v1  ;;  %v1182_v34 = vsel %vm15329_vm1, %v1151_v15, %v1155_v62 }
 0x30c   : > { %v8055_v8 = vadd.f32 %v1180_v46, %v7601_v54  ;;  %v8057_v44 = vadd.f32 %v1182_v34, %v1129_v55 }
 0x30e   : > { %1222 = vrot.lane.b32.xlu1 %v8055_v8, %s6244_s21  ;;  %1218 = vrot.lane.b32.xlu2 %v8057_v44, %s6244_s21 }
 0x312   : > { %v1161_v26 = vpop.permute.xlu1 %1160 }
 0x313   : > { %v1179_v54 = vsel %vm15329_vm1, %v1161_v26, %v8013_v13  ;;  %v1181_v55 = vsel %vm15329_vm1, %v1157_v17, %v1161_v26  ;;  %v5862_v26 = vld [vmem:[%s6279_s18 + $0x1e8] sm:$0x1] }
 0x314   : > { %v8076_v36 = vadd.f32 %v1179_v54, %v7660_v3  ;;  %v8078_v59 = vadd.f32 %v1181_v55, %v1138_v22  ;;  %v8101_v22 = vmul.f32 %v5841_v9, %v5841_v9  ;;  %v5844_v9 = vld [vmem:[%s6279_s18 + $0x158] sm:$0xff]  ;;  %v8202_v13 = vpack.c.bf16 %v5862_v26, %v5861_v37 }
 0x315   : > { %v8189_v34 = vmul.f32 %v5844_v9, %v5844_v9  ;;  %v5836_v54 = vld [vmem:[%s6279_s18 + $0x118] sm:$0xff] }
 0x316   : > { %1228 = vrot.lane.b32.xlu1 %v8076_v36, %s6244_s21  ;;  %1224 = vrot.lane.b32.xlu2 %v8078_v59, %s6244_s21  ;;  %15558 = vst [vmem:[#allocation5_spill] sm:$0xff] %v8202_v13  ;;  %v5864_v13 = vld [vmem:[%s6279_s18 + $0x1f8] sm:$0x1] }
 0x31a   : > { %v1167_v5 = vpop.permute.xlu1 %1166 }
 0x31b   : > { %v1174_v31 = vsel %vm15329_vm1, %v1167_v5, %v1171_v63  ;;  %v1176_v23 = vsel %vm15329_vm1, %v1163_v61, %v1167_v5  ;;  %v8211_v5 = vmul.f32 %v5837_v58, %v5837_v58 }
 0x31c   : > { %v8088_v3 = vadd.f32 %v1176_v23, %v1132_v12  ;;  %v8091_v56 = vadd.f32 %v1174_v31, %v7758_v32  ;;  %v8123_v12 = vmul.f32 %v5834_v35, %v5834_v35  ;;  %v5845_v31 = vld [vmem:[%s6279_s18 + $0x160] sm:$0xff]  ;;  %v5860_v23 = vld [vmem:[%s6279_s18 + $0x1d8] sm:$0x1] }
 0x31e   : > { %1230 = vrot.lane.b32.xlu2 %v8088_v3, %s6244_s21  ;;  %1234 = vrot.lane.b32.xlu1 %v8091_v56, %s6244_s21 }
 0x322   : > { %v1173_v2 = vpop.permute.xlu1 %1172 }
 0x323   : > { %v1175_v43 = vsel %vm15329_vm1, %v1169_v45, %v1173_v2  ;;  %v1189_v49 = vsel %vm15329_vm1, %v1173_v2, %v1145_v51  ;;  %v1178_v51 = vsel %vm15329_vm1, %v8011_v1, %v1163_v61  ;;  %v5859_v1 = vld [vmem:[%s6279_s18 + $0x1d0] sm:$0x1]  ;;  %v8209_v61 = vmul.f32 %v5852_v4, %v5852_v4 }
 0x324   : > { %v8104_v32 = vadd.f32 %v1189_v49, %v7765_v47  ;;  %v8106_v18 = vadd.f32 %v1175_v43, %v1141_v28  ;;  %v1184_v47 = vsel %vm15329_vm1, %v8007_v57, %v1151_v15  ;;  %v5858_v28 = vld [vmem:[%s6279_s18 + $0x1c8] sm:$0x1]  ;;  %v8137_v57 = vpack.c.bf16 %v5852_v4, %v5851_v53 }
 0x325   : > { %v8126_v14 = vadd.f32 %v1184_v47, %v7942_v41  ;;  %v8140_v7 = vpack.c.bf16 %v5858_v28, %v5857_v39  ;;  %v1183_v41 = vsel %vm15329_vm1, %v8009_v0, %v1157_v17  ;;  %v8147_v63 = vmul.f32 %v5858_v28, %v5858_v28  ;;  %v5835_v0 = vld [vmem:[%s6279_s18 + $0x110] sm:$0xff]  ;;  %v5838_v15 = vld [vmem:[%s6279_s18 + $0x128] sm:$0xff]  ;;  %15560 = vst [vmem:[#allocation9_spill] sm:$0xff] %v8209_v61  ;;  %v5848_v47 = vld [vmem:[%s6279_s18 + $0x178] sm:$0xff] }
 0x326   : > { %1208 = vrot.lane.b32.xlu0 %v8104_v32, %s6244_s21  ;;  %1236 = vrot.lane.b32.xlu2 %v8106_v18, %s6244_s21  ;;  %15551 = vst [vmem:[#allocation41_spill] sm:$0xff] %v8137_v57  ;;  %v8150_v20 = vadd.f32 %v1183_v41, %v7970_v50  ;;  %v8162_v38 = vmul.f32 %v5835_v0, %v5835_v0  ;;  %v5854_v4 = vld [vmem:[%s6279_s18 + $0x1a8] sm:$0xff]  ;;  %v5853_v41 = vld [vmem:[%s6279_s18 + $0x1a0] sm:$0xff] }
 0x327   : > { %1700 = vrot.lane.b32.xlu1 %v8101_v22, %s6242_s19  ;;  %15552 = vst [vmem:[#allocation20_spill] sm:$0xff] %v8140_v7  ;;  %v8164_v50 = vmul.f32 %v5851_v53, %v5851_v53  ;;  %v8167_v48 = vadd.f32 %v1178_v51, %v7984_v6  ;;  %v8178_v21 = vpack.c.bf16 %v5838_v15, %v5837_v58  ;;  %v5843_v6 = vld [vmem:[%s6279_s18 + $0x150] sm:$0xff] }
 0x328   : > { %15554 = vst [vmem:[#allocation4_spill] sm:$0xff] %v8162_v38  ;;  %v8185_v62 = vpack.c.bf16 %v5844_v9, %v5843_v6  ;;  %v8187_v46 = vmul.f32 %v5859_v1, %v5859_v1  ;;  %v8192_v17 = vadd.f32 %v1177_v24, %v7997_v10  ;;  %v8205_v55 = vpack.c.bf16 %v5836_v54, %v5835_v0 }
 0x329   : > { %15555 = vst [vmem:[#allocation42_spill] sm:$0xff] %v8178_v21  ;;  %v8207_v10 = vmul.f32 %v5833_v16, %v5833_v16  ;;  %v8221_v45 = vpack.c.bf16 %v5860_v23, %v5859_v1  ;;  %v8223_v2 = vmul.f32 %v5857_v39, %v5857_v39  ;;  %v8225_v43 = vmul.f32 %v5845_v31, %v5845_v31  ;;  %v5847_v16 = vld [vmem:[%s6279_s18 + $0x170] sm:$0xff]  ;;  %v5846_v1 = vld [vmem:[%s6279_s18 + $0x168] sm:$0xff] }
 0x32a   : > { %15556 = vst [vmem:[#allocation17_spill] sm:$0xff] %v8185_v62  ;;  %v8227_v49 = vmul.f32 %v5861_v37, %v5861_v37  ;;  %v8239_v53 = vpack.c.bf16 %v5848_v47, %v5847_v16  ;;  %v8244_v28 = vmul.f32 %v8065_v11, %v8065_v11  ;;  %v8246_v39 = vmul.f32 %v5838_v15, %v5838_v15  ;;  %v5855_v37 = vld [vmem:[%s6279_s18 + $0x1b0] sm:$0xff] }
 0x32b   : > { %15557 = vst [vmem:[#allocation6_spill] sm:$0xff] %v8187_v46  ;;  %v8249_v0 = vmul.f32 %v5854_v4, %v5854_v4  ;;  %v8251_v51 = vpack.c.bf16 %v5854_v4, %v5853_v41  ;;  %v8261_v58 = vmul.f32 %v5843_v6, %v5843_v6  ;;  %v8263_v15 = vmul.f32 %v5862_v26, %v5862_v26  ;;  %v5840_v26 = vld [vmem:[%s6279_s18 + $0x138] sm:$0xff] }
 0x32c   : > { %15559 = vst [vmem:[#allocation8_spill] sm:$0xff] %v8205_v55  ;;  %v8266_v9 = vmul.f32 %v5847_v16, %v5847_v16  ;;  %v8268_v24 = vpack.c.bf16 %v5846_v1, %v5845_v31  ;;  %v8278_v4 = vmul.f32 %v5836_v54, %v5836_v54  ;;  %v8280_v16 = vmul.f32 %v5855_v37, %v5855_v37  ;;  %v5839_v31 = vld [vmem:[%s6279_s18 + $0x130] sm:$0xff] }
 0x32d   : > { %15561 = vst [vmem:[#allocation14_spill] sm:$0xff] %v8221_v45  ;;  %v8298_v62 = vmul.f32 %v5848_v47, %v5848_v47  ;;  %v5856_v47 = vld [vmem:[%s6279_s18 + $0x1b8] sm:$0xff]  ;;  %v8320_v57 = vmul.f32 %v5846_v1, %v5846_v1 }
 0x32e   : > { %1214 = vrot.lane.b32.xlu0 %v8126_v14, %s6244_s21  ;;  %1702 = vrot.lane.b32.xlu2 %v8121_v30, %s6242_s19  ;;  %15562 = vst [vmem:[#allocation13_spill] sm:$0xff] %v8225_v43  ;;  %v8314_v45 = vpack.c.bf16 %v5856_v47, %v5855_v37 }
 0x32f   : > { %1706 = vrot.lane.b32.xlu1 %v8123_v12, %s6242_s19  ;;  %15563 = vst [vmem:[#allocation23_spill] sm:$0xff] %v8239_v53  ;;  %v8283_v53 = vmul.f32 %v5840_v26, %v5840_v26 }
 0x330   : > { %15564 = vst [vmem:[#allocation43_spill] sm:$0xff] %v8246_v39 }
 0x331   : > { %15565 = vst [vmem:[#allocation24_spill] sm:$0xff] %v8251_v51  ;;  %v8296_v51 = vmul.f32 %v5860_v23, %v5860_v23  ;;  %v8311_v23 = vmul.f32 %v5853_v41, %v5853_v41  ;;  %v8328_v41 = vmul.f32 %v5839_v31, %v5839_v31 }
 0x332   : > { %15566 = vst [vmem:[#allocation35_spill] sm:$0xff] %v8263_v15 }
 0x333   : > { %15567 = vst [vmem:[#allocation7_spill] sm:$0xff] %v8266_v9 }
 0x334   : > { %15568 = vst [vmem:[#allocation10_spill] sm:$0xff] %v8268_v24  ;;  %v8285_v24 = vpack.c.bf16 %v5840_v26, %v5839_v31  ;;  %v8300_v26 = vmul.f32 %v5864_v13, %v5864_v13 }
 0x335   : > { %15569 = vst [vmem:[#allocation11_spill] sm:$0xff] %v8280_v16 }
 0x336   : > { %1220 = vrot.lane.b32.xlu0 %v8150_v20, %s6244_s21  ;;  %1708 = vrot.lane.b32.xlu2 %v8145_v42, %s6242_s19  ;;  %15570 = vst [vmem:[#allocation12_spill] sm:$0xff] %v8283_v53 }
 0x337   : > { %1712 = vrot.lane.b32.xlu1 %v8147_v63, %s6242_s19  ;;  %15571 = vst [vmem:[#allocation27_spill] sm:$0xff] %v8285_v24  ;;  %v5863_v24 = vld [vmem:[%s6279_s18 + $0x1f0] sm:$0x1] }
 0x338   : > { %15572 = vst [vmem:[#allocation45_spill] sm:$0xff] %v8298_v62  ;;  %v8303_v55 = vpack.c.bf16 %v5864_v13, %v5863_v24 }
 0x339   : > { %15573 = vst [vmem:[#allocation28_spill] sm:$0xff] %v8300_v26 }
 0x33a   : > { %15574 = vst [vmem:[#allocation44_spill] sm:$0xff] %v8303_v55 }
 0x33b   : > { %15575 = vst [vmem:[#allocation21_spill] sm:$0xff] %v8311_v23 }
 0x33c   : > { %15576 = vst [vmem:[#allocation46_spill] sm:$0xff] %v8314_v45 }
 0x33d   : > { %15577 = vst [vmem:[#allocation30_spill] sm:$0xff] %v8320_v57 }
 0x33e   : > { %1226 = vrot.lane.b32.xlu0 %v8167_v48, %s6244_s21  ;;  %1714 = vrot.lane.b32.xlu2 %v8162_v38, %s6242_s19  ;;  %15578 = vst [vmem:[#allocation31_spill] sm:$0xff] %v8328_v41 }
 0x33f   : > { %1718 = vrot.lane.b32.xlu1 %v8164_v50, %s6242_s19 }
 0x346   : > { %1232 = vrot.lane.b32.xlu0 %v8192_v17, %s6244_s21  ;;  %1720 = vrot.lane.b32.xlu2 %v8187_v46, %s6242_s19 }
 0x347   : > { %1724 = vrot.lane.b32.xlu1 %v8189_v34, %s6242_s19 }
 0x348   : > { %v8233_v35 = vpop.permute.xlu2 %1206 }
 0x34e   : > { %1698 = vrot.lane.b32.xlu0 %v8207_v10, %s6242_s19  ;;  %1726 = vrot.lane.b32.xlu2 %v8209_v61, %s6242_s19 }
 0x34f   : > { %1730 = vrot.lane.b32.xlu1 %v8211_v5, %s6242_s19 }
 0x356   : > { %1704 = vrot.lane.b32.xlu0 %v8223_v2, %s6242_s19  ;;  %1732 = vrot.lane.b32.xlu2 %v8225_v43, %s6242_s19 }
 0x357   : > { %1736 = vrot.lane.b32.xlu1 %v8227_v49, %s6242_s19 }
 0x35b   : > { %v1211_v21 = vpop.permute.xlu1 %1210 }
 0x35e   : > { %1710 = vrot.lane.b32.xlu0 %v8244_v28, %s6242_s19  ;;  %1738 = vrot.lane.b32.xlu2 %v8246_v39, %s6242_s19  ;;  %v8342_v39 = vmul.f32 %v5856_v47, %v5856_v47 }
 0x35f   : > { %1742 = vrot.lane.b32.xlu1 %v8249_v0, %s6242_s19 }
 0x360   : > { %v8259_v11 = vpop.permute.xlu2 %1212  ;;  %15580 = vst [vmem:[#allocation34_spill] sm:$0xff] %v8342_v39 }
 0x366   : > { %1716 = vrot.lane.b32.xlu0 %v8261_v58, %s6242_s19  ;;  %1744 = vrot.lane.b32.xlu2 %v8263_v15, %s6242_s19 }
 0x367   : > { %1748 = vrot.lane.b32.xlu1 %v8266_v9, %s6242_s19 }
 0x368   : > { %v1219_v6 = vpop.permute.xlu2 %1218 }
 0x36e   : > { %1722 = vrot.lane.b32.xlu0 %v8278_v4, %s6242_s19  ;;  %1750 = vrot.lane.b32.xlu2 %v8280_v16, %s6242_s19 }
 0x36f   : > { %1754 = vrot.lane.b32.xlu1 %v8283_v53, %s6242_s19 }
 0x370   : > { %v8293_v54 = vpop.permute.xlu2 %1224 }
 0x376   : > { %1728 = vrot.lane.b32.xlu0 %v8296_v51, %s6242_s19  ;;  %1756 = vrot.lane.b32.xlu2 %v8298_v62, %s6242_s19  ;;  %v8334_v62 = vmul.f32 %v5863_v24, %v5863_v24 }
 0x377   : > { %1760 = vrot.lane.b32.xlu1 %v8300_v26, %s6242_s19 }
 0x378   : > { %v1217_v19 = vpop.permute.xlu1 %1216  ;;  %v1231_v25 = vpop.permute.xlu2 %1230  ;;  %15579 = vst [vmem:[#allocation33_spill] sm:$0xff] %v8334_v62 }
 0x37e   : > { %1734 = vrot.lane.b32.xlu0 %v8311_v23, %s6242_s19 }
 0x380   : > { %v1223_v13 = vpop.permute.xlu1 %1222  ;;  %v8318_v55 = vpop.permute.xlu2 %1236 }
 0x386   : > { %1740 = vrot.lane.b32.xlu0 %v8320_v57, %s6242_s19  ;;  %v1244_v57 = vsel %vm15220_vm2, %v1219_v6, %v1223_v13 }
 0x387   : > { %v1258_v9 = vadd.f32 %v1244_v57, %v8055_v8 }
 0x388   : > { %v8324_v7 = vpop.permute.xlu1 %1228  ;;  %v8326_v52 = vpop.permute.xlu2 %1702 }
 0x38e   : > { %1746 = vrot.lane.b32.xlu0 %v8328_v41, %s6242_s19 }
 0x390   : > { %v8332_v37 = vpop.permute.xlu2 %1708  ;;  %v1235_v45 = vpop.permute.xlu1 %1234 }
 0x391   : > { %v1238_v26 = vsel %vm15220_vm2, %v1231_v25, %v1235_v45  ;;  %v1252_v38 = vsel %vm15220_vm2, %v1235_v45, %v8233_v35 }
 0x392   : > { %v1254_v23 = vadd.f32 %v1252_v38, %v8026_v40  ;;  %v1261_v30 = vadd.f32 %v1238_v26, %v8091_v56 }
 0x394   : > { %v1270_v56 = vadd.f32 %v1261_v30, %v1254_v23 }
 0x396   : > { %1752 = vrot.lane.b32.xlu0 %v8334_v62, %s6242_s19 }
 0x398   : > { %v8338_v1 = vpop.permute.xlu2 %1714  ;;  %v1209_v16 = vpop.permute.xlu0 %1208 }
 0x399   : > { %v8340_v15 = vpop.permute.xlu1 %1700 }
 0x39e   : > { %1758 = vrot.lane.b32.xlu0 %v8342_v39, %s6242_s19  ;;  %v1250_v39 = vsel %vm15220_vm2, %v8233_v35, %v1211_v21 }
 0x3a0   : > { %v8346_v31 = vpop.permute.xlu2 %1720  ;;  %v1215_v43 = vpop.permute.xlu0 %1214 }
 0x3a1   : > { %v8348_v61 = vpop.permute.xlu1 %1706  ;;  %v1248_v62 = vsel %vm15220_vm2, %v1211_v21, %v1215_v43  ;;  %v1246_v47 = vsel %vm15220_vm2, %v1215_v43, %v1219_v6  ;;  %v1249_v43 = vsel %vm15220_vm2, %v8259_v11, %v1217_v19  ;;  %v1255_v21 = vadd.f32 %v1250_v39, %v8019_v27 }
 0x3a2   : > { %v1256_v53 = vadd.f32 %v1248_v62, %v8126_v14  ;;  %v1257_v42 = vadd.f32 %v1246_v47, %v8057_v44  ;;  %v1264_v45 = vadd.f32 %v1249_v43, %v8036_v33  ;;  %v1243_v14 = vsel %vm15220_vm2, %v8293_v54, %v8324_v7 }
 0x3a3   : > { %v1271_v26 = vadd.f32 %v1255_v21, %v1254_v23 }
 0x3a4   : > { %v1272_v62 = vadd.f32 %v1256_v53, %v1255_v21  ;;  %v1274_v44 = vadd.f32 %v1258_v9, %v1257_v42  ;;  %v1273_v47 = vadd.f32 %v1257_v42, %v1256_v53 }
 0x3a6   : > { %v1289_v42 = vadd.f32 %v1273_v47, %v1271_v26 }
 0x3a8   : > { %v8350_v24 = vpop.permute.xlu2 %1726  ;;  %v1221_v46 = vpop.permute.xlu0 %1220 }
 0x3a9   : > { %v8354_v41 = vpop.permute.xlu1 %1712  ;;  %v1247_v27 = vsel %vm15220_vm2, %v1217_v19, %v1221_v46  ;;  %v1245_v57 = vsel %vm15220_vm2, %v1221_v46, %v8293_v54  ;;  %v1251_v19 = vsel %vm15220_vm2, %v1209_v16, %v8259_v11  ;;  %v1267_v46 = vadd.f32 %v1243_v14, %v8076_v36 }
 0x3aa   : > { %15581 = vst [vmem:[#allocation37_spill] sm:$0xff] %v8354_v41  ;;  %v1290_v54 = vadd.f32 %v1274_v44, %v1272_v62 }
 0x3b0   : > { %v8382_v35 = vpop.permute.xlu2 %1732  ;;  %v1227_v6 = vpop.permute.xlu0 %1226 }
 0x3b1   : > { %15582 = vst [vmem:[#allocation16_spill] sm:$0xff] %v8382_v35  ;;  %v8386_v40 = vpop.permute.xlu1 %1718  ;;  %v1240_v8 = vsel %vm15220_vm2, %v1227_v6, %v1231_v25  ;;  %v1242_v33 = vsel %vm15220_vm2, %v1223_v13, %v1227_v6  ;;  %v1253_v25 = vsel %vm15220_vm2, %v8318_v55, %v1209_v16  ;;  %v1265_v13 = vadd.f32 %v1247_v27, %v8150_v20 }
 0x3b2   : > { %v1259_v38 = vadd.f32 %v1242_v33, %v8167_v48  ;;  %v1260_v39 = vadd.f32 %v1240_v8, %v8088_v3  ;;  %v1288_v48 = vadd.f32 %v1272_v62, %v1270_v56  ;;  %v1266_v3 = vadd.f32 %v1245_v57, %v8078_v59 }
 0x3b3   : > { %v1262_v33 = vadd.f32 %v1253_v25, %v8104_v32  ;;  %v1263_v16 = vadd.f32 %v1251_v19, %v8039_v60  ;;  %v1281_v20 = vadd.f32 %v1265_v13, %v1264_v45 }
 0x3b4   : > { %v1275_v43 = vadd.f32 %v1259_v38, %v1258_v9  ;;  %v1276_v6 = vadd.f32 %v1260_v39, %v1259_v38  ;;  %v1277_v35 = vadd.f32 %v1261_v30, %v1260_v39  ;;  %v1282_v14 = vadd.f32 %v1266_v3, %v1265_v13 }
 0x3b5   : > { %v1283_v32 = vadd.f32 %v1267_v46, %v1266_v3  ;;  %v1279_v25 = vadd.f32 %v1263_v16, %v1262_v33 }
 0x3b6   : > { %v1286_v23 = vadd.f32 %v1276_v6, %v1270_v56  ;;  %v1287_v21 = vadd.f32 %v1277_v35, %v1271_v26  ;;  %v1291_v8 = vadd.f32 %v1275_v43, %v1273_v47  ;;  %v1292_v11 = vadd.f32 %v1276_v6, %v1274_v44 }
 0x3b7   : > { %v1293_v53 = vadd.f32 %v1277_v35, %v1275_v43  ;;  %v1280_v47 = vadd.f32 %v1264_v45, %v1263_v16  ;;  %v1299_v6 = vadd.f32 %v1283_v32, %v1281_v20  ;;  %v1297_v3 = vadd.f32 %v1281_v20, %v1279_v25 }
 0x3b8   : > { %v1302_v9 = vadd.f32 %v1290_v54, %v1286_v23  ;;  %v1303_v27 = vadd.f32 %v1291_v8, %v1287_v21  ;;  %v1304_v30 = vadd.f32 %v1292_v11, %v1288_v48  ;;  %v8408_v38 = vpop.permute.xlu2 %1738  ;;  %v1233_v36 = vpop.permute.xlu0 %1232 }
 0x3b9   : > { %15583 = vst [vmem:[#allocation38_spill] sm:$0xff] %v8408_v38  ;;  %v1305_v62 = vadd.f32 %v1293_v53, %v1289_v42  ;;  %v8410_v59 = vpop.permute.xlu1 %1724  ;;  %v1239_v44 = vsel %vm15220_vm2, %v1233_v36, %v8318_v55  ;;  %v1241_v60 = vsel %vm15220_vm2, %v8324_v7, %v1233_v36  ;;  %v1298_v43 = vadd.f32 %v1282_v14, %v1280_v47 }
 0x3ba   : > { %v8418_v35 = vmax.f32 %v1302_v9, 1e-16  ;;  %v8420_v56 = vmax.f32 %v1303_v27, 1e-16  ;;  %v8422_v57 = vmax.f32 %v1304_v30, 1e-16  ;;  %v1268_v26 = vadd.f32 %v1241_v60, %v8192_v17 }
 0x3bb   : > { %v8424_v39 = vmax.f32 %v1305_v62, 1e-16  ;;  %v1269_v19 = vadd.f32 %v1239_v44, %v8106_v18 }
 0x3bc   : > { %6040 = vrsqrt.f32 %v8418_v35  ;;  %v1284_v55 = vadd.f32 %v1268_v26, %v1267_v46  ;;  %vm1324_vm14 = vweird.f32 %v8418_v35  ;;  %vm1334_vm15 = vweird.f32 %v8420_v56 }
 0x3bd   : > { %6042 = vrsqrt.f32 %v8420_v56  ;;  %v1278_v7 = vadd.f32 %v1269_v19, %v1262_v33  ;;  %v1285_v13 = vadd.f32 %v1269_v19, %v1268_v26  ;;  %vm1344_vm9 = vweird.f32 %v8422_v57 }
 0x3be   : > { %6044 = vrsqrt.f32 %v8422_v57  ;;  %v1300_v18 = vadd.f32 %v1284_v55, %v1282_v14 }
 0x3bf   : > { %6046 = vrsqrt.f32 %v8424_v39  ;;  %v1294_v48 = vadd.f32 %v1284_v55, %v1278_v7  ;;  %v1295_v54 = vadd.f32 %v1285_v13, %v1279_v25  ;;  %v1296_v17 = vadd.f32 %v1280_v47, %v1278_v7 }
 0x3c0   : > { %v1301_v23 = vadd.f32 %v1285_v13, %v1283_v32  ;;  %v8432_v45 = vpop.permute.xlu2 %1744  ;;  %v8434_v21 = vpop.permute.xlu0 %1698 }
 0x3c1   : > { %15584 = vst [vmem:[#allocation47_spill] sm:$0xff] %v8432_v45  ;;  %v1306_v8 = vadd.f32 %v1298_v43, %v1294_v48  ;;  %v1307_v11 = vadd.f32 %v1299_v6, %v1295_v54  ;;  %v8436_v46 = vpop.permute.xlu1 %1730  ;;  %v1308_v16 = vadd.f32 %v1300_v18, %v1296_v17 }
 0x3c2   : > { %v8438_v33 = vpop.eup %6040  ;;  %v1309_v42 = vadd.f32 %v1301_v23, %v1297_v3 }
 0x3c3   : > { %v8440_v53 = vpop.eup %6042  ;;  %v1319_v9 = vmul.f32 %v8438_v33, %v8418_v35  ;;  %v8444_v20 = vmax.f32 %v1306_v8, 1e-16  ;;  %v8446_v27 = vmax.f32 %v1307_v11, 1e-16  ;;  %v8452_v14 = vmax.f32 %v1308_v16, 1e-16 }
 0x3c4   : > { %v8448_v30 = vpop.eup %6044  ;;  %v1329_v36 = vmul.f32 %v8440_v53, %v8420_v56  ;;  %v8454_v62 = vmax.f32 %v1309_v42, 1e-16  ;;  %vm1325_vm12 = vweird.f32 %v8438_v33  ;;  %vm1335_vm13 = vweird.f32 %v8440_v53 }
 0x3c5   : > { %v8456_v44 = vpop.eup %6046  ;;  %v1339_v60 = vmul.f32 %v8448_v30, %v8422_v57  ;;  %6048 = vrsqrt.f32 %v8444_v20  ;;  %v1320_v32 = vmul.f32 %v8438_v33, %v1319_v9  ;;  %vm8487_vm3 = vmor %vm1324_vm14, %vm1325_vm12  ;;  %v15588_v9 = vld [vmem:[#allocation22_spill] sm:$0xff]  ;;  %vm1345_vm5 = vweird.f32 %v8448_v30 }
 0x3c6   : > { %v1349_v26 = vmul.f32 %v8456_v44, %v8424_v39  ;;  %6050 = vrsqrt.f32 %v8446_v27  ;;  %v1330_v19 = vmul.f32 %v8440_v53, %v1329_v36  ;;  %vm8497_vm4 = vmor %vm1334_vm15, %vm1335_vm13  ;;  %vm1355_vm6 = vweird.f32 %v8456_v44 }
 0x3c7   : > { %6052 = vrsqrt.f32 %v8452_v14  ;;  %v1321_v25 = vmul.f32 0.5, %v1320_v32  ;;  %v1340_v47 = vmul.f32 %v8448_v30, %v1339_v60  ;;  %vm1364_vm7 = vweird.f32 %v8444_v20  ;;  %vm8547_vm11 = vmor %vm1344_vm9, %vm1345_vm5 }
 0x3c8   : > { %6054 = vrsqrt.f32 %v8454_v62  ;;  %v8469_v7 = vpop.permute.xlu2 %1750  ;;  %v8471_v55 = vpop.permute.xlu0 %1704  ;;  %v1331_v13 = vmul.f32 0.5, %v1330_v19  ;;  %v1350_v43 = vmul.f32 %v8456_v44, %v1349_v26  ;;  %v15591_v26 = vld [vmem:[#allocation15_spill] sm:$0xff]  ;;  %vm1354_vm12 = vweird.f32 %v8424_v39 }
 0x3c9   : > { %15585 = vst [vmem:[#allocation48_spill] sm:$0xff] %v8469_v7  ;;  %v8474_v6 = vpop.permute.xlu1 %1736  ;;  %v1322_v48 = vsub.f32 1.5, %v1321_v25  ;;  %v1341_v54 = vmul.f32 0.5, %v1340_v47  ;;  %v1403_v25 = vunpack.c.h.bf16 %v15588_v9  ;;  %vm1374_vm13 = vweird.f32 %v8446_v27  ;;  %vm8560_vm14 = vmor %vm1354_vm12, %vm1355_vm6 }
 0x3ca   : > { %v1332_v17 = vsub.f32 1.5, %v1331_v13  ;;  %v1351_v3 = vmul.f32 0.5, %v1350_v43  ;;  %vm1384_vm5 = vweird.f32 %v8452_v14  ;;  %vm15216_vm12 = vcmask 39936  }
 0x3cb   : > { %v8478_v18 = vpop.eup %6048  ;;  %v1323_v23 = vmul.f32 %v8438_v33, %v1322_v48  ;;  %v1342_v60 = vsub.f32 1.5, %v1341_v54 }
 0x3cc   : > { %v8483_v8 = vpop.eup %6050  ;;  %v1359_v11 = vmul.f32 %v8478_v18, %v8444_v20  ;;  %v1333_v42 = vmul.f32 %v8440_v53, %v1332_v17  ;;  %v1352_v47 = vsub.f32 1.5, %v1351_v3  ;;  %v1786_v3 = vsel %vm15330_vm0, %v8434_v21, %v8348_v61 }
 0x3cd   : > { %v8493_v32 = vpop.eup %6052  ;;  %v1369_v35 = vmul.f32 %v8483_v8, %v8446_v27  ;;  %v1327_v48 = vsel %vm8487_vm3, %v8438_v33, %v1323_v23  ;;  %vm1365_vm8 = vweird.f32 %v8478_v18  ;;  %vm1375_vm10 = vweird.f32 %v8483_v8 }
 0x3ce   : > { %v8503_v13 = vpop.eup %6054  ;;  %v1379_v43 = vmul.f32 %v8493_v32, %v8452_v14  ;;  %v1337_v54 = vsel %vm8497_vm4, %v8440_v53, %v1333_v42  ;;  %v1360_v17 = vmul.f32 %v8478_v18, %v1359_v11  ;;  %v1343_v11 = vmul.f32 %v8448_v30, %v1342_v60  ;;  %vm1366_vm15 = vmor %vm1364_vm7, %vm1365_vm8  ;;  %v15603_v14 = vld [vmem:[#allocation26_spill] sm:$0xff] }
 0x3cf   : > { %v1370_v19 = vmul.f32 %v8483_v8, %v1369_v35  ;;  %v1389_v33 = vmul.f32 %v8503_v13, %v8454_v62  ;;  %v8535_v7 = vpack.c.bf16 %v1337_v54, %v1327_v48  ;;  %v1353_v45 = vmul.f32 %v8456_v44, %v1352_v47  ;;  %vm1376_vm3 = vmor %vm1374_vm13, %vm1375_vm10 }
 0x3d0   : > { %v8523_v23 = vpop.permute.xlu2 %1756  ;;  %v8525_v16 = vpop.permute.xlu0 %1710  ;;  %v1361_v53 = vmul.f32 0.5, %v1360_v17  ;;  %v1380_v42 = vmul.f32 %v8493_v32, %v1379_v43  ;;  %v1411_v54 = vunpack.c.h.bf16 %v15591_v26  ;;  %vm1385_vm4 = vweird.f32 %v8493_v32 }
 0x3d1   : > { %15592 = vst [vmem:[#allocation22_spill] sm:$0xff] %v8523_v23  ;;  %v1791_v35 = vsel %vm15330_vm0, %v8523_v23, %v8340_v15  ;;  %v8533_v56 = vpop.permute.xlu1 %1742  ;;  %v1371_v36 = vmul.f32 0.5, %v1370_v19  ;;  %v1390_v47 = vmul.f32 %v8503_v13, %v1389_v33  ;;  %v1418_v48 = vunpack.c.l.bf16 %v8535_v7  ;;  %vm8596_vm7 = vmor %vm1384_vm5, %vm1385_vm4 }
 0x3d2   : > { %v8539_v38 = vadd.f32 %v1791_v35, %v8101_v22  ;;  %v1362_v60 = vsub.f32 1.5, %v1361_v53  ;;  %v1347_v22 = vsel %vm8547_vm11, %v8448_v30, %v1343_v11  ;;  %v1357_v30 = vsel %vm8560_vm14, %v8456_v44, %v1353_v45 }
 0x3d3   : > { %v1372_v43 = vsub.f32 1.5, %v1371_v36  ;;  %v1381_v36 = vmul.f32 0.5, %v1380_v42  ;;  %v1419_v17 = vunpack.c.h.bf16 %v8535_v7  ;;  %v1391_v33 = vmul.f32 0.5, %v1390_v47 }
 0x3d4   : > { %15593 = vst [vmem:[#allocation15_spill] sm:$0xff] %v8539_v38  ;;  %1828 = vrot.lane.b32.xlu0 %v8539_v38, %s6243_s20  ;;  %v1363_v39 = vmul.f32 %v8478_v18, %v1362_v60  ;;  %v8576_v11 = vadd.f32 %v1786_v3, %v8123_v12  ;;  %v1789_v12 = vsel %vm15330_vm0, %v8471_v55, %v8354_v41  ;;  %vm1395_vm6 = vweird.f32 %v8503_v13 }
 0x3d5   : > { %v1373_v27 = vmul.f32 %v8483_v8, %v1372_v43  ;;  %v1382_v53 = vsub.f32 1.5, %v1381_v36  ;;  %v1392_v44 = vsub.f32 1.5, %v1391_v33  ;;  %v8584_v43 = vpack.c.bf16 %v1357_v30, %v1347_v22  ;;  %v15602_v22 = vld [vmem:[#allocation18_spill] sm:$0xff] }
 0x3d6   : > { %15598 = vst [vmem:[#allocation49_spill] sm:$0xff] %v8576_v11  ;;  %v1367_v20 = vsel %vm1366_vm15, %v8478_v18, %v1363_v39  ;;  %v15599_v18 = vunpack.c.l.bf16 %v15588_v9  ;;  %v1427_v19 = vmul.f32 %v1419_v17, %v1403_v25  ;;  %vm1394_vm8 = vweird.f32 %v8454_v62 }
 0x3d7   : > { %v1377_v42 = vsel %vm1376_vm3, %v8483_v8, %v1373_v27  ;;  %v1383_v45 = vmul.f32 %v8493_v32, %v1382_v53  ;;  %v1404_v36 = vunpack.c.l.bf16 %v15602_v22  ;;  %v1393_v39 = vmul.f32 %v8503_v13, %v1392_v44  ;;  %vm1396_vm9 = vmor %vm1394_vm8, %vm1395_vm6 }
 0x3d8   : > { %v8581_v35 = vpop.permute.xlu0 %1716  ;;  %v1400_v60 = vpack.c.bf16 %v1377_v42, %v1367_v20  ;;  %v1426_v8 = vmul.f32 %v1418_v48, %v15599_v18  ;;  %v1412_v27 = vunpack.c.l.bf16 %v15603_v14  ;;  %v15604_v25 = vunpack.c.l.bf16 %v15591_v26  ;;  %v15605_v42 = vld [vmem:[#allocation29_spill] sm:$0xff] }
 0x3d9   : > { %v8590_v7 = vpop.permute.xlu1 %1748  ;;  %v1387_v9 = vsel %vm8596_vm7, %v8493_v32, %v1383_v45  ;;  %v1420_v62 = vunpack.c.l.bf16 %v8584_v43  ;;  %v1405_v53 = vunpack.c.h.bf16 %v15602_v22  ;;  %v1413_v33 = vunpack.c.h.bf16 %v15603_v14  ;;  %v15606_v45 = vld [vmem:[#allocation32_spill] sm:$0xff] }
 0x3da   : > { %v1422_v3 = vunpack.c.l.bf16 %v1400_v60  ;;  %v1423_v47 = vunpack.c.h.bf16 %v1400_v60  ;;  %v1397_v32 = vsel %vm1396_vm9, %v8503_v13, %v1393_v39  ;;  %v1406_v60 = vunpack.c.l.bf16 %v15605_v42 }
 0x3db   : > { %v1414_v44 = vunpack.c.l.bf16 %v15606_v45  ;;  %v1401_v57 = vpack.c.bf16 %v1397_v32, %v1387_v9  ;;  %v1407_v26 = vunpack.c.h.bf16 %v15605_v42  ;;  %v1415_v22 = vunpack.c.h.bf16 %v15606_v45  ;;  %v15607_v32 = vld [vmem:[#allocation36_spill] sm:$0xff]  ;;  %v15608_v42 = vld [vmem:[#allocation25_spill] sm:$0xff] }
 0x3dc   : > { %1834 = vrot.lane.b32.xlu0 %v8576_v11, %s6243_s20  ;;  %v1434_v30 = vmul.f32 %v1422_v3, %v15604_v25  ;;  %v1435_v20 = vmul.f32 %v1423_v47, %v1411_v54  ;;  %v1421_v11 = vunpack.c.h.bf16 %v8584_v43  ;;  %v1430_v38 = vmul.f32 %v1418_v48, %v1406_v60 }
 0x3dd   : > { %v1438_v23 = vmul.f32 %v1422_v3, %v1414_v44  ;;  %v8621_v14 = vadd.f32 %v1789_v12, %v8147_v63  ;;  %v1424_v13 = vunpack.c.l.bf16 %v1401_v57  ;;  %v1428_v54 = vmul.f32 %v1420_v62, %v1404_v36 }
 0x3de   : > { %v1442_v18 = vpack.c.bf16 %v1434_v30, %v1426_v8  ;;  %v1443_v25 = vpack.c.bf16 %v1435_v20, %v1427_v19  ;;  %v1425_v39 = vunpack.c.h.bf16 %v1401_v57  ;;  %v1431_v43 = vmul.f32 %v1419_v17, %v1407_v26 }
 0x3df   : > { %v1446_v9 = vpack.c.bf16 %v1438_v23, %v1430_v38  ;;  %v1439_v30 = vmul.f32 %v1423_v47, %v1415_v22  ;;  %v1408_v19 = vunpack.c.l.bf16 %v15607_v32  ;;  %v1436_v48 = vmul.f32 %v1424_v13, %v1412_v27 }
 0x3e0   : > { %1458 = vmatmul.bf16.vlgmr.msra.gmra.mxu0 %v1442_v18  ;;  %v1723_v41 = vpop.permute.xlu0 %1722  ;;  %1472 = vmatmul.bf16.vlgmr.msra.gmra.mxu1 %v1443_v25  ;;  %v1429_v3 = vmul.f32 %v1421_v11, %v1405_v53  ;;  %v1437_v20 = vmul.f32 %v1425_v39, %v1413_v33  ;;  %v1416_v60 = vunpack.c.l.bf16 %v15608_v42  ;;  %v1409_v23 = vunpack.c.h.bf16 %v15607_v32 }
 0x3e1   : > { %v8623_v8 = vpop.permute.xlu1 %1754  ;;  %v1447_v36 = vpack.c.bf16 %v1439_v30, %v1431_v43  ;;  %v1444_v45 = vpack.c.bf16 %v1436_v48, %v1428_v54  ;;  %v1432_v17 = vmul.f32 %v1420_v62, %v1408_v19  ;;  %vm15219_vm10 = vcmask 1040384  }
 0x3e2   : > { %v1790_v63 = vsel %vm15330_vm0, %v8623_v8, %v8434_v21  ;;  %v1445_v38 = vpack.c.bf16 %v1437_v20, %v1429_v3  ;;  %v1440_v47 = vmul.f32 %v1424_v13, %v1416_v60  ;;  %v1417_v21 = vunpack.c.h.bf16 %v15608_v42  ;;  %v15610_v20 = vld [vmem:[#allocation19_spill] sm:$0xff] }
 0x3e3   : > { %v8631_v12 = vadd.f32 %v1790_v63, %v8207_v10  ;;  %1486 = vmatmul.bf16.vlgmr.msra.gmra.mxu2 %v1444_v45  ;;  %v1784_v10 = vsel %vm15330_vm0, %v8525_v16, %v8386_v40  ;;  %v1433_v53 = vmul.f32 %v1421_v11, %v1409_v23  ;;  %v1779_v11 = vsel %vm15330_vm0, %v8581_v35, %v8410_v59  ;;  %v15612_v45 = vld [vmem:[#allocation16_spill] sm:$0xff]  ;;  %v15613_v23 = vld [vmem:[#allocation3_spill] sm:$0xff] }
 0x3e4   : > { %1840 = vrot.lane.b32.xlu0 %v8621_v14, %s6243_s20  ;;  %1500 = vmatmul.bf16.vlgmr.msra.gmra.mxu3 %v1445_v38  ;;  %v1448_v27 = vpack.c.bf16 %v1440_v47, %v1432_v17  ;;  %v1441_v33 = vmul.f32 %v1425_v39, %v1417_v21  ;;  %v8645_v26 = vadd.f32 %v1784_v10, %v8164_v50  ;;  %v15614_v47 = vld [vmem:[#allocation12_spill] sm:$0xff]  ;;  %v15616_v10 = vld [vmem:[#allocation30_spill] sm:$0xff]  ;;  %vm15218_vm11 = vcmask 203776  }
 0x3e5   : > { %1826 = vrot.lane.b32.xlu2 %v8631_v12, %s6243_s20  ;;  %v1788_v50 = vsel %vm15330_vm0, %v8326_v52, %v8525_v16  ;;  %v1774_v16 = vsel %vm15330_vm0, %v1723_v41, %v8436_v46  ;;  %vm15215_vm13 = vcmask 33792  }
 0x3e6   : > { %v1449_v57 = vpack.c.bf16 %v1441_v33, %v1433_v53  ;;  %v8669_v22 = vadd.f32 %v1788_v50, %v8244_v28  ;;  %v8683_v28 = vadd.f32 %v1774_v16, %v8211_v5  ;;  %v15618_v33 = vld [vmem:[#allocation4_spill] sm:$0xff]  ;;  %v15624_v16 = vld [vmem:[#allocation6_spill] sm:$0xff] }
 0x3e8   : > { %v1729_v44 = vpop.permute.xlu0 %1728 }
 0x3e9   : > { %v1761_v18 = vpop.permute.xlu1 %1760  ;;  %v1777_v39 = vsel %vm15330_vm0, %v1729_v44, %v8474_v6 }
 0x3ea   : > { %v1793_v62 = vsel %vm15330_vm0, %v1761_v18, %v8471_v55  ;;  %v8699_v5 = vadd.f32 %v1777_v39, %v8227_v49 }
 0x3eb   : > { %v8651_v25 = vadd.f32 %v1793_v62, %v8223_v2  ;;  %v8666_v2 = vadd.f32 %v1779_v11, %v8189_v34  ;;  %v1783_v34 = vsel %vm15330_vm0, %v8332_v37, %v8581_v35  ;;  %v1778_v35 = vsel %vm15330_vm0, %v8338_v1, %v1723_v41  ;;  %v15621_v11 = vld [vmem:[#allocation31_spill] sm:$0xff] }
 0x3ec   : > { %1846 = vrot.lane.b32.xlu0 %v8645_v26, %s6243_s20  ;;  %v8686_v54 = vadd.f32 %v1783_v34, %v8261_v58  ;;  %v8702_v58 = vadd.f32 %v1778_v35, %v8278_v4  ;;  %v1781_v41 = vsel %vm15330_vm0, %v8346_v31, %v1729_v44  ;;  %v15626_v35 = vld [vmem:[#allocation48_spill] sm:$0xff] }
 0x3ed   : > { %1832 = vrot.lane.b32.xlu2 %v8651_v25, %s6243_s20  ;;  %v8718_v4 = vadd.f32 %v1781_v41, %v8296_v51  ;;  %v15609_v51 = vld [vmem:[#allocation7_spill] sm:$0xff] }
 0x3f0   : > { %1514 = vmatmul.bf16.vlgmr.msrb.gmra.mxu0 %v1446_v9  ;;  %v1735_v55 = vpop.permute.xlu0 %1734  ;;  %1528 = vmatmul.bf16.vlgmr.msrb.gmra.mxu1 %v1447_v36  ;;  %v15611_v36 = vld [vmem:[#allocation21_spill] sm:$0xff] }
 0x3f1   : > { %v1772_v43 = vsel %vm15330_vm0, %v1735_v55, %v8533_v56  ;;  %v1776_v19 = vsel %vm15330_vm0, %v8350_v24, %v1735_v55 }
 0x3f2   : > { %v8715_v49 = vadd.f32 %v1772_v43, %v8249_v0  ;;  %v8740_v42 = vadd.f32 %v1776_v19, %v15611_v36  ;;  %v15627_v43 = vld [vmem:[#allocation9_spill] sm:$0xff] }
 0x3f3   : > { %1542 = vmatmul.bf16.vlgmr.msrb.gmra.mxu2 %v1448_v27 }
 0x3f4   : > { %1852 = vrot.lane.b32.xlu0 %v8666_v2, %s6243_s20  ;;  %1556 = vmatmul.bf16.vlgmr.msrb.gmra.mxu3 %v1449_v57  ;;  %v15619_v57 = vld [vmem:[#allocation28_spill] sm:$0xff] }
 0x3f5   : > { %1838 = vrot.lane.b32.xlu2 %v8669_v22, %s6243_s20 }
 0x3f8   : > { %v1741_v13 = vpop.permute.xlu0 %1740 }
 0x3f9   : > { %v1767_v32 = vsel %vm15330_vm0, %v1741_v13, %v8590_v7  ;;  %v1771_v38 = vsel %vm15330_vm0, %v15612_v45, %v1741_v13  ;;  %v15625_v13 = vld [vmem:[#allocation33_spill] sm:$0xff] }
 0x3fa   : > { %v8734_v3 = vadd.f32 %v1767_v32, %v15609_v51  ;;  %v8765_v27 = vadd.f32 %v1771_v38, %v15616_v10  ;;  %v15630_v51 = vld [vmem:[#allocation43_spill] sm:$0xff]  ;;  %v1768_v38 = vsel %vm15330_vm0, %v8533_v56, %v15626_v35 }
 0x3fc   : > { %1858 = vrot.lane.b32.xlu0 %v8683_v28, %s6243_s20 }
 0x3fd   : > { %1844 = vrot.lane.b32.xlu2 %v8686_v54, %s6243_s20 }
 0x400   : > { %v1747_v9 = vpop.permute.xlu0 %1746 }
 0x401   : > { %v1762_v60 = vsel %vm15330_vm0, %v1747_v9, %v8623_v8  ;;  %v15617_v8 = vld [vmem:[#allocation38_spill] sm:$0xff] }
 0x402   : > { %v8762_v21 = vadd.f32 %v1762_v60, %v15614_v47  ;;  %v1766_v53 = vsel %vm15330_vm0, %v15617_v8, %v1747_v9  ;;  %v15631_v60 = vld [vmem:[#allocation35_spill] sm:$0xff] }
 0x403   : > { %v8789_v50 = vadd.f32 %v1766_v53, %v15621_v11  ;;  %v15632_v47 = vld [vmem:[#allocation11_spill] sm:$0xff]  ;;  %v15634_v53 = vld [vmem:[#allocation45_spill] sm:$0xff] }
 0x404   : > { %1864 = vrot.lane.b32.xlu0 %v8699_v5, %s6243_s20  ;;  %15615 = vst [vmem:[#allocation18_spill] sm:$0xff] %v8762_v21  ;;  %v8873_v10 = vadd.f32 %v1768_v38, %v15632_v47  ;;  %v206_v11 = vld [vmem:[%s15079_s2 + $0x8] sm:$0xff] }
 0x405   : > { %1850 = vrot.lane.b32.xlu2 %v8702_v58, %s6243_s20 }
 0x408   : > { %v1753_v30 = vpop.permute.xlu0 %1752 }
 0x40c   : > { %1870 = vrot.lane.b32.xlu0 %v8715_v49, %s6243_s20 }
 0x40d   : > { %1856 = vrot.lane.b32.xlu2 %v8718_v4, %s6243_s20 }
 0x410   : > { %v1759_v48 = vpop.permute.xlu0 %1758 }
 0x411   : > { %v1792_v0 = vsel %vm15330_vm0, %v1759_v48, %v8326_v52  ;;  %v1787_v52 = vsel %vm15330_vm0, %v8340_v15, %v8332_v37  ;;  %v1782_v15 = vsel %vm15330_vm0, %v8348_v61, %v8338_v1  ;;  %v1765_v37 = vsel %vm15330_vm0, %v1753_v30, %v1761_v18  ;;  %v15622_v61 = vld [vmem:[#allocation37_spill] sm:$0xff]  ;;  %v15623_v18 = vld [vmem:[#allocation47_spill] sm:$0xff] }
 0x412   : > { %v8737_v63 = vadd.f32 %v1792_v0, %v15610_v20  ;;  %v8759_v17 = vadd.f32 %v1787_v52, %v15613_v23  ;;  %v8783_v44 = vadd.f32 %v1782_v15, %v15618_v33  ;;  %v8786_v62 = vadd.f32 %v1765_v37, %v15619_v57  ;;  %v15633_v37 = vld [vmem:[#allocation22_spill] sm:$0xff]  ;;  %v207_v57 = vld [vmem:[%s15079_s2 + $0x10] sm:$0xff] }
 0x413   : > { %v1785_v1 = vsel %vm15330_vm0, %v15622_v61, %v8346_v31  ;;  %v1769_v55 = vsel %vm15330_vm0, %v15623_v18, %v1753_v30  ;;  %v1780_v31 = vsel %vm15330_vm0, %v8386_v40, %v8350_v24  ;;  %v1764_v9 = vsel %vm15330_vm0, %v15626_v35, %v1759_v48  ;;  %v15628_v30 = vld [vmem:[#allocation34_spill] sm:$0xff]  ;;  %v15629_v40 = vld [vmem:[#allocation13_spill] sm:$0xff] }
 0x414   : > { %1876 = vrot.lane.b32.xlu0 %v8734_v3, %s6243_s20  ;;  %1830 = vrot.lane.b32.xlu1 %v8737_v63, %s6243_s20  ;;  %15620 = vst [vmem:[#allocation26_spill] sm:$0xff] %v8786_v62  ;;  %v8805_v34 = vadd.f32 %v1785_v1, %v15624_v16  ;;  %v8808_v39 = vadd.f32 %v1769_v55, %v15625_v13 }
 0x415   : > { %1862 = vrot.lane.b32.xlu2 %v8740_v42, %s6243_s20  ;;  %v8822_v41 = vadd.f32 %v1780_v31, %v15627_v43  ;;  %v8825_v32 = vadd.f32 %v1764_v9, %v15628_v30  ;;  %v1775_v24 = vsel %vm15330_vm0, %v8410_v59, %v15612_v45  ;;  %v1770_v48 = vsel %vm15330_vm0, %v8436_v46, %v15617_v8 }
 0x416   : > { %v8836_v19 = vadd.f32 %v1775_v24, %v15629_v40  ;;  %v8847_v20 = vadd.f32 %v1770_v48, %v15630_v51  ;;  %v1773_v36 = vsel %vm15330_vm0, %v8474_v6, %v15623_v18  ;;  %v208_v6 = vld [vmem:[%s15079_s2 + $0x18] sm:$0x1]  ;;  %v1763_v56 = vsel %vm15330_vm0, %v8590_v7, %v15633_v37  ;;  %v205_v7 = vld [vmem:[%s15079_s2] sm:$0xff] }
 0x417   : > { %v8860_v45 = vadd.f32 %v1773_v36, %v15631_v60  ;;  %5830 = vmatpush.msk.msra.mxu0 %vm15219_vm10, %v208_v6  ;;  %v8890_v33 = vadd.f32 %v1763_v56, %v15634_v53 }
 0x419   : > { %1586 = vmatpush.msra.mxu0 %v207_v57 }
 0x41b   : > { %1587 = vmatpush.msra.mxu0 %v206_v11 }
 0x41c   : > { %1882 = vrot.lane.b32.xlu0 %v8762_v21, %s6243_s20  ;;  %1836 = vrot.lane.b32.xlu1 %v8759_v17, %s6243_s20 }
 0x41d   : > { %1868 = vrot.lane.b32.xlu2 %v8765_v27, %s6243_s20  ;;  %1588 = vmatpush.msra.mxu0 %v205_v7 }
 0x424   : > { %1888 = vrot.lane.b32.xlu0 %v8786_v62, %s6243_s20  ;;  %1842 = vrot.lane.b32.xlu1 %v8783_v44, %s6243_s20 }
 0x425   : > { %1874 = vrot.lane.b32.xlu2 %v8789_v50, %s6243_s20 }
 0x42c   : > { %1848 = vrot.lane.b32.xlu1 %v8805_v34, %s6243_s20 }
 0x42d   : > { %1880 = vrot.lane.b32.xlu2 %v8808_v39, %s6243_s20 }
 0x434   : > { %1854 = vrot.lane.b32.xlu1 %v8822_v41, %s6243_s20 }
 0x435   : > { %1886 = vrot.lane.b32.xlu2 %v8825_v32, %s6243_s20 }
 0x43c   : > { %1860 = vrot.lane.b32.xlu1 %v8836_v19, %s6243_s20 }
 0x43f   : > { %v8844_v0 = vpop.permute.xlu2 %1826 }
 0x444   : > { %1866 = vrot.lane.b32.xlu1 %v8847_v20, %s6243_s20 }
 0x446   : > { %v8851_v59 = vpop.permute.xlu0 %1828 }
 0x447   : > { %v8857_v52 = vpop.permute.xlu2 %1832 }
 0x44c   : > { %1872 = vrot.lane.b32.xlu1 %v8860_v45, %s6243_s20 }
 0x44e   : > { %v8864_v46 = vpop.permute.xlu0 %1834 }
 0x44f   : > { %v8870_v23 = vpop.permute.xlu2 %1838 }
 0x454   : > { %1878 = vrot.lane.b32.xlu1 %v8873_v10, %s6243_s20 }
 0x456   : > { %v8881_v15 = vpop.permute.xlu0 %1840 }
 0x457   : > { %v8887_v8 = vpop.permute.xlu2 %1844 }
 0x45c   : > { %1884 = vrot.lane.b32.xlu1 %v8890_v33, %s6243_s20 }
 0x45d   : > { %v1459_v61 = vpop.f32.mrf.mxu0  ;;  %v1473_v55 = vpop.f32.mrf.mxu1 }
 0x45e   : > { %v8900_v1 = vpop.permute.xlu0 %1846  ;;  %v1474_v30 = vadd.f32 %v1473_v55, %v1459_v61 }
 0x45f   : > { %v8905_v18 = vpop.permute.xlu2 %1850 }
 0x465   : > { %v1461_v16 = vpop.f32.mrf.mxu0  ;;  %v1475_v43 = vpop.f32.mrf.mxu1 }
 0x466   : > { %v8907_v13 = vpop.permute.xlu0 %1852  ;;  %v1487_v35 = vpop.f32.mrf.mxu2  ;;  %v1476_v47 = vadd.f32 %v1475_v43, %v1461_v16 }
 0x467   : > { %v8909_v31 = vpop.permute.xlu2 %1856  ;;  %v1501_v9 = vpop.f32.mrf.mxu3  ;;  %v1488_v24 = vadd.f32 %v1487_v35, %v1474_v30 }
 0x469   : > { %v1502_v38 = vadd.f32 %v1501_v9, %v1488_v24 }
 0x46d   : > { %v1515_v40 = vpop.f32.mrf.mxu0  ;;  %v1529_v37 = vpop.f32.mrf.mxu1 }
 0x46e   : > { %v8911_v48 = vpop.permute.xlu0 %1858  ;;  %v1489_v36 = vpop.f32.mrf.mxu2  ;;  %v1516_v6 = vadd.f32 %v1515_v40, %v1502_v38 }
 0x46f   : > { %v8913_v51 = vpop.permute.xlu2 %1862  ;;  %v1503_v60 = vpop.f32.mrf.mxu3  ;;  %v1490_v56 = vadd.f32 %v1489_v36, %v1476_v47 }
 0x470   : > { %v1530_v11 = vadd.f32 %v1529_v37, %v1516_v6 }
 0x471   : > { %v1504_v35 = vadd.f32 %v1503_v60, %v1490_v56 }
 0x475   : > { %v1517_v7 = vpop.f32.mrf.mxu0  ;;  %v1531_v16 = vpop.f32.mrf.mxu1 }
 0x476   : > { %v8915_v53 = vpop.permute.xlu0 %1864  ;;  %v1543_v61 = vpop.f32.mrf.mxu2  ;;  %v1518_v21 = vadd.f32 %v1517_v7, %v1504_v35 }
 0x477   : > { %v8917_v57 = vpop.permute.xlu2 %1868  ;;  %v1557_v55 = vpop.f32.mrf.mxu3  ;;  %v1544_v30 = vadd.f32 %v1543_v61, %v1530_v11 }
 0x478   : > { %v1532_v24 = vadd.f32 %v1531_v16, %v1518_v21 }
 0x479   : > { %v1558_v62 = vadd.f32 %v1557_v55, %v1544_v30 }
 0x47b   : > { %5831 = vmatmul.msk.f32.vlgmr.msra.gmra.mxu0 %vm15218_vm11, %v1558_v62 }
 0x47e   : > { %v8920_v9 = vpop.permute.xlu0 %1870  ;;  %v1545_v40 = vpop.f32.mrf.mxu2 }
 0x47f   : > { %v8922_v43 = vpop.permute.xlu2 %1874  ;;  %v1546_v36 = vadd.f32 %v1545_v40, %v1532_v24  ;;  %v1559_v38 = vpop.f32.mrf.mxu3 }
 0x481   : > { %v1560_v47 = vadd.f32 %v1559_v38, %v1546_v36 }
 0x483   : > { %5832 = vmatmul.msk.f32.gmra.mxu0 %vm15218_vm11, %v1560_v47 }
 0x486   : > { %v1831_v6 = vpop.permute.xlu1 %1830  ;;  %v8925_v60 = vpop.permute.xlu0 %1876 }
 0x487   : > { %v8927_v37 = vpop.permute.xlu2 %1880  ;;  %v1916_v40 = vsel %vm15329_vm1, %v1831_v6, %v8870_v23 }
 0x48e   : > { %v1837_v56 = vpop.permute.xlu1 %1836  ;;  %v8929_v11 = vpop.permute.xlu0 %1882 }
 0x48f   : > { %v8931_v62 = vpop.permute.xlu2 %1886  ;;  %v1918_v21 = vsel %vm15329_vm1, %v8929_v11, %v8844_v0  ;;  %v1915_v35 = vsel %vm15329_vm1, %v8851_v59, %v1837_v56  ;;  %v1911_v47 = vsel %vm15329_vm1, %v1837_v56, %v8887_v8 }
 0x490   : > { %v1920_v7 = vsel %vm15329_vm1, %v8931_v62, %v1831_v6  ;;  %v8941_v61 = vadd.f32 %v1918_v21, %v8631_v12  ;;  %v8963_v24 = vadd.f32 %v1915_v35, %v8759_v17 }
 0x491   : > { %v8944_v55 = vadd.f32 %v1920_v7, %v8737_v63 }
 0x492   : > { %15635 = vst [vmem:[#allocation29_spill] sm:$0xff] %v8941_v61  ;;  %1954 = vrot.lane.b32.xlu1 %v8941_v61, %s6244_s21 }
 0x493   : > { %1958 = vrot.lane.b32.xlu0 %v8944_v55, %s6244_s21 }
 0x496   : > { %v1843_v30 = vpop.permute.xlu1 %1842  ;;  %v8953_v16 = vpop.permute.xlu0 %1888 }
 0x497   : > { %v1921_v12 = vsel %vm15329_vm1, %v8953_v16, %v8857_v52  ;;  %v1910_v36 = vsel %vm15329_vm1, %v8864_v46, %v1843_v30  ;;  %v1906_v56 = vsel %vm15329_vm1, %v1843_v30, %v8905_v18 }
 0x498   : > { %v8960_v63 = vadd.f32 %v1921_v12, %v8651_v25  ;;  %v8976_v25 = vadd.f32 %v1916_v40, %v8669_v22  ;;  %v8979_v17 = vadd.f32 %v1910_v36, %v8783_v44  ;;  %v8992_v22 = vadd.f32 %v1911_v47, %v8686_v54 }
 0x499   : > { %v9008_v54 = vadd.f32 %v1906_v56, %v8702_v58 }
 0x49a   : > { %15636 = vst [vmem:[#allocation32_spill] sm:$0xff] %v8960_v63  ;;  %1960 = vrot.lane.b32.xlu1 %v8960_v63, %s6244_s21 }
 0x49b   : > { %1964 = vrot.lane.b32.xlu0 %v8963_v24, %s6244_s21 }
 0x49e   : > { %v1849_v38 = vpop.permute.xlu1 %1848 }
 0x49f   : > { %v1913_v6 = vsel %vm15329_vm1, %v8881_v15, %v1849_v38  ;;  %v1909_v30 = vsel %vm15329_vm1, %v1849_v38, %v8909_v31 }
 0x4a0   : > { %v8995_v44 = vadd.f32 %v1913_v6, %v8805_v34  ;;  %v9024_v58 = vadd.f32 %v1909_v30, %v8718_v4 }
 0x4a2   : > { %1966 = vrot.lane.b32.xlu1 %v8976_v25, %s6244_s21 }
 0x4a3   : > { %1970 = vrot.lane.b32.xlu0 %v8979_v17, %s6244_s21 }
 0x4a6   : > { %v1855_v21 = vpop.permute.xlu1 %1854 }
 0x4a7   : > { %v1908_v7 = vsel %vm15329_vm1, %v8900_v1, %v1855_v21  ;;  %v1904_v36 = vsel %vm15329_vm1, %v1855_v21, %v8913_v51 }
 0x4a8   : > { %v9011_v34 = vadd.f32 %v1908_v7, %v8822_v41  ;;  %v9040_v4 = vadd.f32 %v1904_v36, %v8740_v42 }
 0x4aa   : > { %1972 = vrot.lane.b32.xlu1 %v8992_v22, %s6244_s21 }
 0x4ab   : > { %1976 = vrot.lane.b32.xlu0 %v8995_v44, %s6244_s21 }
 0x4ae   : > { %v1861_v35 = vpop.permute.xlu1 %1860 }
 0x4af   : > { %v1903_v12 = vsel %vm15329_vm1, %v8907_v13, %v1861_v35  ;;  %v1899_v6 = vsel %vm15329_vm1, %v1861_v35, %v8917_v57 }
 0x4b0   : > { %v9027_v41 = vadd.f32 %v1903_v12, %v8836_v19  ;;  %v9056_v42 = vadd.f32 %v1899_v6, %v8765_v27  ;;  %v15639_v12 = vld [vmem:[#allocation15_spill] sm:$0xff] }
 0x4b2   : > { %1978 = vrot.lane.b32.xlu1 %v9008_v54, %s6244_s21 }
 0x4b3   : > { %1982 = vrot.lane.b32.xlu0 %v9011_v34, %s6244_s21 }
 0x4b6   : > { %v1867_v40 = vpop.permute.xlu1 %1866 }
 0x4b7   : > { %v1898_v38 = vsel %vm15329_vm1, %v8911_v48, %v1867_v40  ;;  %v1894_v7 = vsel %vm15329_vm1, %v1867_v40, %v8922_v43  ;;  %v15640_v40 = vld [vmem:[#allocation49_spill] sm:$0xff] }
 0x4b8   : > { %v9043_v19 = vadd.f32 %v1898_v38, %v8847_v20 }
 0x4ba   : > { %1984 = vrot.lane.b32.xlu1 %v9024_v58, %s6244_s21  ;;  %15637 = vst [vmem:[#allocation36_spill] sm:$0xff] %v9043_v19 }
 0x4bb   : > { %1988 = vrot.lane.b32.xlu0 %v9027_v41, %s6244_s21 }
 0x4be   : > { %v1873_v47 = vpop.permute.xlu1 %1872 }
 0x4bf   : > { %v1901_v21 = vsel %vm15329_vm1, %v8915_v53, %v1873_v47 }
 0x4c0   : > { %v9059_v20 = vadd.f32 %v1901_v21, %v8860_v45  ;;  %v9075_v45 = vadd.f32 %v1894_v7, %v8789_v50  ;;  %v1914_v50 = vsel %vm15329_vm1, %v8844_v0, %v8864_v46  ;;  %v5865_v0 = vld [vmem:[%s7006_s25 + $0x80] sm:$0xff] }
 0x4c1   : > { %v9100_v6 = vadd.f32 %v1914_v50, %v15640_v40 }
 0x4c2   : > { %1990 = vrot.lane.b32.xlu1 %v9040_v4, %s6244_s21  ;;  %15638 = vst [vmem:[#allocation25_spill] sm:$0xff] %v9059_v20 }
 0x4c3   : > { %1994 = vrot.lane.b32.xlu0 %v9043_v19, %s6244_s21 }
 0x4c6   : > { %v1879_v56 = vpop.permute.xlu1 %1878 }
 0x4c7   : > { %v1896_v35 = vsel %vm15329_vm1, %v8920_v9, %v1879_v56  ;;  %v1892_v46 = vsel %vm15329_vm1, %v1879_v56, %v8931_v62  ;;  %v5873_v62 = vld [vmem:[%s7006_s25 + $0xc0] sm:$0x3]  ;;  %v5868_v56 = vld [vmem:[%s7006_s25 + $0x98] sm:$0xff] }
 0x4c8   : > { %v9081_v38 = vadd.f32 %v1896_v35, %v8873_v10  ;;  %v9128_v35 = vadd.f32 %v1892_v46, %v8825_v32  ;;  %v5870_v46 = vld [vmem:[%s7006_s25 + $0xa8] sm:$0xff] }
 0x4ca   : > { %1996 = vrot.lane.b32.xlu1 %v9056_v42, %s6244_s21 }
 0x4cb   : > { %2000 = vrot.lane.b32.xlu0 %v9059_v20, %s6244_s21 }
 0x4ce   : > { %v1885_v30 = vpop.permute.xlu1 %1884 }
 0x4cf   : > { %v1919_v27 = vsel %vm15329_vm1, %v1885_v30, %v8851_v59  ;;  %v1897_v59 = vsel %vm15329_vm1, %v1873_v47, %v8927_v37  ;;  %v1891_v10 = vsel %vm15329_vm1, %v8925_v60, %v1885_v30 }
 0x4d0   : > { %v9078_v36 = vadd.f32 %v1919_v27, %v15639_v12  ;;  %v9103_v21 = vadd.f32 %v1897_v59, %v8808_v39  ;;  %v9106_v7 = vadd.f32 %v1891_v10, %v8890_v33  ;;  %v1917_v39 = vsel %vm15329_vm1, %v8857_v52, %v8881_v15  ;;  %v5874_v52 = vld [vmem:[%s7006_s25 + $0xc8] sm:$0x3]  ;;  %v5867_v12 = vld [vmem:[%s7006_s25 + $0x90] sm:$0xff] }
 0x4d1   : > { %v9122_v33 = vmul.f32 %v5865_v0, %v5865_v0  ;;  %v9125_v47 = vadd.f32 %v1917_v39, %v8621_v14  ;;  %v1912_v14 = vsel %vm15329_vm1, %v8870_v23, %v8900_v1  ;;  %v9141_v15 = vmul.f32 %v5874_v52, %v5874_v52 }
 0x4d2   : > { %1956 = vrot.lane.b32.xlu2 %v9078_v36, %s6244_s21  ;;  %2002 = vrot.lane.b32.xlu1 %v9075_v45, %s6244_s21  ;;  %v9144_v32 = vadd.f32 %v1912_v14, %v8645_v26  ;;  %v9152_v30 = vpack.c.bf16 %v5874_v52, %v5873_v62  ;;  %v9154_v27 = vmul.f32 %v5873_v62, %v5873_v62 }
 0x4d3   : > { %2006 = vrot.lane.b32.xlu0 %v9081_v38, %s6244_s21  ;;  %15641 = vst [vmem:[#allocation7_spill] sm:$0xff] %v9122_v33  ;;  %v1907_v26 = vsel %vm15329_vm1, %v8887_v8, %v8907_v13  ;;  %v9162_v23 = vmul.f32 %v5868_v56, %v5868_v56  ;;  %v9172_v50 = vpack.c.bf16 %v5868_v56, %v5867_v12  ;;  %v5877_v13 = vld [vmem:[%s7006_s25 + $0xe0] sm:$0x3] }
 0x4d4   : > { %15642 = vst [vmem:[#allocation19_spill] sm:$0xff] %v9141_v15  ;;  %v9165_v1 = vadd.f32 %v1907_v26, %v8666_v2  ;;  %v9174_v8 = vmul.f32 %v5867_v12, %v5867_v12  ;;  %v1902_v59 = vsel %vm15329_vm1, %v8905_v18, %v8911_v48  ;;  %v9184_v2 = vmul.f32 %v5877_v13, %v5877_v13  ;;  %v5876_v18 = vld [vmem:[%s7006_s25 + $0xd8] sm:$0x3]  ;;  %v5879_v26 = vld [vmem:[%s7006_s25 + $0xf0] sm:$0x3] }
 0x4d5   : > { %15643 = vst [vmem:[#allocation21_spill] sm:$0xff] %v9152_v30  ;;  %v9187_v10 = vadd.f32 %v1902_v59, %v8683_v28  ;;  %v9199_v40 = vmul.f32 %v5876_v18, %v5876_v18  ;;  %v5871_v28 = vld [vmem:[%s7006_s25 + $0xb0] sm:$0xff]  ;;  %v1905_v0 = vsel %vm15329_vm1, %v8909_v31, %v8915_v53  ;;  %v9218_v14 = vmul.f32 %v5870_v46, %v5870_v46  ;;  %v5880_v53 = vld [vmem:[%s7006_s25 + $0xf8] sm:$0x3] }
 0x4d6   : > { %15644 = vst [vmem:[#allocation16_spill] sm:$0xff] %v9154_v27  ;;  %v9210_v39 = vmul.f32 %v5871_v28, %v5871_v28  ;;  %v9214_v52 = vadd.f32 %v1905_v0, %v8699_v5  ;;  %v1900_v5 = vsel %vm15329_vm1, %v8913_v51, %v8920_v9  ;;  %v9236_v12 = vmul.f32 %v5880_v53, %v5880_v53  ;;  %v5875_v0 = vld [vmem:[%s7006_s25 + $0xd0] sm:$0x3] }
 0x4d7   : > { %15645 = vst [vmem:[#allocation3_spill] sm:$0xff] %v9162_v23  ;;  %v9238_v13 = vpack.c.bf16 %v5880_v53, %v5879_v26  ;;  %v9241_v59 = vadd.f32 %v1900_v5, %v8715_v49  ;;  %v1895_v9 = vsel %vm15329_vm1, %v8917_v57, %v8925_v60  ;;  %v1890_v57 = vsel %vm15329_vm1, %v8922_v43, %v8929_v11  ;;  %v15658_v5 = vld [vmem:[#allocation18_spill] sm:$0xff]  ;;  %v5866_v11 = vld [vmem:[%s7006_s25 + $0x88] sm:$0xff] }
 0x4d8   : > { %15646 = vst [vmem:[#allocation12_spill] sm:$0xff] %v9172_v50  ;;  %v9258_v49 = vadd.f32 %v1895_v9, %v8734_v3  ;;  %v1893_v9 = vsel %vm15329_vm1, %v8927_v37, %v8953_v16  ;;  %v15661_v50 = vld [vmem:[#allocation26_spill] sm:$0xff] }
 0x4d9   : > { %15647 = vst [vmem:[#allocation30_spill] sm:$0xff] %v9174_v8  ;;  %v9284_v43 = vadd.f32 %v1893_v9, %v15661_v50  ;;  %v9301_v50 = vmul.f32 %v5875_v0, %v5875_v0 }
 0x4da   : > { %1962 = vrot.lane.b32.xlu2 %v9100_v6, %s6244_s21  ;;  %2008 = vrot.lane.b32.xlu1 %v9103_v21, %s6244_s21  ;;  %15648 = vst [vmem:[#allocation38_spill] sm:$0xff] %v9184_v2 }
 0x4db   : > { %2012 = vrot.lane.b32.xlu0 %v9106_v7, %s6244_s21  ;;  %15649 = vst [vmem:[#allocation4_spill] sm:$0xff] %v9199_v40 }
 0x4dc   : > { %15650 = vst [vmem:[#allocation28_spill] sm:$0xff] %v9210_v39 }
 0x4dd   : > { %15651 = vst [vmem:[#allocation31_spill] sm:$0xff] %v9214_v52 }
 0x4de   : > { %15652 = vst [vmem:[#allocation37_spill] sm:$0xff] %v9218_v14 }
 0x4df   : > { %15654 = vst [vmem:[#allocation6_spill] sm:$0xff] %v9236_v12 }
 0x4e0   : > { %15655 = vst [vmem:[#allocation33_spill] sm:$0xff] %v9238_v13  ;;  %v5869_v13 = vld [vmem:[%s7006_s25 + $0xa0] sm:$0xff] }
 0x4e1   : > { %v9273_v3 = vpack.c.bf16 %v5870_v46, %v5869_v13  ;;  %15662 = vst [vmem:[#allocation43_spill] sm:$0xff] %v9284_v43 }
 0x4e2   : > { %1968 = vrot.lane.b32.xlu2 %v9125_v47, %s6244_s21  ;;  %2014 = vrot.lane.b32.xlu1 %v9128_v35, %s6244_s21  ;;  %15664 = vst [vmem:[#allocation11_spill] sm:$0xff] %v9301_v50 }
 0x4e3   : > { %2466 = vrot.lane.b32.xlu0 %v9122_v33, %s6242_s19  ;;  %15660 = vst [vmem:[#allocation13_spill] sm:$0xff] %v9273_v3 }
 0x4ea   : > { %1974 = vrot.lane.b32.xlu2 %v9144_v32, %s6244_s21  ;;  %2468 = vrot.lane.b32.xlu1 %v9154_v27, %s6242_s19 }
 0x4eb   : > { %2472 = vrot.lane.b32.xlu0 %v9141_v15, %s6242_s19 }
 0x4f2   : > { %1980 = vrot.lane.b32.xlu2 %v9165_v1, %s6244_s21  ;;  %2474 = vrot.lane.b32.xlu1 %v9174_v8, %s6242_s19 }
 0x4f3   : > { %2478 = vrot.lane.b32.xlu0 %v9162_v23, %s6242_s19 }
 0x4f8   : > { %v1590_v48 = vpop.f32.mrf.mxu0 }
 0x4f9   : > { %1597 = vst.msk [vmem:[%s9192_s10] sm:$0xff] %vm15216_vm12, %v1590_v48  ;;  %v9245_v48 = vmul.f32 %v5879_v26, %v5879_v26  ;;  %v9270_v26 = vadd.f32 %v1890_v57, %v15658_v5  ;;  %v9291_v5 = vmul.f32 %v5866_v11, %v5866_v11 }
 0x4fa   : > { %1986 = vrot.lane.b32.xlu2 %v9187_v10, %s6244_s21  ;;  %2480 = vrot.lane.b32.xlu1 %v9199_v40, %s6242_s19  ;;  %v5872_v40 = vld [vmem:[%s7006_s25 + $0xb8] sm:$0xff] }
 0x4fb   : > { %2484 = vrot.lane.b32.xlu0 %v9184_v2, %s6242_s19  ;;  %15656 = vst [vmem:[#allocation48_spill] sm:$0xff] %v9245_v48  ;;  %v9323_v23 = vmul.f32 %v5872_v40, %v5872_v40 }
 0x4fc   : > { %15659 = vst [vmem:[#allocation34_spill] sm:$0xff] %v9270_v26 }
 0x4fd   : > { %15663 = vst [vmem:[#allocation35_spill] sm:$0xff] %v9291_v5 }
 0x4fe   : > { %15667 = vst [vmem:[#allocation15_spill] sm:$0xff] %v9323_v23 }
 0x500   : > { %v1593_v62 = vpop.f32.mrf.mxu0 }
 0x501   : > { %1599 = vst.msk [vmem:[%s9192_s10 + $0x8] sm:$0x3] %vm15215_vm13, %v1593_v62  ;;  %v9261_v62 = vpack.c.bf16 %v5876_v18, %v5875_v0 }
 0x502   : > { %1992 = vrot.lane.b32.xlu2 %v9214_v52, %s6244_s21  ;;  %2486 = vrot.lane.b32.xlu1 %v9218_v14, %s6242_s19 }
 0x503   : > { %2490 = vrot.lane.b32.xlu0 %v9210_v39, %s6242_s19  ;;  %15657 = vst [vmem:[#allocation9_spill] sm:$0xff] %v9261_v62  ;;  %v5878_v39 = vld [vmem:[%s7006_s25 + $0xe8] sm:$0x3] }
 0x504   : > { %v9224_v31 = vpop.permute.xlu1 %1954  ;;  %v9318_v0 = vmul.f32 %v5878_v39, %v5878_v39 }
 0x505   : > { %15653 = vst [vmem:[#allocation47_spill] sm:$0xff] %v9224_v31  ;;  %v9231_v56 = vpop.permute.xlu0 %1958 }
 0x506   : > { %15666 = vst [vmem:[#allocation45_spill] sm:$0xff] %v9318_v0 }
 0x50a   : > { %1998 = vrot.lane.b32.xlu2 %v9241_v59, %s6244_s21  ;;  %2492 = vrot.lane.b32.xlu1 %v9245_v48, %s6242_s19 }
 0x50b   : > { %2496 = vrot.lane.b32.xlu0 %v9236_v12, %s6242_s19  ;;  %v9309_v12 = vmul.f32 %v5869_v13, %v5869_v13 }
 0x50c   : > { %v9249_v51 = vpop.permute.xlu1 %1960 }
 0x50d   : > { %v1965_v28 = vpop.permute.xlu0 %1964  ;;  %15665 = vst [vmem:[#allocation22_spill] sm:$0xff] %v9309_v12 }
 0x512   : > { %2004 = vrot.lane.b32.xlu2 %v9258_v49, %s6244_s21 }
 0x514   : > { %v1967_v53 = vpop.permute.xlu1 %1966 }
 0x515   : > { %v1971_v60 = vpop.permute.xlu0 %1970 }
 0x51a   : > { %2010 = vrot.lane.b32.xlu2 %v9270_v26, %s6244_s21 }
 0x51c   : > { %v9277_v18 = vpop.permute.xlu1 %1972 }
 0x51d   : > { %v1977_v62 = vpop.permute.xlu0 %1976  ;;  %v2039_v26 = vsel %vm15220_vm2, %v1965_v28, %v9277_v18 }
 0x522   : > { %2016 = vrot.lane.b32.xlu2 %v9284_v43, %s6244_s21 }
 0x524   : > { %v9289_v46 = vpop.permute.xlu1 %1978 }
 0x525   : > { %v1983_v57 = vpop.permute.xlu0 %1982  ;;  %v2034_v63 = vsel %vm15220_vm2, %v1971_v60, %v9289_v46 }
 0x52a   : > { %2470 = vrot.lane.b32.xlu2 %v9291_v5, %s6242_s19 }
 0x52c   : > { %v9295_v3 = vpop.permute.xlu2 %1956  ;;  %v9297_v37 = vpop.permute.xlu1 %1984 }
 0x52d   : > { %v9299_v16 = vpop.permute.xlu0 %1988 }
 0x532   : > { %2476 = vrot.lane.b32.xlu2 %v9301_v50, %s6242_s19 }
 0x534   : > { %v1963_v9 = vpop.permute.xlu2 %1962  ;;  %v9305_v30 = vpop.permute.xlu1 %1990 }
 0x535   : > { %v9307_v11 = vpop.permute.xlu0 %1994  ;;  %v2042_v61 = vsel %vm15220_vm2, %v9224_v31, %v1963_v9 }
 0x536   : > { %v9378_v19 = vadd.f32 %v2042_v61, %v9100_v6 }
 0x53a   : > { %2482 = vrot.lane.b32.xlu2 %v9309_v12, %s6242_s19 }
 0x53c   : > { %v1969_v33 = vpop.permute.xlu2 %1968  ;;  %v9314_v48 = vpop.permute.xlu1 %1996 }
 0x53d   : > { %v9316_v14 = vpop.permute.xlu0 %2000  ;;  %v2045_v31 = vsel %vm15220_vm2, %v9249_v51, %v1969_v33 }
 0x542   : > { %2488 = vrot.lane.b32.xlu2 %v9318_v0, %s6242_s19  ;;  %v2044_v0 = vsel %vm15220_vm2, %v9231_v56, %v1967_v53 }
 0x543   : > { %v2067_v15 = vadd.f32 %v2044_v0, %v8976_v25  ;;  %v2037_v25 = vsel %vm15220_vm2, %v1977_v62, %v9297_v37 }
 0x544   : > { %v1975_v50 = vpop.permute.xlu2 %1974  ;;  %v9325_v13 = vpop.permute.xlu1 %2002  ;;  %v9393_v61 = vadd.f32 %v2037_v25, %v9024_v58 }
 0x545   : > { %v2007_v2 = vpop.permute.xlu0 %2006  ;;  %v2036_v0 = vsel %vm15220_vm2, %v1975_v50, %v1983_v57 }
 0x54a   : > { %2494 = vrot.lane.b32.xlu2 %v9323_v23, %s6242_s19  ;;  %v2043_v23 = vsel %vm15220_vm2, %v9295_v3, %v1965_v28  ;;  %v2040_v28 = vsel %vm15220_vm2, %v1967_v53, %v1975_v50  ;;  %v2069_v50 = vadd.f32 %v2036_v0, %v9011_v34 }
 0x54b   : > { %v2059_v20 = vadd.f32 %v2043_v23, %v8963_v24 }
 0x54c   : > { %v1981_v12 = vpop.permute.xlu2 %1980  ;;  %v9331_v5 = vpop.permute.xlu1 %2008 }
 0x54d   : > { %v9329_v8 = vpop.permute.xlu0 %2012 }
 0x554   : > { %v9333_v39 = vpop.permute.xlu2 %1986  ;;  %v2015_v43 = vpop.permute.xlu1 %2014 }
 0x555   : > { %v9335_v27 = vpop.permute.xlu0 %2466  ;;  %v2020_v24 = vsel %vm15220_vm2, %v2007_v2, %v2015_v43  ;;  %v2048_v23 = vsel %vm15220_vm2, %v2015_v43, %v9231_v56 }
 0x556   : > { %15668 = vst [vmem:[#allocation49_spill] sm:$0xff] %v9335_v27  ;;  %v2038_v27 = vsel %vm15220_vm2, %v1963_v9, %v1971_v60  ;;  %v2032_v9 = vsel %vm15220_vm2, %v1983_v57, %v9305_v30  ;;  %v2041_v60 = vsel %vm15220_vm2, %v1969_v33, %v1977_v62  ;;  %v2060_v62 = vadd.f32 %v2039_v26, %v8992_v22 }
 0x557   : > { %v2052_v53 = vadd.f32 %v2038_v27, %v8979_v17  ;;  %v9388_v57 = vadd.f32 %v2034_v63, %v9008_v54  ;;  %v2068_v33 = vadd.f32 %v2040_v28, %v9144_v32  ;;  %v9396_v17 = vadd.f32 %v2045_v31, %v9125_v47 }
 0x558   : > { %v9399_v6 = vadd.f32 %v2041_v60, %v8995_v44  ;;  %v2027_v22 = vsel %vm15220_vm2, %v9299_v16, %v9314_v48  ;;  %v2070_v63 = vadd.f32 %v2032_v9, %v9040_v4  ;;  %v2035_v54 = vsel %vm15220_vm2, %v9277_v18, %v1981_v12 }
 0x559   : > { %v2066_v34 = vadd.f32 %v2048_v23, %v8944_v55  ;;  %v2073_v58 = vadd.f32 %v2020_v24, %v9128_v35  ;;  %v9411_v47 = vadd.f32 %v2060_v62, %v2059_v20  ;;  %v9414_v44 = vadd.f32 %v2052_v53, %v9378_v19 }
 0x55a   : > { %v9417_v32 = vadd.f32 %v9388_v57, %v2052_v53  ;;  %v2031_v4 = vsel %vm15220_vm2, %v1981_v12, %v9299_v16  ;;  %v9423_v27 = vadd.f32 %v2027_v22, %v9056_v42  ;;  %v2100_v31 = vadd.f32 %v2068_v33, %v2067_v15 }
 0x55b   : > { %v2102_v56 = vadd.f32 %v2070_v63, %v2069_v50  ;;  %v2022_v55 = vsel %vm15220_vm2, %v9307_v11, %v9325_v13  ;;  %v9431_v35 = vadd.f32 %v9399_v6, %v9396_v17  ;;  %v2061_v26 = vadd.f32 %v2035_v54, %v9165_v1 }
 0x55c   : > { %v9364_v40 = vpop.permute.xlu2 %1992  ;;  %v2025_v12 = vsel %vm15220_vm2, %v9316_v14, %v9331_v5  ;;  %v2047_v42 = vsel %vm15220_vm2, %v9329_v8, %v9295_v3  ;;  %v2062_v43 = vadd.f32 %v2031_v4, %v9027_v41  ;;  %v2098_v16 = vadd.f32 %v2073_v58, %v2066_v34 }
 0x55d   : > { %v9375_v52 = vpop.permute.xlu0 %2472  ;;  %v2101_v28 = vadd.f32 %v2069_v50, %v2068_v33  ;;  %v9451_v9 = vadd.f32 %v2022_v55, %v9075_v45  ;;  %v2134_v53 = vadd.f32 %v2102_v56, %v2100_v31  ;;  %v9456_v41 = vadd.f32 %v2025_v12, %v9103_v21 }
 0x55e   : > { %v2099_v24 = vadd.f32 %v2067_v15, %v2066_v34  ;;  %v2093_v23 = vadd.f32 %v2061_v26, %v2060_v62  ;;  %v2094_v4 = vadd.f32 %v2062_v43, %v2061_v26  ;;  %v2095_v33 = vadd.f32 %v9423_v27, %v2062_v43 }
 0x55f   : > { %v2030_v45 = vsel %vm15220_vm2, %v9289_v46, %v9333_v39  ;;  %v2033_v46 = vsel %vm15220_vm2, %v9297_v37, %v9364_v40 }
 0x560   : > { %v2133_v15 = vadd.f32 %v2101_v28, %v2099_v24  ;;  %v2126_v37 = vadd.f32 %v2094_v4, %v9411_v47 }
 0x564   : > { %v1999_v18 = vpop.permute.xlu2 %1998 }
 0x565   : > { %v2024_v25 = vsel %vm15220_vm2, %v1999_v18, %v2007_v2  ;;  %v2028_v1 = vsel %vm15220_vm2, %v9305_v30, %v1999_v18  ;;  %v9448_v0 = vpop.permute.xlu0 %2478  ;;  %v2058_v2 = vadd.f32 %v2047_v42, %v9078_v36  ;;  %v2026_v36 = vsel %vm15220_vm2, %v9333_v39, %v9307_v11 }
 0x566   : > { %v2071_v60 = vadd.f32 %v2028_v1, %v9241_v59  ;;  %v2072_v3 = vadd.f32 %v2024_v25, %v9081_v38  ;;  %v2132_v38 = vadd.f32 %v2100_v31, %v2098_v16  ;;  %v2127_v25 = vadd.f32 %v2095_v33, %v2093_v23  ;;  %v15670_v1 = vld [vmem:[#allocation36_spill] sm:$0xff] }
 0x567   : > { %v2091_v12 = vadd.f32 %v2059_v20, %v2058_v2 }
 0x568   : > { %v2103_v22 = vadd.f32 %v2071_v60, %v2070_v63  ;;  %v2104_v30 = vadd.f32 %v2072_v3, %v2071_v60  ;;  %v2105_v54 = vadd.f32 %v2073_v58, %v2072_v3  ;;  %v2054_v63 = vadd.f32 %v2030_v45, %v9187_v10  ;;  %v15671_v60 = vld [vmem:[#allocation31_spill] sm:$0xff] }
 0x569   : > { %v2078_v3 = vadd.f32 %v2033_v46, %v15671_v60 }
 0x56a   : > { %v2130_v59 = vadd.f32 %v2104_v30, %v2098_v16  ;;  %v2131_v50 = vadd.f32 %v2105_v54, %v2099_v24  ;;  %v2135_v21 = vadd.f32 %v2103_v22, %v2101_v28  ;;  %v2136_v55 = vadd.f32 %v2104_v30, %v2102_v56 }
 0x56b   : > { %v2137_v62 = vadd.f32 %v2105_v54, %v2103_v22  ;;  %v2055_v28 = vadd.f32 %v2026_v36, %v15670_v1  ;;  %v2086_v22 = vadd.f32 %v2054_v63, %v9388_v57  ;;  %v15673_v36 = vld [vmem:[#allocation47_spill] sm:$0xff] }
 0x56c   : > { %v2154_v34 = vadd.f32 %v2134_v53, %v2130_v59  ;;  %v2155_v58 = vadd.f32 %v2135_v21, %v2131_v50  ;;  %v2156_v26 = vadd.f32 %v2136_v55, %v2132_v38  ;;  %v2005_v42 = vpop.permute.xlu2 %2004  ;;  %v9508_v50 = vpop.permute.xlu1 %2468 }
 0x56d   : > { %v2157_v31 = vadd.f32 %v2137_v62, %v2133_v15  ;;  %v2019_v20 = vsel %vm15220_vm2, %v2005_v42, %v9329_v8  ;;  %v2023_v11 = vsel %vm15220_vm2, %v9314_v48, %v2005_v42  ;;  %v9486_v43 = vpop.permute.xlu0 %2484  ;;  %v2029_v8 = vsel %vm15220_vm2, %v9364_v40, %v9316_v14  ;;  %v15672_v14 = vld [vmem:[#allocation25_spill] sm:$0xff]  ;;  %v15675_v42 = vld [vmem:[#allocation34_spill] sm:$0xff] }
 0x56e   : > { %v9479_v39 = vmax.f32 %v2154_v34, 1e-16  ;;  %v9481_v10 = vmax.f32 %v2155_v58, 1e-16  ;;  %v9483_v56 = vmax.f32 %v2156_v26, 1e-16  ;;  %v2064_v18 = vadd.f32 %v2023_v11, %v9258_v49 }
 0x56f   : > { %v9493_v16 = vmax.f32 %v2157_v31, 1e-16  ;;  %v2065_v48 = vadd.f32 %v2019_v20, %v9106_v7  ;;  %v2125_v49 = vadd.f32 %v2093_v23, %v2091_v12  ;;  %v2079_v40 = vadd.f32 %v2029_v8, %v15672_v14 }
 0x570   : > { %6056 = vrsqrt.f32 %v9479_v39  ;;  %v2096_v24 = vadd.f32 %v2064_v18, %v9423_v27  ;;  %v2087_v38 = vadd.f32 %v2055_v28, %v2054_v63  ;;  %v2088_v23 = vadd.f32 %v9451_v9, %v2055_v28 }
 0x571   : > { %6058 = vrsqrt.f32 %v9481_v10  ;;  %v2090_v53 = vadd.f32 %v2065_v48, %v2058_v2  ;;  %v2097_v7 = vadd.f32 %v2065_v48, %v2064_v18  ;;  %v2110_v2 = vadd.f32 %v2078_v3, %v9393_v61 }
 0x572   : > { %6060 = vrsqrt.f32 %v9483_v56  ;;  %v2128_v45 = vadd.f32 %v2096_v24, %v2094_v4  ;;  %v9518_v15 = vadd.f32 %v2079_v40, %v2078_v3  ;;  %v9521_v62 = vadd.f32 %v9456_v41, %v2079_v40 }
 0x573   : > { %6062 = vrsqrt.f32 %v9493_v16  ;;  %v2122_v30 = vadd.f32 %v2096_v24, %v2090_v53  ;;  %v2124_v54 = vadd.f32 %v9411_v47, %v2090_v53  ;;  %v2123_v59 = vadd.f32 %v2097_v7, %v2091_v12 }
 0x574   : > { %v2011_v27 = vpop.permute.xlu2 %2010  ;;  %v2129_v57 = vadd.f32 %v2097_v7, %v2095_v33  ;;  %v9535_v20 = vadd.f32 %v9393_v61, %v9399_v6  ;;  %v2118_v11 = vadd.f32 %v2086_v22, %v9414_v44  ;;  %v2119_v18 = vadd.f32 %v2087_v38, %v9417_v32 }
 0x575   : > { %v2150_v21 = vadd.f32 %v2126_v37, %v2122_v30  ;;  %v2018_v55 = vsel %vm15220_vm2, %v9325_v13, %v2011_v27  ;;  %v2046_v47 = vsel %vm15220_vm2, %v2011_v27, %v15673_v36  ;;  %v2151_v12 = vadd.f32 %v2127_v25, %v2123_v59  ;;  %v15674_v13 = vld [vmem:[#allocation29_spill] sm:$0xff]  ;;  %v9541_v8 = vpop.permute.xlu0 %2490 }
 0x576   : > { %v9516_v4 = vpop.eup %6056  ;;  %v2152_v63 = vadd.f32 %v2128_v45, %v2124_v54  ;;  %v2050_v26 = vadd.f32 %v2046_v47, %v15674_v13  ;;  %v2057_v46 = vadd.f32 %v2018_v55, %v15675_v42  ;;  %v2120_v25 = vadd.f32 %v2088_v23, %v2086_v22 }
 0x577   : > { %v9523_v34 = vpop.eup %6058  ;;  %v2259_v33 = vmul.f32 %v9516_v4, %v9479_v39  ;;  %v9527_v58 = vmax.f32 %v2150_v21, 1e-16  ;;  %v9546_v1 = vadd.f32 %v2110_v2, %v9431_v35  ;;  %v2153_v61 = vadd.f32 %v2129_v57, %v2125_v49 }
 0x578   : > { %v9531_v31 = vpop.eup %6060  ;;  %v2269_v37 = vmul.f32 %v9523_v34, %v9481_v10  ;;  %v9553_v3 = vmax.f32 %v2151_v12, 1e-16  ;;  %v9558_v53 = vadd.f32 %v9518_v15, %v9535_v20  ;;  %v9561_v24 = vadd.f32 %v9521_v62, %v2110_v2 }
 0x579   : > { %v9543_v48 = vpop.eup %6062  ;;  %v2279_v28 = vmul.f32 %v9531_v31, %v9483_v56  ;;  %v2260_v6 = vmul.f32 %v9516_v4, %v2259_v33  ;;  %6064 = vrsqrt.f32 %v9527_v58  ;;  %v9563_v22 = vmax.f32 %v2152_v63, 1e-16 }
 0x57a   : > { %v2289_v60 = vmul.f32 %v9543_v48, %v9493_v16  ;;  %v2082_v14 = vadd.f32 %v2057_v46, %v2050_v26  ;;  %v2270_v49 = vmul.f32 %v9523_v34, %v2269_v37  ;;  %v2083_v30 = vadd.f32 %v9378_v19, %v2050_v26  ;;  %v9581_v19 = vpop.permute.xlu1 %2474 }
 0x57b   : > { %v2280_v40 = vmul.f32 %v9531_v31, %v2279_v28  ;;  %v9569_v45 = vmax.f32 %v2153_v61, 1e-16  ;;  %v2089_v59 = vadd.f32 %v2057_v46, %v9451_v9  ;;  %v2511_v2 = vsel %vm15330_vm0, %v9508_v50, %v9375_v52  ;;  %v15676_v46 = vld [vmem:[#allocation19_spill] sm:$0xff] }
 0x57c   : > { %v2290_v7 = vmul.f32 %v9543_v48, %v2289_v60  ;;  %v2017_v54 = vpop.permute.xlu2 %2016  ;;  %v2114_v27 = vadd.f32 %v2088_v23, %v2082_v14  ;;  %v9576_v57 = vmul.f32 0.5, %v2260_v6  ;;  %6066 = vrsqrt.f32 %v9553_v3 }
 0x57d   : > { %v2116_v21 = vadd.f32 %v9414_v44, %v2082_v14  ;;  %v2117_v55 = vadd.f32 %v9417_v32, %v2083_v30  ;;  %6068 = vrsqrt.f32 %v9563_v22  ;;  %v2115_v36 = vadd.f32 %v2089_v59, %v2083_v30  ;;  %v15679_v14 = vld [vmem:[#allocation32_spill] sm:$0xff] }
 0x57e   : > { %v2121_v9 = vadd.f32 %v2089_v59, %v2087_v38  ;;  %v2146_v23 = vadd.f32 %v2118_v11, %v2114_v27  ;;  %v9586_v12 = vmul.f32 0.5, %v2270_v49  ;;  %v9588_v63 = vmul.f32 0.5, %v2280_v40  ;;  %v15690_v59 = vld [vmem:[#allocation38_spill] sm:$0xff] }
 0x57f   : > { %v9584_v47 = vpop.eup %6064  ;;  %v9590_v33 = vmul.f32 0.5, %v2290_v7  ;;  %v2148_v13 = vadd.f32 %v2120_v25, %v2116_v21  ;;  %v2147_v26 = vadd.f32 %v2119_v18, %v2115_v36  ;;  %v2021_v32 = vsel %vm15220_vm2, %v9331_v5, %v2017_v54  ;;  %v9606_v25 = vpop.permute.xlu0 %2496 }
 0x580   : > { %v2149_v44 = vadd.f32 %v2121_v9, %v2117_v55  ;;  %v9592_v42 = vmax.f32 %v2146_v23, 1e-16  ;;  %6070 = vrsqrt.f32 %v9569_v45  ;;  %v9601_v11 = vadd.f32 %v2511_v2, %v15676_v46  ;;  %15678 = vst [vmem:[#allocation26_spill] sm:$0xff] %v9606_v25 }
 0x581   : > { %v9598_v38 = vmax.f32 %v2148_v13, 1e-16  ;;  %v2049_v37 = vsel %vm15220_vm2, %v2017_v54, %v9249_v51  ;;  %v2262_v18 = vsub.f32 1.5, %v9576_v57  ;;  %v2219_v28 = vmul.f32 %v9584_v47, %v9527_v58  ;;  %v15680_v51 = vld [vmem:[#allocation43_spill] sm:$0xff]  ;;  %v15681_v13 = vld [vmem:[#allocation16_spill] sm:$0xff] }
 0x582   : > { %15677 = vst [vmem:[#allocation18_spill] sm:$0xff] %v9601_v11  ;;  %v9611_v61 = vmax.f32 %v2147_v26, 1e-16  ;;  %v9613_v5 = vmax.f32 %v2149_v44, 1e-16  ;;  %v9615_v6 = vpop.eup %6066  ;;  %6072 = vrsqrt.f32 %v9592_v42  ;;  %v2074_v49 = vadd.f32 %v2049_v37, %v15679_v14  ;;  %v2481_v36 = vpop.permute.xlu1 %2480 }
 0x583   : > { %v2081_v40 = vadd.f32 %v2021_v32, %v15680_v51  ;;  %v9621_v30 = vpop.eup %6068  ;;  %v2513_v27 = vsel %vm15330_vm0, %v9606_v25, %v9508_v50  ;;  %vm2265_vm14 = vweird.f32 %v9516_v4  ;;  %v9635_v9 = vmul.f32 %v9584_v47, %v2219_v28  ;;  %v15684_v51 = vld [vmem:[#allocation35_spill] sm:$0xff] }
 0x584   : > { %v2471_v7 = vpop.permute.xlu2 %2470  ;;  %6074 = vrsqrt.f32 %v9611_v61  ;;  %v2107_v21 = vadd.f32 %v9396_v17, %v2074_v49  ;;  %v2229_v23 = vmul.f32 %v9615_v6, %v9553_v3  ;;  %v9641_v50 = vadd.f32 %v2513_v27, %v15681_v13 }
 0x585   : > { %6076 = vrsqrt.f32 %v9598_v38  ;;  %v2106_v2 = vadd.f32 %v2081_v40, %v2074_v49  ;;  %v2113_v55 = vadd.f32 %v2081_v40, %v9456_v41  ;;  %vm2275_vm15 = vweird.f32 %v9523_v34 }
 0x586   : > { %6078 = vrsqrt.f32 %v9613_v5  ;;  %15682 = vst [vmem:[#allocation36_spill] sm:$0xff] %v9641_v50  ;;  %v9643_v26 = vpop.eup %6070  ;;  %v2141_v32 = vadd.f32 %v9535_v20, %v2107_v21  ;;  %vm2264_vm3 = vweird.f32 %v9479_v39  ;;  %v2239_v46 = vmul.f32 %v9621_v30, %v9563_v22  ;;  %2532 = vrot.lane.b32.xlu2 %v9641_v50, %s6243_s20 }
 0x587   : > { %v2138_v17 = vadd.f32 %v9521_v62, %v2106_v2  ;;  %v2139_v41 = vadd.f32 %v2113_v55, %v2107_v21  ;;  %v2140_v44 = vadd.f32 %v9431_v35, %v2106_v2  ;;  %v2145_v37 = vadd.f32 %v2113_v55, %v9518_v15  ;;  %v15683_v62 = vld [vmem:[#allocation49_spill] sm:$0xff]  ;;  %vm9752_vm9 = vmor %vm2264_vm3, %vm2265_vm14 }
 0x588   : > { %v2508_v28 = vsel %vm15330_vm0, %v2471_v7, %v9581_v19  ;;  %v2510_v35 = vsel %vm15330_vm0, %v15683_v62, %v2471_v7  ;;  %v9661_v14 = vpop.eup %6072  ;;  %vm2274_vm4 = vweird.f32 %v9481_v10  ;;  %v9673_v2 = vmul.f32 %v9615_v6, %v2229_v23 }
 0x589   : > { %v2158_v20 = vadd.f32 %v9546_v1, %v2138_v17  ;;  %v2159_v49 = vadd.f32 %v9558_v53, %v2139_v41  ;;  %v2160_v15 = vadd.f32 %v9561_v24, %v2140_v44  ;;  %v9668_v40 = vadd.f32 %v2510_v35, %v15684_v51  ;;  %v15686_v17 = vld [vmem:[#allocation30_spill] sm:$0xff]  ;;  %vm9772_vm14 = vmor %vm2274_vm4, %vm2275_vm15 }
 0x58a   : > { %v9670_v27 = vpop.eup %6074  ;;  %v2249_v7 = vmul.f32 %v9643_v26, %v9569_v45  ;;  %v2161_v21 = vadd.f32 %v2145_v37, %v2141_v32  ;;  %v2506_v1 = vsel %vm15330_vm0, %v9581_v19, %v9448_v0  ;;  %v9690_v23 = vadd.f32 %v2508_v28, %v15686_v17  ;;  %v9736_v60 = vpop.permute.xlu1 %2486 }
 0x58b   : > { %15685 = vst [vmem:[#allocation31_spill] sm:$0xff] %v9668_v40  ;;  %v9681_v53 = vpop.eup %6076  ;;  %v9683_v24 = vmax.f32 %v2158_v20, 1e-16  ;;  %v9685_v55 = vmax.f32 %v2159_v49, 1e-16  ;;  %2534 = vrot.lane.b32.xlu0 %v9668_v40, %s6243_s20  ;;  %vm2285_vm5 = vweird.f32 %v9531_v31  ;;  %v2179_v19 = vmul.f32 %v9661_v14, %v9592_v42 }
 0x58c   : > { %v9687_v13 = vmax.f32 %v2160_v15, 1e-16  ;;  %15687 = vst [vmem:[#allocation25_spill] sm:$0xff] %v9690_v23  ;;  %v2477_v41 = vpop.permute.xlu2 %2476  ;;  %v9694_v44 = vpop.eup %6078  ;;  %v2189_v32 = vmul.f32 %v9670_v27, %v9611_v61  ;;  %v9701_v37 = vmax.f32 %v2161_v21, 1e-16  ;;  %v2505_v28 = vsel %vm15330_vm0, %v2481_v36, %v9486_v43  ;;  %v15688_v21 = vld [vmem:[#allocation3_spill] sm:$0xff] }
 0x58d   : > { %vm2295_vm6 = vweird.f32 %v9543_v48  ;;  %v9708_v35 = vmul.f32 %v9621_v30, %v2239_v46  ;;  %v2199_v20 = vmul.f32 %v9681_v53, %v9598_v38  ;;  %v2209_v49 = vmul.f32 %v9694_v44, %v9613_v5  ;;  %15692 = vst [vmem:[#allocation34_spill] sm:$0xff] %v9736_v60 }
 0x58e   : > { %6080 = vrsqrt.f32 %v9683_v24  ;;  %vm2284_vm7 = vweird.f32 %v9483_v56  ;;  %v9717_v15 = vmul.f32 %v9643_v26, %v2249_v7  ;;  %v2507_v51 = vsel %vm15330_vm0, %v2477_v41, %v2481_v36  ;;  %2538 = vrot.lane.b32.xlu2 %v9690_v23, %s6243_s20  ;;  %v15693_v36 = vld [vmem:[#allocation11_spill] sm:$0xff]  ;;  %v15716_v56 = vld [vmem:[#allocation48_spill] sm:$0xff] }
 0x58f   : > { %6082 = vrsqrt.f32 %v9685_v55  ;;  %v2263_v46 = vmul.f32 %v9516_v4, %v2262_v18  ;;  %vm2294_vm8 = vweird.f32 %v9493_v16  ;;  %v9728_v17 = vadd.f32 %v2506_v1, %v15688_v21  ;;  %vm9832_vm13 = vmor %vm2284_vm7, %vm2285_vm5 }
 0x590   : > { %6084 = vrsqrt.f32 %v9687_v13  ;;  %v9731_v54 = vadd.f32 %v2505_v28, %v15690_v59  ;;  %v2509_v7 = vsel %vm15330_vm0, %v9375_v52, %v2477_v41  ;;  %v2180_v57 = vmul.f32 %v9661_v14, %v2179_v19  ;;  %v15697_v19 = vld [vmem:[#allocation4_spill] sm:$0xff]  ;;  %v15705_v52 = vld [vmem:[#allocation41_spill] sm:$0xff]  ;;  %vm9846_vm2 = vmor %vm2294_vm8, %vm2295_vm6 }
 0x591   : > { %15689 = vst [vmem:[#allocation47_spill] sm:$0xff] %v9728_v17  ;;  %v9740_v18 = vmul.f32 %v9670_v27, %v2189_v32  ;;  %6086 = vrsqrt.f32 %v9701_v37  ;;  %v9746_v1 = vadd.f32 %v2509_v7, %v15693_v36  ;;  %v9757_v59 = vmul.f32 %v9681_v53, %v2199_v20  ;;  %v15706_v7 = vld [vmem:[#allocation14_spill] sm:$0xff] }
 0x592   : > { %15691 = vst [vmem:[#allocation29_spill] sm:$0xff] %v9731_v54  ;;  %v9760_v41 = vmul.f32 %v9694_v44, %v2209_v49  ;;  %v9763_v32 = vadd.f32 %v2507_v51, %v15697_v19  ;;  %v15699_v28 = vsub.f32 1.5, %v9586_v12  ;;  %v2267_v20 = vsel %vm9752_vm9, %v9516_v4, %v2263_v46  ;;  %v15702_v49 = vld [vmem:[#allocation20_spill] sm:$0xff]  ;;  %v9859_v16 = vpop.permute.xlu1 %2492 }
 0x593   : > { %15694 = vst [vmem:[#allocation19_spill] sm:$0xff] %v9746_v1  ;;  %v15703_v12 = vsub.f32 1.5, %v9588_v63  ;;  %2540 = vrot.lane.b32.xlu0 %v9746_v1, %s6243_s20  ;;  %v15704_v4 = vsub.f32 1.5, %v9590_v33  ;;  %vm2304_vm15 = vweird.f32 %v9683_v24  ;;  %vm2314_vm4 = vweird.f32 %v9685_v55  ;;  %v15708_v1 = vld [vmem:[#allocation37_spill] sm:$0xff] }
 0x594   : > { %15698 = vst [vmem:[#allocation32_spill] sm:$0xff] %v9763_v32  ;;  %v2273_v21 = vmul.f32 %v9523_v34, %v15699_v28  ;;  %v9784_v19 = vpop.eup %6080  ;;  %v2483_v10 = vpop.permute.xlu2 %2482  ;;  %vm2334_vm11 = vweird.f32 %v9701_v37  ;;  %v2181_v54 = vmul.f32 0.5, %v2180_v57  ;;  %vm2194_vm7 = vweird.f32 %v9611_v61 }
 0x595   : > { %v2283_v36 = vmul.f32 %v9531_v31, %v15703_v12  ;;  %v2293_v46 = vmul.f32 %v9543_v48, %v15704_v4  ;;  %v9796_v23 = vpop.eup %6082  ;;  %v2299_v12 = vmul.f32 %v9784_v19, %v9683_v24  ;;  %v2502_v39 = vsel %vm15330_vm0, %v2483_v10, %v9736_v60  ;;  %v15717_v24 = vld [vmem:[#allocation39_spill] sm:$0xff] }
 0x596   : > { %v2277_v28 = vsel %vm9772_vm14, %v9523_v34, %v2273_v21  ;;  %v2504_v34 = vsel %vm15330_vm0, %v9448_v0, %v2483_v10  ;;  %v9808_v21 = vpop.eup %6084  ;;  %vm2305_vm3 = vweird.f32 %v9784_v19  ;;  %v2309_v4 = vmul.f32 %v9796_v23, %v9685_v55  ;;  %v15707_v10 = vld [vmem:[#allocation22_spill] sm:$0xff]  ;;  %2544 = vrot.lane.b32.xlu2 %v9763_v32, %s6243_s20 }
 0x597   : > { %vm2315_vm9 = vweird.f32 %v9796_v23  ;;  %v9816_v51 = vpop.eup %6086  ;;  %v2300_v50 = vmul.f32 %v9784_v19, %v2299_v12  ;;  %v2319_v0 = vmul.f32 %v9808_v21, %v9687_v13  ;;  %vm2324_vm14 = vweird.f32 %v9687_v13 }
 0x598   : > { %v9823_v33 = vadd.f32 %v2504_v34, %v15707_v10  ;;  %v9826_v40 = vadd.f32 %v2502_v39, %v15708_v1  ;;  %v2310_v12 = vmul.f32 %v9796_v23, %v2309_v4  ;;  %vm2325_vm12 = vweird.f32 %v9808_v21 }
 0x599   : > { %v2329_v25 = vmul.f32 %v9816_v51, %v9701_v37  ;;  %vm2335_vm10 = vweird.f32 %v9816_v51  ;;  %v2301_v1 = vmul.f32 0.5, %v2300_v50  ;;  %v2320_v39 = vmul.f32 %v9808_v21, %v2319_v0  ;;  %vm9912_vm5 = vmor %vm2324_vm14, %vm2325_vm12 }
 0x59a   : > { %v9853_v34 = vpack.c.bf16 %v2277_v28, %v2267_v20  ;;  %v2287_v4 = vsel %vm9832_vm13, %v9531_v31, %v2283_v36  ;;  %v2311_v10 = vmul.f32 0.5, %v2310_v12  ;;  %v2297_v50 = vsel %vm9846_vm2, %v9543_v48, %v2293_v46  ;;  %vm9881_vm2 = vmor %vm2304_vm15, %vm2305_vm3 }
 0x59b   : > { %v2330_v60 = vmul.f32 %v9816_v51, %v2329_v25  ;;  %v2302_v0 = vsub.f32 1.5, %v2301_v1  ;;  %v2321_v17 = vmul.f32 0.5, %v2320_v39  ;;  %2546 = vrot.lane.b32.xlu0 %v9823_v33, %s6243_s20  ;;  %v9868_v25 = vpack.c.bf16 %v2297_v50, %v2287_v4  ;;  %vm2316_vm13 = vmor %vm2314_vm4, %vm2315_vm9 }
 0x59c   : > { %v2386_v32 = vunpack.c.l.bf16 %v9853_v34  ;;  %v2387_v20 = vunpack.c.h.bf16 %v9853_v34  ;;  %v2312_v28 = vsub.f32 1.5, %v2311_v10  ;;  %v2489_v31 = vpop.permute.xlu2 %2488  ;;  %v2182_v36 = vsub.f32 1.5, %v2181_v54  ;;  %vm2336_vm6 = vmor %vm2334_vm11, %vm2335_vm10 }
 0x59d   : > { %v2331_v11 = vmul.f32 0.5, %v2330_v60  ;;  %v2322_v63 = vsub.f32 1.5, %v2321_v17  ;;  %v2501_v48 = vsel %vm15330_vm0, %v2489_v31, %v9859_v16  ;;  %v2503_v57 = vsel %vm15330_vm0, %v9486_v43, %v2489_v31  ;;  %v15715_v17 = vld [vmem:[#allocation45_spill] sm:$0xff] }
 0x59e   : > { %v2303_v46 = vmul.f32 %v9784_v19, %v2302_v0  ;;  %v9886_v12 = vadd.f32 %v2503_v57, %v15715_v17  ;;  %v9889_v1 = vadd.f32 %v2501_v48, %v15716_v56  ;;  %v2313_v39 = vmul.f32 %v9796_v23, %v2312_v28  ;;  %2550 = vrot.lane.b32.xlu2 %v9826_v40, %s6243_s20 }
 0x59f   : > { %v2332_v54 = vsub.f32 1.5, %v2331_v11  ;;  %v15718_v4 = vunpack.c.l.bf16 %v15717_v24  ;;  %v15719_v10 = vunpack.c.h.bf16 %v15717_v24  ;;  %v2323_v0 = vmul.f32 %v9808_v21, %v2322_v63 }
 0x5a0   : > { %v2307_v43 = vsel %vm9881_vm2, %v9784_v19, %v2303_v46  ;;  %v2317_v19 = vsel %vm2316_vm13, %v9796_v23, %v2313_v39  ;;  %v2388_v31 = vunpack.c.l.bf16 %v9868_v25  ;;  %v2389_v48 = vunpack.c.h.bf16 %v9868_v25  ;;  %v15751_v25 = vld [vmem:[#allocation23_spill] sm:$0xff] }
 0x5a1   : > { %v2410_v11 = vmul.f32 %v2386_v32, %v15718_v4  ;;  %v2411_v50 = vmul.f32 %v2387_v20, %v15719_v10  ;;  %v2333_v28 = vmul.f32 %v9816_v51, %v2332_v54  ;;  %v9926_v13 = vpack.c.bf16 %v2317_v19, %v2307_v43 }
 0x5a2   : > { %v2327_v23 = vsel %vm9912_vm5, %v9808_v21, %v2323_v0  ;;  %v2183_v63 = vmul.f32 %v9661_v14, %v2182_v36  ;;  %vm2184_vm12 = vweird.f32 %v9592_v42  ;;  %v15722_v46 = vunpack.c.l.bf16 %v15705_v52 }
 0x5a3   : > { %v2337_v57 = vsel %vm2336_vm6, %v9816_v51, %v2333_v28  ;;  %v15723_v60 = vunpack.c.h.bf16 %v15705_v52  ;;  %vm2185_vm10 = vweird.f32 %v9661_v14  ;;  %v2390_v21 = vunpack.c.l.bf16 %v9926_v13  ;;  %2552 = vrot.lane.b32.xlu0 %v9886_v12, %s6243_s20 }
 0x5a4   : > { %v2412_v37 = vmul.f32 %v2388_v31, %v15722_v46  ;;  %v2391_v36 = vunpack.c.h.bf16 %v9926_v13  ;;  %v9945_v17 = vpack.c.bf16 %v2337_v57, %v2327_v23  ;;  %vm9947_vm11 = vmor %vm2184_vm12, %vm2185_vm10  ;;  %v2191_v51 = vmul.f32 0.5, %v9740_v18  ;;  %v2495_v52 = vpop.permute.xlu2 %2494  ;;  %v15749_v13 = vld [vmem:[#allocation10_spill] sm:$0xff] }
 0x5a5   : > { %v2413_v54 = vmul.f32 %v2389_v48, %v15723_v60  ;;  %v2187_v56 = vsel %vm9947_vm11, %v9661_v14, %v2183_v63  ;;  %vm2195_vm8 = vweird.f32 %v9670_v27  ;;  %v2221_v39 = vmul.f32 0.5, %v9635_v9  ;;  %v15730_v60 = vld [vmem:[#allocation7_spill] sm:$0xff] }
 0x5a6   : > { %v15726_v43 = vunpack.c.l.bf16 %v15702_v49  ;;  %v15727_v18 = vunpack.c.h.bf16 %v15702_v49  ;;  %v2392_v10 = vunpack.c.l.bf16 %v9945_v17  ;;  %v2393_v14 = vunpack.c.h.bf16 %v9945_v17  ;;  %2556 = vrot.lane.b32.xlu2 %v9889_v1, %s6243_s20  ;;  %vm2196_vm15 = vmor %vm2194_vm7, %vm2195_vm8 }
 0x5a7   : > { %v2498_v0 = vsel %vm15330_vm0, %v9541_v8, %v2495_v52  ;;  %v2512_v9 = vsel %vm15330_vm0, %v2495_v52, %v15683_v62  ;;  %v2192_v55 = vsub.f32 1.5, %v2191_v51  ;;  %v2222_v19 = vsub.f32 1.5, %v2221_v39  ;;  %v15735_v39 = vld [vmem:[#allocation2_spill] sm:$0xff] }
 0x5a8   : > { %v2418_v24 = vmul.f32 %v2390_v21, %v15726_v43  ;;  %v2419_v4 = vmul.f32 %v2391_v36, %v15727_v18  ;;  %v15728_v49 = vunpack.c.l.bf16 %v15706_v7  ;;  %v15729_v57 = vunpack.c.h.bf16 %v15706_v7  ;;  %v15731_v43 = vld [vmem:[#allocation15_spill] sm:$0xff] }
 0x5a9   : > { %v9985_v42 = vadd.f32 %v2512_v9, %v15730_v60  ;;  %v9988_v18 = vadd.f32 %v2498_v0, %v15731_v43  ;;  %v2193_v62 = vmul.f32 %v9670_v27, %v2192_v55  ;;  %vm2224_vm3 = vweird.f32 %v9527_v58 }
 0x5aa   : > { %v2434_v28 = vpack.c.bf16 %v2418_v24, %v2410_v11  ;;  %v2435_v23 = vpack.c.bf16 %v2419_v4, %v2411_v50  ;;  %v2420_v63 = vmul.f32 %v2392_v10, %v15728_v49  ;;  %v2421_v46 = vmul.f32 %v2393_v14, %v15729_v57 }
 0x5ab   : > { %v2223_v11 = vmul.f32 %v9584_v47, %v2222_v19  ;;  %vm2225_vm4 = vweird.f32 %v9584_v47  ;;  %2530 = vrot.lane.b32.xlu1 %v9985_v42, %s6243_s20  ;;  %v2197_v7 = vsel %vm2196_vm15, %v9670_v27, %v2193_v62  ;;  %vm2234_vm14 = vweird.f32 %v9553_v3  ;;  %2558 = vrot.lane.b32.xlu0 %v9988_v18, %s6243_s20 }
 0x5ac   : > { %2844 = vmatpush.bf16.xpose.msra.mxu1 %v2434_v28  ;;  %v2436_v50 = vpack.c.bf16 %v2420_v63, %v2412_v37  ;;  %v2437_v51 = vpack.c.bf16 %v2421_v46, %v2413_v54  ;;  %2858 = vmatpush.bf16.xpose.msra.mxu2 %v2435_v23  ;;  %vm10003_vm9 = vmor %vm2224_vm3, %vm2225_vm4  ;;  %v2231_v37 = vmul.f32 0.5, %v9673_v2  ;;  %vm2235_vm2 = vweird.f32 %v9615_v6  ;;  %v15734_v54 = vld [vmem:[#allocation40_spill] sm:$0xff] }
 0x5ad   : > { %v2227_v58 = vsel %vm10003_vm9, %v9584_v47, %v2223_v11  ;;  %v10013_v61 = vpack.c.bf16 %v2197_v7, %v2187_v56  ;;  %v2346_v27 = vunpack.c.l.bf16 %v15734_v54  ;;  %v2354_v24 = vunpack.c.l.bf16 %v15735_v39  ;;  %vm2236_vm12 = vmor %vm2234_vm14, %vm2235_vm2  ;;  %v15741_v7 = vld [vmem:[#allocation8_spill] sm:$0xff] }
 0x5ae   : > { %2872 = vmatpush.bf16.xpose.msra.mxu3 %v2436_v50  ;;  %2886 = vmatpush.bf16.xpose.msrb.mxu0 %v2437_v51  ;;  %v2232_v2 = vsub.f32 1.5, %v2231_v37  ;;  %v2347_v4 = vunpack.c.h.bf16 %v15734_v54  ;;  %v2355_v0 = vunpack.c.h.bf16 %v15735_v39  ;;  %v2201_v9 = vmul.f32 0.5, %v9757_v59  ;;  %v15742_v37 = vld [vmem:[#allocation17_spill] sm:$0xff] }
 0x5af   : > { %v2378_v55 = vunpack.c.l.bf16 %v10013_v61  ;;  %v2379_v47 = vunpack.c.h.bf16 %v10013_v61  ;;  %vm2204_vm13 = vweird.f32 %v9598_v38  ;;  %vm2205_vm5 = vweird.f32 %v9681_v53  ;;  %v15738_v38 = vld [vmem:[#allocation18_spill] sm:$0xff] }
 0x5b0   : > { %v2233_v56 = vmul.f32 %v9615_v6, %v2232_v2  ;;  %v2202_v19 = vsub.f32 1.5, %v2201_v9  ;;  %v2211_v28 = vmul.f32 0.5, %v9760_v41  ;;  %vm2214_vm6 = vweird.f32 %v9613_v5  ;;  %vm10048_vm7 = vmor %vm2204_vm13, %vm2205_vm5  ;;  %v15744_v9 = vld [vmem:[#allocation5_spill] sm:$0xff] }
 0x5b1   : > { %v2394_v59 = vmul.f32 %v2378_v55, %v2346_v27  ;;  %v2395_v23 = vmul.f32 %v2379_v47, %v2347_v4  ;;  %vm2215_vm10 = vweird.f32 %v9694_v44  ;;  %v2241_v49 = vmul.f32 0.5, %v9708_v35  ;;  %v15743_v4 = vld [vmem:[#allocation24_spill] sm:$0xff] }
 0x5b2   : > { %v2237_v63 = vsel %vm2236_vm12, %v9615_v6, %v2233_v56  ;;  %v2203_v41 = vmul.f32 %v9681_v53, %v2202_v19  ;;  %v2212_v57 = vsub.f32 1.5, %v2211_v28  ;;  %vm2244_vm11 = vweird.f32 %v9563_v22  ;;  %vm2216_vm4 = vmor %vm2214_vm6, %vm2215_vm10 }
 0x5b3   : > { %v10042_v46 = vpack.c.bf16 %v2237_v63, %v2227_v58  ;;  %v2242_v60 = vsub.f32 1.5, %v2241_v49  ;;  %vm2245_vm8 = vweird.f32 %v9621_v30  ;;  %v2251_v6 = vmul.f32 0.5, %v9717_v15  ;;  %2536 = vrot.lane.b32.xlu1 %v15738_v38, %s6243_s20 }
 0x5b4   : > { %v2207_v35 = vsel %vm10048_vm7, %v9681_v53, %v2203_v41  ;;  %v2213_v43 = vmul.f32 %v9694_v44, %v2212_v57  ;;  %vm2254_vm15 = vweird.f32 %v9569_v45  ;;  %vm2255_vm3 = vweird.f32 %v9643_v26  ;;  %vm10072_vm9 = vmor %vm2244_vm11, %vm2245_vm8 }
 0x5b5   : > { %v2382_v62 = vunpack.c.l.bf16 %v10042_v46  ;;  %v2383_v11 = vunpack.c.h.bf16 %v10042_v46  ;;  %v2243_v53 = vmul.f32 %v9621_v30, %v2242_v60  ;;  %v2252_v15 = vsub.f32 1.5, %v2251_v6  ;;  %vm2256_vm14 = vmor %vm2254_vm15, %vm2255_vm3  ;;  %v15755_v46 = vld [vmem:[#allocation26_spill] sm:$0xff] }
 0x5b6   : > { %v2217_v50 = vsel %vm2216_vm4, %v9694_v44, %v2213_v43  ;;  %v2348_v52 = vunpack.c.l.bf16 %v15741_v7  ;;  %v2356_v58 = vunpack.c.l.bf16 %v15742_v37  ;;  %v2349_v54 = vunpack.c.h.bf16 %v15741_v7 }
 0x5b7   : > { %v2402_v27 = vmul.f32 %v2382_v62, %v2354_v24  ;;  %v2403_v5 = vmul.f32 %v2383_v11, %v2355_v0  ;;  %v2247_v44 = vsel %vm10072_vm9, %v9621_v30, %v2243_v53  ;;  %v2253_v22 = vmul.f32 %v9643_v26, %v2252_v15  ;;  %v15746_v53 = vld [vmem:[#allocation47_spill] sm:$0xff] }
 0x5b8   : > { %v10089_v39 = vpack.c.bf16 %v2217_v50, %v2207_v35  ;;  %v2357_v2 = vunpack.c.h.bf16 %v15742_v37  ;;  %v2366_v24 = vunpack.c.l.bf16 %v15743_v4  ;;  %v2374_v56 = vunpack.c.l.bf16 %v15744_v9  ;;  %v15747_v50 = vld [vmem:[#allocation44_spill] sm:$0xff] }
 0x5b9   : > { %v2426_v0 = vpack.c.bf16 %v2402_v27, %v2394_v59  ;;  %v2427_v19 = vpack.c.bf16 %v2403_v5, %v2395_v23  ;;  %v2257_v28 = vsel %vm2256_vm14, %v9643_v26, %v2253_v22  ;;  %v2367_v30 = vunpack.c.h.bf16 %v15743_v4  ;;  %v15745_v23 = vld [vmem:[#allocation46_spill] sm:$0xff] }
 0x5ba   : > { %v2341_v49 = vpack.c.bf16 %v2257_v28, %v2247_v44  ;;  %v2380_v63 = vunpack.c.l.bf16 %v10089_v39  ;;  %v2381_v45 = vunpack.c.h.bf16 %v10089_v39  ;;  %v2414_v41 = vmul.f32 %v2386_v32, %v2366_v24  ;;  %v15748_v27 = vld [vmem:[#allocation42_spill] sm:$0xff] }
 0x5bb   : > { %2845 = vmatpush.bf16.xpose.msra.mxu1 %v2426_v0  ;;  %2859 = vmatpush.bf16.xpose.msra.mxu2 %v2427_v19  ;;  %v2422_v57 = vmul.f32 %v2390_v21, %v2374_v56  ;;  %v2375_v59 = vunpack.c.h.bf16 %v15744_v9  ;;  %v2415_v26 = vmul.f32 %v2387_v20, %v2367_v30  ;;  %v2368_v3 = vunpack.c.l.bf16 %v15745_v23  ;;  %v15750_v56 = vld [vmem:[#allocation27_spill] sm:$0xff] }
 0x5bc   : > { %v2384_v60 = vunpack.c.l.bf16 %v2341_v49  ;;  %v2396_v6 = vmul.f32 %v2380_v63, %v2348_v52  ;;  %v2385_v35 = vunpack.c.h.bf16 %v2341_v49  ;;  %v2397_v43 = vmul.f32 %v2381_v45, %v2349_v54  ;;  %2542 = vrot.lane.b32.xlu1 %v15746_v53, %s6243_s20  ;;  %v15752_v49 = vld [vmem:[#allocation29_spill] sm:$0xff] }
 0x5bd   : > { %v2438_v32 = vpack.c.bf16 %v2422_v57, %v2414_v41  ;;  %v2423_v15 = vmul.f32 %v2391_v36, %v2375_v59  ;;  %v2376_v21 = vunpack.c.l.bf16 %v15747_v50  ;;  %v2416_v51 = vmul.f32 %v2388_v31, %v2368_v3  ;;  %v15753_v41 = vld [vmem:[#allocation34_spill] sm:$0xff]  ;;  %v15754_v3 = vld [vmem:[#allocation28_spill] sm:$0xff] }
 0x5be   : > { %v2404_v34 = vmul.f32 %v2384_v60, %v2356_v58  ;;  %v2405_v20 = vmul.f32 %v2385_v35, %v2357_v2  ;;  %v2369_v7 = vunpack.c.h.bf16 %v15745_v23  ;;  %v2377_v52 = vunpack.c.h.bf16 %v15747_v50 }
 0x5bf   : > { %v2439_v37 = vpack.c.bf16 %v2423_v15, %v2415_v26  ;;  %v2424_v54 = vmul.f32 %v2392_v10, %v2376_v21  ;;  %v2350_v5 = vunpack.c.l.bf16 %v15748_v27  ;;  %v2358_v36 = vunpack.c.l.bf16 %v15749_v13  ;;  %v15757_v21 = vld [vmem:[#allocation31_spill] sm:$0xff] }
 0x5c0   : > { %v2428_v44 = vpack.c.bf16 %v2404_v34, %v2396_v6  ;;  %v2429_v22 = vpack.c.bf16 %v2405_v20, %v2397_v43  ;;  %v2417_v31 = vmul.f32 %v2389_v48, %v2369_v7  ;;  %v2425_v58 = vmul.f32 %v2393_v14, %v2377_v52 }
 0x5c1   : > { %v2440_v39 = vpack.c.bf16 %v2424_v54, %v2416_v51  ;;  %v2398_v2 = vmul.f32 %v2378_v55, %v2350_v5  ;;  %v2406_v4 = vmul.f32 %v2382_v62, %v2358_v36  ;;  %v2351_v10 = vunpack.c.h.bf16 %v15748_v27 }
 0x5c2   : > { %2873 = vmatpush.bf16.xpose.msra.mxu3 %v2428_v44  ;;  %2887 = vmatpush.bf16.xpose.msrb.mxu0 %v2429_v22  ;;  %v2441_v24 = vpack.c.bf16 %v2425_v58, %v2417_v31  ;;  %v2359_v9 = vunpack.c.h.bf16 %v15749_v13  ;;  %v2352_v0 = vunpack.c.l.bf16 %v15750_v56  ;;  %v2360_v48 = vunpack.c.l.bf16 %v15751_v25 }
 0x5c3   : > { %2900 = vmatpush.bf16.xpose.msrb.mxu1 %v2438_v32  ;;  %2914 = vmatpush.bf16.xpose.msrb.mxu2 %v2439_v37  ;;  %v2430_v17 = vpack.c.bf16 %v2406_v4, %v2398_v2  ;;  %v2399_v14 = vmul.f32 %v2379_v47, %v2351_v10  ;;  %v2353_v19 = vunpack.c.h.bf16 %v15750_v56  ;;  %v2361_v55 = vunpack.c.h.bf16 %v15751_v25  ;;  %v5894_v4 = vld [vmem:[%s6279_s18 + $0x240] sm:$0xff]  ;;  %v5895_v10 = vld [vmem:[%s6279_s18 + $0x248] sm:$0xff] }
 0x5c4   : > { %v2407_v62 = vmul.f32 %v2383_v11, %v2359_v9  ;;  %v2400_v28 = vmul.f32 %v2380_v63, %v2352_v0  ;;  %v2408_v30 = vmul.f32 %v2384_v60, %v2360_v48  ;;  %2548 = vrot.lane.b32.xlu1 %v15752_v49, %s6243_s20  ;;  %v2500_v57 = vsel %vm15330_vm0, %v15753_v41, %v9541_v8  ;;  %v15756_v63 = vld [vmem:[#allocation6_spill] sm:$0xff] }
 0x5c5   : > { %v2401_v61 = vmul.f32 %v2381_v45, %v2353_v19  ;;  %v2409_v47 = vmul.f32 %v2385_v35, %v2361_v55  ;;  %v2520_v6 = vadd.f32 %v2500_v57, %v15754_v3  ;;  %v2499_v11 = vsel %vm15330_vm0, %v9859_v16, %v15755_v46  ;;  %v5886_v41 = vld [vmem:[%s6279_s18 + $0x200] sm:$0xff]  ;;  %v5905_v46 = vld [vmem:[%s6279_s18 + $0x298] sm:$0xff] }
 0x5c6   : > { %v2431_v59 = vpack.c.bf16 %v2407_v62, %v2399_v14  ;;  %v2432_v26 = vpack.c.bf16 %v2408_v30, %v2400_v28  ;;  %v2529_v8 = vadd.f32 %v2499_v11, %v15756_v63  ;;  %v10231_v19 = vmul.f32 %v5894_v4, %v5894_v4  ;;  %v15760_v28 = vld [vmem:[#allocation36_spill] sm:$0xff]  ;;  %v5911_v11 = vld [vmem:[%s6279_s18 + $0x2c8] sm:$0x1] }
 0x5c7   : > { %v2433_v23 = vpack.c.bf16 %v2409_v47, %v2401_v61  ;;  %v5902_v61 = vld [vmem:[%s6279_s18 + $0x280] sm:$0xff]  ;;  %vm15796_vm2 = vcmp.lt.s32.totalorder %v6495_v29, 64 }
 0x5c8   : > { %v10260_v3 = vmul.f32 %v5902_v61, %v5902_v61  ;;  %vm15797_vm13 = vmmov %vm15796_vm2 }
 0x5c9   : > { %vm15799_vm5 = vmmov %vm15796_vm2 }
 0x5ca   : > { %2928 = vmatpush.bf16.xpose.msrb.mxu3 %v2440_v39  ;;  %2942 = vmatpush.bf16.xpose.msra.mxu0 %v2441_v24  ;;  %v10214_v24 = vpack.c.bf16 %v5895_v10, %v5894_v4  ;;  %15763 = vst [vmem:[#allocation49_spill] sm:$0xff] %v10260_v3  ;;  %vm15800_vm6 = vmmov %vm15796_vm2 }
 0x5cb   : > { %2901 = vmatpush.bf16.xpose.msrb.mxu1 %v2430_v17  ;;  %2915 = vmatpush.bf16.xpose.msrb.mxu2 %v2431_v59  ;;  %vm15801_vm12 = vmmov %vm15796_vm2 }
 0x5cc   : > { %2554 = vrot.lane.b32.xlu1 %v2520_v6, %s6243_s20  ;;  %15759 = vst [vmem:[#allocation43_spill] sm:$0xff] %v10214_v24  ;;  %vm15802_vm10 = vmmov %vm15796_vm2 }
 0x5cd   : > { %vm15803_vm11 = vmmov %vm15796_vm2 }
 0x5ce   : > { %vm15804_vm7 = vmmov %vm15796_vm2 }
 0x5cf   : > { %vm15805_vm8 = vmmov %vm15796_vm2 }
 0x5d0   : > { %vm15806_vm15 = vmmov %vm15796_vm2 }
 0x5d1   : > { %vm15807_vm3 = vmmov %vm15796_vm2 }
 0x5d2   : > { %2929 = vmatpush.bf16.xpose.msrb.mxu3 %v2432_v26  ;;  %2943 = vmatpush.bf16.xpose.msra.mxu0 %v2433_v23  ;;  %v15762_v26 = vld [vmem:[#allocation25_spill] sm:$0xff]  ;;  %vm15808_vm4 = vmmov %vm15796_vm2 }
 0x5d3   : > { %vm15810_vm9 = vmmov %vm15796_vm2 }
 0x5d4   : > { %2560 = vrot.lane.b32.xlu1 %v2529_v8, %s6243_s20  ;;  %vm15811_vm14 = vmmov %vm15796_vm2 }
 0x5e0   : > { %v2533_v32 = vpop.permute.xlu2 %2532 }
 0x5e8   : > { %v2539_v54 = vpop.permute.xlu2 %2538 }
 0x5f0   : > { %v2545_v31 = vpop.permute.xlu2 %2544 }
 0x5f8   : > { %v2551_v9 = vpop.permute.xlu2 %2550 }
 0x5fd   : > { %v2535_v45 = vpop.permute.xlu0 %2534 }
 0x5fe   : > { %v2572_v57 = vsel %vm15329_vm1, %v2535_v45, %v2539_v54 }
 0x5ff   : > { %v10258_v23 = vadd.f32 %v2572_v57, %v15762_v26  ;;  %v5901_v26 = vld [vmem:[%s6279_s18 + $0x278] sm:$0xff] }
 0x600   : > { %v2557_v17 = vpop.permute.xlu2 %2556 }
 0x605   : > { %v10149_v60 = vpop.permute.xlu0 %2540 }
 0x60d   : > { %v10151_v35 = vpop.permute.xlu0 %2546 }
 0x615   : > { %v10153_v43 = vpop.permute.xlu0 %2552 }
 0x61d   : > { %v2531_v15 = vpop.permute.xlu1 %2530  ;;  %v2559_v16 = vpop.permute.xlu0 %2558 }
 0x61e   : > { %v2574_v50 = vsel %vm15329_vm1, %v2531_v15, %v2535_v45  ;;  %v2576_v34 = vsel %vm15329_vm1, %v2559_v16, %v2531_v15  ;;  %v2571_v45 = vsel %vm15329_vm1, %v10149_v60, %v2545_v31  ;;  %v10279_v15 = vmul.f32 %v5911_v11, %v5911_v11 }
 0x61f   : > { %v10158_v51 = vadd.f32 %v2574_v50, %v15757_v21  ;;  %v10163_v20 = vadd.f32 %v2576_v34, %v9985_v42  ;;  %v15758_v42 = vld [vmem:[#allocation19_spill] sm:$0xff]  ;;  %v15766_v50 = vld [vmem:[#allocation32_spill] sm:$0xff] }
 0x620   : > { %v10282_v21 = vadd.f32 %v2571_v45, %v15766_v50  ;;  %v5888_v34 = vld [vmem:[%s6279_s18 + $0x210] sm:$0xff]  ;;  %v5906_v50 = vld [vmem:[%s6279_s18 + $0x2a0] sm:$0xff] }
 0x621   : > { %2598 = vrot.lane.b32.xlu1 %v10158_v51, %s6244_s21  ;;  %2594 = vrot.lane.b32.xlu2 %v10163_v20, %s6244_s21 }
 0x625   : > { %v2537_v7 = vpop.permute.xlu1 %2536 }
 0x626   : > { %v2573_v52 = vsel %vm15329_vm1, %v2537_v7, %v10149_v60  ;;  %v2575_v37 = vsel %vm15329_vm1, %v2533_v32, %v2537_v7  ;;  %v2566_v60 = vsel %vm15329_vm1, %v10151_v35, %v2551_v9 }
 0x627   : > { %v10175_v27 = vadd.f32 %v2575_v37, %v15738_v38  ;;  %v10178_v5 = vadd.f32 %v2573_v52, %v15758_v42  ;;  %v5903_v52 = vld [vmem:[%s6279_s18 + $0x288] sm:$0xff]  ;;  %v10304_v42 = vmul.f32 %v5888_v34, %v5888_v34 }
 0x628   : > { %v10299_v37 = vpack.c.bf16 %v5903_v52, %v5902_v61  ;;  %v5900_v61 = vld [vmem:[%s6279_s18 + $0x270] sm:$0xff] }
 0x629   : > { %2604 = vrot.lane.b32.xlu1 %v10178_v5, %s6244_s21  ;;  %2600 = vrot.lane.b32.xlu2 %v10175_v27, %s6244_s21  ;;  %15769 = vst [vmem:[#allocation11_spill] sm:$0xff] %v10304_v42 }
 0x62a   : > { %15768 = vst [vmem:[#allocation38_spill] sm:$0xff] %v10299_v37 }
 0x62e   : > { %v2543_v13 = vpop.permute.xlu1 %2542 }
 0x62f   : > { %v2568_v36 = vsel %vm15329_vm1, %v2543_v13, %v10151_v35  ;;  %v2570_v38 = vsel %vm15329_vm1, %v2539_v54, %v2543_v13  ;;  %v10302_v54 = vadd.f32 %v2566_v60, %v9826_v40  ;;  %v5890_v35 = vld [vmem:[%s6279_s18 + $0x220] sm:$0xff]  ;;  %v5891_v13 = vld [vmem:[%s6279_s18 + $0x228] sm:$0xff]  ;;  %v2565_v40 = vsel %vm15329_vm1, %v10153_v43, %v2557_v17 }
 0x630   : > { %v10190_v44 = vadd.f32 %v2570_v38, %v15746_v53  ;;  %v10193_v22 = vadd.f32 %v2568_v36, %v9823_v33  ;;  %v5897_v36 = vld [vmem:[%s6279_s18 + $0x258] sm:$0xff]  ;;  %v10313_v38 = vpack.c.bf16 %v5891_v13, %v5890_v35  ;;  %v10327_v4 = vadd.f32 %v2565_v40, %v9889_v1  ;;  %v5899_v40 = vld [vmem:[%s6279_s18 + $0x268] sm:$0xff] }
 0x631   : > { %v10343_v1 = vmul.f32 %v5890_v35, %v5890_v35 }
 0x632   : > { %2610 = vrot.lane.b32.xlu1 %v10193_v22, %s6244_s21  ;;  %2606 = vrot.lane.b32.xlu2 %v10190_v44, %s6244_s21  ;;  %15770 = vst [vmem:[#allocation4_spill] sm:$0xff] %v10313_v38  ;;  %v5917_v38 = vld [vmem:[%s6279_s18 + $0x2f8] sm:$0x1] }
 0x636   : > { %v2549_v58 = vpop.permute.xlu1 %2548 }
 0x637   : > { %v2567_v39 = vsel %vm15329_vm1, %v2549_v58, %v10153_v43  ;;  %v2569_v2 = vsel %vm15329_vm1, %v2545_v31, %v2549_v58  ;;  %v5912_v31 = vld [vmem:[%s6279_s18 + $0x2d0] sm:$0x1]  ;;  %v10321_v58 = vmul.f32 %v5897_v36, %v5897_v36  ;;  %v5914_v43 = vld [vmem:[%s6279_s18 + $0x2e0] sm:$0x1] }
 0x638   : > { %v10205_v53 = vadd.f32 %v2569_v2, %v15752_v49  ;;  %v10208_v33 = vadd.f32 %v2567_v39, %v9886_v12  ;;  %v5887_v49 = vld [vmem:[%s6279_s18 + $0x208] sm:$0xff]  ;;  %v5896_v39 = vld [vmem:[%s6279_s18 + $0x250] sm:$0xff] }
 0x639   : > { %v10253_v47 = vpack.c.bf16 %v5887_v49, %v5886_v41  ;;  %v10255_v59 = vmul.f32 %v5887_v49, %v5887_v49  ;;  %v10324_v2 = vpack.c.bf16 %v5897_v36, %v5896_v39  ;;  %v5913_v49 = vld [vmem:[%s6279_s18 + $0x2d8] sm:$0x1]  ;;  %v10396_v35 = vmul.f32 %v5896_v39, %v5896_v39  ;;  %v5908_v39 = vld [vmem:[%s6279_s18 + $0x2b0] sm:$0xff] }
 0x63a   : > { %2616 = vrot.lane.b32.xlu1 %v10208_v33, %s6244_s21  ;;  %2612 = vrot.lane.b32.xlu2 %v10205_v53, %s6244_s21  ;;  %v10398_v36 = vmul.f32 %v5900_v61, %v5900_v61 }
 0x63b   : > { %15761 = vst [vmem:[#allocation16_spill] sm:$0xff] %v10253_v47 }
 0x63c   : > { %15771 = vst [vmem:[#allocation20_spill] sm:$0xff] %v10324_v2  ;;  %v10431_v2 = vmul.f32 %v5917_v38, %v5917_v38 }
 0x63d   : > { %15781 = vst [vmem:[#allocation40_spill] sm:$0xff] %v10398_v36 }
 0x63e   : > { %v2555_v56 = vpop.permute.xlu1 %2554  ;;  %15787 = vst [vmem:[#allocation5_spill] sm:$0xff] %v10431_v2 }
 0x63f   : > { %v2562_v0 = vsel %vm15329_vm1, %v2555_v56, %v2559_v16  ;;  %v2564_v12 = vsel %vm15329_vm1, %v2551_v9, %v2555_v56  ;;  %v10284_v16 = vmul.f32 %v5895_v10, %v5895_v10  ;;  %v10329_v10 = vmul.f32 %v5912_v31, %v5912_v31  ;;  %v5915_v9 = vld [vmem:[%s6279_s18 + $0x2e8] sm:$0x1] }
 0x640   : > { %v10222_v25 = vadd.f32 %v2564_v12, %v2520_v6  ;;  %v10225_v48 = vadd.f32 %v2562_v0, %v9988_v18  ;;  %v5904_v6 = vld [vmem:[%s6279_s18 + $0x290] sm:$0xff]  ;;  %v10337_v56 = vpack.c.bf16 %v5915_v9, %v5914_v43  ;;  %v10341_v0 = vmul.f32 %v5886_v41, %v5886_v41  ;;  %v5889_v12 = vld [vmem:[%s6279_s18 + $0x218] sm:$0xff] }
 0x641   : > { %v10269_v63 = vpack.c.bf16 %v5905_v46, %v5904_v6  ;;  %15767 = vst [vmem:[#allocation3_spill] sm:$0xff] %v10284_v16  ;;  %v10296_v7 = vmul.f32 %v5904_v6, %v5904_v6  ;;  %v10362_v41 = vpack.c.bf16 %v5913_v49, %v5912_v31  ;;  %v5907_v6 = vld [vmem:[%s6279_s18 + $0x2a8] sm:$0xff]  ;;  %v10403_v31 = vmul.f32 %v5915_v9, %v5915_v9 }
 0x642   : > { %2622 = vrot.lane.b32.xlu1 %v10225_v48, %s6244_s21  ;;  %2618 = vrot.lane.b32.xlu2 %v10222_v25, %s6244_s21  ;;  %15772 = vst [vmem:[#allocation41_spill] sm:$0xff] %v10329_v10  ;;  %v10381_v45 = vmul.f32 %v5907_v6, %v5907_v6  ;;  %v10384_v60 = vpack.c.bf16 %v5907_v6, %v5906_v50 }
 0x643   : > { %15764 = vst [vmem:[#allocation35_spill] sm:$0xff] %v10269_v63  ;;  %v10413_v6 = vmul.f32 %v5889_v12, %v5889_v12 }
 0x644   : > { %15773 = vst [vmem:[#allocation14_spill] sm:$0xff] %v10337_v56 }
 0x645   : > { %15776 = vst [vmem:[#allocation45_spill] sm:$0xff] %v10362_v41  ;;  %v5909_v41 = vld [vmem:[%s6279_s18 + $0x2b8] sm:$0xff] }
 0x646   : > { %v2561_v14 = vpop.permute.xlu1 %2560  ;;  %15779 = vst [vmem:[#allocation7_spill] sm:$0xff] %v10384_v60  ;;  %v10429_v60 = vmul.f32 %v5913_v49, %v5913_v49  ;;  %v10444_v49 = vmul.f32 %v5906_v50, %v5906_v50  ;;  %v10447_v63 = vpack.c.bf16 %v5909_v41, %v5908_v39 }
 0x647   : > { %v2563_v55 = vsel %vm15329_vm1, %v2557_v17, %v2561_v14  ;;  %v2577_v62 = vsel %vm15329_vm1, %v2561_v14, %v2533_v32  ;;  %v10346_v17 = vpack.c.bf16 %v5889_v12, %v5888_v34  ;;  %v10348_v14 = vmul.f32 %v5905_v46, %v5905_v46  ;;  %15783 = vst [vmem:[#allocation18_spill] sm:$0xff] %v10403_v31 }
 0x648   : > { %v10238_v18 = vadd.f32 %v2577_v62, %v15760_v28  ;;  %v10240_v30 = vadd.f32 %v2563_v55, %v2529_v8  ;;  %v5910_v8 = vld [vmem:[%s6279_s18 + $0x2c0] sm:$0x1]  ;;  %v10359_v28 = vmul.f32 %v5914_v43, %v5914_v43  ;;  %v10373_v46 = vpack.c.bf16 %v5901_v26, %v5900_v61  ;;  %v5893_v43 = vld [vmem:[%s6279_s18 + $0x238] sm:$0xff]  ;;  %15790 = vst [vmem:[#allocation44_spill] sm:$0xff] %v10444_v49 }
 0x649   : > { %v10277_v32 = vpack.c.bf16 %v5911_v11, %v5910_v8  ;;  %15774 = vst [vmem:[#allocation22_spill] sm:$0xff] %v10346_v17  ;;  %v5898_v55 = vld [vmem:[%s6279_s18 + $0x260] sm:$0xff]  ;;  %v10357_v62 = vmul.f32 %v5910_v8, %v5910_v8  ;;  %v10379_v8 = vmul.f32 %v5903_v52, %v5903_v52  ;;  %v10386_v34 = vmul.f32 %v5891_v13, %v5891_v13 }
 0x64a   : > { %2596 = vrot.lane.b32.xlu0 %v10238_v18, %s6244_s21  ;;  %3082 = vrot.lane.b32.xlu1 %v10231_v19, %s6242_s19  ;;  %15775 = vst [vmem:[#allocation37_spill] sm:$0xff] %v10348_v14  ;;  %v10364_v57 = vmul.f32 %v5898_v55, %v5898_v55  ;;  %v10401_v13 = vpack.c.bf16 %v5899_v40, %v5898_v55  ;;  %v5892_v55 = vld [vmem:[%s6279_s18 + $0x230] sm:$0xff] }
 0x64b   : > { %2624 = vrot.lane.b32.xlu2 %v10240_v30, %s6244_s21  ;;  %15765 = vst [vmem:[#allocation30_spill] sm:$0xff] %v10277_v32  ;;  %v10418_v9 = vpack.c.bf16 %v5893_v43, %v5892_v55  ;;  %v10461_v50 = vmul.f32 %v5892_v55, %v5892_v55 }
 0x64c   : > { %15777 = vst [vmem:[#allocation48_spill] sm:$0xff] %v10364_v57 }
 0x64d   : > { %15778 = vst [vmem:[#allocation39_spill] sm:$0xff] %v10373_v46  ;;  %v10415_v46 = vmul.f32 %v5893_v43, %v5893_v43  ;;  %v10433_v43 = vmul.f32 %v5901_v26, %v5901_v26 }
 0x64e   : > { %15780 = vst [vmem:[#allocation15_spill] sm:$0xff] %v10386_v34 }
 0x64f   : > { %15782 = vst [vmem:[#allocation2_spill] sm:$0xff] %v10401_v13  ;;  %v10420_v13 = vmul.f32 %v5908_v39, %v5908_v39 }
 0x650   : > { %15784 = vst [vmem:[#allocation8_spill] sm:$0xff] %v10415_v46 }
 0x651   : > { %15785 = vst [vmem:[#allocation17_spill] sm:$0xff] %v10418_v9  ;;  %v5916_v9 = vld [vmem:[%s6279_s18 + $0x2f0] sm:$0x1] }
 0x652   : > { %2602 = vrot.lane.b32.xlu0 %v10258_v23, %s6244_s21  ;;  %3088 = vrot.lane.b32.xlu1 %v10255_v59, %s6242_s19  ;;  %15786 = vst [vmem:[#allocation24_spill] sm:$0xff] %v10420_v13  ;;  %v10436_v17 = vpack.c.bf16 %v5917_v38, %v5916_v9 }
 0x653   : > { %3084 = vrot.lane.b32.xlu2 %v10260_v3, %s6242_s19  ;;  %15788 = vst [vmem:[#allocation46_spill] sm:$0xff] %v10433_v43 }
 0x654   : > { %15789 = vst [vmem:[#allocation47_spill] sm:$0xff] %v10436_v17  ;;  %v10453_v17 = vmul.f32 %v5899_v40, %v5899_v40 }
 0x655   : > { %15791 = vst [vmem:[#allocation42_spill] sm:$0xff] %v10447_v63 }
 0x656   : > { %15792 = vst [vmem:[#allocation10_spill] sm:$0xff] %v10453_v17 }
 0x657   : > { %15793 = vst [vmem:[#allocation27_spill] sm:$0xff] %v10461_v50 }
 0x65a   : > { %2608 = vrot.lane.b32.xlu0 %v10282_v21, %s6244_s21  ;;  %3094 = vrot.lane.b32.xlu1 %v10279_v15, %s6242_s19 }
 0x65b   : > { %3090 = vrot.lane.b32.xlu2 %v10284_v16, %s6242_s19 }
 0x662   : > { %2614 = vrot.lane.b32.xlu0 %v10302_v54, %s6244_s21  ;;  %3100 = vrot.lane.b32.xlu1 %v10296_v7, %s6242_s19 }
 0x663   : > { %3096 = vrot.lane.b32.xlu2 %v10304_v42, %s6242_s19 }
 0x66a   : > { %2620 = vrot.lane.b32.xlu0 %v10327_v4, %s6244_s21  ;;  %3106 = vrot.lane.b32.xlu1 %v10321_v58, %s6242_s19 }
 0x66b   : > { %3102 = vrot.lane.b32.xlu2 %v10329_v10, %s6242_s19 }
 0x672   : > { %3080 = vrot.lane.b32.xlu0 %v10341_v0, %s6242_s19  ;;  %3112 = vrot.lane.b32.xlu1 %v10343_v1, %s6242_s19 }
 0x673   : > { %3108 = vrot.lane.b32.xlu2 %v10348_v14, %s6242_s19 }
 0x67a   : > { %3086 = vrot.lane.b32.xlu0 %v10357_v62, %s6242_s19  ;;  %3118 = vrot.lane.b32.xlu1 %v10359_v28, %s6242_s19 }
 0x67b   : > { %3114 = vrot.lane.b32.xlu2 %v10364_v57, %s6242_s19  ;;  %v10377_v11 = vpop.permute.xlu2 %2594 }
 0x682   : > { %3092 = vrot.lane.b32.xlu0 %v10379_v8, %s6242_s19  ;;  %3124 = vrot.lane.b32.xlu1 %v10381_v45, %s6242_s19 }
 0x683   : > { %3120 = vrot.lane.b32.xlu2 %v10386_v34, %s6242_s19  ;;  %v10394_v52 = vpop.permute.xlu2 %2600  ;;  %v10475_v34 = vmul.f32 %v5909_v41, %v5909_v41 }
 0x685   : > { %15795 = vst [vmem:[#allocation29_spill] sm:$0xff] %v10475_v34 }
 0x68a   : > { %3098 = vrot.lane.b32.xlu0 %v10396_v35, %s6242_s19  ;;  %3130 = vrot.lane.b32.xlu1 %v10398_v36, %s6242_s19 }
 0x68b   : > { %3126 = vrot.lane.b32.xlu2 %v10403_v31, %s6242_s19 }
 0x68c   : > { %v2607_v61 = vpop.permute.xlu2 %2606 }
 0x692   : > { %3104 = vrot.lane.b32.xlu0 %v10413_v6, %s6242_s19  ;;  %3136 = vrot.lane.b32.xlu1 %v10415_v46, %s6242_s19 }
 0x693   : > { %3132 = vrot.lane.b32.xlu2 %v10420_v13, %s6242_s19  ;;  %v2599_v12 = vpop.permute.xlu1 %2598 }
 0x694   : > { %v2613_v56 = vpop.permute.xlu2 %2612  ;;  %v2638_v41 = vsel %vm15799_vm5, %v10377_v11, %v2599_v12 }
 0x695   : > { %v2643_v16 = vadd.f32 %v2638_v41, %v10158_v51 }
 0x69a   : > { %3110 = vrot.lane.b32.xlu0 %v10429_v60, %s6242_s19  ;;  %3142 = vrot.lane.b32.xlu1 %v10431_v2, %s6242_s19 }
 0x69b   : > { %3138 = vrot.lane.b32.xlu2 %v10433_v43, %s6242_s19  ;;  %v2605_v24 = vpop.permute.xlu1 %2604  ;;  %v10467_v43 = vmul.f32 %v5916_v9, %v5916_v9 }
 0x69c   : > { %v2619_v47 = vpop.permute.xlu2 %2618 }
 0x69d   : > { %15794 = vst [vmem:[#allocation23_spill] sm:$0xff] %v10467_v43 }
 0x6a2   : > { %3116 = vrot.lane.b32.xlu0 %v10444_v49, %s6242_s19 }
 0x6a4   : > { %v2611_v38 = vpop.permute.xlu1 %2610 }
 0x6a5   : > { %v10451_v26 = vpop.permute.xlu2 %2624 }
 0x6aa   : > { %3122 = vrot.lane.b32.xlu0 %v10453_v17, %s6242_s19 }
 0x6ac   : > { %v10457_v32 = vpop.permute.xlu1 %2616 }
 0x6ad   : > { %v10459_v37 = vpop.permute.xlu2 %3084 }
 0x6b2   : > { %3128 = vrot.lane.b32.xlu0 %v10461_v50, %s6242_s19 }
 0x6b4   : > { %v2623_v39 = vpop.permute.xlu1 %2622 }
 0x6b5   : > { %v10465_v63 = vpop.permute.xlu2 %3090  ;;  %v2626_v42 = vsel %vm15801_vm12, %v2619_v47, %v2623_v39  ;;  %v2640_v46 = vsel %vm15802_vm10, %v2623_v39, %v10377_v11  ;;  %v2631_v11 = vsel %vm15804_vm7, %v2613_v56, %v10457_v32 }
 0x6b6   : > { %v2649_v49 = vadd.f32 %v2626_v42, %v10225_v48 }
 0x6ba   : > { %3134 = vrot.lane.b32.xlu0 %v10467_v43, %s6242_s19 }
 0x6bc   : > { %v10471_v40 = vpop.permute.xlu1 %3082  ;;  %v2597_v13 = vpop.permute.xlu0 %2596 }
 0x6bd   : > { %v10473_v31 = vpop.permute.xlu2 %3096 }
 0x6c2   : > { %3140 = vrot.lane.b32.xlu0 %v10475_v34, %s6242_s19  ;;  %v2632_v34 = vsel %vm15800_vm6, %v2607_v61, %v2611_v38 }
 0x6c3   : > { %v2646_v36 = vadd.f32 %v2632_v34, %v10193_v22 }
 0x6c4   : > { %v10479_v55 = vpop.permute.xlu1 %3088  ;;  %v2603_v57 = vpop.permute.xlu0 %2602 }
 0x6c5   : > { %v10481_v14 = vpop.permute.xlu2 %3102  ;;  %v2634_v43 = vsel %vm15796_vm2, %v2603_v57, %v2607_v61  ;;  %v2636_v2 = vsel %vm15797_vm13, %v2599_v12, %v2603_v57  ;;  %v2642_v12 = vadd.f32 %v2640_v46, %v10163_v20  ;;  %v2637_v61 = vsel %vm15803_vm11, %v10394_v52, %v2605_v24  ;;  %vm15812_vm13 = vmmov %vm15796_vm2 }
 0x6c6   : > { %v2644_v17 = vadd.f32 %v2636_v2, %v10258_v23  ;;  %v2645_v57 = vadd.f32 %v2634_v43, %v10190_v44 }
 0x6c7   : > { %v2658_v43 = vadd.f32 %v2649_v49, %v2642_v12  ;;  %v2659_v41 = vadd.f32 %v2643_v16, %v2642_v12 }
 0x6c8   : > { %v2660_v44 = vadd.f32 %v2644_v17, %v2643_v16  ;;  %v2662_v2 = vadd.f32 %v2646_v36, %v2645_v57  ;;  %v2661_v3 = vadd.f32 %v2645_v57, %v2644_v17  ;;  %v2655_v17 = vadd.f32 %v2631_v11, %v10208_v33 }
 0x6ca   : > { %v2677_v57 = vadd.f32 %v2661_v3, %v2659_v41 }
 0x6cc   : > { %v10483_v9 = vpop.permute.xlu1 %3094  ;;  %v2609_v10 = vpop.permute.xlu0 %2608 }
 0x6cd   : > { %v10489_v50 = vpop.permute.xlu2 %3108  ;;  %v2633_v22 = vsel %vm15807_vm3, %v2609_v10, %v2613_v56  ;;  %v2635_v48 = vsel %vm15808_vm4, %v2605_v24, %v2609_v10  ;;  %v2641_v56 = vsel %vm15811_vm14, %v10451_v26, %v2597_v13  ;;  %v2676_v10 = vadd.f32 %v2660_v44, %v2658_v43 }
 0x6ce   : > { %15798 = vst [vmem:[#allocation34_spill] sm:$0xff] %v10489_v50 }
 0x6d4   : > { %v10513_v39 = vpop.permute.xlu1 %3100  ;;  %v2615_v23 = vpop.permute.xlu0 %2614 }
 0x6d5   : > { %v2628_v51 = vsel %vm15805_vm8, %v2615_v23, %v2619_v47  ;;  %v2630_v20 = vsel %vm15806_vm15, %v2611_v38, %v2615_v23  ;;  %v10523_v42 = vpop.permute.xlu2 %3114  ;;  %v2639_v47 = vsel %vm15810_vm9, %v2597_v13, %v10394_v52  ;;  %v2652_v52 = vadd.f32 %v2637_v61, %v10178_v5 }
 0x6d6   : > { %15809 = vst [vmem:[#allocation28_spill] sm:$0xff] %v10523_v42  ;;  %v2647_v46 = vadd.f32 %v2630_v20, %v10302_v54  ;;  %v2648_v34 = vadd.f32 %v2628_v51, %v10222_v25  ;;  %v2678_v42 = vadd.f32 %v2662_v2, %v2660_v44  ;;  %v2653_v54 = vadd.f32 %v2635_v48, %v10282_v21 }
 0x6d7   : > { %v2654_v25 = vadd.f32 %v2633_v22, %v10205_v53  ;;  %v2650_v53 = vadd.f32 %v2641_v56, %v10238_v18 }
 0x6d8   : > { %v2663_v38 = vadd.f32 %v2647_v46, %v2646_v36  ;;  %v2664_v23 = vadd.f32 %v2648_v34, %v2647_v46  ;;  %v2665_v24 = vadd.f32 %v2649_v49, %v2648_v34  ;;  %v2651_v36 = vadd.f32 %v2639_v47, %v10175_v27 }
 0x6d9   : > { %v2670_v33 = vadd.f32 %v2654_v25, %v2653_v54  ;;  %v2671_v34 = vadd.f32 %v2655_v17, %v2654_v25 }
 0x6da   : > { %v2674_v51 = vadd.f32 %v2664_v23, %v2658_v43  ;;  %v2675_v16 = vadd.f32 %v2665_v24, %v2659_v41  ;;  %v2679_v12 = vadd.f32 %v2663_v38, %v2661_v3  ;;  %v2680_v20 = vadd.f32 %v2664_v23, %v2662_v2 }
 0x6db   : > { %v2681_v50 = vadd.f32 %v2665_v24, %v2663_v38  ;;  %v2667_v41 = vadd.f32 %v2651_v36, %v2650_v53 }
 0x6dc   : > { %v2690_v13 = vadd.f32 %v2678_v42, %v2674_v51  ;;  %v2691_v49 = vadd.f32 %v2679_v12, %v2675_v16  ;;  %v2692_v46 = vadd.f32 %v2680_v20, %v2676_v10  ;;  %v10538_v44 = vpop.permute.xlu1 %3106  ;;  %v2621_v21 = vpop.permute.xlu0 %2620  ;;  %v2669_v42 = vadd.f32 %v2653_v54, %v2652_v52 }
 0x6dd   : > { %v2693_v22 = vadd.f32 %v2681_v50, %v2677_v57  ;;  %v2627_v2 = vsel %vm15796_vm2, %v2621_v21, %v10451_v26  ;;  %v2629_v5 = vsel %vm15812_vm13, %v10457_v32, %v2621_v21  ;;  %v10553_v11 = vpop.permute.xlu2 %3120  ;;  %v2668_v26 = vadd.f32 %v2652_v52, %v2651_v36 }
 0x6de   : > { %v10547_v3 = vmax.f32 %v2690_v13, 1e-16  ;;  %v10549_v27 = vmax.f32 %v2691_v49, 1e-16  ;;  %v10551_v61 = vmax.f32 %v2692_v46, 1e-16  ;;  %v2656_v18 = vadd.f32 %v2629_v5, %v10327_v4 }
 0x6df   : > { %15813 = vst [vmem:[#allocation26_spill] sm:$0xff] %v10553_v11  ;;  %v10555_v48 = vmax.f32 %v2693_v22, 1e-16  ;;  %v2657_v50 = vadd.f32 %v2627_v2, %v10240_v30  ;;  %v2686_v47 = vadd.f32 %v2670_v33, %v2668_v26  ;;  %v2685_v30 = vadd.f32 %v2669_v42, %v2667_v41 }
 0x6e0   : > { %6088 = vrsqrt.f32 %v10547_v3  ;;  %v2672_v43 = vadd.f32 %v2656_v18, %v2655_v17  ;;  %v2687_v24 = vadd.f32 %v2671_v34, %v2669_v42  ;;  %vm2712_vm6 = vweird.f32 %v10547_v3 }
 0x6e1   : > { %6090 = vrsqrt.f32 %v10549_v27  ;;  %v2666_v32 = vadd.f32 %v2657_v50, %v2650_v53  ;;  %v2673_v56 = vadd.f32 %v2657_v50, %v2656_v18  ;;  %vm2722_vm10 = vweird.f32 %v10549_v27 }
 0x6e2   : > { %6092 = vrsqrt.f32 %v10551_v61  ;;  %v2688_v23 = vadd.f32 %v2672_v43, %v2670_v33  ;;  %vm2732_vm11 = vweird.f32 %v10551_v61  ;;  %vm2742_vm8 = vweird.f32 %v10555_v48 }
 0x6e3   : > { %6094 = vrsqrt.f32 %v10555_v48  ;;  %v2682_v38 = vadd.f32 %v2672_v43, %v2666_v32  ;;  %v2684_v4 = vadd.f32 %v2668_v26, %v2666_v32  ;;  %v2683_v10 = vadd.f32 %v2673_v56, %v2667_v41  ;;  %v6206_v32 = vld [vmem:[%s7006_s25 + $0x80] sm:$0xff]  ;;  %v6207_v43 = vld [vmem:[%s7006_s25 + $0x88] sm:$0xff] }
 0x6e4   : > { %v2689_v54 = vadd.f32 %v2673_v56, %v2671_v34  ;;  %v10563_v25 = vpop.permute.xlu1 %3112  ;;  %v10565_v51 = vpop.permute.xlu0 %3080  ;;  %v10600_v41 = vpack.c.bf16 %v6207_v43, %v6206_v32 }
 0x6e5   : > { %v2694_v16 = vadd.f32 %v2686_v47, %v2682_v38  ;;  %v2696_v12 = vadd.f32 %v2688_v23, %v2684_v4  ;;  %v2695_v52 = vadd.f32 %v2687_v24, %v2683_v10  ;;  %v10569_v57 = vpop.permute.xlu2 %3126  ;;  %v6208_v24 = vld [vmem:[%s7006_s25 + $0xe0] sm:$0x3]  ;;  %v6209_v10 = vld [vmem:[%s7006_s25 + $0xe8] sm:$0x3] }
 0x6e6   : > { %v10567_v20 = vpop.eup %6088  ;;  %v2697_v17 = vadd.f32 %v2689_v54, %v2685_v30  ;;  %15814 = vst [vmem:[#allocation6_spill] sm:$0xff] %v10569_v57  ;;  %v10611_v54 = vpack.c.bf16 %v6209_v10, %v6208_v24 }
 0x6e7   : > { %v10571_v36 = vpop.eup %6090  ;;  %v2707_v13 = vmul.f32 %v10567_v20, %v10547_v3  ;;  %v10575_v49 = vmax.f32 %v2694_v16, 1e-16  ;;  %v10581_v53 = vmax.f32 %v2695_v52, 1e-16  ;;  %v10583_v22 = vmax.f32 %v2696_v12, 1e-16 }
 0x6e8   : > { %v10577_v46 = vpop.eup %6092  ;;  %v2717_v21 = vmul.f32 %v10571_v36, %v10549_v27  ;;  %v10590_v18 = vmax.f32 %v2697_v17, 1e-16  ;;  %v6210_v16 = vld [vmem:[%s7006_s25 + $0xb0] sm:$0xff]  ;;  %v6211_v12 = vld [vmem:[%s7006_s25 + $0xb8] sm:$0xff]  ;;  %vm2713_vm5 = vweird.f32 %v10567_v20  ;;  %vm2723_vm12 = vweird.f32 %v10571_v36 }
 0x6e9   : > { %v10585_v2 = vpop.eup %6094  ;;  %v2708_v5 = vmul.f32 %v10567_v20, %v2707_v13  ;;  %v2727_v33 = vmul.f32 %v10577_v46, %v10551_v61  ;;  %6096 = vrsqrt.f32 %v10575_v49  ;;  %v10615_v52 = vpack.c.bf16 %v6211_v12, %v6210_v16  ;;  %vm10636_vm7 = vmor %vm2712_vm6, %vm2713_vm5  ;;  %v15818_v27 = vld [vmem:[#allocation21_spill] sm:$0xff] }
 0x6ea   : > { %v2718_v50 = vmul.f32 %v10571_v36, %v2717_v21  ;;  %v2737_v26 = vmul.f32 %v10585_v2, %v10555_v48  ;;  %6098 = vrsqrt.f32 %v10581_v53  ;;  %vm10647_vm15 = vmor %vm2722_vm10, %vm2723_vm12  ;;  %vm2733_vm3 = vweird.f32 %v10577_v46 }
 0x6eb   : > { %v2709_v42 = vmul.f32 0.5, %v2708_v5  ;;  %v2728_v34 = vmul.f32 %v10577_v46, %v2727_v33  ;;  %6100 = vrsqrt.f32 %v10583_v22  ;;  %v3168_v5 = vsel %vm15330_vm0, %v10565_v51, %v10479_v55  ;;  %vm10695_vm5 = vmor %vm2732_vm11, %vm2733_vm3 }
 0x6ec   : > { %v2719_v47 = vmul.f32 0.5, %v2718_v50  ;;  %v10603_v56 = vpop.permute.xlu1 %3118  ;;  %v10605_v38 = vpop.permute.xlu0 %3086  ;;  %v2738_v30 = vmul.f32 %v10585_v2, %v2737_v26  ;;  %6102 = vrsqrt.f32 %v10590_v18  ;;  %vm2743_vm4 = vweird.f32 %v10585_v2 }
 0x6ed   : > { %v2710_v4 = vsub.f32 1.5, %v2709_v42  ;;  %v2729_v23 = vmul.f32 0.5, %v2728_v34  ;;  %v10618_v13 = vpop.permute.xlu2 %3132  ;;  %vm2752_vm9 = vweird.f32 %v10575_v49  ;;  %vm2762_vm2 = vweird.f32 %v10581_v53  ;;  %vm10720_vm10 = vmor %vm2742_vm8, %vm2743_vm4 }
 0x6ee   : > { %v2720_v17 = vsub.f32 1.5, %v2719_v47  ;;  %15815 = vst [vmem:[#allocation31_spill] sm:$0xff] %v10618_v13  ;;  %v2739_v32 = vmul.f32 0.5, %v2738_v30  ;;  %v10656_v30 = vadd.f32 %v3168_v5, %v10255_v59  ;;  %v2803_v11 = vunpack.c.h.bf16 %v10611_v54 }
 0x6ef   : > { %v10620_v21 = vpop.eup %6096  ;;  %v2711_v33 = vmul.f32 %v10567_v20, %v2710_v4  ;;  %v2730_v34 = vsub.f32 1.5, %v2729_v23 }
 0x6f0   : > { %v2747_v50 = vmul.f32 %v10620_v21, %v10575_v49  ;;  %v2721_v26 = vmul.f32 %v10571_v36, %v2720_v17  ;;  %v10634_v42 = vpop.eup %6098  ;;  %v2740_v57 = vsub.f32 1.5, %v2739_v32  ;;  %vm2753_vm14 = vweird.f32 %v10620_v21 }
 0x6f1   : > { %v10643_v4 = vpop.eup %6100  ;;  %v2757_v23 = vmul.f32 %v10634_v42, %v10581_v53  ;;  %v2715_v17 = vsel %vm10636_vm7, %v10567_v20, %v2711_v33  ;;  %v2731_v33 = vmul.f32 %v10577_v46, %v2730_v34  ;;  %vm2763_vm13 = vweird.f32 %v10634_v42  ;;  %vm10707_vm6 = vmor %vm2752_vm9, %vm2753_vm14 }
 0x6f2   : > { %v2748_v10 = vmul.f32 %v10620_v21, %v2747_v50  ;;  %v10658_v16 = vpop.eup %6102  ;;  %v2767_v12 = vmul.f32 %v10643_v4, %v10583_v22  ;;  %v2725_v50 = vsel %vm10647_vm15, %v10571_v36, %v2721_v26  ;;  %vm2773_vm12 = vweird.f32 %v10643_v4  ;;  %vm2764_vm11 = vmor %vm2762_vm2, %vm2763_vm13 }
 0x6f3   : > { %v2758_v59 = vmul.f32 %v10634_v42, %v2757_v23  ;;  %v2777_v5 = vmul.f32 %v10658_v16, %v10590_v18  ;;  %vm2772_vm7 = vweird.f32 %v10583_v22  ;;  %vm2783_vm8 = vweird.f32 %v10658_v16 }
 0x6f4   : > { %v2749_v47 = vmul.f32 0.5, %v2748_v10  ;;  %v10673_v43 = vpop.permute.xlu1 %3124  ;;  %v10675_v13 = vpop.permute.xlu0 %3092  ;;  %v2768_v20 = vmul.f32 %v10643_v4, %v2767_v12  ;;  %v10683_v10 = vpack.c.bf16 %v2725_v50, %v2715_v17  ;;  %vm2782_vm15 = vweird.f32 %v10590_v18  ;;  %vm2774_vm3 = vmor %vm2772_vm7, %vm2773_vm12 }
 0x6f5   : > { %v2759_v26 = vmul.f32 0.5, %v2758_v59  ;;  %v2778_v3 = vmul.f32 %v10658_v16, %v2777_v5  ;;  %v10681_v24 = vpop.permute.xlu2 %3138  ;;  %v2735_v5 = vsel %vm10695_vm5, %v10577_v46, %v2731_v33  ;;  %vm2784_vm4 = vmor %vm2782_vm15, %vm2783_vm8  ;;  %v15829_v34 = vunpack.c.l.bf16 %v10600_v41  ;;  %v15831_v59 = vld [vmem:[#allocation9_spill] sm:$0xff] }
 0x6f6   : > { %v2750_v36 = vsub.f32 1.5, %v2749_v47  ;;  %15821 = vst [vmem:[#allocation19_spill] sm:$0xff] %v10681_v24  ;;  %v2769_v23 = vmul.f32 0.5, %v2768_v20  ;;  %v3173_v32 = vsel %vm15330_vm0, %v10681_v24, %v10471_v40  ;;  %v2807_v18 = vunpack.c.h.bf16 %v10683_v10 }
 0x6f7   : > { %v2760_v47 = vsub.f32 1.5, %v2759_v26  ;;  %v2779_v12 = vmul.f32 0.5, %v2778_v3  ;;  %v10700_v17 = vadd.f32 %v3173_v32, %v10231_v19  ;;  %v2741_v19 = vmul.f32 %v10585_v2, %v2740_v57 }
 0x6f8   : > { %v2751_v50 = vmul.f32 %v10620_v21, %v2750_v36  ;;  %v2770_v61 = vsub.f32 1.5, %v2769_v23  ;;  %v2806_v57 = vunpack.c.l.bf16 %v10683_v10  ;;  %v2799_v32 = vunpack.c.h.bf16 %v15818_v27 }
 0x6f9   : > { %15824 = vst [vmem:[#allocation36_spill] sm:$0xff] %v10700_v17  ;;  %v2780_v49 = vsub.f32 1.5, %v2779_v12  ;;  %3210 = vrot.lane.b32.xlu0 %v10700_v17, %s6243_s20  ;;  %v2761_v46 = vmul.f32 %v10634_v42, %v2760_v47  ;;  %v2745_v48 = vsel %vm10720_vm10, %v10585_v2, %v2741_v19  ;;  %v2791_v2 = vunpack.c.h.bf16 %v10600_v41  ;;  %v15830_v12 = vld [vmem:[#allocation12_spill] sm:$0xff] }
 0x6fa   : > { %v2755_v36 = vsel %vm10707_vm6, %v10620_v21, %v2751_v50  ;;  %v2771_v33 = vmul.f32 %v10643_v4, %v2770_v61  ;;  %v10748_v23 = vpack.c.bf16 %v2745_v48, %v2735_v5  ;;  %v2814_v47 = vmul.f32 %v2806_v57, %v15829_v34  ;;  %v15833_v34 = vld [vmem:[#allocation13_spill] sm:$0xff] }
 0x6fb   : > { %v2765_v3 = vsel %vm2764_vm11, %v10634_v42, %v2761_v46  ;;  %v2781_v53 = vmul.f32 %v10658_v16, %v2780_v49  ;;  %v2792_v50 = vunpack.c.l.bf16 %v15830_v12  ;;  %v2800_v61 = vunpack.c.l.bf16 %v15831_v59 }
 0x6fc   : > { %v10742_v21 = vpop.permute.xlu1 %3130  ;;  %v10744_v26 = vpop.permute.xlu0 %3098  ;;  %v2788_v22 = vpack.c.bf16 %v2765_v3, %v2755_v36  ;;  %v2775_v42 = vsel %vm2774_vm3, %v10643_v4, %v2771_v33  ;;  %v2808_v49 = vunpack.c.l.bf16 %v10748_v23  ;;  %v2793_v46 = vunpack.c.h.bf16 %v15830_v12 }
 0x6fd   : > { %v2785_v20 = vsel %vm2784_vm4, %v10658_v16, %v2781_v53  ;;  %v2801_v10 = vunpack.c.h.bf16 %v15831_v59  ;;  %v2809_v41 = vunpack.c.h.bf16 %v10748_v23  ;;  %v15832_v48 = vunpack.c.l.bf16 %v15818_v27 }
 0x6fe   : > { %v2810_v5 = vunpack.c.l.bf16 %v2788_v22  ;;  %v2811_v19 = vunpack.c.h.bf16 %v2788_v22  ;;  %v2789_v36 = vpack.c.bf16 %v2785_v20, %v2775_v42  ;;  %v2815_v33 = vmul.f32 %v2807_v18, %v2791_v2 }
 0x6ff   : > { %v2794_v17 = vunpack.c.l.bf16 %v15833_v34  ;;  %v2816_v53 = vmul.f32 %v2808_v49, %v2792_v50  ;;  %v2802_v42 = vunpack.c.l.bf16 %v10611_v54  ;;  %v2817_v59 = vmul.f32 %v2809_v41, %v2793_v46 }
 0x700   : > { %v2822_v4 = vmul.f32 %v2810_v5, %v15832_v48  ;;  %v2823_v3 = vmul.f32 %v2811_v19, %v2799_v32  ;;  %v2812_v16 = vunpack.c.l.bf16 %v2789_v36  ;;  %v2813_v22 = vunpack.c.h.bf16 %v2789_v36 }
 0x701   : > { %3216 = vrot.lane.b32.xlu0 %v10656_v30, %s6243_s20  ;;  %v2795_v23 = vunpack.c.h.bf16 %v15833_v34  ;;  %v2826_v32 = vmul.f32 %v2810_v5, %v2802_v42  ;;  %v3171_v50 = vsel %vm15330_vm0, %v10605_v38, %v10483_v9  ;;  %v2796_v54 = vunpack.c.l.bf16 %v10615_v52  ;;  %v6212_v5 = vld [vmem:[%s15079_s2 + $0x18] sm:$0x1] }
 0x702   : > { %v2830_v12 = vpack.c.bf16 %v2822_v4, %v2814_v47  ;;  %v2831_v20 = vpack.c.bf16 %v2823_v3, %v2815_v33  ;;  %v2824_v24 = vmul.f32 %v2812_v16, %v2800_v61  ;;  %v2825_v27 = vmul.f32 %v2813_v22, %v2801_v10 }
 0x703   : > { %v2818_v61 = vmul.f32 %v2806_v57, %v2794_v17  ;;  %vm15834_vm9 = vcmask 1040384   ;;  %v2819_v33 = vmul.f32 %v2807_v18, %v2795_v23  ;;  %v2827_v3 = vmul.f32 %v2811_v19, %v2803_v11  ;;  %v6213_v18 = vld [vmem:[%s15079_s2 + $0x10] sm:$0xff] }
 0x704   : > { %v10772_v48 = vpop.permute.xlu1 %3136  ;;  %v10774_v2 = vpop.permute.xlu0 %3104  ;;  %2846 = vmatmul.bf16.vlgmr.msra.gmra.mxu1 %v2830_v12  ;;  %2860 = vmatmul.bf16.vlgmr.msra.gmra.mxu2 %v2831_v20  ;;  %v2832_v36 = vpack.c.bf16 %v2824_v24, %v2816_v53  ;;  %v2833_v46 = vpack.c.bf16 %v2825_v27, %v2817_v59  ;;  %v10794_v34 = vadd.f32 %v3171_v50, %v10279_v15  ;;  %vm15864_vm14 = vcmask 203776  }
 0x705   : > { %v3172_v47 = vsel %vm15330_vm0, %v10772_v48, %v10565_v51  ;;  %5881 = vmatpush.msk.msra.mxu1 %vm15834_vm9, %v6212_v5  ;;  %v2834_v4 = vpack.c.bf16 %v2826_v32, %v2818_v61  ;;  %v15835_v51 = vld [vmem:[#allocation33_spill] sm:$0xff]  ;;  %v2835_v57 = vpack.c.bf16 %v2827_v3, %v2819_v33  ;;  %v2820_v15 = vmul.f32 %v2808_v49, %v2796_v54  ;;  %v15836_v5 = vld [vmem:[#allocation34_spill] sm:$0xff]  ;;  %vm15865_vm2 = vmmov %vm15864_vm14 }
 0x706   : > { %v10786_v10 = vadd.f32 %v3172_v47, %v10341_v0  ;;  %2874 = vmatmul.bf16.vlgmr.msra.gmra.mxu3 %v2832_v36  ;;  %2888 = vmatmul.bf16.vlgmr.msrb.gmra.mxu0 %v2833_v46  ;;  %v2804_v24 = vunpack.c.l.bf16 %v15835_v51  ;;  %v2797_v0 = vunpack.c.h.bf16 %v10615_v52  ;;  %v2805_v17 = vunpack.c.h.bf16 %v15835_v51  ;;  %v6214_v52 = vld [vmem:[%s15079_s2 + $0x8] sm:$0xff] }
 0x707   : > { %2969 = vmatpush.msra.mxu1 %v6213_v18  ;;  %v3166_v23 = vsel %vm15330_vm0, %v10675_v13, %v10513_v39  ;;  %v15840_v18 = vld [vmem:[#allocation28_spill] sm:$0xff]  ;;  %vm15889_vm13 = vcmask 39936   ;;  %vm15890_vm5 = vcmask 33792   ;;  %vm15927_vm6 = vcmp.lt.s32.totalorder %v6495_v29, 64 }
 0x708   : > { %3208 = vrot.lane.b32.xlu2 %v10786_v10, %s6243_s20  ;;  %v2828_v11 = vmul.f32 %v2812_v16, %v2804_v24  ;;  %v2821_v19 = vmul.f32 %v2809_v41, %v2797_v0  ;;  %v2829_v53 = vmul.f32 %v2813_v22, %v2805_v17  ;;  %v6215_v41 = vld [vmem:[%s15079_s2] sm:$0xff]  ;;  %v10826_v22 = vadd.f32 %v3166_v23, %v10296_v7  ;;  %v15838_v24 = vld [vmem:[#allocation44_spill] sm:$0xff]  ;;  %vm15929_vm12 = vmmov %vm15927_vm6 }
 0x709   : > { %3222 = vrot.lane.b32.xlu0 %v10794_v34, %s6243_s20  ;;  %2970 = vmatpush.msra.mxu1 %v6214_v52  ;;  %v15839_v17 = vld [vmem:[#allocation40_spill] sm:$0xff]  ;;  %v15842_v52 = vld [vmem:[#allocation10_spill] sm:$0xff]  ;;  %vm15932_vm10 = vmmov %vm15927_vm6 }
 0x70a   : > { %v2836_v20 = vpack.c.bf16 %v2828_v11, %v2820_v15  ;;  %v2837_v59 = vpack.c.bf16 %v2829_v53, %v2821_v19  ;;  %v15841_v19 = vld [vmem:[#allocation3_spill] sm:$0xff]  ;;  %vm15935_vm11 = vmmov %vm15927_vm6 }
 0x70b   : > { %2971 = vmatpush.msra.mxu1 %v6215_v41  ;;  %vm15939_vm7 = vmmov %vm15927_vm6 }
 0x70c   : > { %v10809_v42 = vpop.permute.xlu1 %3142  ;;  %v3111_v12 = vpop.permute.xlu0 %3110  ;;  %vm15941_vm8 = vmmov %vm15927_vm6 }
 0x70d   : > { %v3175_v49 = vsel %vm15330_vm0, %v10809_v42, %v10605_v38  ;;  %v3170_v38 = vsel %vm15330_vm0, %v10459_v37, %v10675_v13  ;;  %v3165_v13 = vsel %vm15330_vm0, %v10465_v63, %v10744_v26  ;;  %vm15945_vm15 = vmmov %vm15927_vm6 }
 0x70e   : > { %v10823_v16 = vadd.f32 %v3175_v49, %v10357_v62  ;;  %v3161_v62 = vsel %vm15330_vm0, %v10744_v26, %v10538_v44  ;;  %v10841_v7 = vadd.f32 %v3170_v38, %v10379_v8  ;;  %v10859_v8 = vadd.f32 %v3165_v13, %v10396_v35  ;;  %v15845_v49 = vld [vmem:[#allocation11_spill] sm:$0xff]  ;;  %vm15947_vm3 = vmmov %vm15927_vm6 }
 0x70f   : > { %v10844_v32 = vadd.f32 %v3161_v62, %v10321_v58  ;;  %v3156_v58 = vsel %vm15330_vm0, %v10774_v2, %v10563_v25  ;;  %v3160_v26 = vsel %vm15330_vm0, %v10473_v31, %v10774_v2  ;;  %v3159_v35 = vsel %vm15330_vm0, %v3111_v12, %v10603_v56  ;;  %v15846_v38 = vld [vmem:[#allocation27_spill] sm:$0xff]  ;;  %v15848_v62 = vld [vmem:[#allocation5_spill] sm:$0xff]  ;;  %vm15949_vm4 = vmmov %vm15947_vm3 }
 0x710   : > { %3214 = vrot.lane.b32.xlu2 %v10823_v16, %s6243_s20  ;;  %v10862_v47 = vadd.f32 %v3156_v58, %v10343_v1  ;;  %v10876_v36 = vadd.f32 %v3160_v26, %v10413_v6  ;;  %v10879_v1 = vadd.f32 %v3159_v35, %v10359_v28  ;;  %v3163_v2 = vsel %vm15330_vm0, %v10481_v14, %v3111_v12  ;;  %v15851_v26 = vld [vmem:[#allocation23_spill] sm:$0xff]  ;;  %vm15951_vm9 = vmmov %vm15947_vm3 }
 0x711   : > { %3228 = vrot.lane.b32.xlu0 %v10826_v22, %s6243_s20  ;;  %v10892_v6 = vadd.f32 %v3163_v2, %v10429_v60  ;;  %v15837_v60 = vld [vmem:[#allocation49_spill] sm:$0xff] }
 0x712   : > { %v15854_v2 = vld [vmem:[#allocation37_spill] sm:$0xff] }
 0x714   : > { %v3117_v27 = vpop.permute.xlu0 %3116  ;;  %2902 = vmatmul.bf16.vlgmr.msrb.gmra.mxu1 %v2834_v4  ;;  %2916 = vmatmul.bf16.vlgmr.msrb.gmra.mxu2 %v2835_v57 }
 0x715   : > { %v3154_v54 = vsel %vm15330_vm0, %v3117_v27, %v10673_v43  ;;  %v3158_v4 = vsel %vm15330_vm0, %v15836_v5, %v3117_v27 }
 0x716   : > { %2930 = vmatmul.bf16.vlgmr.msrb.gmra.mxu3 %v2836_v20  ;;  %2944 = vmatmul.bf16.vlgmr.msra.gmra.mxu0 %v2837_v59  ;;  %v10895_v28 = vadd.f32 %v3154_v54, %v10381_v45  ;;  %v10914_v0 = vadd.f32 %v3158_v4, %v15838_v24  ;;  %v15843_v20 = vld [vmem:[#allocation8_spill] sm:$0xff]  ;;  %v15855_v54 = vld [vmem:[#allocation29_spill] sm:$0xff] }
 0x718   : > { %3220 = vrot.lane.b32.xlu2 %v10841_v7, %s6243_s20 }
 0x719   : > { %3234 = vrot.lane.b32.xlu0 %v10844_v32, %s6243_s20 }
 0x71c   : > { %v3123_v50 = vpop.permute.xlu0 %3122 }
 0x71d   : > { %v3149_v3 = vsel %vm15330_vm0, %v3123_v50, %v10742_v21  ;;  %v3153_v15 = vsel %vm15330_vm0, %v15840_v18, %v3123_v50  ;;  %v15850_v50 = vld [vmem:[#allocation41_spill] sm:$0xff] }
 0x71e   : > { %v10917_v57 = vadd.f32 %v3149_v3, %v15839_v17  ;;  %v10939_v12 = vadd.f32 %v3153_v15, %v15842_v52 }
 0x720   : > { %3226 = vrot.lane.b32.xlu2 %v10859_v8, %s6243_s20 }
 0x721   : > { %3240 = vrot.lane.b32.xlu0 %v10862_v47, %s6243_s20 }
 0x724   : > { %v3129_v61 = vpop.permute.xlu0 %3128 }
 0x725   : > { %v3144_v11 = vsel %vm15330_vm0, %v3129_v61, %v10772_v48 }
 0x726   : > { %v10942_v59 = vadd.f32 %v3144_v11, %v15843_v20  ;;  %v15861_v20 = vld [vmem:[#allocation19_spill] sm:$0xff] }
 0x728   : > { %3232 = vrot.lane.b32.xlu2 %v10876_v36, %s6243_s20 }
 0x729   : > { %3246 = vrot.lane.b32.xlu0 %v10879_v1, %s6243_s20 }
 0x72c   : > { %v3135_v46 = vpop.permute.xlu0 %3134 }
 0x72d   : > { %v3147_v23 = vsel %vm15330_vm0, %v3135_v46, %v10809_v42 }
 0x72e   : > { %v10967_v13 = vadd.f32 %v3147_v23, %v15848_v62 }
 0x730   : > { %3238 = vrot.lane.b32.xlu2 %v10892_v6, %s6243_s20 }
 0x731   : > { %3252 = vrot.lane.b32.xlu0 %v10895_v28, %s6243_s20 }
 0x734   : > { %v3141_v33 = vpop.permute.xlu0 %3140 }
 0x735   : > { %v3174_v45 = vsel %vm15330_vm0, %v3141_v33, %v10459_v37  ;;  %v3169_v37 = vsel %vm15330_vm0, %v10471_v40, %v10465_v63  ;;  %v3164_v63 = vsel %vm15330_vm0, %v10479_v55, %v10473_v31  ;;  %v15844_v40 = vld [vmem:[#allocation26_spill] sm:$0xff]  ;;  %v3167_v31 = vsel %vm15330_vm0, %v10483_v9, %v10481_v14  ;;  %v15853_v9 = vld [vmem:[#allocation31_spill] sm:$0xff] }
 0x736   : > { %v10911_v51 = vadd.f32 %v3174_v45, %v15837_v60  ;;  %v10936_v53 = vadd.f32 %v3169_v37, %v15841_v19  ;;  %v3148_v48 = vsel %vm15330_vm0, %v15844_v40, %v3129_v61  ;;  %v10961_v41 = vadd.f32 %v3164_v63, %v15845_v49  ;;  %v15849_v55 = vld [vmem:[#allocation6_spill] sm:$0xff]  ;;  %v15858_v60 = vld [vmem:[#allocation15_spill] sm:$0xff] }
 0x737   : > { %v10964_v27 = vadd.f32 %v3148_v48, %v15846_v38  ;;  %v3151_v42 = vsel %vm15330_vm0, %v15849_v55, %v3135_v46  ;;  %v10983_v58 = vadd.f32 %v3167_v31, %v15850_v50  ;;  %v3162_v14 = vsel %vm15330_vm0, %v10513_v39, %v15836_v5  ;;  %v15856_v5 = vld [vmem:[#allocation48_spill] sm:$0xff] }
 0x738   : > { %3212 = vrot.lane.b32.xlu1 %v10911_v51, %s6243_s20  ;;  %3244 = vrot.lane.b32.xlu2 %v10914_v0, %s6243_s20  ;;  %v10986_v61 = vadd.f32 %v3151_v42, %v15851_v26  ;;  %v3146_v35 = vsel %vm15330_vm0, %v15853_v9, %v3141_v33  ;;  %v11000_v46 = vadd.f32 %v3162_v14, %v15854_v2 }
 0x739   : > { %3258 = vrot.lane.b32.xlu0 %v10917_v57, %s6243_s20  ;;  %15847 = vst [vmem:[#allocation25_spill] sm:$0xff] %v10964_v27  ;;  %v11003_v4 = vadd.f32 %v3146_v35, %v15855_v54  ;;  %v3157_v39 = vsel %vm15330_vm0, %v10538_v44, %v15840_v18  ;;  %v3152_v33 = vsel %vm15330_vm0, %v10563_v25, %v15844_v40  ;;  %v15859_v18 = vld [vmem:[#allocation18_spill] sm:$0xff] }
 0x73a   : > { %15852 = vst [vmem:[#allocation32_spill] sm:$0xff] %v10986_v61  ;;  %v11014_v3 = vadd.f32 %v3157_v39, %v15856_v5  ;;  %v11025_v24 = vadd.f32 %v3152_v33, %v15858_v60  ;;  %v3155_v44 = vsel %vm15330_vm0, %v10603_v56, %v15849_v55  ;;  %v3150_v25 = vsel %vm15330_vm0, %v10673_v43, %v15853_v9  ;;  %v15860_v56 = vld [vmem:[#allocation24_spill] sm:$0xff]  ;;  %v15862_v43 = vld [vmem:[#allocation46_spill] sm:$0xff] }
 0x73b   : > { %v11038_v15 = vadd.f32 %v3155_v44, %v15859_v18  ;;  %v11051_v52 = vadd.f32 %v3150_v25, %v15860_v56  ;;  %v3145_v63 = vsel %vm15330_vm0, %v10742_v21, %v15861_v20 }
 0x73c   : > { %15857 = vst [vmem:[#allocation21_spill] sm:$0xff] %v11014_v3  ;;  %v11064_v23 = vadd.f32 %v3145_v63, %v15862_v43 }
 0x73e   : > { %15863 = vst [vmem:[#allocation12_spill] sm:$0xff] %v11064_v23 }
 0x740   : > { %3218 = vrot.lane.b32.xlu1 %v10936_v53, %s6243_s20  ;;  %3250 = vrot.lane.b32.xlu2 %v10939_v12, %s6243_s20 }
 0x741   : > { %3264 = vrot.lane.b32.xlu0 %v10942_v59, %s6243_s20 }
 0x748   : > { %3224 = vrot.lane.b32.xlu1 %v10961_v41, %s6243_s20  ;;  %3256 = vrot.lane.b32.xlu2 %v10964_v27, %s6243_s20 }
 0x749   : > { %3270 = vrot.lane.b32.xlu0 %v10967_v13, %s6243_s20 }
 0x750   : > { %3230 = vrot.lane.b32.xlu1 %v10983_v58, %s6243_s20  ;;  %3262 = vrot.lane.b32.xlu2 %v10986_v61, %s6243_s20 }
 0x758   : > { %3236 = vrot.lane.b32.xlu1 %v11000_v46, %s6243_s20  ;;  %3268 = vrot.lane.b32.xlu2 %v11003_v4, %s6243_s20 }
 0x760   : > { %3242 = vrot.lane.b32.xlu1 %v11014_v3, %s6243_s20 }
 0x762   : > { %v11022_v45 = vpop.permute.xlu2 %3208 }
 0x768   : > { %3248 = vrot.lane.b32.xlu1 %v11025_v24, %s6243_s20 }
 0x76a   : > { %v11033_v17 = vpop.permute.xlu2 %3214 }
 0x76b   : > { %v11035_v37 = vpop.permute.xlu0 %3210 }
 0x770   : > { %3254 = vrot.lane.b32.xlu1 %v11038_v15, %s6243_s20 }
 0x772   : > { %v11046_v11 = vpop.permute.xlu2 %3220 }
 0x773   : > { %v11048_v19 = vpop.permute.xlu0 %3216 }
 0x778   : > { %3260 = vrot.lane.b32.xlu1 %v11051_v52, %s6243_s20 }
 0x77a   : > { %v11059_v40 = vpop.permute.xlu2 %3226 }
 0x77b   : > { %v11061_v48 = vpop.permute.xlu0 %3222 }
 0x780   : > { %3266 = vrot.lane.b32.xlu1 %v11064_v23, %s6243_s20 }
 0x781   : > { %v2847_v49 = vpop.f32.mrf.mxu1 }
 0x782   : > { %v11068_v38 = vpop.permute.xlu2 %3232 }
 0x783   : > { %v11070_v62 = vpop.permute.xlu0 %3228  ;;  %v2889_v31 = vpop.f32.mrf.mxu0 }
 0x787   : > { %v2861_v55 = vpop.f32.mrf.mxu2 }
 0x788   : > { %v2862_v14 = vadd.f32 %v2861_v55, %v2847_v49 }
 0x789   : > { %v2849_v42 = vpop.f32.mrf.mxu1  ;;  %v2875_v50 = vpop.f32.mrf.mxu3 }
 0x78a   : > { %v11072_v21 = vpop.permute.xlu2 %3238  ;;  %v2876_v2 = vadd.f32 %v2875_v50, %v2862_v14 }
 0x78b   : > { %v11074_v26 = vpop.permute.xlu0 %3234  ;;  %v2891_v9 = vpop.f32.mrf.mxu0 }
 0x78c   : > { %v2890_v44 = vadd.f32 %v2889_v31, %v2876_v2 }
 0x78f   : > { %v2863_v35 = vpop.f32.mrf.mxu2 }
 0x790   : > { %v2864_v60 = vadd.f32 %v2863_v35, %v2849_v42 }
 0x791   : > { %v2903_v54 = vpop.f32.mrf.mxu1  ;;  %v2877_v39 = vpop.f32.mrf.mxu3 }
 0x792   : > { %v11076_v5 = vpop.permute.xlu2 %3244  ;;  %v2904_v18 = vadd.f32 %v2903_v54, %v2890_v44  ;;  %v2878_v56 = vadd.f32 %v2877_v39, %v2864_v60 }
 0x793   : > { %v11078_v33 = vpop.permute.xlu0 %3240  ;;  %v2945_v63 = vpop.f32.mrf.mxu0 }
 0x794   : > { %v2892_v50 = vadd.f32 %v2891_v9, %v2878_v56 }
 0x797   : > { %v2917_v25 = vpop.f32.mrf.mxu2 }
 0x798   : > { %v2918_v20 = vadd.f32 %v2917_v25, %v2904_v18 }
 0x799   : > { %v2931_v43 = vpop.f32.mrf.mxu3  ;;  %v2905_v55 = vpop.f32.mrf.mxu1 }
 0x79a   : > { %v11080_v23 = vpop.permute.xlu2 %3250  ;;  %v2932_v49 = vadd.f32 %v2931_v43, %v2918_v20  ;;  %v2906_v3 = vadd.f32 %v2905_v55, %v2892_v50 }
 0x79b   : > { %v11082_v27 = vpop.permute.xlu0 %3246  ;;  %v2947_v39 = vpop.f32.mrf.mxu0 }
 0x79c   : > { %v2946_v14 = vadd.f32 %v2945_v63, %v2932_v49 }
 0x79e   : > { %5882 = vmatmul.msk.f32.vlgmr.msra.gmra.mxu1 %vm15864_vm14, %v2946_v14  ;;  %vm15954_vm14 = vmmov %vm15947_vm3 }
 0x79f   : > { %v2919_v61 = vpop.f32.mrf.mxu2 }
 0x7a0   : > { %v2920_v42 = vadd.f32 %v2919_v61, %v2906_v3 }
 0x7a1   : > { %v2933_v31 = vpop.f32.mrf.mxu3 }
 0x7a2   : > { %v11085_v35 = vpop.permute.xlu2 %3256  ;;  %v2934_v2 = vadd.f32 %v2933_v31, %v2920_v42 }
 0x7a3   : > { %v11087_v54 = vpop.permute.xlu0 %3252 }
 0x7a4   : > { %v2948_v60 = vadd.f32 %v2947_v39, %v2934_v2 }
 0x7a6   : > { %5883 = vmatmul.msk.f32.gmra.mxu1 %vm15865_vm2, %v2948_v60  ;;  %vm15957_vm2 = vmmov %vm15947_vm3 }
 0x7aa   : > { %v3213_v44 = vpop.permute.xlu1 %3212  ;;  %v11090_v18 = vpop.permute.xlu2 %3262 }
 0x7ab   : > { %v11092_v9 = vpop.permute.xlu0 %3258  ;;  %v3298_v31 = vsel %vm15329_vm1, %v3213_v44, %v11046_v11 }
 0x7b2   : > { %v3219_v25 = vpop.permute.xlu1 %3218  ;;  %v11094_v56 = vpop.permute.xlu2 %3268 }
 0x7b3   : > { %v3302_v61 = vsel %vm15329_vm1, %v11094_v56, %v3213_v44  ;;  %v11099_v3 = vpop.permute.xlu0 %3264  ;;  %v3297_v49 = vsel %vm15329_vm1, %v11035_v37, %v3219_v25 }
 0x7b4   : > { %v11102_v20 = vadd.f32 %v3302_v61, %v10911_v51  ;;  %v3300_v63 = vsel %vm15329_vm1, %v11099_v3, %v11022_v45  ;;  %v11121_v50 = vadd.f32 %v3297_v49, %v10936_v53  ;;  %v5918_v49 = vld [vmem:[%s7006_s25 + $0x100] sm:$0xff] }
 0x7b5   : > { %v11109_v43 = vadd.f32 %v3300_v63, %v10786_v10 }
 0x7b6   : > { %15866 = vst [vmem:[#allocation9_spill] sm:$0xff] %v11102_v20  ;;  %3340 = vrot.lane.b32.xlu0 %v11102_v20, %s6244_s21 }
 0x7b7   : > { %15867 = vst [vmem:[#allocation13_spill] sm:$0xff] %v11109_v43  ;;  %3336 = vrot.lane.b32.xlu1 %v11109_v43, %s6244_s21 }
 0x7b8   : > { %15868 = vst [vmem:[#allocation33_spill] sm:$0xff] %v11121_v50 }
 0x7ba   : > { %v3225_v51 = vpop.permute.xlu1 %3224 }
 0x7bb   : > { %v11118_v55 = vpop.permute.xlu0 %3270  ;;  %v3292_v42 = vsel %vm15329_vm1, %v11048_v19, %v3225_v51 }
 0x7bc   : > { %v3303_v10 = vsel %vm15329_vm1, %v11118_v55, %v11033_v17  ;;  %v11141_v2 = vadd.f32 %v3292_v42, %v10961_v41  ;;  %v3293_v41 = vsel %vm15329_vm1, %v3219_v25, %v11059_v40 }
 0x7bd   : > { %v11128_v14 = vadd.f32 %v3303_v10, %v10823_v16  ;;  %v11144_v16 = vadd.f32 %v3298_v31, %v10841_v7  ;;  %v11162_v44 = vadd.f32 %v3293_v41, %v10859_v8  ;;  %v5921_v41 = vld [vmem:[%s7006_s25 + $0x118] sm:$0xff] }
 0x7be   : > { %3346 = vrot.lane.b32.xlu0 %v11121_v50, %s6244_s21  ;;  %15870 = vst [vmem:[#allocation49_spill] sm:$0xff] %v11141_v2 }
 0x7bf   : > { %15869 = vst [vmem:[#allocation34_spill] sm:$0xff] %v11128_v14  ;;  %3342 = vrot.lane.b32.xlu1 %v11128_v14, %s6244_s21 }
 0x7c0   : > { %15871 = vst [vmem:[#allocation44_spill] sm:$0xff] %v11144_v16 }
 0x7c1   : > { %15873 = vst [vmem:[#allocation28_spill] sm:$0xff] %v11162_v44 }
 0x7c2   : > { %v3231_v53 = vpop.permute.xlu1 %3230 }
 0x7c3   : > { %v3295_v39 = vsel %vm15329_vm1, %v11061_v48, %v3231_v53 }
 0x7c4   : > { %v11159_v7 = vadd.f32 %v3295_v39, %v10983_v58  ;;  %v3288_v58 = vsel %vm15329_vm1, %v3225_v51, %v11068_v38  ;;  %v3291_v51 = vsel %vm15329_vm1, %v3231_v53, %v11072_v21  ;;  %v5926_v53 = vld [vmem:[%s7006_s25 + $0x140] sm:$0x3] }
 0x7c5   : > { %v11181_v25 = vadd.f32 %v3288_v58, %v10876_v36  ;;  %v11196_v42 = vadd.f32 %v3291_v51, %v10892_v6  ;;  %v5927_v36 = vld [vmem:[%s7006_s25 + $0x148] sm:$0x3]  ;;  %v11213_v6 = vmul.f32 %v5926_v53, %v5926_v53  ;;  %v5920_v51 = vld [vmem:[%s7006_s25 + $0x110] sm:$0xff] }
 0x7c6   : > { %3352 = vrot.lane.b32.xlu0 %v11141_v2, %s6244_s21  ;;  %15872 = vst [vmem:[#allocation40_spill] sm:$0xff] %v11159_v7  ;;  %v11205_v39 = vmul.f32 %v5927_v36, %v5927_v36  ;;  %v11224_v43 = vpack.c.bf16 %v5921_v41, %v5920_v51  ;;  %v11226_v14 = vmul.f32 %v5920_v51, %v5920_v51  ;;  %v5929_v51 = vld [vmem:[%s7006_s25 + $0x158] sm:$0x3] }
 0x7c7   : > { %3348 = vrot.lane.b32.xlu1 %v11144_v16, %s6244_s21  ;;  %15875 = vst [vmem:[#allocation10_spill] sm:$0xff] %v11181_v25 }
 0x7c8   : > { %15876 = vst [vmem:[#allocation8_spill] sm:$0xff] %v11196_v42 }
 0x7c9   : > { %15878 = vst [vmem:[#allocation11_spill] sm:$0xff] %v11224_v43  ;;  %v11247_v43 = vmul.f32 %v5929_v51, %v5929_v51 }
 0x7ca   : > { %v11153_v60 = vpop.permute.xlu1 %3236 }
 0x7cb   : > { %v3290_v61 = vsel %vm15329_vm1, %v11070_v62, %v11153_v60 }
 0x7cc   : > { %v11178_v8 = vadd.f32 %v3290_v61, %v11000_v46  ;;  %v11193_v46 = vmul.f32 %v5918_v49, %v5918_v49  ;;  %v11211_v61 = vpack.c.bf16 %v5927_v36, %v5926_v53  ;;  %v11219_v49 = vmul.f32 %v5921_v41, %v5921_v41  ;;  %v5930_v36 = vld [vmem:[%s7006_s25 + $0x160] sm:$0x3] }
 0x7cd   : > { %v11237_v20 = vmul.f32 %v5930_v36, %v5930_v36  ;;  %v5923_v36 = vld [vmem:[%s7006_s25 + $0x128] sm:$0xff] }
 0x7ce   : > { %3358 = vrot.lane.b32.xlu0 %v11159_v7, %s6244_s21  ;;  %15874 = vst [vmem:[#allocation3_spill] sm:$0xff] %v11178_v8 }
 0x7cf   : > { %3354 = vrot.lane.b32.xlu1 %v11162_v44, %s6244_s21  ;;  %15877 = vst [vmem:[#allocation26_spill] sm:$0xff] %v11211_v61 }
 0x7d2   : > { %v11172_v63 = vpop.permute.xlu1 %3242 }
 0x7d6   : > { %3364 = vrot.lane.b32.xlu0 %v11178_v8, %s6244_s21  ;;  %v15879_v8 = vld [vmem:[#allocation36_spill] sm:$0xff] }
 0x7d7   : > { %3360 = vrot.lane.b32.xlu1 %v11181_v25, %s6244_s21  ;;  %v5933_v25 = vld [vmem:[%s7006_s25 + $0x178] sm:$0x3] }
 0x7da   : > { %v11188_v10 = vpop.permute.xlu1 %3248 }
 0x7de   : > { %3848 = vrot.lane.b32.xlu0 %v11193_v46, %s6242_s19 }
 0x7df   : > { %3366 = vrot.lane.b32.xlu1 %v11196_v42, %s6244_s21  ;;  %v5924_v42 = vld [vmem:[%s7006_s25 + $0x130] sm:$0xff] }
 0x7e2   : > { %v11203_v31 = vpop.permute.xlu1 %3254 }
 0x7e6   : > { %3854 = vrot.lane.b32.xlu0 %v11205_v39, %s6242_s19 }
 0x7e7   : > { %3850 = vrot.lane.b32.xlu1 %v11213_v6, %s6242_s19 }
 0x7ea   : > { %v11215_v58 = vpop.permute.xlu1 %3260 }
 0x7ee   : > { %3860 = vrot.lane.b32.xlu0 %v11219_v49, %s6242_s19 }
 0x7ef   : > { %3856 = vrot.lane.b32.xlu1 %v11226_v14, %s6242_s19 }
 0x7f2   : > { %v11229_v53 = vpop.permute.xlu1 %3266 }
 0x7f3   : > { %v3301_v61 = vsel %vm15329_vm1, %v11229_v53, %v11035_v37  ;;  %v3296_v37 = vsel %vm15329_vm1, %v11022_v45, %v11048_v19  ;;  %v3299_v45 = vsel %vm15329_vm1, %v11033_v17, %v11061_v48  ;;  %v3294_v48 = vsel %vm15329_vm1, %v11046_v11, %v11070_v62  ;;  %v5922_v11 = vld [vmem:[%s7006_s25 + $0x120] sm:$0xff] }
 0x7f4   : > { %v11240_v41 = vadd.f32 %v3301_v61, %v15879_v8  ;;  %v11256_v8 = vmul.f32 %v5924_v42, %v5924_v42  ;;  %v11259_v61 = vadd.f32 %v3296_v37, %v10656_v30  ;;  %v11275_v30 = vmul.f32 %v5933_v25, %v5933_v25  ;;  %v5932_v42 = vld [vmem:[%s7006_s25 + $0x170] sm:$0x3] }
 0x7f5   : > { %v11278_v19 = vadd.f32 %v3299_v45, %v10794_v34  ;;  %v11285_v37 = vpack.c.bf16 %v5933_v25, %v5932_v42  ;;  %v11287_v17 = vmul.f32 %v5932_v42, %v5932_v42  ;;  %v5928_v34 = vld [vmem:[%s7006_s25 + $0x150] sm:$0x3]  ;;  %v11299_v16 = vadd.f32 %v3294_v48, %v10826_v22 }
 0x7f6   : > { %15880 = vst [vmem:[#allocation27_spill] sm:$0xff] %v11240_v41  ;;  %3338 = vrot.lane.b32.xlu2 %v11240_v41, %s6244_s21  ;;  %3866 = vrot.lane.b32.xlu0 %v11237_v20, %s6242_s19  ;;  %v11266_v41 = vmul.f32 %v5923_v36, %v5923_v36  ;;  %v11296_v45 = vpack.c.bf16 %v5929_v51, %v5928_v34 }
 0x7f7   : > { %3862 = vrot.lane.b32.xlu1 %v11247_v43, %s6242_s19  ;;  %15881 = vst [vmem:[#allocation5_spill] sm:$0xff] %v11259_v61  ;;  %v3289_v25 = vsel %vm15329_vm1, %v11059_v40, %v11074_v26  ;;  %v11308_v62 = vpack.c.bf16 %v5923_v36, %v5922_v11  ;;  %v3284_v22 = vsel %vm15329_vm1, %v11068_v38, %v11078_v33 }
 0x7f8   : > { %15882 = vst [vmem:[#allocation6_spill] sm:$0xff] %v11278_v19  ;;  %v11311_v42 = vadd.f32 %v3289_v25, %v10844_v32  ;;  %v11320_v51 = vadd.f32 %v3284_v22, %v10862_v47  ;;  %v5919_v32 = vld [vmem:[%s7006_s25 + $0x108] sm:$0xff]  ;;  %v3842_v38 = vmul.f32 %v5928_v34, %v5928_v34  ;;  %v3836_v22 = vmul.f32 %v5922_v11, %v5922_v11 }
 0x7f9   : > { %15883 = vst [vmem:[#allocation41_spill] sm:$0xff] %v11285_v37  ;;  %v3833_v40 = vmul.f32 %v5919_v32, %v5919_v32  ;;  %v5931_v37 = vld [vmem:[%s7006_s25 + $0x168] sm:$0x3] }
 0x7fa   : > { %15884 = vst [vmem:[#allocation23_spill] sm:$0xff] %v11296_v45 }
 0x7fb   : > { %15885 = vst [vmem:[#allocation31_spill] sm:$0xff] %v11299_v16 }
 0x7fc   : > { %15886 = vst [vmem:[#allocation37_spill] sm:$0xff] %v11308_v62  ;;  %v3845_v62 = vmul.f32 %v5931_v37, %v5931_v37 }
 0x7fd   : > { %15887 = vst [vmem:[#allocation29_spill] sm:$0xff] %v11311_v42 }
 0x7fe   : > { %3344 = vrot.lane.b32.xlu2 %v11259_v61, %s6244_s21  ;;  %3872 = vrot.lane.b32.xlu0 %v11256_v8, %s6242_s19  ;;  %15888 = vst [vmem:[#allocation48_spill] sm:$0xff] %v11320_v51 }
 0x7ff   : > { %3868 = vrot.lane.b32.xlu1 %v11266_v41, %s6242_s19 }
 0x806   : > { %3350 = vrot.lane.b32.xlu2 %v11278_v19, %s6244_s21  ;;  %3878 = vrot.lane.b32.xlu0 %v11275_v30, %s6242_s19 }
 0x807   : > { %3874 = vrot.lane.b32.xlu1 %v11287_v17, %s6242_s19 }
 0x80e   : > { %3356 = vrot.lane.b32.xlu2 %v11299_v16, %s6244_s21 }
 0x816   : > { %3362 = vrot.lane.b32.xlu2 %v11311_v42, %s6244_s21 }
 0x81b   : > { %v2973_v48 = vpop.f32.mrf.mxu1 }
 0x81c   : > { %5884 = vst.msk [vmem:[%s9192_s10 + $0x10] sm:$0xff] %vm15889_vm13, %v2973_v48  ;;  %vm15960_vm13 = vmmov %vm15957_vm2 }
 0x81e   : > { %3368 = vrot.lane.b32.xlu2 %v11320_v51, %s6244_s21 }
 0x823   : > { %v2976_v36 = vpop.f32.mrf.mxu1 }
 0x824   : > { %5885 = vst.msk [vmem:[%s9192_s10 + $0x18] sm:$0x3] %vm15890_vm5, %v2976_v36  ;;  %v5925_v36 = vld [vmem:[%s7006_s25 + $0x138] sm:$0xff]  ;;  %vm15962_vm5 = vmmov %vm15957_vm2 }
 0x825   : > { %v3839_v34 = vmul.f32 %v5925_v36, %v5925_v36 }
 0x826   : > { %3852 = vrot.lane.b32.xlu2 %v3833_v40, %s6242_s19 }
 0x828   : > { %v11330_v25 = vpop.permute.xlu0 %3340 }
 0x829   : > { %15891 = vst [vmem:[#allocation15_spill] sm:$0xff] %v11330_v25  ;;  %v11335_v48 = vpop.permute.xlu1 %3336 }
 0x82a   : > { %15893 = vst [vmem:[#allocation24_spill] sm:$0xff] %v11335_v48 }
 0x82e   : > { %3858 = vrot.lane.b32.xlu2 %v3842_v38, %s6242_s19 }
 0x830   : > { %v11333_v47 = vpop.permute.xlu0 %3346 }
 0x831   : > { %15892 = vst [vmem:[#allocation18_spill] sm:$0xff] %v11333_v47  ;;  %v11341_v45 = vpop.permute.xlu1 %3342 }
 0x832   : > { %15895 = vst [vmem:[#allocation46_spill] sm:$0xff] %v11341_v45 }
 0x836   : > { %3864 = vrot.lane.b32.xlu2 %v3836_v22, %s6242_s19 }
 0x838   : > { %v11339_v32 = vpop.permute.xlu0 %3352 }
 0x839   : > { %15894 = vst [vmem:[#allocation19_spill] sm:$0xff] %v11339_v32  ;;  %v11348_v51 = vpop.permute.xlu1 %3348 }
 0x83a   : > { %15897 = vst [vmem:[#allocation50_spill] sm:$0xff] %v11348_v51 }
 0x83e   : > { %3870 = vrot.lane.b32.xlu2 %v3845_v62, %s6242_s19 }
 0x840   : > { %v11345_v42 = vpop.permute.xlu0 %3358 }
 0x841   : > { %15896 = vst [vmem:[#allocation36_spill] sm:$0xff] %v11345_v42  ;;  %v11354_v19 = vpop.permute.xlu1 %3354 }
 0x846   : > { %3876 = vrot.lane.b32.xlu2 %v3839_v34, %s6242_s19 }
 0x848   : > { %v11350_v11 = vpop.permute.xlu0 %3364 }
 0x849   : > { %15898 = vst [vmem:[#allocation51_spill] sm:$0xff] %v11350_v11  ;;  %v11358_v45 = vpop.permute.xlu1 %3360 }
 0x84a   : > { %15901 = vst [vmem:[#allocation54_spill] sm:$0xff] %v11358_v45 }
 0x850   : > { %v11352_v16 = vpop.permute.xlu2 %3338  ;;  %v3849_v7 = vpop.permute.xlu0 %3848 }
 0x851   : > { %15899 = vst [vmem:[#allocation52_spill] sm:$0xff] %v11352_v16  ;;  %v11364_v36 = vpop.permute.xlu1 %3366 }
 0x852   : > { %15903 = vst [vmem:[#allocation56_spill] sm:$0xff] %v11364_v36 }
 0x858   : > { %v11356_v37 = vpop.permute.xlu2 %3344  ;;  %v3855_v2 = vpop.permute.xlu0 %3854 }
 0x859   : > { %15900 = vst [vmem:[#allocation53_spill] sm:$0xff] %v11356_v37  ;;  %v3851_v11 = vpop.permute.xlu1 %3850 }
 0x860   : > { %v11360_v61 = vpop.permute.xlu2 %3350  ;;  %v11362_v42 = vpop.permute.xlu0 %3860 }
 0x861   : > { %15902 = vst [vmem:[#allocation55_spill] sm:$0xff] %v11360_v61  ;;  %v3857_v48 = vpop.permute.xlu1 %3856 }
 0x868   : > { %v11366_v50 = vpop.permute.xlu2 %3356  ;;  %v11368_v32 = vpop.permute.xlu0 %3866 }
 0x869   : > { %15904 = vst [vmem:[#allocation57_spill] sm:$0xff] %v11366_v50  ;;  %v3863_v47 = vpop.permute.xlu1 %3862 }
 0x870   : > { %v11370_v44 = vpop.permute.xlu2 %3362  ;;  %v11372_v25 = vpop.permute.xlu0 %3872 }
 0x871   : > { %15905 = vst [vmem:[#allocation58_spill] sm:$0xff] %v11370_v44 }
 0x878   : > { %v11374_v51 = vpop.permute.xlu2 %3368  ;;  %v11376_v37 = vpop.permute.xlu0 %3878 }
 0x879   : > { %15906 = vst [vmem:[#allocation59_spill] sm:$0xff] %v11374_v51  ;;  %v3895_v61 = vsel %vm15330_vm0, %v11376_v37, %v3851_v11 }
 0x87a   : > { %v11382_v36 = vadd.f32 %v3895_v61, %v11213_v6 }
 0x87c   : > { %15907 = vst [vmem:[#allocation60_spill] sm:$0xff] %v11382_v36  ;;  %3914 = vrot.lane.b32.xlu2 %v11382_v36, %s6243_s20 }
 0x880   : > { %v3853_v50 = vpop.permute.xlu2 %3852 }
 0x881   : > { %v3892_v44 = vsel %vm15330_vm0, %v3849_v7, %v3853_v50  ;;  %v3890_v51 = vsel %vm15330_vm0, %v3853_v50, %v3857_v48 }
 0x882   : > { %v11390_v45 = vadd.f32 %v3892_v44, %v3833_v40  ;;  %v11393_v16 = vadd.f32 %v3890_v51, %v11226_v14  ;;  %v3869_v14 = vpop.permute.xlu1 %3868 }
 0x884   : > { %3916 = vrot.lane.b32.xlu0 %v11390_v45, %s6243_s20  ;;  %3920 = vrot.lane.b32.xlu2 %v11393_v16, %s6243_s20 }
 0x888   : > { %v3859_v6 = vpop.permute.xlu2 %3858 }
 0x889   : > { %v3891_v61 = vsel %vm15330_vm0, %v3855_v2, %v3859_v6  ;;  %v3889_v36 = vsel %vm15330_vm0, %v3859_v6, %v3863_v47 }
 0x88a   : > { %v11403_v50 = vadd.f32 %v3891_v61, %v3842_v38  ;;  %v11406_v44 = vadd.f32 %v3889_v36, %v11247_v43  ;;  %v3875_v36 = vpop.permute.xlu1 %3874 }
 0x88c   : > { %15908 = vst [vmem:[#allocation61_spill] sm:$0xff] %v11406_v44  ;;  %3922 = vrot.lane.b32.xlu0 %v11403_v50, %s6243_s20  ;;  %3926 = vrot.lane.b32.xlu2 %v11406_v44, %s6243_s20 }
 0x890   : > { %v3865_v51 = vpop.permute.xlu2 %3864 }
 0x891   : > { %v3886_v40 = vsel %vm15330_vm0, %v11362_v42, %v3865_v51  ;;  %v3884_v6 = vsel %vm15330_vm0, %v3865_v51, %v3869_v14 }
 0x892   : > { %v11417_v38 = vadd.f32 %v3886_v40, %v3836_v22  ;;  %v11420_v43 = vadd.f32 %v3884_v6, %v11266_v41  ;;  %v3286_v40 = vsel %vm15329_vm1, %v11153_v60, %v11076_v5  ;;  %v3893_v60 = vsel %vm15330_vm0, %v3851_v11, %v3855_v2 }
 0x894   : > { %3928 = vrot.lane.b32.xlu0 %v11417_v38, %s6243_s20  ;;  %3932 = vrot.lane.b32.xlu2 %v11420_v43, %s6243_s20 }
 0x898   : > { %v3871_v61 = vpop.permute.xlu2 %3870 }
 0x899   : > { %v3885_v44 = vsel %vm15330_vm0, %v11368_v32, %v3871_v61  ;;  %v3883_v51 = vsel %vm15330_vm0, %v3871_v61, %v3875_v36 }
 0x89a   : > { %v11431_v22 = vadd.f32 %v3885_v44, %v3845_v62  ;;  %v11434_v41 = vadd.f32 %v3883_v51, %v11287_v17  ;;  %v11455_v51 = vadd.f32 %v3286_v40, %v10914_v0  ;;  %v3283_v0 = vsel %vm15329_vm1, %v11082_v27, %v11203_v31 }
 0x89b   : > { %v11480_v2 = vadd.f32 %v3283_v0, %v11038_v15 }
 0x89c   : > { %3934 = vrot.lane.b32.xlu0 %v11431_v22, %s6243_s20  ;;  %3938 = vrot.lane.b32.xlu2 %v11434_v41, %s6243_s20 }
 0x8a0   : > { %v3877_v6 = vpop.permute.xlu2 %3876 }
 0x8a1   : > { %v3880_v62 = vsel %vm15330_vm0, %v11372_v25, %v3877_v6  ;;  %v3894_v17 = vsel %vm15330_vm0, %v3877_v6, %v3849_v7  ;;  %v3287_v7 = vsel %vm15329_vm1, %v11072_v21, %v11082_v27  ;;  %v3888_v21 = vsel %vm15330_vm0, %v3857_v48, %v11362_v42 }
 0x8a2   : > { %v11450_v44 = vadd.f32 %v3894_v17, %v11193_v46  ;;  %v11452_v61 = vadd.f32 %v3880_v62, %v3839_v34  ;;  %v11474_v46 = vadd.f32 %v3893_v60, %v11205_v39  ;;  %v11477_v34 = vadd.f32 %v3287_v7, %v10879_v1 }
 0x8a3   : > { %v3278_v1 = vsel %vm15329_vm1, %v11087_v54, %v11215_v58  ;;  %v3274_v27 = vsel %vm15329_vm1, %v11215_v58, %v11094_v56  ;;  %v11500_v15 = vadd.f32 %v3888_v21, %v11219_v49  ;;  %v3887_v48 = vsel %vm15330_vm0, %v3863_v47, %v11368_v32 }
 0x8a4   : > { %3912 = vrot.lane.b32.xlu1 %v11450_v44, %s6243_s20  ;;  %3940 = vrot.lane.b32.xlu0 %v11452_v61, %s6243_s20  ;;  %v11503_v39 = vadd.f32 %v3278_v1, %v11051_v52  ;;  %v11506_v42 = vadd.f32 %v3274_v27, %v11003_v4  ;;  %v3275_v52 = vsel %vm15329_vm1, %v11090_v18, %v11118_v55 }
 0x8a5   : > { %3372 = vrot.lane.b32.xlu2 %v11455_v51, %s6244_s21  ;;  %v3280_v4 = vsel %vm15329_vm1, %v11078_v33, %v11188_v10  ;;  %v11526_v56 = vadd.f32 %v3887_v48, %v11237_v20  ;;  %v11529_v58 = vadd.f32 %v3275_v52, %v10967_v13  ;;  %v3882_v55 = vsel %vm15330_vm0, %v3869_v14, %v11372_v25 }
 0x8a6   : > { %v11532_v49 = vadd.f32 %v3280_v4, %v11025_v24  ;;  %v3281_v13 = vsel %vm15329_vm1, %v11172_v63, %v11080_v23  ;;  %v3277_v24 = vsel %vm15329_vm1, %v11080_v23, %v11092_v9  ;;  %v11552_v33 = vadd.f32 %v3882_v55, %v11256_v8 }
 0x8a7   : > { %v11555_v20 = vadd.f32 %v3281_v13, %v10939_v12  ;;  %v11558_v25 = vadd.f32 %v3277_v24, %v10917_v57  ;;  %v3881_v47 = vsel %vm15330_vm0, %v3875_v36, %v11376_v37  ;;  %v3272_v12 = vsel %vm15329_vm1, %v11085_v35, %v11099_v3  ;;  %v15910_v3 = vld [vmem:[#allocation32_spill] sm:$0xff] }
 0x8a8   : > { %v11574_v57 = vadd.f32 %v3881_v47, %v11275_v30  ;;  %v11577_v23 = vadd.f32 %v3272_v12, %v10942_v59  ;;  %v3282_v8 = vsel %vm15329_vm1, %v11076_v5, %v11087_v54  ;;  %v3279_v59 = vsel %vm15329_vm1, %v11203_v31, %v11090_v18  ;;  %v15911_v5 = vld [vmem:[#allocation21_spill] sm:$0xff] }
 0x8a9   : > { %v11588_v32 = vadd.f32 %v3282_v8, %v10895_v28  ;;  %v11597_v30 = vadd.f32 %v3279_v59, %v15910_v3  ;;  %v3285_v28 = vsel %vm15329_vm1, %v11074_v26, %v11172_v63  ;;  %v3276_v18 = vsel %vm15329_vm1, %v11188_v10, %v11085_v35  ;;  %v15912_v31 = vld [vmem:[#allocation25_spill] sm:$0xff]  ;;  %v15914_v63 = vld [vmem:[#allocation12_spill] sm:$0xff] }
 0x8aa   : > { %15909 = vst [vmem:[#allocation62_spill] sm:$0xff] %v11577_v23  ;;  %v11606_v54 = vadd.f32 %v3285_v28, %v15911_v5  ;;  %v11615_v11 = vadd.f32 %v3276_v18, %v15912_v31  ;;  %v3273_v26 = vsel %vm15329_vm1, %v11092_v9, %v11229_v53 }
 0x8ab   : > { %v11624_v37 = vadd.f32 %v3273_v26, %v15914_v63  ;;  %v15926_v26 = vld [vmem:[#allocation18_spill] sm:$0xff] }
 0x8ac   : > { %3918 = vrot.lane.b32.xlu1 %v11474_v46, %s6243_s20  ;;  %3374 = vrot.lane.b32.xlu0 %v11477_v34, %s6244_s21  ;;  %15913 = vst [vmem:[#allocation32_spill] sm:$0xff] %v11615_v11  ;;  %v3421_v63 = vsel %vm15927_vm6, %v15926_v26, %v11354_v19  ;;  %vm15968_vm6 = vmmov %vm15957_vm2 }
 0x8ad   : > { %3382 = vrot.lane.b32.xlu2 %v11480_v2, %s6244_s21  ;;  %15915 = vst [vmem:[#allocation21_spill] sm:$0xff] %v11624_v37 }
 0x8b4   : > { %3924 = vrot.lane.b32.xlu1 %v11500_v15, %s6243_s20  ;;  %3388 = vrot.lane.b32.xlu0 %v11503_v39, %s6244_s21 }
 0x8b5   : > { %3396 = vrot.lane.b32.xlu2 %v11506_v42, %s6244_s21 }
 0x8bc   : > { %3930 = vrot.lane.b32.xlu1 %v11526_v56, %s6243_s20  ;;  %3398 = vrot.lane.b32.xlu0 %v11529_v58, %s6244_s21 }
 0x8bd   : > { %3376 = vrot.lane.b32.xlu2 %v11532_v49, %s6244_s21 }
 0x8c4   : > { %3936 = vrot.lane.b32.xlu1 %v11552_v33, %s6243_s20  ;;  %3378 = vrot.lane.b32.xlu0 %v11555_v20, %s6244_s21 }
 0x8c5   : > { %3386 = vrot.lane.b32.xlu2 %v11558_v25, %s6244_s21 }
 0x8cc   : > { %3392 = vrot.lane.b32.xlu0 %v11577_v23, %s6244_s21  ;;  %3942 = vrot.lane.b32.xlu1 %v11574_v57, %s6243_s20 }
 0x8d4   : > { %3380 = vrot.lane.b32.xlu1 %v11588_v32, %s6244_s21 }
 0x8d6   : > { %v11630_v35 = vpop.permute.xlu2 %3914 }
 0x8dc   : > { %3390 = vrot.lane.b32.xlu1 %v11597_v30, %s6244_s21 }
 0x8de   : > { %v11634_v36 = vpop.permute.xlu2 %3920 }
 0x8e4   : > { %3370 = vrot.lane.b32.xlu1 %v11606_v54, %s6244_s21 }
 0x8e6   : > { %v11638_v6 = vpop.permute.xlu2 %3926 }
 0x8ec   : > { %3384 = vrot.lane.b32.xlu1 %v11615_v11, %s6244_s21  ;;  %v15958_v11 = vld [vmem:[#allocation6_spill] sm:$0xff] }
 0x8ee   : > { %v11642_v17 = vpop.permute.xlu2 %3932 }
 0x8f4   : > { %3394 = vrot.lane.b32.xlu1 %v11624_v37, %s6244_s21 }
 0x8f6   : > { %v11628_v14 = vpop.permute.xlu0 %3916  ;;  %v11671_v52 = vpop.permute.xlu2 %3938 }
 0x8fe   : > { %v11632_v10 = vpop.permute.xlu0 %3922 }
 0x8ff   : > { %v11693_v24 = vpop.permute.xlu2 %3372 }
 0x906   : > { %v11636_v40 = vpop.permute.xlu0 %3928 }
 0x907   : > { %v11713_v3 = vpop.permute.xlu2 %3382 }
 0x90e   : > { %v11640_v62 = vpop.permute.xlu0 %3934 }
 0x916   : > { %v3913_v9 = vpop.permute.xlu1 %3912  ;;  %v3941_v53 = vpop.permute.xlu0 %3940 }
 0x917   : > { %v3956_v60 = vsel %vm15329_vm1, %v3913_v9, %v11628_v14  ;;  %v3958_v7 = vsel %vm15329_vm1, %v3941_v53, %v3913_v9  ;;  %v15928_v9 = vld [vmem:[#allocation52_spill] sm:$0xff] }
 0x918   : > { %v11650_v0 = vadd.f32 %v3956_v60, %v11390_v45  ;;  %v11653_v21 = vadd.f32 %v3958_v7, %v11450_v44  ;;  %v15931_v60 = vld [vmem:[#allocation24_spill] sm:$0xff]  ;;  %v15933_v7 = vld [vmem:[#allocation50_spill] sm:$0xff] }
 0x91a   : > { %15916 = vst [vmem:[#allocation25_spill] sm:$0xff] %v11650_v0  ;;  %3980 = vrot.lane.b32.xlu1 %v11650_v0, %s6244_s21  ;;  %3976 = vrot.lane.b32.xlu2 %v11653_v21, %s6244_s21 }
 0x91b   : > { %15917 = vst [vmem:[#allocation12_spill] sm:$0xff] %v11653_v21 }
 0x91e   : > { %v3919_v1 = vpop.permute.xlu1 %3918  ;;  %v11695_v47 = vpop.permute.xlu0 %3374 }
 0x91f   : > { %v3955_v27 = vsel %vm15329_vm1, %v3919_v1, %v11632_v10  ;;  %v3957_v48 = vsel %vm15329_vm1, %v11630_v35, %v3919_v1  ;;  %v15934_v1 = vld [vmem:[#allocation15_spill] sm:$0xff] }
 0x920   : > { %v11666_v45 = vadd.f32 %v3957_v48, %v11474_v46  ;;  %v11669_v44 = vadd.f32 %v3955_v27, %v11403_v50  ;;  %v3426_v27 = vsel %vm15935_vm11, %v15934_v1, %v15933_v7  ;;  %v5963_v48 = vld [vmem:[%s6279_s18 + $0x3c0] sm:$0x1]  ;;  %vm15971_vm11 = vmmov %vm15957_vm2 }
 0x922   : > { %15918 = vst [vmem:[#allocation63_spill] sm:$0xff] %v11666_v45  ;;  %3986 = vrot.lane.b32.xlu1 %v11669_v44, %s6244_s21  ;;  %3982 = vrot.lane.b32.xlu2 %v11666_v45, %s6244_s21  ;;  %v15943_v45 = vld [vmem:[#allocation36_spill] sm:$0xff] }
 0x923   : > { %15919 = vst [vmem:[#allocation64_spill] sm:$0xff] %v11669_v44  ;;  %v11788_v44 = vmul.f32 %v5963_v48, %v5963_v48 }
 0x925   : > { %15952 = vst [vmem:[#allocation18_spill] sm:$0xff] %v11788_v44 }
 0x926   : > { %v3925_v4 = vpop.permute.xlu1 %3924  ;;  %v3389_v28 = vpop.permute.xlu0 %3388 }
 0x927   : > { %v3950_v55 = vsel %vm15329_vm1, %v3925_v4, %v11636_v40  ;;  %v3952_v46 = vsel %vm15329_vm1, %v11634_v36, %v3925_v4  ;;  %v15936_v4 = vld [vmem:[#allocation28_spill] sm:$0xff] }
 0x928   : > { %v11684_v50 = vadd.f32 %v3952_v46, %v11500_v15  ;;  %v11687_v13 = vadd.f32 %v3950_v55, %v11417_v38  ;;  %v11748_v55 = vadd.f32 %v3421_v63, %v15936_v4  ;;  %v15937_v46 = vld [vmem:[#allocation54_spill] sm:$0xff] }
 0x929   : > { %v15946_v4 = vld [vmem:[#allocation46_spill] sm:$0xff] }
 0x92a   : > { %15920 = vst [vmem:[#allocation65_spill] sm:$0xff] %v11684_v50  ;;  %3992 = vrot.lane.b32.xlu1 %v11687_v13, %s6244_s21  ;;  %3988 = vrot.lane.b32.xlu2 %v11684_v50, %s6244_s21 }
 0x92b   : > { %15921 = vst [vmem:[#allocation66_spill] sm:$0xff] %v11687_v13 }
 0x92e   : > { %v3931_v12 = vpop.permute.xlu1 %3930 }
 0x92f   : > { %v3949_v8 = vsel %vm15329_vm1, %v3931_v12, %v11640_v62  ;;  %v3951_v38 = vsel %vm15329_vm1, %v11638_v6, %v3931_v12  ;;  %v15938_v12 = vld [vmem:[#allocation19_spill] sm:$0xff] }
 0x930   : > { %v11704_v15 = vadd.f32 %v3951_v38, %v11526_v56  ;;  %v11707_v59 = vadd.f32 %v3949_v8, %v11431_v22  ;;  %v3416_v8 = vsel %vm15939_vm7, %v15938_v12, %v15937_v46  ;;  %v15940_v38 = vld [vmem:[#allocation33_spill] sm:$0xff]  ;;  %vm15974_vm7 = vmmov %vm15957_vm2 }
 0x932   : > { %15922 = vst [vmem:[#allocation67_spill] sm:$0xff] %v11704_v15  ;;  %3998 = vrot.lane.b32.xlu1 %v11707_v59, %s6244_s21  ;;  %3994 = vrot.lane.b32.xlu2 %v11704_v15, %s6244_s21  ;;  %v15944_v15 = vld [vmem:[#allocation55_spill] sm:$0xff] }
 0x933   : > { %15923 = vst [vmem:[#allocation68_spill] sm:$0xff] %v11707_v59  ;;  %v3423_v63 = vsel %vm15945_vm15, %v15944_v15, %v15943_v45  ;;  %vm15978_vm15 = vmmov %vm15957_vm2 }
 0x936   : > { %v3937_v5 = vpop.permute.xlu1 %3936 }
 0x937   : > { %v3944_v18 = vsel %vm15329_vm1, %v3937_v5, %v3941_v53  ;;  %v3946_v56 = vsel %vm15329_vm1, %v11642_v17, %v3937_v5  ;;  %v3425_v53 = vsel %vm15929_vm12, %v15928_v9, %v15926_v26  ;;  %v15956_v9 = vld [vmem:[#allocation56_spill] sm:$0xff]  ;;  %vm15969_vm12 = vmmov %vm15957_vm2 }
 0x938   : > { %v11721_v22 = vadd.f32 %v3946_v56, %v11552_v33  ;;  %v11724_v31 = vadd.f32 %v3944_v18, %v11452_v61  ;;  %v15930_v33 = vld [vmem:[#allocation53_spill] sm:$0xff]  ;;  %v11755_v5 = vadd.f32 %v3425_v53, %v15940_v38  ;;  %v3419_v23 = vsel %vm15957_vm2, %v15943_v45, %v15956_v9 }
 0x939   : > { %v3424_v61 = vsel %vm15932_vm10, %v15931_v60, %v15930_v33  ;;  %v3420_v18 = vsel %vm15941_vm8, %v15930_v33, %v15938_v12  ;;  %v15942_v56 = vld [vmem:[#allocation5_spill] sm:$0xff]  ;;  %v15950_v33 = vld [vmem:[#allocation51_spill] sm:$0xff]  ;;  %v3397_v12 = vpop.permute.xlu2 %3396  ;;  %vm15970_vm10 = vmmov %vm15957_vm2 }
 0x93a   : > { %15924 = vst [vmem:[#allocation69_spill] sm:$0xff] %v11721_v22  ;;  %4000 = vrot.lane.b32.xlu2 %v11721_v22, %s6244_s21  ;;  %4004 = vrot.lane.b32.xlu1 %v11724_v31, %s6244_s21  ;;  %v11762_v26 = vadd.f32 %v3424_v61, %v15942_v56  ;;  %v3427_v22 = vsel %vm15947_vm3, %v15946_v4, %v15944_v15  ;;  %v15948_v53 = vld [vmem:[#allocation57_spill] sm:$0xff]  ;;  %v11780_v56 = vpop.permute.xlu0 %3398  ;;  %vm15976_vm8 = vmmov %vm15957_vm2 }
 0x93b   : > { %15925 = vst [vmem:[#allocation70_spill] sm:$0xff] %v11724_v31  ;;  %v3422_v38 = vsel %vm15949_vm4, %v15933_v7, %v15948_v53  ;;  %v3414_v61 = vsel %vm15951_vm9, %v15950_v33, %v11693_v24  ;;  %v15953_v7 = vld [vmem:[#allocation49_spill] sm:$0xff]  ;;  %v3402_v50 = vsel %vm15954_vm14, %v3389_v28, %v3397_v12  ;;  %v15955_v31 = vld [vmem:[#allocation60_spill] sm:$0xff]  ;;  %v3430_v45 = vsel %vm15962_vm5, %v3397_v12, %v15934_v1  ;;  %vm15979_vm3 = vmmov %vm15957_vm2 }
 0x93c   : > { %v3434_v0 = vadd.f32 %v3420_v18, %v15953_v7  ;;  %v15961_v18 = vld [vmem:[#allocation31_spill] sm:$0xff]  ;;  %v15965_v1 = vld [vmem:[#allocation8_spill] sm:$0xff]  ;;  %v15967_v7 = vld [vmem:[#allocation9_spill] sm:$0xff] }
 0x93d   : > { %vm15982_vm4 = vmmov %vm15957_vm2 }
 0x93e   : > { %v3943_v59 = vpop.permute.xlu1 %3942  ;;  %vm15984_vm9 = vmmov %vm15957_vm2 }
 0x93f   : > { %v3945_v13 = vsel %vm15329_vm1, %v11671_v52, %v3943_v59  ;;  %v3959_v15 = vsel %vm15329_vm1, %v3943_v59, %v11630_v35  ;;  %v11804_v35 = vadd.f32 %v3427_v22, %v15958_v11  ;;  %v15959_v59 = vld [vmem:[#allocation40_spill] sm:$0xff]  ;;  %vm15985_vm14 = vmmov %vm15957_vm2 }
 0x940   : > { %v11794_v21 = vadd.f32 %v3959_v15, %v15955_v31  ;;  %v11797_v37 = vadd.f32 %v3945_v13, %v11574_v57  ;;  %v11807_v48 = vadd.f32 %v3423_v63, %v15959_v59  ;;  %v3418_v31 = vsel %vm15960_vm13, %v15948_v53, %v15950_v33  ;;  %v15963_v11 = vld [vmem:[#allocation44_spill] sm:$0xff]  ;;  %v15964_v63 = vld [vmem:[#allocation10_spill] sm:$0xff]  ;;  %vm15989_vm13 = vmmov %vm15957_vm2 }
 0x941   : > { %v3450_v57 = vadd.f32 %v3422_v38, %v15961_v18  ;;  %v3452_v13 = vadd.f32 %v3414_v61, %v11455_v51  ;;  %v3449_v22 = vadd.f32 %v3426_v27, %v15963_v11  ;;  %v11824_v15 = vadd.f32 %v3416_v8, %v15964_v63  ;;  %v15966_v61 = vld [vmem:[#allocation3_spill] sm:$0xff]  ;;  %v5957_v27 = vld [vmem:[%s6279_s18 + $0x390] sm:$0xff]  ;;  %vm15990_vm5 = vmmov %vm15957_vm2 }
 0x942   : > { %3978 = vrot.lane.b32.xlu0 %v11794_v21, %s6244_s21  ;;  %4006 = vrot.lane.b32.xlu2 %v11797_v37, %s6244_s21  ;;  %v3455_v53 = vadd.f32 %v3402_v50, %v11506_v42  ;;  %v11831_v51 = vadd.f32 %v11748_v55, %v11755_v5  ;;  %v3459_v38 = vadd.f32 %v3419_v23, %v15965_v1 }
 0x943   : > { %4468 = vrot.lane.b32.xlu1 %v11788_v44, %s6242_s19  ;;  %v11835_v33 = vadd.f32 %v3434_v0, %v11762_v26  ;;  %v3451_v12 = vadd.f32 %v3418_v31, %v15966_v61  ;;  %v11840_v8 = vadd.f32 %v11824_v15, %v3434_v0  ;;  %v11844_v42 = vadd.f32 %v11807_v48, %v11804_v35 }
 0x944   : > { %v3954_v50 = vsel %vm15329_vm1, %v11628_v14, %v11634_v36  ;;  %v3448_v23 = vadd.f32 %v3430_v45, %v15967_v7  ;;  %v3482_v59 = vadd.f32 %v3450_v57, %v3449_v22  ;;  %v3411_v31 = vsel %vm15968_vm6, %v11695_v47, %v11713_v3  ;;  %vm15991_vm6 = vmmov %vm15957_vm2 }
 0x945   : > { %v3484_v18 = vadd.f32 %v3452_v13, %v3451_v12  ;;  %v3415_v0 = vsel %vm15969_vm12, %v15956_v9, %v11695_v47  ;;  %v11864_v36 = vmul.f32 %v5957_v27, %v5957_v27  ;;  %v11867_v45 = vadd.f32 %v3954_v50, %v11393_v16  ;;  %v11877_v27 = vpop.permute.xlu0 %3378  ;;  %v15973_v16 = vld [vmem:[#allocation59_spill] sm:$0xff]  ;;  %vm15992_vm12 = vmmov %vm15957_vm2 }
 0x946   : > { %v3381_v11 = vpop.permute.xlu1 %3380  ;;  %v3480_v63 = vadd.f32 %v3455_v53, %v3448_v23  ;;  %v3953_v61 = vsel %vm15329_vm1, %v11632_v10, %v11638_v6  ;;  %v3483_v7 = vadd.f32 %v3451_v12, %v3450_v57  ;;  %v3460_v44 = vadd.f32 %v3415_v0, %v11477_v34  ;;  %v11895_v12 = vld [vmem:[%s6279_s18 + $0x3d8] sm:$0x1] }
 0x947   : > { %v3406_v1 = vsel %vm15970_vm10, %v3381_v11, %v3389_v28  ;;  %v3410_v14 = vsel %vm15971_vm11, %v11693_v24, %v3381_v11  ;;  %15972 = vst [vmem:[#allocation53_spill] sm:$0xff] %v11864_v36  ;;  %v3481_v28 = vadd.f32 %v3449_v22, %v3448_v23  ;;  %v3461_v24 = vadd.f32 %v3411_v31, %v11480_v2 }
 0x948   : > { %v3453_v47 = vadd.f32 %v3410_v14, %v11588_v32  ;;  %v3454_v9 = vadd.f32 %v3406_v1, %v11503_v39  ;;  %v3412_v50 = vsel %vm15974_vm7, %v15937_v46, %v15973_v16  ;;  %v3516_v39 = vadd.f32 %v3484_v18, %v3482_v59  ;;  %v15975_v32 = vld [vmem:[#allocation61_spill] sm:$0xff]  ;;  %v15977_v14 = vld [vmem:[#allocation34_spill] sm:$0xff] }
 0x949   : > { %v11886_v57 = vadd.f32 %v3953_v61, %v15975_v32  ;;  %v3514_v34 = vadd.f32 %v3482_v59, %v3480_v63  ;;  %v3431_v2 = vsel %vm15976_vm8, %v11780_v56, %v15946_v4  ;;  %v3515_v23 = vadd.f32 %v3483_v7, %v3481_v28 }
 0x94a   : > { %v3485_v11 = vadd.f32 %v3453_v47, %v3452_v13  ;;  %v3486_v10 = vadd.f32 %v3454_v9, %v3453_v47  ;;  %v3487_v6 = vadd.f32 %v3455_v53, %v3454_v9  ;;  %3984 = vrot.lane.b32.xlu0 %v11867_v45, %s6244_s21  ;;  %v3492_v31 = vadd.f32 %v3460_v44, %v3459_v38 }
 0x94b   : > { %4482 = vrot.lane.b32.xlu1 %v11864_v36, %s6242_s19  ;;  %v3493_v0 = vadd.f32 %v3461_v24, %v3460_v44  ;;  %v3456_v59 = vadd.f32 %v3431_v2, %v15977_v14  ;;  %v11908_v44 = vpop.permute.xlu2 %3376 }
 0x94c   : > { %v3512_v46 = vadd.f32 %v3486_v10, %v3480_v63  ;;  %v3513_v13 = vadd.f32 %v3487_v6, %v3481_v28  ;;  %v3517_v22 = vadd.f32 %v3485_v11, %v3483_v7  ;;  %v3518_v53 = vadd.f32 %v3486_v10, %v3484_v18 }
 0x94d   : > { %v3519_v1 = vadd.f32 %v3487_v6, %v3485_v11  ;;  %v11906_v7 = vmul.f32 %v11895_v12, %v11895_v12 }
 0x94e   : > { %v3536_v61 = vadd.f32 %v3516_v39, %v3512_v46  ;;  %v3537_v47 = vadd.f32 %v3517_v22, %v3513_v13  ;;  %v3538_v9 = vadd.f32 %v3518_v53, %v3514_v34  ;;  %v3391_v32 = vpop.permute.xlu1 %3390  ;;  %v15981_v39 = vld [vmem:[#allocation58_spill] sm:$0xff]  ;;  %v15983_v46 = vld [vmem:[#allocation48_spill] sm:$0xff]  ;;  %v3948_v22 = vsel %vm15329_vm1, %v11636_v40, %v11642_v17 }
 0x94f   : > { %v3539_v4 = vadd.f32 %v3519_v1, %v3515_v23  ;;  %v3403_v63 = vsel %vm15978_vm15, %v3391_v32, %v11780_v56  ;;  %v3407_v18 = vsel %vm15979_vm3, %v11713_v3, %v3391_v32  ;;  %15980 = vst [vmem:[#allocation24_spill] sm:$0xff] %v11906_v7  ;;  %v3491_v56 = vadd.f32 %v3459_v38, %v11807_v48  ;;  %vm15997_vm15 = vmmov %vm15957_vm2 }
 0x950   : > { %v11910_v28 = vmax.f32 %v3536_v61, 1e-16  ;;  %v11912_v11 = vmax.f32 %v3537_v47, 1e-16  ;;  %v11914_v10 = vmax.f32 %v3538_v9, 1e-16  ;;  %v3462_v6 = vadd.f32 %v3407_v18, %v11597_v30  ;;  %vm15999_vm3 = vmmov %vm15957_vm2 }
 0x951   : > { %v3417_v3 = vsel %vm15982_vm4, %v11354_v19, %v15981_v39  ;;  %v11922_v34 = vmax.f32 %v3539_v4, 1e-16  ;;  %v3463_v2 = vadd.f32 %v3403_v63, %v11529_v58  ;;  %v3436_v13 = vadd.f32 %v3412_v50, %v15983_v46  ;;  %v11938_v58 = vpop.permute.xlu0 %3392  ;;  %v11946_v50 = vld [vmem:[%s6279_s18 + $0x3a8] sm:$0xff]  ;;  %v15986_v47 = vld [vmem:[#allocation29_spill] sm:$0xff] }
 0x952   : > { %v3489_v30 = vadd.f32 %v11804_v35, %v3456_v59  ;;  %6104 = vrsqrt.f32 %v11910_v28  ;;  %3990 = vrot.lane.b32.xlu0 %v11886_v57, %s6244_s21  ;;  %v3408_v19 = vsel %vm15984_vm9, %v15973_v16, %v11908_v44  ;;  %v3494_v38 = vadd.f32 %v3462_v6, %v3461_v24 }
 0x953   : > { %6106 = vrsqrt.f32 %v11912_v11  ;;  %v3488_v48 = vadd.f32 %v3463_v2, %v3456_v59  ;;  %4492 = vrot.lane.b32.xlu1 %v11906_v7, %s6242_s19  ;;  %v3524_v40 = vadd.f32 %v3492_v31, %v11844_v42  ;;  %v3525_v17 = vadd.f32 %v3493_v0, %v3491_v56  ;;  %v12100_v7 = vld [vmem:[%s6279_s18 + $0x3f0] sm:$0x1] }
 0x954   : > { %6108 = vrsqrt.f32 %v11914_v10  ;;  %v3495_v35 = vadd.f32 %v3463_v2, %v3462_v6  ;;  %v3526_v23 = vadd.f32 %v3494_v38, %v3492_v31  ;;  %v3523_v1 = vadd.f32 %v3491_v56, %v3489_v30 }
 0x955   : > { %6110 = vrsqrt.f32 %v11922_v34  ;;  %v3520_v16 = vadd.f32 %v3494_v38, %v3488_v48  ;;  %v3522_v53 = vadd.f32 %v11844_v42, %v3488_v48  ;;  %v3428_v24 = vsel %vm15985_vm14, %v11938_v58, %v15931_v60 }
 0x956   : > { %v3521_v14 = vadd.f32 %v3495_v35, %v3489_v30  ;;  %v3527_v59 = vadd.f32 %v3495_v35, %v3493_v0  ;;  %v3371_v61 = vpop.permute.xlu1 %3370  ;;  %v3443_v9 = vadd.f32 %v3417_v3, %v15986_v47  ;;  %v11957_v63 = vmul.f32 %v11946_v50, %v11946_v50  ;;  %v15988_v3 = vld [vmem:[#allocation13_spill] sm:$0xff] }
 0x957   : > { %v3540_v32 = vadd.f32 %v3524_v40, %v3520_v16  ;;  %v3542_v4 = vadd.f32 %v3526_v23, %v3522_v53  ;;  %v11962_v42 = vadd.f32 %v3948_v22, %v11420_v43  ;;  %v11965_v31 = vadd.f32 %v3408_v19, %v11532_v49 }
 0x958   : > { %15987 = vst [vmem:[#allocation50_spill] sm:$0xff] %v11957_v63  ;;  %v11959_v18 = vpop.eup %6104  ;;  %v3541_v60 = vadd.f32 %v3525_v17, %v3521_v14  ;;  %v3543_v6 = vadd.f32 %v3527_v59, %v3523_v1  ;;  %v11970_v56 = vadd.f32 %v3436_v13, %v11824_v15  ;;  %v3432_v2 = vadd.f32 %v3428_v24, %v15988_v3 }
 0x959   : > { %v11967_v0 = vpop.eup %6106  ;;  %v3641_v46 = vmul.f32 %v11959_v18, %v11910_v28  ;;  %v11975_v30 = vmax.f32 %v3540_v32, 1e-16  ;;  %v3947_v43 = vsel %vm15329_vm1, %v11640_v62, %v11671_v52  ;;  %v11987_v15 = vmax.f32 %v3542_v4, 1e-16  ;;  %v12004_v52 = vpop.permute.xlu2 %3386 }
 0x95a   : > { %v11977_v48 = vpop.eup %6108  ;;  %v3651_v49 = vmul.f32 %v11967_v0, %v11912_v11  ;;  %v11985_v22 = vmax.f32 %v3541_v60, 1e-16  ;;  %3996 = vrot.lane.b32.xlu0 %v11962_v42, %s6244_s21  ;;  %v11996_v17 = vmax.f32 %v3543_v6, 1e-16  ;;  %v12002_v62 = vadd.f32 %v11965_v31, %v3436_v13 }
 0x95b   : > { %v11991_v19 = vpop.eup %6110  ;;  %v3642_v38 = vmul.f32 %v11959_v18, %v3641_v46  ;;  %v3661_v40 = vmul.f32 %v11977_v48, %v11914_v10  ;;  %6112 = vrsqrt.f32 %v11975_v30  ;;  %4506 = vrot.lane.b32.xlu1 %v11957_v63, %s6242_s19  ;;  %v3413_v53 = vsel %vm15957_vm2, %v15981_v39, %v3371_v61  ;;  %v12054_v46 = vld [vmem:[%s6279_s18 + $0x388] sm:$0xff] }
 0x95c   : > { %v3652_v35 = vmul.f32 %v11967_v0, %v3651_v49  ;;  %v3671_v16 = vmul.f32 %v11991_v19, %v11922_v34  ;;  %v3405_v23 = vsel %vm15989_vm13, %v11877_v27, %v12004_v52  ;;  %v3465_v1 = vadd.f32 %v11762_v26, %v3432_v2 }
 0x95d   : > { %6114 = vrsqrt.f32 %v11985_v22  ;;  %v3409_v13 = vsel %vm15990_vm5, %v3371_v61, %v11877_v27  ;;  %v12021_v24 = vmul.f32 0.5, %v3642_v38  ;;  %v3662_v14 = vmul.f32 %v11977_v48, %v3661_v40 }
 0x95e   : > { %v3672_v59 = vmul.f32 %v11991_v19, %v3671_v16  ;;  %6116 = vrsqrt.f32 %v11987_v15  ;;  %v3385_v39 = vpop.permute.xlu1 %3384  ;;  %v12027_v47 = vadd.f32 %v3443_v9, %v11748_v55  ;;  %v12029_v26 = vmul.f32 0.5, %v3652_v35  ;;  %v15994_v35 = vld [vmem:[#allocation62_spill] sm:$0xff] }
 0x95f   : > { %6118 = vrsqrt.f32 %v11996_v17  ;;  %v3444_v32 = vadd.f32 %v3413_v53, %v11606_v54  ;;  %v3500_v27 = vadd.f32 %v11970_v56, %v11835_v33  ;;  %v12036_v61 = vadd.f32 %v3947_v43, %v11434_v41 }
 0x960   : > { %v3501_v4 = vadd.f32 %v12002_v62, %v11840_v8  ;;  %v3445_v60 = vadd.f32 %v3409_v13, %v11555_v20  ;;  %v12044_v55 = vadd.f32 %v3405_v23, %v11558_v25  ;;  %v3499_v3 = vadd.f32 %v11840_v8, %v3465_v1 }
 0x961   : > { %v12041_v6 = vpop.eup %6112  ;;  %v3400_v54 = vsel %vm15991_vm6, %v3385_v39, %v11938_v58  ;;  %v3404_v41 = vsel %vm15992_vm12, %v11908_v44, %v3385_v39  ;;  %v12057_v20 = vmul.f32 0.5, %v3662_v14  ;;  %v12059_v49 = vmul.f32 0.5, %v3672_v59  ;;  %v15993_v44 = vld [vmem:[#allocation32_spill] sm:$0xff] }
 0x962   : > { %v3681_v25 = vmul.f32 %v12041_v6, %v11975_v30  ;;  %4002 = vrot.lane.b32.xlu0 %v12036_v61, %s6244_s21  ;;  %v3476_v38 = vadd.f32 %v3444_v32, %v3443_v9  ;;  %v3438_v40 = vadd.f32 %v3404_v41, %v15993_v44  ;;  %v3439_v16 = vadd.f32 %v3400_v54, %v15994_v35 }
 0x963   : > { %v12065_v8 = vpop.eup %6114  ;;  %v12075_v14 = vadd.f32 %v3445_v60, %v3444_v32  ;;  %v12079_v59 = vmul.f32 %v12054_v46, %v12054_v46  ;;  %v12086_v54 = vadd.f32 %v12044_v55, %v3445_v60  ;;  %vm3647_vm10 = vweird.f32 %v11959_v18 }
 0x964   : > { %v12070_v53 = vpop.eup %6116  ;;  %v3682_v23 = vmul.f32 %v12041_v6, %v3681_v25  ;;  %v3691_v13 = vmul.f32 %v12065_v8, %v11985_v22  ;;  %v3464_v41 = vadd.f32 %v3439_v16, %v3432_v2  ;;  %v3470_v25 = vadd.f32 %v3438_v40, %v11965_v31 }
 0x965   : > { %15995 = vst [vmem:[#allocation15_spill] sm:$0xff] %v12079_v59  ;;  %v12081_v39 = vpop.eup %6118  ;;  %v3701_v9 = vmul.f32 %v12070_v53, %v11987_v15  ;;  %4474 = vrot.lane.b32.xlu2 %v12079_v59, %s6242_s19  ;;  %v3471_v63 = vadd.f32 %v3439_v16, %v3438_v40  ;;  %v12104_v32 = vadd.f32 %v3476_v38, %v11831_v51  ;;  %vm3657_vm11 = vweird.f32 %v11967_v0 }
 0x966   : > { %v12091_v35 = vmul.f32 0.5, %v3682_v23  ;;  %v3692_v58 = vmul.f32 %v12065_v8, %v3691_v13  ;;  %v3711_v43 = vmul.f32 %v12081_v39, %v11996_v17  ;;  %v3496_v60 = vadd.f32 %v3470_v25, %v3464_v41 }
 0x967   : > { %v3498_v2 = vadd.f32 %v11835_v33, %v3464_v41  ;;  %v3702_v31 = vmul.f32 %v12070_v53, %v3701_v9  ;;  %v12108_v23 = vadd.f32 %v12075_v14, %v12027_v47  ;;  %v3502_v13 = vadd.f32 %v3470_v25, %v11970_v56  ;;  %v3395_v9 = vpop.permute.xlu1 %3394 }
 0x968   : > { %v12113_v40 = vadd.f32 %v12086_v54, %v3476_v38  ;;  %v3497_v33 = vadd.f32 %v3471_v63, %v3465_v1  ;;  %v3503_v16 = vadd.f32 %v3471_v63, %v12002_v62  ;;  %v3528_v41 = vadd.f32 %v3500_v27, %v3496_v60  ;;  %v5965_v27 = vld [vmem:[%s6279_s18 + $0x3d0] sm:$0x1] }
 0x969   : > { %v12118_v36 = vmul.f32 0.5, %v3692_v58  ;;  %v3530_v59 = vadd.f32 %v3502_v13, %v3498_v2  ;;  %v12122_v56 = vmul.f32 %v12100_v7, %v12100_v7  ;;  %vm3646_vm7 = vweird.f32 %v11910_v28  ;;  %v12227_v28 = vld [vmem:[%s6279_s18 + $0x348] sm:$0xff] }
 0x96a   : > { %v3712_v1 = vmul.f32 %v12081_v39, %v3711_v43  ;;  %v3529_v38 = vadd.f32 %v3501_v4, %v3497_v33  ;;  %v3531_v63 = vadd.f32 %v3503_v16, %v3499_v3  ;;  %v12126_v62 = vmax.f32 %v3528_v41, 1e-16  ;;  %v15998_v43 = vld [vmem:[#allocation52_spill] sm:$0xff]  ;;  %v5955_v3 = vld [vmem:[%s6279_s18 + $0x380] sm:$0xff] }
 0x96b   : > { %15996 = vst [vmem:[#allocation28_spill] sm:$0xff] %v12122_v56  ;;  %vm3656_vm8 = vweird.f32 %v11912_v11  ;;  %v12130_v25 = vmul.f32 0.5, %v3702_v31  ;;  %v12132_v58 = vmax.f32 %v3530_v59, 1e-16  ;;  %4516 = vrot.lane.b32.xlu1 %v12122_v56, %s6242_s19  ;;  %v3401_v60 = vsel %vm15997_vm15, %v12004_v52, %v3395_v9  ;;  %v16000_v59 = vld [vmem:[#allocation27_spill] sm:$0xff]  ;;  %v12151_v33 = vld [vmem:[%s6279_s18 + $0x300] sm:$0xff]  ;;  %vm12213_vm15 = vmor %vm3646_vm7, %vm3647_vm10 }
 0x96c   : > { %v3429_v4 = vsel %vm15999_vm3, %v3395_v9, %v15998_v43  ;;  %vm3687_vm4 = vweird.f32 %v12041_v6  ;;  %v12144_v2 = vmax.f32 %v3529_v38, 1e-16  ;;  %v12146_v31 = vmax.f32 %v3531_v63, 1e-16  ;;  %v16001_v52 = vld [vmem:[#allocation21_spill] sm:$0xff]  ;;  %vm12235_vm10 = vmor %vm3656_vm8, %vm3657_vm11  ;;  %v12465_v56 = vld [vmem:[%s6279_s18 + $0x330] sm:$0xff] }
 0x96d   : > { %6120 = vrsqrt.f32 %v12126_v62  ;;  %v3440_v13 = vadd.f32 %v3429_v4, %v16000_v59  ;;  %vm3697_vm9 = vweird.f32 %v12065_v8  ;;  %v3447_v16 = vadd.f32 %v3401_v60, %v16001_v52 }
 0x96e   : > { %6122 = vrsqrt.f32 %v12132_v58  ;;  %v12157_v41 = vpack.c.bf16 %v11895_v12, %v5965_v27  ;;  %v12159_v9 = vmul.f32 %v5965_v27, %v5965_v27  ;;  %vm3686_vm14 = vweird.f32 %v11975_v30 }
 0x96f   : > { %6124 = vrsqrt.f32 %v12144_v2  ;;  %v3473_v38 = vadd.f32 %v11755_v5, %v3440_v13  ;;  %v12165_v63 = vpack.c.bf16 %v12054_v46, %v5955_v3  ;;  %v12167_v43 = vmul.f32 %v5955_v3, %v5955_v3  ;;  %v5959_v5 = vld [vmem:[%s6279_s18 + $0x3a0] sm:$0xff]  ;;  %v5964_v46 = vld [vmem:[%s6279_s18 + $0x3c8] sm:$0x1]  ;;  %vm12271_vm11 = vmor %vm3686_vm14, %vm3687_vm4 }
 0x970   : > { %16002 = vst [vmem:[#allocation54_spill] sm:$0xff] %v12157_v41  ;;  %v3694_v4 = vsub.f32 1.5, %v12118_v36  ;;  %vm3696_vm2 = vweird.f32 %v11985_v22  ;;  %v3472_v60 = vadd.f32 %v3447_v16, %v3440_v13  ;;  %v3479_v12 = vadd.f32 %v3447_v16, %v12044_v55  ;;  %4484 = vrot.lane.b32.xlu2 %v12159_v9, %s6242_s19 }
 0x971   : > { %16003 = vst [vmem:[#allocation19_spill] sm:$0xff] %v12165_v63  ;;  %v12176_v27 = vmul.f32 %v12151_v33, %v12151_v33  ;;  %vm3667_vm13 = vweird.f32 %v11977_v48  ;;  %v12181_v3 = vmul.f32 0.5, %v3712_v1  ;;  %v3507_v36 = vadd.f32 %v12027_v47, %v3473_v38  ;;  %4466 = vrot.lane.b32.xlu0 %v12167_v43, %s6242_s19  ;;  %vm3698_vm8 = vmor %vm3696_vm2, %vm3697_vm9 }
 0x972   : > { %v12187_v55 = vpack.c.bf16 %v11946_v50, %v5959_v5  ;;  %vm3677_vm5 = vweird.f32 %v11991_v19  ;;  %v3504_v59 = vadd.f32 %v12086_v54, %v3472_v60  ;;  %v3505_v13 = vadd.f32 %v3479_v12, %v3473_v38 }
 0x973   : > { %16004 = vst [vmem:[#allocation33_spill] sm:$0xff] %v12176_v27  ;;  %v3506_v52 = vadd.f32 %v11831_v51, %v3472_v60  ;;  %v3511_v16 = vadd.f32 %v3479_v12, %v12075_v14  ;;  %v12194_v1 = vpop.eup %6120  ;;  %vm3666_vm6 = vweird.f32 %v11914_v10  ;;  %vm3707_vm12 = vweird.f32 %v12070_v53  ;;  %4462 = vrot.lane.b32.xlu1 %v12176_v27, %s6242_s19 }
 0x974   : > { %16005 = vst [vmem:[#allocation5_spill] sm:$0xff] %v12187_v55  ;;  %6126 = vrsqrt.f32 %v12146_v31  ;;  %v12199_v50 = vmul.f32 %v5959_v5, %v5959_v5  ;;  %v16006_v47 = vsub.f32 1.5, %v12021_v24  ;;  %v16007_v51 = vsub.f32 1.5, %v12029_v26  ;;  %v12207_v38 = vpop.eup %6122  ;;  %vm12314_vm4 = vmor %vm3666_vm6, %vm3667_vm13  ;;  %v5962_v55 = vld [vmem:[%s6279_s18 + $0x3b8] sm:$0xff]  ;;  %v12426_v41 = vpop.permute.xlu2 %3976 }
 0x975   : > { %vm3676_vm3 = vweird.f32 %v11922_v34  ;;  %vm3717_vm1 = vweird.f32 %v12081_v39  ;;  %v3561_v24 = vmul.f32 %v12194_v1, %v12126_v62  ;;  %v3532_v26 = vadd.f32 %v12104_v32, %v3504_v59  ;;  %v16030_v34 = vld [vmem:[#allocation35_spill] sm:$0xff] }
 0x976   : > { %v3645_v54 = vmul.f32 %v11959_v18, %v16006_v47  ;;  %v3655_v14 = vmul.f32 %v11967_v0, %v16007_v51  ;;  %v3533_v12 = vadd.f32 %v12108_v23, %v3505_v13  ;;  %v3534_v5 = vadd.f32 %v12113_v40, %v3506_v52  ;;  %v12229_v47 = vpop.eup %6124  ;;  %vm12332_vm9 = vmor %vm3676_vm3, %vm3677_vm5 }
 0x977   : > { %vm3706_vm7 = vweird.f32 %v11987_v15  ;;  %v3714_v32 = vsub.f32 1.5, %v12181_v3  ;;  %v3581_v23 = vmul.f32 %v12207_v38, %v12132_v58  ;;  %v3535_v40 = vadd.f32 %v3511_v16, %v3507_v36 }
 0x978   : > { %v12243_v59 = vmul.f32 %v5964_v46, %v5964_v46  ;;  %vm3716_vm0 = vweird.f32 %v11996_v17  ;;  %v12246_v13 = vmax.f32 %v3532_v26, 1e-16  ;;  %v12248_v52 = vmax.f32 %v3533_v12, 1e-16  ;;  %4498 = vrot.lane.b32.xlu2 %v12199_v50, %s6242_s19  ;;  %v16016_v26 = vld [vmem:[#allocation38_spill] sm:$0xff]  ;;  %vm12349_vm14 = vmor %vm3706_vm7, %vm3707_vm12 }
 0x979   : > { %v3649_v11 = vsel %vm12213_vm15, %v11959_v18, %v3645_v54  ;;  %v3659_v3 = vsel %vm12235_vm10, %v11967_v0, %v3655_v14  ;;  %v12257_v44 = vmul.f32 %v12194_v1, %v3561_v24  ;;  %v12259_v36 = vmax.f32 %v3534_v5, 1e-16  ;;  %v16017_v5 = vld [vmem:[#allocation30_spill] sm:$0xff]  ;;  %vm12368_vm2 = vmor %vm3716_vm0, %vm3717_vm1 }
 0x97a   : > { %v12261_v46 = vmax.f32 %v3535_v40, 1e-16  ;;  %v12265_v16 = vmul.f32 %v12227_v28, %v12227_v28  ;;  %v3571_v0 = vmul.f32 %v12229_v47, %v12144_v2  ;;  %6128 = vrsqrt.f32 %v12246_v13  ;;  %v12284_v24 = vpop.eup %6126  ;;  %4476 = vrot.lane.b32.xlu0 %v12243_v59, %s6242_s19 }
 0x97b   : > { %v16015_v54 = vsub.f32 1.5, %v12091_v35  ;;  %v3695_v60 = vmul.f32 %v12065_v8, %v3694_v4  ;;  %v12291_v30 = vmul.f32 %v12207_v38, %v3581_v23  ;;  %6130 = vrsqrt.f32 %v12248_v52 }
 0x97c   : > { %16012 = vst [vmem:[#allocation36_spill] sm:$0xff] %v12265_v16  ;;  %v12296_v35 = vpack.c.bf16 %v3659_v3, %v3649_v11  ;;  %v3744_v12 = vunpack.c.l.bf16 %v16016_v26  ;;  %6132 = vrsqrt.f32 %v12259_v36  ;;  %v3752_v51 = vunpack.c.l.bf16 %v16017_v5  ;;  %4472 = vrot.lane.b32.xlu1 %v12265_v16, %s6242_s19  ;;  %v5947_v16 = vld [vmem:[%s6279_s18 + $0x340] sm:$0xff] }
 0x97d   : > { %v3685_v14 = vmul.f32 %v12041_v6, %v16015_v54  ;;  %v3699_v22 = vsel %vm3698_vm8, %v12065_v8, %v3695_v60  ;;  %6134 = vrsqrt.f32 %v12261_v46  ;;  %v3745_v11 = vunpack.c.h.bf16 %v16016_v26 }
 0x97e   : > { %v15333_v40 = vunpack.c.l.bf16 %v12296_v35  ;;  %v15331_v8 = vunpack.c.h.bf16 %v12296_v35  ;;  %v16020_v18 = vsub.f32 1.5, %v12057_v20  ;;  %v3591_v26 = vmul.f32 %v12284_v24, %v12146_v31 }
 0x97f   : > { %v3689_v4 = vsel %vm12271_vm11, %v12041_v6, %v3685_v14  ;;  %v3753_v6 = vunpack.c.h.bf16 %v16017_v5  ;;  %v16021_v14 = vsub.f32 1.5, %v12059_v49  ;;  %vm3567_vm0 = vweird.f32 %v12194_v1 }
 0x980   : > { %v12306_v23 = vpack.c.bf16 %v3699_v22, %v3689_v4  ;;  %v3665_v54 = vmul.f32 %v11977_v48, %v16020_v18  ;;  %v16024_v22 = vsub.f32 1.5, %v12130_v25  ;;  %v12343_v5 = vpop.eup %6128  ;;  %v3792_v18 = vmul.f32 %v15333_v40, %v3744_v12 }
 0x981   : > { %v3675_v60 = vmul.f32 %v11991_v19, %v16021_v14  ;;  %v12362_v20 = vpop.eup %6130  ;;  %vm3566_vm1 = vweird.f32 %v12126_v62  ;;  %vm3576_vm13 = vweird.f32 %v12144_v2  ;;  %vm3577_vm5 = vweird.f32 %v12229_v47 }
 0x982   : > { %v15332_v4 = vunpack.c.l.bf16 %v12306_v23  ;;  %v3705_v49 = vmul.f32 %v12070_v53, %v16024_v22  ;;  %v3669_v14 = vsel %vm12314_vm4, %v11977_v48, %v3665_v54  ;;  %v3715_v22 = vmul.f32 %v12081_v39, %v3714_v32  ;;  %v12381_v17 = vpop.eup %6132  ;;  %vm12490_vm6 = vmor %vm3566_vm1, %vm3567_vm0 }
 0x983   : > { %v3679_v25 = vsel %vm12332_vm9, %v11991_v19, %v3675_v60  ;;  %v3793_v48 = vmul.f32 %v15331_v8, %v3745_v11  ;;  %v16029_v19 = vunpack.c.h.bf16 %v12306_v23  ;;  %v3572_v54 = vmul.f32 %v12229_v47, %v3571_v0  ;;  %vm3578_vm7 = vmor %vm3576_vm13, %vm3577_vm5 }
 0x984   : > { %v3800_v12 = vmul.f32 %v15332_v4, %v3752_v51  ;;  %v3709_v32 = vsel %vm12349_vm14, %v12070_v53, %v3705_v49  ;;  %v3601_v60 = vmul.f32 %v12343_v5, %v12246_v13  ;;  %v3719_v51 = vsel %vm12368_vm2, %v12081_v39, %v3715_v22  ;;  %v16031_v39 = vld [vmem:[#allocation45_spill] sm:$0xff] }
 0x985   : > { %v3801_v3 = vmul.f32 %v16029_v19, %v3753_v6  ;;  %v12389_v11 = vpack.c.bf16 %v3679_v25, %v3669_v14  ;;  %v12391_v6 = vpop.eup %6134  ;;  %v3611_v10 = vmul.f32 %v12362_v20, %v12248_v52  ;;  %v3746_v19 = vunpack.c.l.bf16 %v16030_v34  ;;  %v5968_v25 = vld [vmem:[%s6279_s18 + $0x3e8] sm:$0x1]  ;;  %v5958_v22 = vld [vmem:[%s6279_s18 + $0x398] sm:$0xff] }
 0x986   : > { %v3816_v53 = vpack.c.bf16 %v3800_v12, %v3792_v18  ;;  %v12397_v0 = vmul.f32 %v12284_v24, %v3591_v26  ;;  %v3621_v8 = vmul.f32 %v12381_v17, %v12259_v36  ;;  %v12401_v15 = vpack.c.bf16 %v3719_v51, %v3709_v32 }
 0x987   : > { %v3817_v49 = vpack.c.bf16 %v3801_v3, %v3793_v48  ;;  %v3754_v14 = vunpack.c.l.bf16 %v16031_v39  ;;  %v3631_v4 = vmul.f32 %v12391_v6, %v12261_v46  ;;  %v15337_v18 = vunpack.c.l.bf16 %v12389_v11  ;;  %v12412_v48 = vld [vmem:[%s6279_s18 + $0x318] sm:$0xff] }
 0x988   : > { %4226 = vmatpush.bf16.xpose.msra.mxu2 %v3816_v53  ;;  %v3747_v26 = vunpack.c.h.bf16 %v16030_v34  ;;  %v3755_v12 = vunpack.c.h.bf16 %v16031_v39  ;;  %v3602_v3 = vmul.f32 %v12343_v5, %v3601_v60  ;;  %v15342_v32 = vunpack.c.l.bf16 %v12401_v15 }
 0x989   : > { %4240 = vmatpush.bf16.xpose.msra.mxu3 %v3817_v49  ;;  %v15341_v51 = vunpack.c.h.bf16 %v12389_v11  ;;  %v15340_v53 = vunpack.c.h.bf16 %v12401_v15  ;;  %v3612_v49 = vmul.f32 %v12362_v20, %v3611_v10  ;;  %v3794_v34 = vmul.f32 %v15337_v18, %v3746_v19  ;;  %v5967_v18 = vld [vmem:[%s6279_s18 + $0x3e0] sm:$0x1] }
 0x98a   : > { %v12421_v40 = vmul.f32 %v5968_v25, %v5968_v25  ;;  %v12423_v39 = vmul.f32 %v5958_v22, %v5958_v22  ;;  %v3802_v60 = vmul.f32 %v15342_v32, %v3754_v14  ;;  %v12436_v19 = vmul.f32 %v12412_v48, %v12412_v48  ;;  %v12440_v22 = vld [vmem:[%s6279_s18 + $0x360] sm:$0xff] }
 0x98b   : > { %v3795_v63 = vmul.f32 %v15341_v51, %v3747_v26  ;;  %v3803_v10 = vmul.f32 %v15340_v53, %v3755_v12  ;;  %v12444_v27 = vmul.f32 %v12381_v17, %v3621_v8  ;;  %v12447_v14 = vmul.f32 %v12391_v6, %v3631_v4  ;;  %v5961_v12 = vld [vmem:[%s6279_s18 + $0x3b0] sm:$0xff] }
 0x98c   : > { %16032 = vst [vmem:[#allocation55_spill] sm:$0xff] %v12421_v40  ;;  %4508 = vrot.lane.b32.xlu2 %v12421_v40, %s6242_s19  ;;  %4490 = vrot.lane.b32.xlu0 %v12423_v39, %s6242_s19  ;;  %v12453_v26 = vpack.c.bf16 %v5968_v25, %v5967_v18  ;;  %v3563_v53 = vmul.f32 0.5, %v12257_v44  ;;  %v3818_v51 = vpack.c.bf16 %v3802_v60, %v3794_v34  ;;  %v12486_v60 = vpop.permute.xlu1 %3980  ;;  %vm3606_vm12 = vweird.f32 %v12246_v13 }
 0x98d   : > { %16033 = vst [vmem:[#allocation46_spill] sm:$0xff] %v12436_v19  ;;  %v3819_v32 = vpack.c.bf16 %v3803_v10, %v3795_v63  ;;  %4486 = vrot.lane.b32.xlu1 %v12436_v19, %s6242_s19  ;;  %v12459_v8 = vmul.f32 %v5962_v55, %v5962_v55  ;;  %v12462_v4 = vpack.c.bf16 %v12227_v28, %v5947_v16  ;;  %v3573_v28 = vmul.f32 0.5, %v3572_v54  ;;  %v5978_v19 = vld [vmem:[%s7006_s25 + $0x1b8] sm:$0xff] }
 0x98e   : > { %16034 = vst [vmem:[#allocation57_spill] sm:$0xff] %v12453_v26  ;;  %v12467_v40 = vmul.f32 %v5967_v18, %v5967_v18  ;;  %v12471_v25 = vmul.f32 %v12440_v22, %v12440_v22  ;;  %v12473_v26 = vmul.f32 %v5947_v16, %v5947_v16  ;;  %v12475_v44 = vpack.c.bf16 %v5962_v55, %v5961_v12 }
 0x98f   : > { %16035 = vst [vmem:[#allocation51_spill] sm:$0xff] %v12462_v4  ;;  %4254 = vmatpush.bf16.xpose.msrb.mxu0 %v3818_v51  ;;  %4268 = vmatpush.bf16.xpose.msrb.mxu1 %v3819_v32  ;;  %v12477_v63 = vmul.f32 %v5961_v12, %v5961_v12  ;;  %v3564_v34 = vsub.f32 1.5, %v3563_v53  ;;  %v12482_v18 = vmul.f32 %v12465_v56, %v12465_v56  ;;  %v3603_v16 = vmul.f32 0.5, %v3602_v3  ;;  %v16041_v12 = vld [vmem:[#allocation16_spill] sm:$0xff] }
 0x990   : > { %16036 = vst [vmem:[#allocation49_spill] sm:$0xff] %v12471_v25  ;;  %v3574_v32 = vsub.f32 1.5, %v3573_v28  ;;  %v3613_v51 = vmul.f32 0.5, %v3612_v49  ;;  %vm3607_vm15 = vweird.f32 %v12343_v5  ;;  %vm3616_vm3 = vweird.f32 %v12248_v52  ;;  %v16042_v28 = vld [vmem:[#allocation43_spill] sm:$0xff] }
 0x991   : > { %16037 = vst [vmem:[#allocation60_spill] sm:$0xff] %v12475_v44  ;;  %v3565_v55 = vmul.f32 %v12194_v1, %v3564_v34  ;;  %v3604_v54 = vsub.f32 1.5, %v3603_v16  ;;  %vm3617_vm10 = vweird.f32 %v12362_v20  ;;  %v3728_v34 = vunpack.c.l.bf16 %v16041_v12  ;;  %vm3608_vm11 = vmor %vm3606_vm12, %vm3607_vm15 }
 0x992   : > { %16038 = vst [vmem:[#allocation56_spill] sm:$0xff] %v12482_v18  ;;  %v3575_v3 = vmul.f32 %v12229_v47, %v3574_v32  ;;  %v3614_v10 = vsub.f32 1.5, %v3613_v51  ;;  %v3729_v16 = vunpack.c.h.bf16 %v16041_v12  ;;  %v3737_v51 = vunpack.c.h.bf16 %v16042_v28  ;;  %vm3618_vm8 = vmor %vm3616_vm3, %vm3617_vm10 }
 0x993   : > { %v3569_v62 = vsel %vm12490_vm6, %v12194_v1, %v3565_v55  ;;  %v3605_v49 = vmul.f32 %v12343_v5, %v3604_v54  ;;  %v3736_v1 = vunpack.c.l.bf16 %v16042_v28  ;;  %v12512_v55 = vpop.permute.xlu2 %3982  ;;  %v3583_v53 = vmul.f32 0.5, %v12291_v30 }
 0x994   : > { %4522 = vrot.lane.b32.xlu2 %v12459_v8, %s6242_s19  ;;  %4500 = vrot.lane.b32.xlu0 %v12467_v40, %s6242_s19  ;;  %v3579_v32 = vsel %vm3578_vm7, %v12229_v47, %v3575_v3  ;;  %v3615_v2 = vmul.f32 %v12362_v20, %v3614_v10  ;;  %vm3586_vm4 = vweird.f32 %v12132_v58  ;;  %vm3587_vm9 = vweird.f32 %v12207_v38 }
 0x995   : > { %4496 = vrot.lane.b32.xlu1 %v12471_v25, %s6242_s19  ;;  %v3609_v54 = vsel %vm3608_vm11, %v12343_v5, %v3605_v49  ;;  %v12529_v12 = vpack.c.bf16 %v3579_v32, %v3569_v62  ;;  %v3584_v13 = vsub.f32 1.5, %v3583_v53  ;;  %v3593_v3 = vmul.f32 0.5, %v12397_v0  ;;  %vm12556_vm1 = vmor %vm3586_vm4, %vm3587_vm9 }
 0x996   : > { %v3619_v47 = vsel %vm3618_vm8, %v12362_v20, %v3615_v2  ;;  %vm3596_vm14 = vweird.f32 %v12146_v31  ;;  %vm3597_vm2 = vweird.f32 %v12284_v24  ;;  %v3623_v49 = vmul.f32 0.5, %v12444_v27  ;;  %v12544_v20 = vpop.permute.xlu1 %3986  ;;  %v16048_v27 = vld [vmem:[#allocation20_spill] sm:$0xff] }
 0x997   : > { %v12536_v30 = vpack.c.bf16 %v3619_v47, %v3609_v54  ;;  %v15349_v5 = vunpack.c.l.bf16 %v12529_v12  ;;  %v15347_v52 = vunpack.c.h.bf16 %v12529_v12  ;;  %v3585_v62 = vmul.f32 %v12207_v38, %v3584_v13  ;;  %vm3598_vm5 = vmor %vm3596_vm14, %vm3597_vm2 }
 0x998   : > { %v3594_v10 = vsub.f32 1.5, %v3593_v3  ;;  %vm3626_vm0 = vweird.f32 %v12259_v36  ;;  %vm3627_vm13 = vweird.f32 %v12381_v17  ;;  %vm3636_vm6 = vweird.f32 %v12261_v46 }
 0x999   : > { %v15348_v0 = vunpack.c.l.bf16 %v12536_v30  ;;  %v3776_v28 = vmul.f32 %v15349_v5, %v3728_v34  ;;  %v15346_v32 = vunpack.c.h.bf16 %v12536_v30  ;;  %v3777_v2 = vmul.f32 %v15347_v52, %v3729_v16  ;;  %vm12589_vm15 = vmor %vm3626_vm0, %vm3627_vm13 }
 0x99a   : > { %v3589_v53 = vsel %vm12556_vm1, %v12207_v38, %v3585_v62  ;;  %v3595_v54 = vmul.f32 %v12284_v24, %v3594_v10  ;;  %v3624_v34 = vsub.f32 1.5, %v3623_v49  ;;  %v3633_v38 = vmul.f32 0.5, %v12447_v14 }
 0x99b   : > { %v3784_v58 = vmul.f32 %v15348_v0, %v3736_v1  ;;  %v3785_v16 = vmul.f32 %v15346_v32, %v3737_v51  ;;  %vm3637_vm12 = vweird.f32 %v12391_v6  ;;  %v16045_v1 = vld [vmem:[#allocation22_spill] sm:$0xff]  ;;  %v16053_v52 = vunpack.c.l.bf16 %v12306_v23 }
 0x99c   : > { %4464 = vrot.lane.b32.xlu2 %v12473_v26, %s6242_s19  ;;  %4514 = vrot.lane.b32.xlu0 %v12477_v63, %s6242_s19  ;;  %v3599_v47 = vsel %vm3598_vm5, %v12284_v24, %v3595_v54  ;;  %v3625_v13 = vmul.f32 %v12381_v17, %v3624_v34  ;;  %v3730_v51 = vunpack.c.l.bf16 %v16045_v1  ;;  %v3634_v14 = vsub.f32 1.5, %v3633_v38  ;;  %v12595_v24 = vpop.permute.xlu2 %3988  ;;  %vm3638_vm3 = vmor %vm3636_vm6, %vm3637_vm12 }
 0x99d   : > { %4510 = vrot.lane.b32.xlu1 %v12482_v18, %s6242_s19  ;;  %v3808_v3 = vpack.c.bf16 %v3784_v58, %v3776_v28  ;;  %v3809_v62 = vpack.c.bf16 %v3785_v16, %v3777_v2  ;;  %v12593_v10 = vpack.c.bf16 %v3599_v47, %v3589_v53  ;;  %v3738_v28 = vunpack.c.l.bf16 %v16048_v27  ;;  %v16049_v58 = vld [vmem:[#allocation7_spill] sm:$0xff]  ;;  %v16107_v18 = vld [vmem:[#allocation70_spill] sm:$0xff] }
 0x99e   : > { %v3629_v49 = vsel %vm12589_vm15, %v12381_v17, %v3625_v13  ;;  %v3731_v2 = vunpack.c.h.bf16 %v16045_v1  ;;  %v3739_v54 = vunpack.c.h.bf16 %v16048_v27  ;;  %v3635_v36 = vmul.f32 %v12391_v6, %v3634_v14  ;;  %v16050_v17 = vld [vmem:[#allocation14_spill] sm:$0xff] }
 0x99f   : > { %4227 = vmatpush.bf16.xpose.msra.mxu2 %v3808_v3  ;;  %4241 = vmatpush.bf16.xpose.msra.mxu3 %v3809_v62  ;;  %v15351_v34 = vunpack.c.l.bf16 %v12593_v10  ;;  %v15353_v53 = vunpack.c.h.bf16 %v12593_v10  ;;  %v3748_v16 = vunpack.c.l.bf16 %v16049_v58  ;;  %v3756_v38 = vunpack.c.l.bf16 %v16050_v17  ;;  %v16051_v1 = vld [vmem:[#allocation42_spill] sm:$0xff]  ;;  %v12615_v62 = vpop.permute.xlu1 %3992 }
 0x9a0   : > { %v3749_v47 = vunpack.c.h.bf16 %v16049_v58  ;;  %v3757_v13 = vunpack.c.h.bf16 %v16050_v17  ;;  %v3750_v3 = vunpack.c.l.bf16 %v16051_v1  ;;  %v3639_v31 = vsel %vm3638_vm3, %v12391_v6, %v3635_v36  ;;  %v16056_v36 = vld [vmem:[#allocation47_spill] sm:$0xff] }
 0x9a1   : > { %v3778_v14 = vmul.f32 %v15351_v34, %v3730_v51  ;;  %v3779_v46 = vmul.f32 %v15353_v53, %v3731_v2  ;;  %v16052_v27 = vunpack.c.l.bf16 %v12296_v35  ;;  %v3723_v58 = vpack.c.bf16 %v3639_v31, %v3629_v49  ;;  %v5941_v49 = vld [vmem:[%s6279_s18 + $0x310] sm:$0xff] }
 0x9a2   : > { %v3804_v17 = vmul.f32 %v16053_v52, %v3756_v38  ;;  %v16054_v0 = vunpack.c.h.bf16 %v12296_v35  ;;  %v16055_v4 = vunpack.c.h.bf16 %v12306_v23  ;;  %v3758_v51 = vunpack.c.l.bf16 %v16056_v36  ;;  %v5970_v35 = vld [vmem:[%s6279_s18 + $0x3f8] sm:$0x1] }
 0x9a3   : > { %v3796_v32 = vmul.f32 %v16052_v27, %v3748_v16  ;;  %v16057_v34 = vunpack.c.l.bf16 %v12389_v11  ;;  %v3751_v2 = vunpack.c.h.bf16 %v16051_v1  ;;  %v3759_v16 = vunpack.c.h.bf16 %v16056_v36  ;;  %v5954_v1 = vld [vmem:[%s6279_s18 + $0x378] sm:$0xff] }
 0x9a4   : > { %v3797_v5 = vmul.f32 %v16054_v0, %v3749_v47  ;;  %v3805_v6 = vmul.f32 %v16055_v4, %v3757_v13  ;;  %v3766_v31 = vunpack.c.l.bf16 %v3723_v58  ;;  %v3767_v27 = vunpack.c.h.bf16 %v3723_v58 }
 0x9a5   : > { %v3798_v44 = vmul.f32 %v16057_v34, %v3750_v3  ;;  %v3820_v52 = vpack.c.bf16 %v3804_v17, %v3796_v32  ;;  %v16058_v0 = vunpack.c.l.bf16 %v12401_v15  ;;  %v16059_v4 = vunpack.c.h.bf16 %v12389_v11  ;;  %v16062_v32 = vld [vmem:[#allocation4_spill] sm:$0xff] }
 0x9a6   : > { %v3821_v38 = vpack.c.bf16 %v3805_v6, %v3797_v5  ;;  %v16060_v13 = vunpack.c.h.bf16 %v12401_v15  ;;  %v12644_v34 = vpack.c.bf16 %v12412_v48, %v5941_v49  ;;  %v3786_v3 = vmul.f32 %v3766_v31, %v3738_v28 }
 0x9a7   : > { %v3806_v23 = vmul.f32 %v16058_v0, %v3758_v51  ;;  %v3799_v47 = vmul.f32 %v16059_v4, %v3751_v2  ;;  %v3787_v36 = vmul.f32 %v3767_v27, %v3739_v54  ;;  %4282 = vmatpush.bf16.xpose.msrb.mxu2 %v3820_v52  ;;  %v12647_v5 = vmul.f32 %v5941_v49, %v5941_v49  ;;  %v12655_v51 = vpop.permute.xlu2 %3994  ;;  %v5950_v54 = vld [vmem:[%s6279_s18 + $0x358] sm:$0xff]  ;;  %v5940_v4 = vld [vmem:[%s6279_s18 + $0x308] sm:$0xff] }
 0x9a8   : > { %v3807_v53 = vmul.f32 %v16060_v13, %v3759_v16  ;;  %16061 = vst [vmem:[#allocation6_spill] sm:$0xff] %v12644_v34  ;;  %4296 = vmatpush.bf16.xpose.msrb.mxu3 %v3821_v38  ;;  %v3732_v58 = vunpack.c.l.bf16 %v16062_v32  ;;  %v12651_v11 = vpack.c.bf16 %v5970_v35, %v12100_v7  ;;  %v12653_v15 = vmul.f32 %v5970_v35, %v5970_v35  ;;  %v12662_v16 = vpop.permute.xlu1 %3998  ;;  %v16066_v7 = vld [vmem:[#allocation2_spill] sm:$0xff]  ;;  %v16068_v52 = vld [vmem:[#allocation17_spill] sm:$0xff]  ;;  %v16069_v35 = vld [vmem:[#allocation39_spill] sm:$0xff] }
 0x9a9   : > { %v3822_v17 = vpack.c.bf16 %v3806_v23, %v3798_v44  ;;  %v3810_v48 = vpack.c.bf16 %v3786_v3, %v3778_v14  ;;  %v3811_v2 = vpack.c.bf16 %v3787_v36, %v3779_v46  ;;  %4478 = vrot.lane.b32.xlu2 %v12647_v5, %s6242_s19  ;;  %v12659_v28 = vmul.f32 %v5954_v1, %v5954_v1 }
 0x9aa   : > { %v3823_v6 = vpack.c.bf16 %v3807_v53, %v3799_v47  ;;  %16063 = vst [vmem:[#allocation40_spill] sm:$0xff] %v12651_v11  ;;  %4524 = vrot.lane.b32.xlu0 %v12653_v15, %s6242_s19  ;;  %v3740_v44 = vunpack.c.l.bf16 %v16066_v7  ;;  %v16067_v53 = vunpack.c.l.bf16 %v12529_v12  ;;  %v3733_v14 = vunpack.c.h.bf16 %v16062_v32 }
 0x9ab   : > { %16064 = vst [vmem:[#allocation31_spill] sm:$0xff] %v12653_v15  ;;  %4255 = vmatpush.bf16.xpose.msrb.mxu0 %v3810_v48  ;;  %4269 = vmatpush.bf16.xpose.msrb.mxu1 %v3811_v2  ;;  %v3741_v46 = vunpack.c.h.bf16 %v16066_v7  ;;  %v3734_v38 = vunpack.c.l.bf16 %v16068_v52  ;;  %v3742_v0 = vunpack.c.l.bf16 %v16069_v35  ;;  %v3735_v23 = vunpack.c.h.bf16 %v16068_v52 }
 0x9ac   : > { %16065 = vst [vmem:[#allocation44_spill] sm:$0xff] %v12659_v28  ;;  %v3780_v49 = vmul.f32 %v16067_v53, %v3732_v58  ;;  %v16070_v47 = vunpack.c.l.bf16 %v12536_v30  ;;  %v16071_v3 = vunpack.c.h.bf16 %v12529_v12  ;;  %v3743_v32 = vunpack.c.h.bf16 %v16069_v35  ;;  %4520 = vrot.lane.b32.xlu1 %v12659_v28, %s6242_s19 }
 0x9ad   : > { %v12680_v58 = vmul.f32 %v5950_v54, %v5950_v54  ;;  %v16073_v48 = vunpack.c.h.bf16 %v12536_v30  ;;  %v3790_v7 = vmul.f32 %v3766_v31, %v3742_v0  ;;  %v12691_v52 = vpack.c.bf16 %v5940_v4, %v12151_v33  ;;  %v5944_v33 = vld [vmem:[%s6279_s18 + $0x328] sm:$0xff] }
 0x9ae   : > { %v3788_v13 = vmul.f32 %v16070_v47, %v3740_v44  ;;  %v3781_v36 = vmul.f32 %v16071_v3, %v3733_v14  ;;  %v16075_v44 = vunpack.c.h.bf16 %v12593_v10  ;;  %v3791_v14 = vmul.f32 %v3767_v27, %v3743_v32  ;;  %v5972_v47 = vld [vmem:[%s7006_s25 + $0x188] sm:$0xff]  ;;  %v5949_v3 = vld [vmem:[%s6279_s18 + $0x350] sm:$0xff] }
 0x9af   : > { %16072 = vst [vmem:[#allocation10_spill] sm:$0xff] %v12680_v58  ;;  %v3789_v2 = vmul.f32 %v16073_v48, %v3741_v46  ;;  %v12693_v35 = vmul.f32 %v5940_v4, %v5940_v4  ;;  %v5953_v27 = vld [vmem:[%s6279_s18 + $0x370] sm:$0xff]  ;;  %v12712_v4 = vpop.permute.xlu2 %4000  ;;  %v5952_v32 = vld [vmem:[%s6279_s18 + $0x368] sm:$0xff]  ;;  %v12720_v48 = vmul.f32 %v5944_v33, %v5944_v33  ;;  %vm16096_vm10 = vcmp.lt.s32.totalorder %v6495_v29, 16 }
 0x9b0   : > { %v3783_v12 = vmul.f32 %v16075_v44, %v3735_v23  ;;  %v3812_v53 = vpack.c.bf16 %v3788_v13, %v3780_v49  ;;  %16076 = vst [vmem:[#allocation8_spill] sm:$0xff] %v12691_v52  ;;  %v5943_v49 = vld [vmem:[%s6279_s18 + $0x320] sm:$0xff]  ;;  %v4005_v0 = vpop.permute.xlu1 %4004  ;;  %v12708_v23 = vpack.c.bf16 %v5954_v1, %v5953_v27  ;;  %v12723_v1 = vpack.c.bf16 %v5952_v32, %v12440_v22  ;;  %v5984_v22 = vld [vmem:[%s7006_s25 + $0x1e8] sm:$0x3]  ;;  %vm16115_vm1 = vmmov %vm16096_vm10 }
 0x9b1   : > { %16077 = vst [vmem:[#allocation3_spill] sm:$0xff] %v12693_v35  ;;  %v3813_v30 = vpack.c.bf16 %v3789_v2, %v3781_v36  ;;  %4488 = vrot.lane.b32.xlu2 %v12680_v58, %s6242_s19  ;;  %v5971_v13 = vld [vmem:[%s7006_s25 + $0x180] sm:$0xff]  ;;  %v5946_v2 = vld [vmem:[%s6279_s18 + $0x338] sm:$0xff]  ;;  %v12790_v11 = vmul.f32 %v5952_v32, %v5952_v32  ;;  %vm16098_vm7 = vcmp.lt.s32.totalorder %v6495_v29, 64  ;;  %v16114_v58 = vld [vmem:[#allocation68_spill] sm:$0xff] }
 0x9b2   : > { %4283 = vmatpush.bf16.xpose.msrb.mxu2 %v3812_v53  ;;  %v3815_v31 = vpack.c.bf16 %v3791_v14, %v3783_v12  ;;  %4470 = vrot.lane.b32.xlu0 %v12693_v35, %s6242_s19  ;;  %16080 = vst [vmem:[#allocation61_spill] sm:$0xff] %v12708_v23  ;;  %v12715_v36 = vpack.c.bf16 %v5972_v47, %v5971_v13  ;;  %v5980_v53 = vld [vmem:[%s7006_s25 + $0x1c8] sm:$0x3]  ;;  %v12740_v14 = vld [vmem:[%s7006_s25 + $0x1c0] sm:$0x3]  ;;  %vm16099_vm11 = vmmov %vm16098_vm7 }
 0x9b3   : > { %4310 = vmatpush.bf16.xpose.msra.mxu0 %v3822_v17  ;;  %4324 = vmatpush.bf16.xpose.msra.mxu1 %v3823_v6  ;;  %v16074_v17 = vunpack.c.l.bf16 %v12593_v10  ;;  %v12701_v10 = vmul.f32 %v5972_v47, %v5972_v47  ;;  %16083 = vst [vmem:[#allocation48_spill] sm:$0xff] %v12720_v48  ;;  %v4022_v32 = vsel %vm16099_vm11, %v4005_v0, %v12426_v41  ;;  %vm16100_vm8 = vmmov %vm16098_vm7 }
 0x9b4   : > { %4297 = vmatpush.bf16.xpose.msrb.mxu3 %v3813_v30  ;;  %16082 = vst [vmem:[#allocation58_spill] sm:$0xff] %v12715_v36  ;;  %v12736_v12 = vpop.permute.xlu0 %3978  ;;  %v12751_v30 = vld [vmem:[%s7006_s25 + $0x1e0] sm:$0x3]  ;;  %vm16101_vm4 = vmmov %vm16098_vm7 }
 0x9b5   : > { %v3782_v6 = vmul.f32 %v16074_v17, %v3734_v38  ;;  %v12697_v38 = vpack.c.bf16 %v5950_v54, %v5949_v3  ;;  %16079 = vst [vmem:[#allocation59_spill] sm:$0xff] %v12701_v10  ;;  %v12710_v54 = vpack.c.bf16 %v5944_v33, %v5943_v49  ;;  %5234 = vrot.lane.b32.xlu1 %v12701_v10, %s6242_s19  ;;  %v12765_v36 = vld [vmem:[%s7006_s25 + $0x1a0] sm:$0xff]  ;;  %vm16102_vm9 = vmmov %vm16101_vm4  ;;  %v16106_v10 = vld [vmem:[#allocation12_spill] sm:$0xff] }
 0x9b6   : > { %16084 = vst [vmem:[#allocation29_spill] sm:$0xff] %v12723_v1  ;;  %v12726_v17 = vmul.f32 %v5949_v3, %v5949_v3  ;;  %v12762_v33 = vmul.f32 %v5943_v49, %v5943_v49  ;;  %v12786_v1 = vmul.f32 %v5971_v13, %v5971_v13  ;;  %v4008_v13 = vsel %vm16098_vm7, %v12712_v4, %v4005_v0  ;;  %vm16103_vm14 = vmmov %vm16101_vm4 }
 0x9b7   : > { %v3814_v46 = vpack.c.bf16 %v3790_v7, %v3782_v6  ;;  %16078 = vst [vmem:[#allocation9_spill] sm:$0xff] %v12697_v38  ;;  %v5981_v6 = vld [vmem:[%s7006_s25 + $0x1d0] sm:$0x3]  ;;  %v12730_v7 = vpack.c.bf16 %v5946_v2, %v12465_v56  ;;  %v12748_v56 = vpack.c.bf16 %v5980_v53, %v12740_v14  ;;  %v12756_v3 = vpop.permute.xlu2 %4006  ;;  %v4019_v0 = vsel %vm16103_vm14, %v12512_v55, %v12544_v20  ;;  %vm16104_vm2 = vmmov %vm16101_vm4 }
 0x9b8   : > { %16081 = vst [vmem:[#allocation34_spill] sm:$0xff] %v12710_v54  ;;  %v12734_v44 = vmul.f32 %v5981_v6, %v5981_v6  ;;  %v12745_v47 = vpop.permute.xlu1 %4468  ;;  %vm16105_vm0 = vmmov %vm16104_vm2  ;;  %v4024_v28 = vadd.f32 %v4022_v32, %v16106_v10  ;;  %v4031_v25 = vadd.f32 %v4008_v13, %v16107_v18 }
 0x9b9   : > { %16085 = vst [vmem:[#allocation13_spill] sm:$0xff] %v12726_v17  ;;  %4502 = vrot.lane.b32.xlu2 %v12720_v48, %s6242_s19  ;;  %v16113_v48 = vld [vmem:[#allocation66_spill] sm:$0xff]  ;;  %vm16116_vm13 = vmmov %vm16105_vm0 }
 0x9ba   : > { %16086 = vst [vmem:[#allocation32_spill] sm:$0xff] %v12730_v7  ;;  %4480 = vrot.lane.b32.xlu0 %v12726_v17, %s6242_s19  ;;  %v12775_v7 = vld [vmem:[%s7006_s25 + $0x190] sm:$0xff]  ;;  %vm16118_vm5 = vmmov %vm16105_vm0 }
 0x9bb   : > { %4311 = vmatpush.bf16.xpose.msra.mxu0 %v3814_v46  ;;  %4325 = vmatpush.bf16.xpose.msra.mxu1 %v3815_v31  ;;  %16087 = vst [vmem:[#allocation62_spill] sm:$0xff] %v12734_v44  ;;  %v12754_v46 = vpack.c.bf16 %v5984_v22, %v12751_v30  ;;  %v12760_v31 = vmul.f32 %v5953_v27, %v5953_v27  ;;  %vm16119_vm6 = vmmov %vm16105_vm0 }
 0x9bc   : > { %16088 = vst [vmem:[#allocation52_spill] sm:$0xff] %v12748_v56  ;;  %v12771_v56 = vmul.f32 %v12765_v36, %v12765_v36  ;;  %v3985_v23 = vpop.permute.xlu0 %3984  ;;  %vm16120_vm12 = vmmov %vm16105_vm0 }
 0x9bd   : > { %16089 = vst [vmem:[#allocation27_spill] sm:$0xff] %v12754_v46  ;;  %5240 = vrot.lane.b32.xlu1 %v12734_v44, %s6242_s19  ;;  %v5974_v46 = vld [vmem:[%s7006_s25 + $0x198] sm:$0xff]  ;;  %v4018_v52 = vsel %vm16101_vm4, %v12486_v60, %v3985_v23  ;;  %v4014_v44 = vsel %vm16104_vm2, %v12595_v24, %v12615_v62  ;;  %vm16121_vm15 = vmmov %vm16105_vm0 }
 0x9be   : > { %16090 = vst [vmem:[#allocation21_spill] sm:$0xff] %v12760_v31  ;;  %v12780_v27 = vpack.c.bf16 %v5974_v46, %v12775_v7  ;;  %v4028_v35 = vadd.f32 %v4014_v44, %v16113_v48  ;;  %v12879_v48 = vmul.f32 %v5978_v19, %v5978_v19  ;;  %vm16123_vm3 = vmmov %vm16105_vm0 }
 0x9bf   : > { %16091 = vst [vmem:[#allocation38_spill] sm:$0xff] %v12762_v33  ;;  %v12788_v54 = vpop.permute.xlu2 %4474  ;;  %vm16130_vm7 = vmmov %vm16105_vm0 }
 0x9c0   : > { %16092 = vst [vmem:[#allocation30_spill] sm:$0xff] %v12771_v56  ;;  %v12782_v49 = vpop.permute.xlu1 %4482  ;;  %vm16131_vm11 = vmmov %vm16105_vm0 }
 0x9c1   : > { %4512 = vrot.lane.b32.xlu2 %v12760_v31, %s6242_s19  ;;  %16093 = vst [vmem:[#allocation35_spill] sm:$0xff] %v12780_v27  ;;  %v12796_v38 = vsel %vm16096_vm10, %v12788_v54, %v12782_v49  ;;  %v12800_v27 = vmul.f32 %v5984_v22, %v5984_v22  ;;  %v4016_v22 = vsel %vm16100_vm8, %v3985_v23, %v12595_v24  ;;  %v12844_v24 = vld [vmem:[%s7006_s25 + $0x1b0] sm:$0xff]  ;;  %v16108_v31 = vld [vmem:[#allocation65_spill] sm:$0xff]  ;;  %vm16128_vm10 = vmmov %vm16115_vm1 }
 0x9c2   : > { %4494 = vrot.lane.b32.xlu0 %v12762_v33, %s6242_s19  ;;  %16094 = vst [vmem:[#allocation45_spill] sm:$0xff] %v12786_v1  ;;  %v4013_v23 = vsel %vm16105_vm0, %v12655_v51, %v12662_v16  ;;  %v4026_v33 = vadd.f32 %v4018_v52, %v11867_v45  ;;  %v4027_v10 = vadd.f32 %v4016_v22, %v16108_v31  ;;  %vm16137_vm8 = vmmov %vm16115_vm1 }
 0x9c3   : > { %16095 = vst [vmem:[#allocation16_spill] sm:$0xff] %v12790_v11  ;;  %v12852_v18 = vpack.c.bf16 %v5978_v19, %v12844_v24  ;;  %v12865_v15 = vadd.f32 %v4013_v23, %v16114_v58  ;;  %v4040_v52 = vadd.f32 %v4031_v25, %v4024_v28  ;;  %v16122_v23 = vld [vmem:[#allocation69_spill] sm:$0xff] }
 0x9c4   : > { %16097 = vst [vmem:[#allocation43_spill] sm:$0xff] %v12800_v27  ;;  %v3991_v34 = vpop.permute.xlu0 %3990  ;;  %v4044_v31 = vadd.f32 %v4028_v35, %v4027_v10 }
 0x9c5   : > { %5246 = vrot.lane.b32.xlu1 %v12771_v56, %s6242_s19  ;;  %v4020_v56 = vsel %vm16102_vm9, %v12426_v41, %v12486_v60  ;;  %v12836_v41 = vmul.f32 %v5980_v53, %v5980_v53  ;;  %v12838_v60 = vmul.f32 %v5946_v2, %v5946_v2  ;;  %16109 = vst [vmem:[#allocation22_spill] sm:$0xff] %v12852_v18  ;;  %v16111_v53 = vld [vmem:[#allocation25_spill] sm:$0xff] }
 0x9c6   : > { %v4025_v2 = vadd.f32 %v4020_v56, %v16111_v53  ;;  %v4023_v56 = vsel %vm16116_vm13, %v12756_v3, %v12736_v12  ;;  %16117 = vst [vmem:[#allocation7_spill] sm:$0xff] %v12879_v48  ;;  %v4015_v22 = vsel %vm16120_vm12, %v3991_v34, %v12655_v51  ;;  %v4017_v19 = vsel %vm16121_vm15, %v12544_v20, %v3991_v34  ;;  %vm16140_vm12 = vmmov %vm16137_vm8 }
 0x9c7   : > { %v12901_v18 = vmul.f32 %v5974_v46, %v5974_v46  ;;  %v4032_v51 = vadd.f32 %v4023_v56, %v11794_v21  ;;  %v16127_v56 = vld [vmem:[#allocation63_spill] sm:$0xff] }
 0x9c8   : > { %v4042_v44 = vadd.f32 %v4026_v33, %v4025_v2 }
 0x9c9   : > { %5230 = vrot.lane.b32.xlu2 %v12786_v1, %s6242_s19  ;;  %v12841_v1 = vpop.permute.xlu1 %4492  ;;  %16124 = vst [vmem:[#allocation14_spill] sm:$0xff] %v12901_v18 }
 0x9ca   : > { %4504 = vrot.lane.b32.xlu0 %v12790_v11, %s6242_s19  ;;  %v12847_v11 = vld [vmem:[%s7006_s25 + $0x1d8] sm:$0x3]  ;;  %v12858_v32 = vpop.permute.xlu2 %4484 }
 0x9cb   : > { %v12855_v13 = vpack.c.bf16 %v12847_v11, %v5981_v6  ;;  %v12871_v45 = vsel %vm16115_vm1, %v12858_v32, %v12841_v1  ;;  %v4041_v6 = vadd.f32 %v4025_v2, %v4024_v28  ;;  %v4043_v2 = vadd.f32 %v4027_v10, %v4026_v33 }
 0x9cc   : > { %v3997_v58 = vpop.permute.xlu0 %3996 }
 0x9cd   : > { %5252 = vrot.lane.b32.xlu1 %v12800_v27, %s6242_s19  ;;  %16110 = vst [vmem:[#allocation20_spill] sm:$0xff] %v12855_v13  ;;  %v16112_v27 = vld [vmem:[#allocation64_spill] sm:$0xff]  ;;  %v4010_v28 = vsel %vm16118_vm5, %v3997_v58, %v12712_v4  ;;  %v4021_v4 = vsel %vm16123_vm3, %v12736_v12, %v12512_v55  ;;  %v16126_v55 = vld [vmem:[#allocation67_spill] sm:$0xff] }
 0x9ce   : > { %v12861_v17 = vadd.f32 %v4019_v0, %v16112_v27  ;;  %v4012_v27 = vsel %vm16119_vm6, %v12615_v62, %v3997_v58  ;;  %v4030_v53 = vadd.f32 %v4010_v28, %v16122_v23  ;;  %v12905_v62 = vmul.f32 %v12740_v14, %v12740_v14 }
 0x9cf   : > { %v4029_v0 = vadd.f32 %v4012_v27, %v11962_v42  ;;  %v4058_v58 = vadd.f32 %v4042_v44, %v4040_v52  ;;  %v4060_v28 = vadd.f32 %v4044_v31, %v4042_v44  ;;  %v4035_v27 = vadd.f32 %v4017_v19, %v11886_v57 }
 0x9d0   : > { %16125 = vst [vmem:[#allocation42_spill] sm:$0xff] %v12905_v62  ;;  %v4047_v34 = vadd.f32 %v4031_v25, %v4030_v53  ;;  %v4036_v12 = vadd.f32 %v4015_v22, %v16126_v55  ;;  %v4033_v13 = vadd.f32 %v4021_v4, %v16127_v56 }
 0x9d1   : > { %5236 = vrot.lane.b32.xlu2 %v12836_v41, %s6242_s19  ;;  %v4045_v42 = vadd.f32 %v4029_v0, %v4028_v35  ;;  %v4046_v20 = vadd.f32 %v4030_v53, %v4029_v0  ;;  %v12914_v33 = vpop.permute.xlu1 %4506  ;;  %v4059_v35 = vadd.f32 %v4043_v2, %v4041_v6 }
 0x9d2   : > { %4518 = vrot.lane.b32.xlu0 %v12838_v60, %s6242_s19  ;;  %v12912_v46 = vpop.permute.xlu2 %4498  ;;  %v4057_v10 = vadd.f32 %v4047_v34, %v4041_v6  ;;  %v4052_v6 = vadd.f32 %v4036_v12, %v4035_v27  ;;  %v4050_v55 = vadd.f32 %v12861_v17, %v4033_v13 }
 0x9d3   : > { %v4056_v14 = vadd.f32 %v4046_v20, %v4040_v52  ;;  %v4061_v23 = vadd.f32 %v4045_v42, %v4043_v2  ;;  %v4062_v21 = vadd.f32 %v4046_v20, %v4044_v31  ;;  %v12921_v25 = vsel %vm16128_vm10, %v12912_v46, %v12914_v33  ;;  %v12938_v2 = vld [vmem:[%s7006_s25 + $0x1a8] sm:$0xff] }
 0x9d4   : > { %v4063_v57 = vadd.f32 %v4047_v34, %v4045_v42  ;;  %v12927_v52 = vmul.f32 %v12751_v30, %v12751_v30  ;;  %v4003_v19 = vpop.permute.xlu0 %4002  ;;  %v4068_v56 = vadd.f32 %v4052_v6, %v4050_v55 }
 0x9d5   : > { %5258 = vrot.lane.b32.xlu1 %v12879_v48, %s6242_s19  ;;  %v4072_v44 = vadd.f32 %v4060_v28, %v4056_v14  ;;  %v4073_v31 = vadd.f32 %v4061_v23, %v4057_v10  ;;  %v4074_v22 = vadd.f32 %v4062_v21, %v4058_v58  ;;  %v4009_v53 = vsel %vm16130_vm7, %v4003_v19, %v12756_v3  ;;  %v5986_v21 = vld [vmem:[%s7006_s25 + $0x1f8] sm:$0x3] }
 0x9d6   : > { %16129 = vst [vmem:[#allocation47_spill] sm:$0xff] %v12927_v52  ;;  %v4075_v0 = vadd.f32 %v4063_v57, %v4059_v35  ;;  %v4011_v4 = vsel %vm16131_vm11, %v12662_v16, %v4003_v19  ;;  %v4049_v58 = vadd.f32 %v4033_v13, %v4032_v51  ;;  %v4039_v3 = vadd.f32 %v4009_v53, %v11797_v37 }
 0x9d7   : > { %v12940_v30 = vmax.f32 %v4072_v44, 1e-16  ;;  %v12942_v42 = vmax.f32 %v4073_v31, 1e-16  ;;  %v12944_v20 = vmax.f32 %v4074_v22, 1e-16  ;;  %v4038_v34 = vadd.f32 %v4011_v4, %v12036_v61 }
 0x9d8   : > { %v12947_v28 = vmax.f32 %v4075_v0, 1e-16  ;;  %v12952_v16 = vpack.c.bf16 %v12938_v2, %v12765_v36  ;;  %v4051_v14 = vadd.f32 %v4035_v27, %v12861_v17  ;;  %v4053_v10 = vadd.f32 %v12865_v15, %v4036_v12  ;;  %v12966_v36 = vld [vmem:[%s7006_s25 + $0x1f0] sm:$0x3] }
 0x9d9   : > { %5242 = vrot.lane.b32.xlu2 %v12901_v18, %s6242_s19  ;;  %6136 = vrsqrt.f32 %v12940_v30  ;;  %v12960_v61 = vmul.f32 %v12775_v7, %v12775_v7  ;;  %v4048_v23 = vadd.f32 %v4039_v3, %v4032_v51  ;;  %v4054_v37 = vadd.f32 %v4038_v34, %v12865_v15 }
 0x9da   : > { %5232 = vrot.lane.b32.xlu0 %v12905_v62, %s6242_s19  ;;  %16132 = vst [vmem:[#allocation4_spill] sm:$0xff] %v12952_v16  ;;  %6138 = vrsqrt.f32 %v12942_v42  ;;  %v4055_v17 = vadd.f32 %v4039_v3, %v4038_v34  ;;  %v12970_v13 = vpack.c.bf16 %v5986_v21, %v12966_v36  ;;  %v4067_v35 = vadd.f32 %v4051_v14, %v4049_v58 }
 0x9db   : > { %16133 = vst [vmem:[#allocation2_spill] sm:$0xff] %v12960_v61  ;;  %6140 = vrsqrt.f32 %v12944_v20  ;;  %v4064_v27 = vadd.f32 %v4054_v37, %v4048_v23  ;;  %v4066_v7 = vadd.f32 %v4050_v55, %v4048_v23  ;;  %v4070_v12 = vadd.f32 %v4054_v37, %v4052_v6 }
 0x9dc   : > { %16134 = vst [vmem:[#allocation17_spill] sm:$0xff] %v12970_v13  ;;  %6142 = vrsqrt.f32 %v12947_v28  ;;  %v4069_v57 = vadd.f32 %v4053_v10, %v4051_v14  ;;  %v4065_v15 = vadd.f32 %v4055_v17, %v4049_v58  ;;  %v4071_v51 = vadd.f32 %v4055_v17, %v4053_v10 }
 0x9dd   : > { %v4076_v44 = vadd.f32 %v4068_v56, %v4064_v27  ;;  %v4078_v31 = vadd.f32 %v4070_v12, %v4066_v7  ;;  %v12979_v19 = vpop.permute.xlu1 %4516  ;;  %v12993_v55 = vmul.f32 %v12844_v24, %v12844_v24  ;;  %v13003_v37 = vmul.f32 %v12847_v11, %v12847_v11 }
 0x9de   : > { %v4077_v0 = vadd.f32 %v4069_v57, %v4065_v15  ;;  %v4079_v53 = vadd.f32 %v4071_v51, %v4067_v35  ;;  %v6216_v51 = vld [vmem:[%s7006_s25 + $0x100] sm:$0xff]  ;;  %vm4094_vm4 = vweird.f32 %v12940_v30  ;;  %vm4104_vm9 = vweird.f32 %v12942_v42 }
 0x9df   : > { %v12977_v22 = vpop.eup %6136  ;;  %v12985_v34 = vmax.f32 %v4076_v44, 1e-16  ;;  %16135 = vst [vmem:[#allocation39_spill] sm:$0xff] %v12993_v55  ;;  %v13007_v17 = vmax.f32 %v4078_v31, 1e-16  ;;  %v6217_v44 = vld [vmem:[%s7006_s25 + $0x108] sm:$0xff]  ;;  %vm4114_vm14 = vweird.f32 %v12944_v20  ;;  %vm4124_vm13 = vweird.f32 %v12947_v28 }
 0x9e0   : > { %v12981_v4 = vpop.eup %6138  ;;  %v4089_v6 = vmul.f32 %v12977_v22, %v12940_v30  ;;  %v12995_v14 = vmax.f32 %v4077_v0, 1e-16  ;;  %16136 = vst [vmem:[#allocation12_spill] sm:$0xff] %v13003_v37  ;;  %v13018_v11 = vmax.f32 %v4079_v53, 1e-16  ;;  %v13032_v31 = vpack.c.bf16 %v6217_v44, %v6216_v51 }
 0x9e1   : > { %5248 = vrot.lane.b32.xlu2 %v12927_v52, %s6242_s19  ;;  %v12987_v58 = vpop.eup %6140  ;;  %v4099_v3 = vmul.f32 %v12981_v4, %v12942_v42  ;;  %6144 = vrsqrt.f32 %v12985_v34  ;;  %v6218_v0 = vld [vmem:[%s7006_s25 + $0x160] sm:$0x3]  ;;  %v6219_v53 = vld [vmem:[%s7006_s25 + $0x168] sm:$0x3]  ;;  %vm4095_vm2 = vweird.f32 %v12977_v22  ;;  %vm4105_vm0 = vweird.f32 %v12981_v4 }
 0x9e2   : > { %5238 = vrot.lane.b32.xlu0 %v12960_v61, %s6242_s19  ;;  %v12997_v10 = vpop.eup %6142  ;;  %v4109_v23 = vmul.f32 %v12987_v58, %v12944_v20  ;;  %v4090_v7 = vmul.f32 %v12977_v22, %v4089_v6  ;;  %6146 = vrsqrt.f32 %v12995_v14  ;;  %v13036_v6 = vpack.c.bf16 %v6219_v53, %v6218_v0  ;;  %v16157_v42 = vld [vmem:[#allocation11_spill] sm:$0xff] }
 0x9e3   : > { %v4119_v24 = vmul.f32 %v12997_v10, %v12947_v28  ;;  %v4100_v12 = vmul.f32 %v12981_v4, %v4099_v3  ;;  %v4467_v35 = vpop.permute.xlu0 %4466  ;;  %6148 = vrsqrt.f32 %v13007_v17  ;;  %v13039_v3 = vmul.f32 %v5986_v21, %v5986_v21 }
 0x9e4   : > { %v4110_v57 = vmul.f32 %v12987_v58, %v4109_v23  ;;  %6150 = vrsqrt.f32 %v13018_v11  ;;  %v4091_v13 = vmul.f32 0.5, %v4090_v7  ;;  %v13056_v0 = vmul.f32 %v12938_v2, %v12938_v2 }
 0x9e5   : > { %v4120_v15 = vmul.f32 %v12997_v10, %v4119_v24  ;;  %16138 = vst [vmem:[#allocation70_spill] sm:$0xff] %v13039_v3  ;;  %v13041_v23 = vpop.permute.xlu1 %4462  ;;  %v4101_v16 = vmul.f32 0.5, %v4100_v12  ;;  %vm4115_vm1 = vweird.f32 %v12987_v58  ;;  %v13065_v12 = vmul.f32 %v12966_v36, %v12966_v36 }
 0x9e6   : > { %v13005_v56 = vpop.permute.xlu2 %4508  ;;  %v13047_v51 = vmul.f32 0.5, %v4110_v57  ;;  %16139 = vst [vmem:[#allocation65_spill] sm:$0xff] %v13056_v0  ;;  %vm4125_vm5 = vweird.f32 %v12997_v10  ;;  %vm4134_vm6 = vweird.f32 %v12985_v34  ;;  %v4092_v48 = vsub.f32 1.5, %v4091_v13  ;;  %v16141_v13 = vld [vmem:[#allocation15_spill] sm:$0xff] }
 0x9e7   : > { %v13016_v27 = vsel %vm16137_vm8, %v13005_v56, %v12979_v19  ;;  %v13043_v24 = vpop.eup %6144  ;;  %v13050_v44 = vmul.f32 0.5, %v4120_v15  ;;  %v4552_v15 = vsel %vm16140_vm12, %v4467_v35, %v12788_v54  ;;  %vm4144_vm15 = vweird.f32 %v12995_v14  ;;  %vm13113_vm12 = vmor %vm4094_vm4, %vm4095_vm2 }
 0x9e8   : > { %v4129_v21 = vmul.f32 %v13043_v24, %v12985_v34  ;;  %v13067_v57 = vpop.eup %6146  ;;  %v4112_v61 = vsub.f32 1.5, %v13047_v51  ;;  %vm4154_vm3 = vweird.f32 %v13007_v17  ;;  %vm4135_vm10 = vweird.f32 %v13043_v24 }
 0x9e9   : > { %5254 = vrot.lane.b32.xlu2 %v12993_v55, %s6242_s19  ;;  %v13076_v53 = vpop.eup %6148  ;;  %v4139_v36 = vmul.f32 %v13067_v57, %v12995_v14  ;;  %vm4164_vm7 = vweird.f32 %v13018_v11  ;;  %v13098_v51 = vadd.f32 %v4552_v15, %v16141_v13  ;;  %vm4145_vm11 = vweird.f32 %v13067_v57 }
 0x9ea   : > { %5244 = vrot.lane.b32.xlu0 %v13003_v37, %s6242_s19  ;;  %v4130_v2 = vmul.f32 %v13043_v24, %v4129_v21  ;;  %v4102_v37 = vsub.f32 1.5, %v4101_v16  ;;  %v13081_v55 = vpop.eup %6150  ;;  %v4122_v21 = vsub.f32 1.5, %v13050_v44  ;;  %v4149_v62 = vmul.f32 %v13076_v53, %v13007_v17 }
 0x9eb   : > { %v4140_v54 = vmul.f32 %v13067_v57, %v4139_v36  ;;  %v4159_v16 = vmul.f32 %v13081_v55, %v13018_v11  ;;  %v4093_v13 = vmul.f32 %v12977_v22, %v4092_v48  ;;  %vm4155_vm4 = vweird.f32 %v13076_v53 }
 0x9ec   : > { %v4131_v52 = vmul.f32 0.5, %v4130_v2  ;;  %v13100_v44 = vpop.permute.xlu0 %4476  ;;  %vm16146_vm2 = vcmp.lt.s32.totalorder %v6495_v29, 16 }
 0x9ed   : > { %v4141_v15 = vmul.f32 0.5, %v4140_v54  ;;  %v4549_v48 = vsel %vm16146_vm2, %v13100_v44, %v12858_v32 }
 0x9ee   : > { %v13061_v7 = vpop.permute.xlu2 %4522  ;;  %v4132_v2 = vsub.f32 1.5, %v4131_v52  ;;  %v4160_v52 = vmul.f32 %v13081_v55, %v4159_v16  ;;  %v13130_v54 = vpop.permute.xlu1 %4472 }
 0x9ef   : > { %v13107_v36 = vsel %vm16137_vm8, %v13061_v7, %v4467_v35  ;;  %vm13124_vm8 = vmor %vm4104_vm9, %vm4105_vm0  ;;  %vm4165_vm0 = vweird.f32 %v13081_v55  ;;  %v4173_v35 = vunpack.c.h.bf16 %v13032_v31 }
 0x9f0   : > { %v4133_v30 = vmul.f32 %v13043_v24, %v4132_v2  ;;  %vm13140_vm9 = vmor %vm4114_vm14, %vm4115_vm1  ;;  %v4161_v16 = vmul.f32 0.5, %v4160_v52  ;;  %v4097_v2 = vsel %vm13113_vm12, %v12977_v22, %v4093_v13  ;;  %v4172_v13 = vunpack.c.l.bf16 %v13032_v31 }
 0x9f1   : > { %5260 = vrot.lane.b32.xlu2 %v13039_v3, %s6242_s19  ;;  %v4150_v3 = vmul.f32 %v13076_v53, %v4149_v62  ;;  %v4103_v62 = vmul.f32 %v12981_v4, %v4102_v37  ;;  %v4142_v37 = vsub.f32 1.5, %v4141_v15  ;;  %vm13156_vm14 = vmor %vm4134_vm6, %vm4135_vm10  ;;  %v4123_v31 = vmul.f32 %v12997_v10, %v4122_v21 }
 0x9f2   : > { %5250 = vrot.lane.b32.xlu0 %v13056_v0, %s6242_s19  ;;  %vm16151_vm1 = vmmov %vm16146_vm2  ;;  %v4162_v34 = vsub.f32 1.5, %v4161_v16  ;;  %v4137_v52 = vsel %vm13156_vm14, %v13043_v24, %v4133_v30  ;;  %v4113_v16 = vmul.f32 %v12987_v58, %v4112_v61 }
 0x9f3   : > { %v4151_v18 = vmul.f32 0.5, %v4150_v3  ;;  %v4107_v32 = vsel %vm13124_vm8, %v12981_v4, %v4103_v62  ;;  %vm13173_vm12 = vmor %vm4124_vm13, %vm4125_vm5  ;;  %v16158_v4 = vld [vmem:[#allocation23_spill] sm:$0xff] }
 0x9f4   : > { %v13167_v0 = vpack.c.bf16 %v4107_v32, %v4097_v2  ;;  %vm4146_vm6 = vmor %vm4144_vm15, %vm4145_vm11  ;;  %v4163_v14 = vmul.f32 %v13081_v55, %v4162_v34  ;;  %v16156_v2 = vld [vmem:[#allocation26_spill] sm:$0xff]  ;;  %v4117_v61 = vsel %vm13140_vm9, %v12987_v58, %v4113_v16  ;;  %v4127_v11 = vsel %vm13173_vm12, %v12997_v10, %v4123_v31  ;;  %v6220_v31 = vld [vmem:[%s7006_s25 + $0x130] sm:$0xff] }
 0x9f5   : > { %v4152_v15 = vsub.f32 1.5, %v4151_v18  ;;  %v4143_v18 = vmul.f32 %v13067_v57, %v4142_v37  ;;  %vm13196_vm13 = vmor %vm4154_vm3, %vm4155_vm4  ;;  %v4180_v32 = vunpack.c.l.bf16 %v16156_v2  ;;  %v4181_v20 = vunpack.c.h.bf16 %v16156_v2 }
 0x9f6   : > { %v13144_v3 = vpop.permute.xlu2 %4464  ;;  %v4188_v62 = vunpack.c.l.bf16 %v13167_v0  ;;  %v4189_v37 = vunpack.c.h.bf16 %v13167_v0  ;;  %vm4166_vm5 = vmor %vm4164_vm7, %vm4165_vm0  ;;  %v4174_v10 = vunpack.c.l.bf16 %v16157_v42  ;;  %v4183_v16 = vunpack.c.h.bf16 %v16158_v4  ;;  %v6224_v0 = vld [vmem:[%s15079_s2 + $0x8] sm:$0xff] }
 0x9f7   : > { %v13165_v22 = vsel %vm16151_vm1, %v13144_v3, %v13130_v54  ;;  %v4153_v28 = vmul.f32 %v13076_v53, %v4152_v15  ;;  %v4147_v30 = vsel %vm4146_vm6, %v13067_v57, %v4143_v18  ;;  %v13216_v57 = vadd.f32 %v4549_v48, %v12159_v9  ;;  %vm16159_vm15 = vmmov %vm16151_vm1 }
 0x9f8   : > { %v4170_v17 = vpack.c.bf16 %v4147_v30, %v4137_v52  ;;  %v4167_v21 = vsel %vm4166_vm5, %v13081_v55, %v4163_v14  ;;  %v13225_v52 = vpack.c.bf16 %v4127_v11, %v4117_v61  ;;  %v4196_v48 = vmul.f32 %v4188_v62, %v4172_v13  ;;  %vm16160_vm3 = vmmov %vm16151_vm1 }
 0x9f9   : > { %4602 = vrot.lane.b32.xlu2 %v13098_v51, %s6243_s20  ;;  %v4157_v15 = vsel %vm13196_vm13, %v13076_v53, %v4153_v28  ;;  %v4197_v58 = vmul.f32 %v4189_v37, %v4173_v35  ;;  %v4182_v28 = vunpack.c.l.bf16 %v16158_v4  ;;  %v4175_v30 = vunpack.c.h.bf16 %v16157_v42  ;;  %v16161_v42 = vld [vmem:[#allocation37_spill] sm:$0xff]  ;;  %vm16162_vm10 = vmmov %vm16151_vm1 }
 0x9fa   : > { %5256 = vrot.lane.b32.xlu0 %v13065_v12, %s6242_s19  ;;  %v4192_v18 = vunpack.c.l.bf16 %v4170_v17  ;;  %v4193_v34 = vunpack.c.h.bf16 %v4170_v17  ;;  %v13227_v53 = vpack.c.bf16 %v4167_v21, %v4157_v15  ;;  %v6221_v17 = vld [vmem:[%s7006_s25 + $0x138] sm:$0xff]  ;;  %v13245_v13 = vadd.f32 %v13107_v36, %v12167_v43  ;;  %vm16165_vm11 = vmmov %vm16151_vm1 }
 0x9fb   : > { %v3827_v2 = vpack.c.bf16 %v6221_v17, %v6220_v31  ;;  %v4190_v35 = vunpack.c.l.bf16 %v13225_v52  ;;  %v4191_v61 = vunpack.c.h.bf16 %v13225_v52  ;;  %v4553_v21 = vsel %vm16159_vm15, %v12745_v47, %v13100_v44  ;;  %vm16166_vm8 = vmmov %vm16151_vm1 }
 0x9fc   : > { %v4204_v24 = vmul.f32 %v4192_v18, %v4180_v32  ;;  %v4205_v14 = vmul.f32 %v4193_v34, %v4181_v20  ;;  %v4194_v15 = vunpack.c.l.bf16 %v13227_v53  ;;  %v4195_v11 = vunpack.c.h.bf16 %v13227_v53  ;;  %vm16167_vm4 = vmmov %vm16151_vm1 }
 0x9fd   : > { %v4198_v36 = vmul.f32 %v4190_v35, %v4174_v10  ;;  %v4199_v52 = vmul.f32 %v4191_v61, %v4175_v30  ;;  %v4176_v4 = vunpack.c.l.bf16 %v16161_v42  ;;  %v4184_v44 = vunpack.c.l.bf16 %v13036_v6  ;;  %vm16169_vm2 = vmmov %vm16151_vm1 }
 0x9fe   : > { %v13229_v9 = vpop.permute.xlu0 %4490  ;;  %v4212_v32 = vpack.c.bf16 %v4204_v24, %v4196_v48  ;;  %v4213_v20 = vpack.c.bf16 %v4205_v14, %v4197_v58  ;;  %v4206_v48 = vmul.f32 %v4194_v15, %v4182_v28  ;;  %v4207_v53 = vmul.f32 %v4195_v11, %v4183_v16  ;;  %v6222_v28 = vld [vmem:[%s15079_s2 + $0x18] sm:$0x1]  ;;  %vm16170_vm9 = vmmov %vm16151_vm1 }
 0x9ff   : > { %v13237_v55 = vpop.permute.xlu1 %4486  ;;  %v4540_v43 = vsel %vm16160_vm3, %v13229_v9, %v12912_v46  ;;  %v4177_v46 = vunpack.c.h.bf16 %v16161_v42  ;;  %v4185_v10 = vunpack.c.h.bf16 %v13036_v6  ;;  %vm16163_vm7 = vcmask 1040384   ;;  %vm16171_vm14 = vmmov %vm16151_vm1 }
 0xa00   : > { %4228 = vmatmul.bf16.vlgmr.msra.gmra.mxu2 %v4212_v32  ;;  %4242 = vmatmul.bf16.vlgmr.msra.gmra.mxu3 %v4213_v20  ;;  %v4214_v14 = vpack.c.bf16 %v4206_v48, %v4198_v36  ;;  %v13280_v30 = vadd.f32 %v4540_v43, %v12199_v50  ;;  %v4215_v16 = vpack.c.bf16 %v4207_v53, %v4199_v52  ;;  %v4178_v36 = vunpack.c.l.bf16 %v3827_v2  ;;  %v16164_v48 = vld [vmem:[#allocation41_spill] sm:$0xff]  ;;  %vm16172_vm0 = vmmov %vm16151_vm1 }
 0xa01   : > { %4612 = vrot.lane.b32.xlu2 %v13216_v57, %s6243_s20  ;;  %5934 = vmatpush.msk.msra.mxu2 %vm16163_vm7, %v6222_v28  ;;  %v4200_v31 = vmul.f32 %v4188_v62, %v4176_v4  ;;  %v4208_v17 = vmul.f32 %v4192_v18, %v4184_v44  ;;  %v4201_v20 = vmul.f32 %v4189_v37, %v4177_v46  ;;  %v4186_v42 = vunpack.c.l.bf16 %v16164_v48  ;;  %v6223_v28 = vld [vmem:[%s15079_s2 + $0x10] sm:$0xff]  ;;  %vm16173_vm1 = vmmov %vm16172_vm0 }
 0xa02   : > { %4594 = vrot.lane.b32.xlu0 %v13245_v13, %s6243_s20  ;;  %4256 = vmatmul.bf16.vlgmr.msrb.gmra.mxu0 %v4214_v14  ;;  %v4209_v6 = vmul.f32 %v4193_v34, %v4185_v10  ;;  %v4179_v43 = vunpack.c.h.bf16 %v3827_v2  ;;  %v13291_v62 = vadd.f32 %v4553_v21, %v12243_v59  ;;  %v4202_v34 = vmul.f32 %v4190_v35, %v4178_v36  ;;  %v6225_v2 = vld [vmem:[%s15079_s2] sm:$0xff]  ;;  %vm16175_vm12 = vmmov %vm16172_vm0 }
 0xa03   : > { %v13263_v58 = vpop.permute.xlu2 %4478  ;;  %4351 = vmatpush.msra.mxu2 %v6223_v28  ;;  %4270 = vmatmul.bf16.vlgmr.msrb.gmra.mxu1 %v4215_v16  ;;  %v4216_v50 = vpack.c.bf16 %v4208_v17, %v4200_v31  ;;  %v4210_v52 = vmul.f32 %v4194_v15, %v4186_v42  ;;  %v4187_v53 = vunpack.c.h.bf16 %v16164_v48  ;;  %v4544_v15 = vsel %vm16167_vm4, %v12782_v49, %v13229_v9  ;;  %vm16176_vm6 = vmmov %vm16172_vm0 }
 0xa04   : > { %v13271_v24 = vsel %vm16162_vm10, %v13263_v58, %v13237_v55  ;;  %v4217_v18 = vpack.c.bf16 %v4209_v6, %v4201_v20  ;;  %v4203_v44 = vmul.f32 %v4191_v61, %v4179_v43  ;;  %v13322_v31 = vadd.f32 %v4544_v15, %v12423_v39  ;;  %vm16177_vm13 = vmmov %vm16172_vm0  ;;  %v16179_v43 = vld [vmem:[#allocation53_spill] sm:$0xff]  ;;  %v16186_v15 = vld [vmem:[#allocation3_spill] sm:$0xff] }
 0xa05   : > { %4352 = vmatpush.msra.mxu2 %v6224_v0  ;;  %v4218_v4 = vpack.c.bf16 %v4210_v52, %v4202_v34  ;;  %v4211_v14 = vmul.f32 %v4195_v11, %v4187_v53  ;;  %vm16178_vm5 = vmmov %vm16172_vm0  ;;  %v16180_v34 = vld [vmem:[#allocation31_spill] sm:$0xff] }
 0xa06   : > { %v4501_v32 = vpop.permute.xlu0 %4500  ;;  %vm16181_vm15 = vmmov %vm16172_vm0 }
 0xa07   : > { %v13298_v37 = vpop.permute.xlu1 %4496  ;;  %v4537_v59 = vsel %vm16165_vm11, %v4501_v32, %v13005_v56  ;;  %4353 = vmatpush.msra.mxu2 %v6225_v2  ;;  %v16168_v56 = vld [vmem:[#allocation55_spill] sm:$0xff]  ;;  %v4219_v10 = vpack.c.bf16 %v4211_v14, %v4203_v44  ;;  %v4541_v9 = vsel %vm16171_vm14, %v12841_v1, %v4501_v32  ;;  %v16174_v32 = vld [vmem:[#allocation18_spill] sm:$0xff]  ;;  %vm16182_vm3 = vmmov %vm16172_vm0 }
 0xa08   : > { %v13319_v46 = vadd.f32 %v4537_v59, %v16168_v56  ;;  %vm16183_vm10 = vmmov %vm16172_vm0  ;;  %v16184_v59 = vld [vmem:[#allocation24_spill] sm:$0xff]  ;;  %v16185_v44 = vld [vmem:[#allocation10_spill] sm:$0xff] }
 0xa09   : > { %4626 = vrot.lane.b32.xlu2 %v13280_v30, %s6243_s20  ;;  %v13415_v2 = vadd.f32 %v12871_v45, %v16184_v59  ;;  %vm16187_vm7 = vmmov %vm16172_vm0 }
 0xa0a   : > { %4604 = vrot.lane.b32.xlu0 %v13291_v62, %s6243_s20  ;;  %vm16188_vm11 = vmmov %vm16172_vm0 }
 0xa0b   : > { %v4489_v21 = vpop.permute.xlu2 %4488  ;;  %vm16193_vm4 = vmmov %vm16172_vm0 }
 0xa0c   : > { %v13312_v35 = vsel %vm16166_vm8, %v4489_v21, %v13298_v37  ;;  %vm16189_vm8 = vmmov %vm16172_vm0 }
 0xa0d   : > { %vm16199_vm14 = vmmov %vm16172_vm0 }
 0xa0e   : > { %v4515_v16 = vpop.permute.xlu0 %4514 }
 0xa0f   : > { %v4528_v61 = vsel %vm16169_vm2, %v4515_v16, %v13061_v7  ;;  %v13331_v49 = vpop.permute.xlu1 %4510  ;;  %v13345_v7 = vadd.f32 %v4541_v9, %v12467_v40  ;;  %v4532_v1 = vsel %vm16172_vm0, %v12914_v33, %v4515_v16  ;;  %v16190_v9 = vld [vmem:[#allocation50_spill] sm:$0xff]  ;;  %vm16194_vm2 = vmmov %vm16172_vm0 }
 0xa10   : > { %4284 = vmatmul.bf16.vlgmr.msrb.gmra.mxu2 %v4216_v50  ;;  %4298 = vmatmul.bf16.vlgmr.msrb.gmra.mxu3 %v4217_v18  ;;  %v13342_v17 = vadd.f32 %v4528_v61, %v12459_v8  ;;  %v13361_v48 = vadd.f32 %v4532_v1, %v12477_v63 }
 0xa11   : > { %4636 = vrot.lane.b32.xlu2 %v13319_v46, %s6243_s20 }
 0xa12   : > { %4618 = vrot.lane.b32.xlu0 %v13322_v31, %s6243_s20  ;;  %4312 = vmatmul.bf16.vlgmr.msra.gmra.mxu0 %v4218_v4 }
 0xa13   : > { %v4503_v11 = vpop.permute.xlu2 %4502  ;;  %4326 = vmatmul.bf16.vlgmr.msra.gmra.mxu1 %v4219_v10 }
 0xa14   : > { %v13336_v39 = vsel %vm16170_vm9, %v4503_v11, %v13331_v49  ;;  %vm16195_vm9 = vmmov %vm16172_vm0 }
 0xa19   : > { %4650 = vrot.lane.b32.xlu2 %v13342_v17, %s6243_s20 }
 0xa1a   : > { %4628 = vrot.lane.b32.xlu0 %v13345_v7, %s6243_s20 }
 0xa1b   : > { %v4513_v20 = vpop.permute.xlu2 %4512 }
 0xa1c   : > { %v4525_v6 = vpop.permute.xlu0 %4524 }
 0xa1d   : > { %v4557_v8 = vsel %vm16173_vm1, %v4525_v6, %v12745_v47  ;;  %v4529_v50 = vsel %vm16177_vm13, %v12979_v19, %v4525_v6  ;;  %v13443_v6 = vadd.f32 %v12921_v25, %v16190_v9  ;;  %vm16200_vm1 = vmmov %vm16172_vm0  ;;  %v16202_v9 = vld [vmem:[#allocation16_spill] sm:$0xff] }
 0xa1e   : > { %v13358_v36 = vadd.f32 %v4557_v8, %v16174_v32  ;;  %v4521_v40 = vpop.permute.xlu1 %4520  ;;  %v13395_v52 = vadd.f32 %v4529_v50, %v16180_v34  ;;  %v16191_v8 = vld [vmem:[#allocation48_spill] sm:$0xff]  ;;  %vm16207_vm13 = vmmov %vm16172_vm0 }
 0xa1f   : > { %v13365_v42 = vsel %vm16175_vm12, %v4513_v20, %v4521_v40  ;;  %v4555_v28 = vsel %vm16176_vm6, %v4521_v40, %v13144_v3  ;;  %v16192_v40 = vld [vmem:[#allocation13_spill] sm:$0xff]  ;;  %vm16203_vm12 = vmmov %vm16172_vm0 }
 0xa20   : > { %4596 = vrot.lane.b32.xlu1 %v13358_v36, %s6243_s20  ;;  %v13373_v47 = vadd.f32 %v4555_v28, %v12473_v26  ;;  %v13387_v26 = vadd.f32 %v12796_v38, %v16179_v43  ;;  %vm16206_vm6 = vmmov %vm16172_vm0 }
 0xa22   : > { %4642 = vrot.lane.b32.xlu0 %v13361_v48, %s6243_s20  ;;  %4592 = vrot.lane.b32.xlu2 %v13373_v47, %s6243_s20 }
 0xa23   : > { %v5231_v63 = vpop.permute.xlu2 %5230 }
 0xa24   : > { %v4471_v33 = vpop.permute.xlu0 %4470 }
 0xa25   : > { %v4546_v3 = vsel %vm16178_vm5, %v4471_v33, %v13263_v58  ;;  %v4550_v58 = vsel %vm16182_vm3, %v13041_v23, %v4471_v33  ;;  %vm16210_vm5 = vmmov %vm16172_vm0 }
 0xa26   : > { %v13392_v0 = vadd.f32 %v4546_v3, %v12647_v5  ;;  %v13423_v56 = vadd.f32 %v4550_v58, %v16186_v15  ;;  %v16196_v3 = vld [vmem:[#allocation28_spill] sm:$0xff]  ;;  %vm16216_vm3 = vmmov %vm16172_vm0 }
 0xa27   : > { %v13389_v18 = vpop.permute.xlu1 %5234  ;;  %v13471_v43 = vadd.f32 %v13016_v27, %v16196_v3  ;;  %v16208_v3 = vld [vmem:[#allocation36_spill] sm:$0xff] }
 0xa28   : > { %v13400_v19 = vsel %vm16181_vm15, %v5231_v63, %v13389_v18  ;;  %4610 = vrot.lane.b32.xlu1 %v13387_v26, %s6243_s20  ;;  %vm16211_vm15 = vmmov %vm16172_vm0 }
 0xa2a   : > { %4652 = vrot.lane.b32.xlu0 %v13395_v52, %s6243_s20  ;;  %4606 = vrot.lane.b32.xlu2 %v13392_v0, %s6243_s20 }
 0xa2b   : > { %v5237_v38 = vpop.permute.xlu2 %5236 }
 0xa2c   : > { %v4481_v5 = vpop.permute.xlu0 %4480 }
 0xa2d   : > { %v4543_v53 = vsel %vm16183_vm10, %v4481_v5, %v4489_v21  ;;  %v4547_v16 = vsel %vm16188_vm11, %v13130_v54, %v4481_v5  ;;  %v16197_v5 = vld [vmem:[#allocation21_spill] sm:$0xff]  ;;  %vm16217_vm10 = vmmov %vm16172_vm0 }
 0xa2e   : > { %v13420_v14 = vadd.f32 %v4543_v53, %v16185_v44  ;;  %v13451_v28 = vadd.f32 %v4547_v16, %v16192_v40  ;;  %v16198_v53 = vld [vmem:[#allocation38_spill] sm:$0xff]  ;;  %vm16223_vm11 = vmmov %vm16172_vm0 }
 0xa2f   : > { %v13417_v4 = vpop.permute.xlu1 %5240 }
 0xa30   : > { %v13428_v10 = vsel %vm16187_vm7, %v5237_v38, %v13417_v4  ;;  %4620 = vrot.lane.b32.xlu1 %v13415_v2, %s6243_s20  ;;  %vm16222_vm7 = vmmov %vm16172_vm0 }
 0xa32   : > { %4598 = vrot.lane.b32.xlu0 %v13423_v56, %s6243_s20  ;;  %4616 = vrot.lane.b32.xlu2 %v13420_v14, %s6243_s20 }
 0xa33   : > { %v5243_v45 = vpop.permute.xlu2 %5242 }
 0xa34   : > { %v4495_v21 = vpop.permute.xlu0 %4494 }
 0xa35   : > { %v4534_v61 = vsel %vm16189_vm8, %v4495_v21, %v4503_v11  ;;  %v4538_v11 = vsel %vm16194_vm2, %v13237_v55, %v4495_v21  ;;  %v16201_v21 = vld [vmem:[#allocation33_spill] sm:$0xff]  ;;  %vm16228_vm8 = vmmov %vm16172_vm0 }
 0xa36   : > { %v13448_v32 = vadd.f32 %v4534_v61, %v16191_v8  ;;  %v13479_v59 = vadd.f32 %v4538_v11, %v16198_v53  ;;  %vm16234_vm2 = vmmov %vm16172_vm0 }
 0xa37   : > { %v13445_v1 = vpop.permute.xlu1 %5246 }
 0xa38   : > { %v13456_v33 = vsel %vm16193_vm4, %v5243_v45, %v13445_v1  ;;  %4634 = vrot.lane.b32.xlu1 %v13443_v6, %s6243_s20  ;;  %vm16229_vm4 = vmmov %vm16172_vm0 }
 0xa3a   : > { %4608 = vrot.lane.b32.xlu0 %v13451_v28, %s6243_s20  ;;  %4630 = vrot.lane.b32.xlu2 %v13448_v32, %s6243_s20 }
 0xa3b   : > { %v5249_v25 = vpop.permute.xlu2 %5248 }
 0xa3c   : > { %v4505_v54 = vpop.permute.xlu0 %4504 }
 0xa3d   : > { %v4531_v50 = vsel %vm16195_vm9, %v4505_v54, %v4513_v20  ;;  %v4535_v20 = vsel %vm16172_vm0, %v13298_v37, %v4505_v54  ;;  %v16204_v37 = vld [vmem:[#allocation45_spill] sm:$0xff]  ;;  %vm16235_vm9 = vcmp.lt.s32.totalorder %v6495_v29, 32 }
 0xa3e   : > { %v13476_v58 = vadd.f32 %v4531_v50, %v16197_v5  ;;  %v13506_v8 = vadd.f32 %v4535_v20, %v16202_v9  ;;  %v13527_v5 = vadd.f32 %v13165_v22, %v16208_v3  ;;  %v16215_v9 = vld [vmem:[#allocation42_spill] sm:$0xff]  ;;  %v16219_v3 = vld [vmem:[#allocation47_spill] sm:$0xff]  ;;  %vm16240_vm0 = vmmov %vm16235_vm9 }
 0xa3f   : > { %v13473_v34 = vpop.permute.xlu1 %5252 }
 0xa40   : > { %v13484_v44 = vsel %vm16199_vm14, %v5249_v25, %v13473_v34  ;;  %4644 = vrot.lane.b32.xlu1 %v13471_v43, %s6243_s20  ;;  %vm16239_vm14 = vmmov %vm16235_vm9 }
 0xa42   : > { %4622 = vrot.lane.b32.xlu0 %v13479_v59, %s6243_s20  ;;  %4640 = vrot.lane.b32.xlu2 %v13476_v58, %s6243_s20 }
 0xa43   : > { %v13492_v27 = vpop.permute.xlu2 %5254 }
 0xa44   : > { %v4519_v55 = vpop.permute.xlu0 %4518 }
 0xa45   : > { %v4554_v15 = vsel %vm16200_vm1, %v4519_v55, %v13041_v23  ;;  %v4526_v50 = vsel %vm16206_vm6, %v13331_v49, %v4519_v55  ;;  %vm16244_vm1 = vmmov %vm16240_vm0 }
 0xa46   : > { %v13501_v16 = vadd.f32 %v4554_v15, %v16201_v21  ;;  %v13533_v20 = vadd.f32 %v4526_v50, %v12838_v60  ;;  %v16212_v60 = vld [vmem:[#allocation46_spill] sm:$0xff]  ;;  %v16218_v50 = vld [vmem:[#allocation49_spill] sm:$0xff]  ;;  %vm16252_vm6 = vmmov %vm16234_vm2 }
 0xa47   : > { %v13503_v61 = vpop.permute.xlu1 %5258  ;;  %v13549_v55 = vadd.f32 %v13271_v24, %v16212_v60  ;;  %v16213_v15 = vld [vmem:[#allocation14_spill] sm:$0xff] }
 0xa48   : > { %v5276_v40 = vsel %vm16203_vm12, %v13503_v61, %v5231_v63  ;;  %4590 = vrot.lane.b32.xlu1 %v13501_v16, %s6243_s20  ;;  %vm16248_vm12 = vmmov %vm16240_vm0 }
 0xa49   : > { %v13514_v54 = vadd.f32 %v5276_v40, %v16204_v37 }
 0xa4a   : > { %4632 = vrot.lane.b32.xlu0 %v13506_v8, %s6243_s20 }
 0xa4b   : > { %16205 = vst [vmem:[#allocation25_spill] sm:$0xff] %v13514_v54  ;;  %5294 = vrot.lane.b32.xlu2 %v13514_v54, %s6243_s20  ;;  %v5261_v23 = vpop.permute.xlu2 %5260 }
 0xa4c   : > { %v5233_v11 = vpop.permute.xlu0 %5232 }
 0xa4d   : > { %v5275_v63 = vsel %vm16207_vm13, %v5233_v11, %v5237_v38  ;;  %v5277_v22 = vsel %vm16210_vm5, %v5261_v23, %v5233_v11  ;;  %vm16253_vm13 = vmmov %vm16240_vm0 }
 0xa4e   : > { %v13530_v53 = vadd.f32 %v5275_v63, %v12836_v41  ;;  %v13555_v40 = vadd.f32 %v5277_v22, %v16215_v9  ;;  %v13572_v63 = vadd.f32 %v13312_v35, %v16218_v50  ;;  %v16227_v50 = vld [vmem:[#allocation12_spill] sm:$0xff]  ;;  %vm16254_vm5 = vmmov %vm16240_vm0 }
 0xa50   : > { %16209 = vst [vmem:[#allocation64_spill] sm:$0xff] %v13530_v53  ;;  %4600 = vrot.lane.b32.xlu1 %v13527_v5, %s6243_s20 }
 0xa52   : > { %4646 = vrot.lane.b32.xlu0 %v13533_v20, %s6243_s20 }
 0xa53   : > { %5300 = vrot.lane.b32.xlu2 %v13530_v53, %s6243_s20  ;;  %v13541_v49 = vpop.permute.xlu2 %4602 }
 0xa54   : > { %v5239_v38 = vpop.permute.xlu0 %5238 }
 0xa55   : > { %v5270_v41 = vsel %vm16211_vm15, %v5239_v38, %v5243_v45  ;;  %v5272_v24 = vsel %vm16216_vm3, %v13389_v18, %v5239_v38  ;;  %vm16256_vm15 = vmmov %vm16240_vm0 }
 0xa56   : > { %v13552_v21 = vadd.f32 %v5270_v41, %v16213_v15  ;;  %v16221_v41 = vld [vmem:[#allocation2_spill] sm:$0xff]  ;;  %v16224_v15 = vld [vmem:[#allocation56_spill] sm:$0xff]  ;;  %vm16257_vm3 = vmmov %vm16240_vm0 }
 0xa57   : > { %v13578_v60 = vadd.f32 %v5272_v24, %v16221_v41  ;;  %v13596_v9 = vadd.f32 %v13336_v39, %v16224_v15  ;;  %v16225_v24 = vld [vmem:[#allocation39_spill] sm:$0xff]  ;;  %v16231_v15 = vld [vmem:[#allocation70_spill] sm:$0xff] }
 0xa58   : > { %16214 = vst [vmem:[#allocation66_spill] sm:$0xff] %v13552_v21  ;;  %4614 = vrot.lane.b32.xlu1 %v13549_v55, %s6243_s20 }
 0xa5a   : > { %5296 = vrot.lane.b32.xlu0 %v13555_v40, %s6243_s20 }
 0xa5b   : > { %5306 = vrot.lane.b32.xlu2 %v13552_v21, %s6243_s20  ;;  %v13563_v45 = vpop.permute.xlu2 %4612 }
 0xa5c   : > { %v5245_v37 = vpop.permute.xlu0 %5244 }
 0xa5d   : > { %v5269_v11 = vsel %vm16217_vm10, %v5245_v37, %v5249_v25  ;;  %v5271_v35 = vsel %vm16222_vm7, %v13417_v4, %v5245_v37  ;;  %vm16258_vm10 = vcmask 203776   ;;  %vm16259_vm7 = vmmov %vm16240_vm0 }
 0xa5e   : > { %v13575_v22 = vadd.f32 %v5269_v11, %v16219_v3  ;;  %v13602_v3 = vadd.f32 %v5271_v35, %v16227_v50  ;;  %v16230_v35 = vld [vmem:[#allocation44_spill] sm:$0xff]  ;;  %v16233_v50 = vld [vmem:[#allocation65_spill] sm:$0xff] }
 0xa60   : > { %16220 = vst [vmem:[#allocation68_spill] sm:$0xff] %v13575_v22  ;;  %4624 = vrot.lane.b32.xlu1 %v13572_v63, %s6243_s20 }
 0xa62   : > { %5302 = vrot.lane.b32.xlu0 %v13578_v60, %s6243_s20 }
 0xa63   : > { %5312 = vrot.lane.b32.xlu2 %v13575_v22, %s6243_s20  ;;  %v13586_v18 = vpop.permute.xlu2 %4626 }
 0xa64   : > { %v5251_v25 = vpop.permute.xlu0 %5250 }
 0xa65   : > { %v5264_v38 = vsel %vm16223_vm11, %v5251_v25, %v13492_v27  ;;  %v5266_v39 = vsel %vm16228_vm8, %v13445_v1, %v5251_v25  ;;  %vm16260_vm11 = vmmov %vm16240_vm0 }
 0xa66   : > { %v13599_v11 = vadd.f32 %v5264_v38, %v16225_v24  ;;  %v13619_v38 = vadd.f32 %v13365_v42, %v16230_v35  ;;  %v13625_v22 = vadd.f32 %v5266_v39, %v16233_v50  ;;  %v16236_v39 = vld [vmem:[#allocation59_spill] sm:$0xff]  ;;  %vm16261_vm8 = vmmov %vm16240_vm0 }
 0xa68   : > { %16226 = vst [vmem:[#allocation69_spill] sm:$0xff] %v13599_v11  ;;  %4638 = vrot.lane.b32.xlu1 %v13596_v9, %s6243_s20 }
 0xa6a   : > { %5308 = vrot.lane.b32.xlu0 %v13602_v3, %s6243_s20 }
 0xa6b   : > { %5318 = vrot.lane.b32.xlu2 %v13599_v11, %s6243_s20  ;;  %v13610_v4 = vpop.permute.xlu2 %4636 }
 0xa6c   : > { %v5257_v37 = vpop.permute.xlu0 %5256 }
 0xa6d   : > { %v5263_v41 = vsel %vm16229_vm4, %v5257_v37, %v5261_v23  ;;  %v5265_v42 = vsel %vm16234_vm2, %v13473_v34, %v5257_v37  ;;  %vm16262_vm4 = vmmov %vm16258_vm10 }
 0xa6e   : > { %v13622_v24 = vadd.f32 %v5263_v41, %v16231_v15  ;;  %v13641_v41 = vadd.f32 %v13400_v19, %v16236_v39  ;;  %v13647_v15 = vadd.f32 %v5265_v42, %v13065_v12  ;;  %vm16263_vm2 = vmmov %vm16240_vm0 }
 0xa70   : > { %16232 = vst [vmem:[#allocation67_spill] sm:$0xff] %v13622_v24  ;;  %4648 = vrot.lane.b32.xlu1 %v13619_v38, %s6243_s20 }
 0xa71   : > { %16238 = vst [vmem:[#allocation15_spill] sm:$0xff] %v13647_v15 }
 0xa72   : > { %5314 = vrot.lane.b32.xlu0 %v13625_v22, %s6243_s20 }
 0xa73   : > { %5324 = vrot.lane.b32.xlu2 %v13622_v24, %s6243_s20  ;;  %v4651_v1 = vpop.permute.xlu2 %4650 }
 0xa74   : > { %v4595_v23 = vpop.permute.xlu0 %4594 }
 0xa75   : > { %v4680_v25 = vsel %vm16235_vm9, %v4595_v23, %v13541_v49  ;;  %v4684_v19 = vsel %vm16239_vm14, %v4651_v1, %v4595_v23  ;;  %vm16264_vm9 = vmmov %vm16240_vm0 }
 0xa76   : > { %v13644_v35 = vadd.f32 %v4680_v25, %v13098_v51  ;;  %v16241_v51 = vld [vmem:[#allocation62_spill] sm:$0xff]  ;;  %v13670_v25 = vadd.f32 %v4684_v19, %v13245_v13  ;;  %vm16265_vm14 = vmmov %vm16240_vm0 }
 0xa77   : > { %v13664_v50 = vadd.f32 %v13428_v10, %v16241_v51  ;;  %v16245_v13 = vld [vmem:[#allocation30_spill] sm:$0xff] }
 0xa78   : > { %16237 = vst [vmem:[#allocation63_spill] sm:$0xff] %v13644_v35  ;;  %5298 = vrot.lane.b32.xlu1 %v13641_v41, %s6243_s20  ;;  %v13685_v19 = vadd.f32 %v13456_v33, %v16245_v13  ;;  %v16249_v33 = vld [vmem:[#allocation43_spill] sm:$0xff] }
 0xa79   : > { %16243 = vst [vmem:[#allocation11_spill] sm:$0xff] %v13670_v25  ;;  %v13699_v13 = vadd.f32 %v13484_v44, %v16249_v33  ;;  %v16255_v33 = vld [vmem:[#allocation7_spill] sm:$0xff] }
 0xa7a   : > { %5320 = vrot.lane.b32.xlu0 %v13647_v15, %s6243_s20  ;;  %16246 = vst [vmem:[#allocation23_spill] sm:$0xff] %v13685_v19 }
 0xa7b   : > { %4730 = vrot.lane.b32.xlu2 %v13644_v35, %s6244_s21  ;;  %16250 = vst [vmem:[#allocation41_spill] sm:$0xff] %v13699_v13 }
 0xa7c   : > { %v4605_v34 = vpop.permute.xlu0 %4604  ;;  %v13657_v37 = vpop.permute.xlu2 %4592 }
 0xa7d   : > { %v4677_v12 = vsel %vm16240_vm0, %v4605_v34, %v13563_v45 }
 0xa7e   : > { %v13667_v42 = vadd.f32 %v4677_v12, %v13216_v57 }
 0xa7f   : > { %v4257_v23 = vpop.f32.mrf.mxu0 }
 0xa80   : > { %16242 = vst [vmem:[#allocation26_spill] sm:$0xff] %v13667_v42  ;;  %5304 = vrot.lane.b32.xlu1 %v13664_v50, %s6243_s20  ;;  %v4271_v10 = vpop.f32.mrf.mxu1 }
 0xa82   : > { %4722 = vrot.lane.b32.xlu0 %v13670_v25, %s6244_s21 }
 0xa83   : > { %4740 = vrot.lane.b32.xlu2 %v13667_v42, %s6244_s21  ;;  %v4229_v12 = vpop.f32.mrf.mxu2  ;;  %v4243_v51 = vpop.f32.mrf.mxu3 }
 0xa84   : > { %v4619_v39 = vpop.permute.xlu0 %4618  ;;  %v13678_v24 = vpop.permute.xlu2 %4606  ;;  %v4244_v25 = vadd.f32 %v4243_v51, %v4229_v12  ;;  %v5262_v12 = vsel %vm16252_vm6, %v13492_v27, %v13503_v61  ;;  %vm16268_vm6 = vmmov %vm16240_vm0 }
 0xa85   : > { %v4668_v57 = vsel %vm16244_vm1, %v4619_v39, %v13586_v18  ;;  %vm16266_vm1 = vmmov %vm16240_vm0 }
 0xa86   : > { %v13688_v11 = vadd.f32 %v4668_v57, %v13280_v30 }
 0xa87   : > { %v4259_v21 = vpop.f32.mrf.mxu0 }
 0xa88   : > { %16247 = vst [vmem:[#allocation37_spill] sm:$0xff] %v13688_v11  ;;  %5310 = vrot.lane.b32.xlu1 %v13685_v19, %s6243_s20  ;;  %v4273_v54 = vpop.f32.mrf.mxu1 }
 0xa8b   : > { %4754 = vrot.lane.b32.xlu2 %v13688_v11, %s6244_s21  ;;  %v4231_v53 = vpop.f32.mrf.mxu2  ;;  %v4245_v30 = vpop.f32.mrf.mxu3  ;;  %v4258_v11 = vadd.f32 %v4257_v23, %v4244_v25 }
 0xa8c   : > { %v4629_v42 = vpop.permute.xlu0 %4628  ;;  %v13704_v19 = vpop.permute.xlu2 %4616  ;;  %v4246_v25 = vadd.f32 %v4245_v30, %v4231_v53 }
 0xa8d   : > { %v4665_v35 = vsel %vm16248_vm12, %v4629_v42, %v13610_v4  ;;  %v4272_v23 = vadd.f32 %v4271_v10, %v4258_v11  ;;  %vm16267_vm12 = vmmov %vm16240_vm0 }
 0xa8e   : > { %v13702_v57 = vadd.f32 %v4665_v35, %v13319_v46 }
 0xa90   : > { %16251 = vst [vmem:[#allocation55_spill] sm:$0xff] %v13702_v57  ;;  %5316 = vrot.lane.b32.xlu1 %v13699_v13, %s6243_s20  ;;  %v13722_v13 = vadd.f32 %v5262_v12, %v16255_v33 }
 0xa92   : > { %v4597_v15 = vpop.permute.xlu1 %4596 }
 0xa93   : > { %4764 = vrot.lane.b32.xlu2 %v13702_v57, %s6244_s21  ;;  %v4681_v46 = vsel %vm16253_vm13, %v4597_v15, %v4605_v34  ;;  %v4285_v27 = vpop.f32.mrf.mxu2  ;;  %v4299_v61 = vpop.f32.mrf.mxu3  ;;  %vm16269_vm13 = vmmov %vm16240_vm0 }
 0xa94   : > { %v13717_v44 = vadd.f32 %v4681_v46, %v13291_v62  ;;  %v4643_v35 = vpop.permute.xlu0 %4642  ;;  %v4286_v34 = vadd.f32 %v4285_v27, %v4272_v23  ;;  %v4313_v62 = vpop.f32.mrf.mxu0  ;;  %v4260_v46 = vadd.f32 %v4259_v21, %v4246_v25 }
 0xa95   : > { %v4656_v51 = vsel %vm16254_vm5, %v4643_v35, %v4651_v1  ;;  %v4327_v1 = vpop.f32.mrf.mxu1  ;;  %v13731_v11 = vpop.permute.xlu2 %4630  ;;  %vm16270_vm5 = vmmov %vm16240_vm0 }
 0xa96   : > { %4732 = vrot.lane.b32.xlu0 %v13717_v44, %s6244_s21  ;;  %v13727_v57 = vadd.f32 %v4656_v51, %v13342_v17  ;;  %v4300_v53 = vadd.f32 %v4299_v61, %v4286_v34  ;;  %v4274_v25 = vadd.f32 %v4273_v54, %v4260_v46 }
 0xa98   : > { %5322 = vrot.lane.b32.xlu1 %v13722_v13, %s6243_s20  ;;  %v4314_v12 = vadd.f32 %v4313_v62, %v4300_v53 }
 0xa9a   : > { %v4611_v10 = vpop.permute.xlu1 %4610  ;;  %v4328_v21 = vadd.f32 %v4327_v1, %v4314_v12 }
 0xa9b   : > { %4778 = vrot.lane.b32.xlu2 %v13727_v57, %s6244_s21  ;;  %v4672_v30 = vsel %vm16256_vm15, %v4611_v10, %v4619_v39  ;;  %v4287_v27 = vpop.f32.mrf.mxu2  ;;  %v4676_v54 = vsel %vm16259_vm7, %v13541_v49, %v4611_v10  ;;  %vm16271_vm15 = vmmov %vm16240_vm0 }
 0xa9c   : > { %v13738_v17 = vadd.f32 %v4672_v30, %v13322_v31  ;;  %v4653_v51 = vpop.permute.xlu0 %4652  ;;  %v4288_v61 = vadd.f32 %v4287_v27, %v4274_v25  ;;  %5935 = vmatmul.msk.f32.vlgmr.msra.gmra.mxu2 %vm16258_vm10, %v4328_v21  ;;  %v4301_v31 = vpop.f32.mrf.mxu3  ;;  %v13766_v21 = vadd.f32 %v4676_v54, %v13387_v26  ;;  %vm16273_vm10 = vmmov %vm16240_vm0 }
 0xa9d   : > { %v4685_v23 = vsel %vm16257_vm3, %v4653_v51, %v4597_v15  ;;  %v4315_v62 = vpop.f32.mrf.mxu0  ;;  %v4329_v15 = vpop.f32.mrf.mxu1  ;;  %vm16272_vm3 = vmmov %vm16240_vm0 }
 0xa9e   : > { %v13743_v33 = vadd.f32 %v4685_v23, %v13358_v36  ;;  %4746 = vrot.lane.b32.xlu0 %v13738_v17, %s6244_s21  ;;  %v4302_v39 = vadd.f32 %v4301_v31, %v4288_v61  ;;  %v13755_v1 = vpop.permute.xlu2 %4640  ;;  %vm16274_vm7 = vmmov %vm16240_vm0 }
 0xaa0   : > { %4724 = vrot.lane.b32.xlu1 %v13743_v33, %s6244_s21  ;;  %v4316_v46 = vadd.f32 %v4315_v62, %v4302_v39 }
 0xaa2   : > { %v4621_v34 = vpop.permute.xlu1 %4620  ;;  %v4330_v23 = vadd.f32 %v4329_v15, %v4316_v46 }
 0xaa3   : > { %v4669_v36 = vsel %vm16260_vm11, %v4621_v34, %v4629_v42  ;;  %v4673_v49 = vsel %vm16263_vm2, %v13563_v45, %v4621_v34  ;;  %vm16275_vm11 = vmmov %vm16240_vm0 }
 0xaa4   : > { %v13758_v53 = vadd.f32 %v4669_v36, %v13345_v7  ;;  %v4599_v30 = vpop.permute.xlu0 %4598  ;;  %5936 = vmatmul.msk.f32.gmra.mxu2 %vm16262_vm4, %v4330_v23  ;;  %v13787_v27 = vadd.f32 %v4673_v49, %v13415_v2  ;;  %vm16277_vm4 = vmmov %vm16240_vm0 }
 0xaa5   : > { %v13763_v12 = vsel %vm16261_vm8, %v4599_v30, %v13678_v24  ;;  %vm16276_vm8 = vmmov %vm16240_vm0 }
 0xaa6   : > { %4756 = vrot.lane.b32.xlu0 %v13758_v53, %s6244_s21  ;;  %v13789_v61 = vpop.permute.xlu2 %5294  ;;  %vm16278_vm2 = vmmov %vm16240_vm0 }
 0xaa8   : > { %4738 = vrot.lane.b32.xlu1 %v13766_v21, %s6244_s21 }
 0xaaa   : > { %v4635_v7 = vpop.permute.xlu1 %4634 }
 0xaab   : > { %v4660_v42 = vsel %vm16264_vm9, %v4635_v7, %v4643_v35  ;;  %vm16279_vm9 = vmmov %vm16240_vm0 }
 0xaac   : > { %v13779_v10 = vadd.f32 %v4660_v42, %v13361_v48  ;;  %v4609_v26 = vpop.permute.xlu0 %4608  ;;  %v4664_v48 = vsel %vm16240_vm0, %v13586_v18, %v4635_v7 }
 0xaad   : > { %v13784_v25 = vsel %vm16265_vm14, %v4609_v26, %v13704_v19  ;;  %v13809_v34 = vadd.f32 %v4664_v48, %v13443_v6  ;;  %vm16280_vm14 = vmmov %vm16240_vm0 }
 0xaae   : > { %4770 = vrot.lane.b32.xlu0 %v13779_v10, %s6244_s21  ;;  %v13813_v62 = vpop.permute.xlu2 %5300 }
 0xab0   : > { %4748 = vrot.lane.b32.xlu1 %v13787_v27, %s6244_s21 }
 0xab2   : > { %v4645_v45 = vpop.permute.xlu1 %4644 }
 0xab3   : > { %v4657_v35 = vsel %vm16266_vm1, %v4645_v45, %v4653_v51  ;;  %vm16282_vm1 = vmmov %vm16240_vm0 }
 0xab4   : > { %v13801_v31 = vadd.f32 %v4657_v35, %v13395_v52  ;;  %v4623_v2 = vpop.permute.xlu0 %4622  ;;  %v4661_v52 = vsel %vm16268_vm6, %v13610_v4, %v4645_v45  ;;  %vm16284_vm6 = vmmov %vm16240_vm0 }
 0xab5   : > { %v13806_v39 = vsel %vm16267_vm12, %v4623_v2, %v13731_v11  ;;  %v13831_v15 = vadd.f32 %v4661_v52, %v13471_v43  ;;  %vm16283_vm12 = vmmov %vm16240_vm0 }
 0xab6   : > { %4780 = vrot.lane.b32.xlu0 %v13801_v31, %s6244_s21  ;;  %v13837_v4 = vpop.permute.xlu2 %5306 }
 0xab8   : > { %4762 = vrot.lane.b32.xlu1 %v13809_v34, %s6244_s21 }
 0xaba   : > { %v4591_v18 = vpop.permute.xlu1 %4590 }
 0xabb   : > { %v4678_v51 = vsel %vm16269_vm13, %v4591_v18, %v4599_v30  ;;  %vm16285_vm13 = vmmov %vm16240_vm0 }
 0xabc   : > { %v13823_v54 = vadd.f32 %v4678_v51, %v13423_v56  ;;  %v4633_v6 = vpop.permute.xlu0 %4632 }
 0xabd   : > { %v13828_v36 = vsel %vm16270_vm5, %v4633_v6, %v13755_v1  ;;  %vm16286_vm5 = vmmov %vm16240_vm0 }
 0xabe   : > { %4726 = vrot.lane.b32.xlu0 %v13823_v54, %s6244_s21 }
 0xac0   : > { %4772 = vrot.lane.b32.xlu1 %v13831_v15, %s6244_s21 }
 0xac2   : > { %v4601_v46 = vpop.permute.xlu1 %4600 }
 0xac3   : > { %v4675_v56 = vsel %vm16271_vm15, %v4601_v46, %v4609_v26  ;;  %v4679_v42 = vsel %vm16273_vm10, %v13657_v37, %v4601_v46  ;;  %v13858_v26 = vpop.permute.xlu2 %5312  ;;  %vm16287_vm15 = vmmov %vm16240_vm0 }
 0xac4   : > { %v13842_v30 = vadd.f32 %v4675_v56, %v13451_v28  ;;  %v4647_v23 = vpop.permute.xlu0 %4646  ;;  %vm16291_vm10 = vmmov %vm16240_vm0 }
 0xac5   : > { %v4682_v43 = vsel %vm16272_vm3, %v4647_v23, %v4591_v18  ;;  %vm16290_vm3 = vmmov %vm16240_vm0 }
 0xac6   : > { %v13847_v7 = vadd.f32 %v4682_v43, %v13501_v16  ;;  %4736 = vrot.lane.b32.xlu0 %v13842_v30, %s6244_s21  ;;  %v13864_v16 = vadd.f32 %v4679_v42, %v13527_v5 }
 0xac8   : > { %4718 = vrot.lane.b32.xlu1 %v13847_v7, %s6244_s21 }
 0xaca   : > { %v4615_v49 = vpop.permute.xlu1 %4614 }
 0xacb   : > { %v4666_v28 = vsel %vm16274_vm7, %v4615_v49, %v4623_v2  ;;  %v4670_v2 = vsel %vm16275_vm11, %v13678_v24, %v4615_v49  ;;  %v13880_v5 = vpop.permute.xlu2 %5318  ;;  %vm16296_vm7 = vmmov %vm16240_vm0 }
 0xacc   : > { %v13861_v45 = vadd.f32 %v4666_v28, %v13479_v59  ;;  %v13866_v48 = vpop.permute.xlu0 %5296  ;;  %v13883_v52 = vadd.f32 %v4670_v2, %v13549_v55  ;;  %vm16297_vm11 = vmmov %vm16240_vm0 }
 0xace   : > { %4750 = vrot.lane.b32.xlu0 %v13861_v45, %s6244_s21 }
 0xad0   : > { %4728 = vrot.lane.b32.xlu1 %v13864_v16, %s6244_s21 }
 0xad2   : > { %v4625_v35 = vpop.permute.xlu1 %4624 }
 0xad3   : > { %v4663_v59 = vsel %vm16276_vm8, %v4625_v35, %v4633_v6  ;;  %v4667_v6 = vsel %vm16277_vm4, %v13704_v19, %v4625_v35  ;;  %v13904_v56 = vpop.permute.xlu2 %5324  ;;  %vm16302_vm8 = vmmov %vm16240_vm0 }
 0xad4   : > { %v13878_v18 = vadd.f32 %v4663_v59, %v13506_v8  ;;  %v13887_v51 = vpop.permute.xlu0 %5302  ;;  %v13900_v55 = vadd.f32 %v4667_v6, %v13572_v63  ;;  %v5341_v19 = vsel %vm16279_vm9, %v13904_v56, %v13866_v48  ;;  %vm16303_vm4 = vmmov %vm16240_vm0 }
 0xad5   : > { %v13921_v49 = vadd.f32 %v5341_v19, %v13555_v40  ;;  %vm16309_vm9 = vmmov %vm16240_vm0 }
 0xad6   : > { %4760 = vrot.lane.b32.xlu0 %v13878_v18, %s6244_s21 }
 0xad7   : > { %16281 = vst [vmem:[#allocation18_spill] sm:$0xff] %v13921_v49 }
 0xad8   : > { %4742 = vrot.lane.b32.xlu1 %v13883_v52, %s6244_s21 }
 0xada   : > { %v4639_v24 = vpop.permute.xlu1 %4638 }
 0xadb   : > { %v4654_v8 = vsel %vm16278_vm2, %v4639_v24, %v4647_v23  ;;  %v4658_v63 = vsel %vm16280_vm14, %v13731_v11, %v4639_v24  ;;  %vm16306_vm2 = vmmov %vm16240_vm0  ;;  %vm16310_vm14 = vcmp.lt.s32.totalorder %v6495_v29, 64 }
 0xadc   : > { %v13897_v46 = vadd.f32 %v4654_v8, %v13533_v20  ;;  %v13912_v23 = vpop.permute.xlu0 %5308  ;;  %v13927_v28 = vadd.f32 %v4658_v63, %v13596_v9  ;;  %v13943_v9 = vadd.f32 %v13763_v12, %v13392_v0 }
 0xade   : > { %4774 = vrot.lane.b32.xlu0 %v13897_v46, %s6244_s21 }
 0xae0   : > { %4752 = vrot.lane.b32.xlu1 %v13900_v55, %s6244_s21 }
 0xae2   : > { %v4649_v20 = vpop.permute.xlu1 %4648 }
 0xae3   : > { %v4683_v43 = vsel %vm16240_vm0, %v4649_v20, %v13657_v37  ;;  %v4655_v40 = vsel %vm16282_vm1, %v13755_v1, %v4649_v20  ;;  %vm16311_vm0 = vmmov %vm16310_vm14 }
 0xae4   : > { %v13924_v42 = vadd.f32 %v4683_v43, %v13373_v47  ;;  %v13945_v37 = vpop.permute.xlu0 %5314  ;;  %v13951_v2 = vadd.f32 %v4655_v40, %v13619_v38  ;;  %v13967_v38 = vadd.f32 %v13784_v25, %v13420_v14  ;;  %v4731_v14 = vpop.permute.xlu2 %4730  ;;  %v13991_v25 = vadd.f32 %v13806_v39, %v13448_v32  ;;  %v16292_v39 = vld [vmem:[#allocation15_spill] sm:$0xff]  ;;  %vm16314_vm1 = vmmov %vm16311_vm0 }
 0xae5   : > { %v16294_v40 = vld [vmem:[#allocation23_spill] sm:$0xff] }
 0xae6   : > { %4720 = vrot.lane.b32.xlu2 %v13924_v42, %s6244_s21  ;;  %5360 = vrot.lane.b32.xlu0 %v13921_v49, %s6244_s21 }
 0xae8   : > { %4766 = vrot.lane.b32.xlu1 %v13927_v28, %s6244_s21 }
 0xaea   : > { %v5299_v11 = vpop.permute.xlu1 %5298 }
 0xaeb   : > { %v5336_v47 = vsel %vm16283_vm12, %v5299_v11, %v13887_v51  ;;  %v5338_v0 = vsel %vm16284_vm6, %v13789_v61, %v5299_v11  ;;  %vm16315_vm12 = vmmov %vm16311_vm0 }
 0xaec   : > { %v13948_v35 = vadd.f32 %v5336_v47, %v13578_v60  ;;  %v13973_v59 = vadd.f32 %v5338_v0, %v13641_v41  ;;  %v13975_v24 = vpop.permute.xlu0 %5320  ;;  %v14018_v11 = vpop.permute.xlu2 %4740  ;;  %vm16316_vm6 = vmmov %vm16311_vm0 }
 0xaee   : > { %4734 = vrot.lane.b32.xlu2 %v13943_v9, %s6244_s21  ;;  %5366 = vrot.lane.b32.xlu0 %v13948_v35, %s6244_s21 }
 0xaf0   : > { %4776 = vrot.lane.b32.xlu1 %v13951_v2, %s6244_s21 }
 0xaf2   : > { %v5305_v1 = vpop.permute.xlu1 %5304 }
 0xaf3   : > { %v5335_v60 = vsel %vm16285_vm13, %v5305_v1, %v13912_v23  ;;  %vm16317_vm13 = vmmov %vm16311_vm0 }
 0xaf4   : > { %v13970_v12 = vadd.f32 %v5335_v60, %v13602_v3  ;;  %v5337_v3 = vsel %vm16286_vm5, %v13813_v62, %v5305_v1  ;;  %v4723_v20 = vpop.permute.xlu0 %4722  ;;  %v16298_v60 = vld [vmem:[#allocation25_spill] sm:$0xff]  ;;  %vm16318_vm5 = vmmov %vm16306_vm2 }
 0xaf5   : > { %v13997_v19 = vadd.f32 %v5337_v3, %v13664_v50  ;;  %v14013_v50 = vadd.f32 %v13828_v36, %v13476_v58  ;;  %v16300_v3 = vld [vmem:[#allocation41_spill] sm:$0xff] }
 0xaf6   : > { %4744 = vrot.lane.b32.xlu2 %v13967_v38, %s6244_s21  ;;  %5372 = vrot.lane.b32.xlu0 %v13970_v12, %s6244_s21 }
 0xaf7   : > { %16289 = vst [vmem:[#allocation31_spill] sm:$0xff] %v13997_v19 }
 0xaf8   : > { %5362 = vrot.lane.b32.xlu1 %v13973_v59, %s6244_s21 }
 0xafa   : > { %v5311_v6 = vpop.permute.xlu1 %5310 }
 0xafb   : > { %v5330_v41 = vsel %vm16287_vm15, %v5311_v6, %v13945_v37  ;;  %v5332_v32 = vsel %vm16290_vm3, %v13837_v4, %v5311_v6  ;;  %vm16319_vm15 = vmmov %vm16306_vm2  ;;  %vm16325_vm3 = vcmask 39936  }
 0xafc   : > { %v13994_v8 = vadd.f32 %v5330_v41, %v13625_v22  ;;  %v14021_v47 = vadd.f32 %v5332_v32, %v16294_v40  ;;  %v4755_v32 = vpop.permute.xlu2 %4754  ;;  %v16304_v40 = vld [vmem:[#allocation64_spill] sm:$0xff] }
 0xafe   : > { %16288 = vst [vmem:[#allocation53_spill] sm:$0xff] %v13994_v8  ;;  %4758 = vrot.lane.b32.xlu2 %v13991_v25, %s6244_s21  ;;  %5378 = vrot.lane.b32.xlu0 %v13994_v8, %s6244_s21  ;;  %v16322_v8 = vld [vmem:[#allocation37_spill] sm:$0xff] }
 0xaff   : > { %16295 = vst [vmem:[#allocation10_spill] sm:$0xff] %v14021_v47 }
 0xb00   : > { %5368 = vrot.lane.b32.xlu1 %v13997_v19, %s6244_s21 }
 0xb02   : > { %v5317_v63 = vpop.permute.xlu1 %5316 }
 0xb03   : > { %v5329_v22 = vsel %vm16291_vm10, %v5317_v63, %v13975_v24  ;;  %v5331_v36 = vsel %vm16296_vm7, %v13858_v26, %v5317_v63  ;;  %v5339_v63 = vsel %vm16302_vm8, %v13866_v48, %v13813_v62  ;;  %v5334_v62 = vsel %vm16306_vm2, %v13887_v51, %v13837_v4  ;;  %vm16328_vm10 = vmmov %vm16311_vm0 }
 0xb04   : > { %v14016_v43 = vadd.f32 %v5329_v22, %v16292_v39  ;;  %v14039_v41 = vadd.f32 %v5331_v36, %v16300_v3  ;;  %v14053_v36 = vadd.f32 %v5339_v63, %v16304_v40  ;;  %v14066_v48 = vpop.permute.xlu2 %4764  ;;  %v16307_v3 = vld [vmem:[#allocation66_spill] sm:$0xff]  ;;  %vm16329_vm7 = vmmov %vm16311_vm0 }
 0xb05   : > { %v14069_v63 = vadd.f32 %v5334_v62, %v16307_v3  ;;  %v4808_v3 = vsel %vm16314_vm1, %v4723_v20, %v4731_v14  ;;  %vm16331_vm8 = vmmov %vm16311_vm0 }
 0xb06   : > { %16293 = vst [vmem:[#allocation24_spill] sm:$0xff] %v14016_v43  ;;  %4768 = vrot.lane.b32.xlu2 %v14013_v50, %s6244_s21  ;;  %5384 = vrot.lane.b32.xlu0 %v14016_v43, %s6244_s21  ;;  %vm16334_vm2 = vmmov %vm16311_vm0 }
 0xb07   : > { %16301 = vst [vmem:[#allocation50_spill] sm:$0xff] %v14039_v41  ;;  %vm16338_vm1 = vmmov %vm16311_vm0 }
 0xb08   : > { %5374 = vrot.lane.b32.xlu1 %v14021_v47, %s6244_s21  ;;  %v4733_v1 = vpop.permute.xlu0 %4732  ;;  %16308 = vst [vmem:[#allocation13_spill] sm:$0xff] %v14069_v63 }
 0xb0a   : > { %v5323_v58 = vpop.permute.xlu1 %5322 }
 0xb0b   : > { %v5340_v0 = vsel %vm16297_vm11, %v5323_v58, %v13789_v61  ;;  %v5326_v39 = vsel %vm16303_vm4, %v13880_v5, %v5323_v58  ;;  %vm16330_vm11 = vmmov %vm16311_vm0 }
 0xb0c   : > { %v14036_v6 = vadd.f32 %v5340_v0, %v16298_v60  ;;  %v14056_v0 = vadd.f32 %v5326_v39, %v13722_v13  ;;  %v5333_v39 = vsel %vm16309_vm9, %v13912_v23, %v13858_v26  ;;  %v4779_v49 = vpop.permute.xlu2 %4778  ;;  %vm16332_vm4 = vmmov %vm16311_vm0 }
 0xb0d   : > { %vm16335_vm9 = vmmov %vm16311_vm0 }
 0xb0e   : > { %16299 = vst [vmem:[#allocation3_spill] sm:$0xff] %v14036_v6  ;;  %5358 = vrot.lane.b32.xlu2 %v14036_v6, %s6244_s21  ;;  %v16312_v6 = vld [vmem:[#allocation68_spill] sm:$0xff] }
 0xb0f   : > { %16305 = vst [vmem:[#allocation48_spill] sm:$0xff] %v14056_v0  ;;  %v14082_v62 = vadd.f32 %v5333_v39, %v16312_v6 }
 0xb10   : > { %5380 = vrot.lane.b32.xlu1 %v14039_v41, %s6244_s21  ;;  %v4747_v22 = vpop.permute.xlu0 %4746 }
 0xb11   : > { %16313 = vst [vmem:[#allocation28_spill] sm:$0xff] %v14082_v62  ;;  %v4796_v23 = vsel %vm16317_vm13, %v4747_v22, %v4755_v32 }
 0xb12   : > { %v4725_v61 = vpop.permute.xlu1 %4724 }
 0xb16   : > { %5364 = vrot.lane.b32.xlu2 %v14053_v36, %s6244_s21 }
 0xb18   : > { %5386 = vrot.lane.b32.xlu1 %v14056_v0, %s6244_s21  ;;  %v4757_v60 = vpop.permute.xlu0 %4756  ;;  %v4812_v0 = vsel %vm16315_vm12, %v4779_v49, %v4723_v20  ;;  %vm16339_vm12 = vcmask 33792  }
 0xb1a   : > { %v4739_v58 = vpop.permute.xlu1 %4738 }
 0xb1b   : > { %v4800_v4 = vsel %vm16310_vm14, %v4739_v58, %v4747_v22  ;;  %v4804_v51 = vsel %vm16311_vm0, %v4731_v14, %v4739_v58  ;;  %v5328_v58 = vsel %vm16318_vm5, %v13945_v37, %v13880_v5  ;;  %v16320_v14 = vld [vmem:[#allocation11_spill] sm:$0xff]  ;;  %v4834_v5 = vadd.f32 %v4796_v23, %v16322_v8  ;;  %vm16336_vm14 = vmmov %vm16311_vm0 }
 0xb1c   : > { %v4832_v6 = vadd.f32 %v4804_v51, %v13766_v21  ;;  %v4833_v39 = vadd.f32 %v4800_v4, %v13738_v17  ;;  %v4830_v20 = vadd.f32 %v4812_v0, %v16320_v14  ;;  %v16321_v22 = vld [vmem:[#allocation63_spill] sm:$0xff]  ;;  %v16323_v51 = vld [vmem:[#allocation69_spill] sm:$0xff] }
 0xb1d   : > { %v4831_v43 = vadd.f32 %v4808_v3, %v16321_v22  ;;  %v14109_v17 = vadd.f32 %v5328_v58, %v16323_v51  ;;  %v16326_v4 = vld [vmem:[#allocation67_spill] sm:$0xff] }
 0xb1e   : > { %5370 = vrot.lane.b32.xlu2 %v14069_v63, %s6244_s21  ;;  %v4866_v0 = vadd.f32 %v4834_v5, %v4833_v39 }
 0xb1f   : > { %v4355_v21 = vpop.f32.mrf.mxu2  ;;  %16324 = vst [vmem:[#allocation21_spill] sm:$0xff] %v14109_v17 }
 0xb20   : > { %v4771_v13 = vpop.permute.xlu0 %4770  ;;  %5937 = vst.msk [vmem:[%s9192_s10 + $0x20] sm:$0xff] %vm16325_vm3, %v4355_v21  ;;  %v16333_v21 = vld [vmem:[#allocation26_spill] sm:$0xff]  ;;  %vm16341_vm3 = vmmov %vm16311_vm0 }
 0xb21   : > { %v4784_v26 = vsel %vm16316_vm6, %v4771_v13, %v4779_v49  ;;  %v5327_v49 = vsel %vm16319_vm15, %v13975_v24, %v13904_v56  ;;  %v4805_v56 = vsel %vm16328_vm10, %v4733_v1, %v14018_v11  ;;  %v4864_v24 = vadd.f32 %v4832_v6, %v4831_v43  ;;  %vm16340_vm6 = vmmov %vm16311_vm0 }
 0xb22   : > { %v4749_v40 = vpop.permute.xlu1 %4748  ;;  %v4837_v41 = vadd.f32 %v4784_v26, %v13727_v57  ;;  %v4863_v57 = vadd.f32 %v4831_v43, %v4830_v20  ;;  %v4840_v43 = vadd.f32 %v4805_v56, %v16333_v21  ;;  %vm16342_vm10 = vmmov %vm16311_vm0 }
 0xb23   : > { %v4797_v58 = vsel %vm16331_vm8, %v4749_v40, %v4757_v60  ;;  %v4898_v51 = vadd.f32 %v4866_v0, %v4864_v24 }
 0xb24   : > { %v4862_v26 = vadd.f32 %v4837_v41, %v4830_v20  ;;  %v4809_v20 = vsel %vm16334_vm2, %v4725_v61, %v4733_v1 }
 0xb26   : > { %5376 = vrot.lane.b32.xlu2 %v14082_v62, %s6244_s21  ;;  %v14114_v62 = vadd.f32 %v5327_v49, %v16326_v4  ;;  %v4801_v49 = vsel %vm16332_vm4, %v14018_v11, %v4749_v40  ;;  %v4842_v11 = vadd.f32 %v4797_v58, %v13758_v53 }
 0xb28   : > { %v4781_v37 = vpop.permute.xlu0 %4780  ;;  %16327 = vst [vmem:[#allocation38_spill] sm:$0xff] %v14114_v62 }
 0xb29   : > { %v4813_v1 = vsel %vm16336_vm14, %v4781_v37, %v4725_v61  ;;  %v4358_v61 = vpop.f32.mrf.mxu2 }
 0xb2a   : > { %v4763_v3 = vpop.permute.xlu1 %4762  ;;  %5938 = vst.msk [vmem:[%s9192_s10 + $0x28] sm:$0x3] %vm16339_vm12, %v4358_v61 }
 0xb2b   : > { %v4788_v8 = vsel %vm16329_vm7, %v4763_v3, %v4771_v13  ;;  %v4792_v23 = vsel %vm16330_vm11, %v4755_v32, %v4763_v3  ;;  %v4793_v32 = vsel %vm16335_vm9, %v4757_v60, %v14066_v48  ;;  %v4865_v13 = vadd.f32 %v4833_v39, %v4832_v6  ;;  %v16337_v39 = vld [vmem:[#allocation55_spill] sm:$0xff] }
 0xb2c   : > { %v4835_v14 = vadd.f32 %v4792_v23, %v13809_v34  ;;  %v4836_v22 = vadd.f32 %v4788_v8, %v13779_v10  ;;  %v4896_v34 = vadd.f32 %v4864_v24, %v4862_v26  ;;  %v4841_v10 = vadd.f32 %v4801_v49, %v13787_v27 }
 0xb2d   : > { %v4897_v23 = vadd.f32 %v4865_v13, %v4863_v57  ;;  %v4838_v27 = vadd.f32 %v4813_v1, %v13743_v33 }
 0xb2e   : > { %v4867_v4 = vadd.f32 %v4835_v14, %v4834_v5  ;;  %v4868_v3 = vadd.f32 %v4836_v22, %v4835_v14  ;;  %v4869_v47 = vadd.f32 %v4837_v41, %v4836_v22  ;;  %5382 = vrot.lane.b32.xlu2 %v14109_v17, %s6244_s21  ;;  %v4839_v41 = vadd.f32 %v4809_v20, %v13717_v44 }
 0xb2f   : > { %v4843_v5 = vadd.f32 %v4793_v32, %v16337_v39 }
 0xb30   : > { %v4894_v40 = vadd.f32 %v4868_v3, %v4862_v26  ;;  %v4895_v56 = vadd.f32 %v4869_v47, %v4863_v57  ;;  %v4899_v8 = vadd.f32 %v4867_v4, %v4865_v13  ;;  %v4900_v60 = vadd.f32 %v4868_v3, %v4866_v0  ;;  %v14142_v6 = vpop.permute.xlu0 %4726 }
 0xb31   : > { %v4901_v24 = vadd.f32 %v4869_v47, %v4867_v4  ;;  %v4874_v26 = vadd.f32 %v4842_v11, %v4841_v10  ;;  %v4872_v20 = vadd.f32 %v4840_v43, %v4839_v41  ;;  %v4871_v4 = vadd.f32 %v4839_v41, %v4838_v27 }
 0xb32   : > { %v4918_v49 = vadd.f32 %v4898_v51, %v4894_v40  ;;  %v4919_v53 = vadd.f32 %v4899_v8, %v4895_v56  ;;  %v4920_v58 = vadd.f32 %v4900_v60, %v4896_v34  ;;  %v4773_v14 = vpop.permute.xlu1 %4772  ;;  %v4875_v51 = vadd.f32 %v4843_v5, %v4842_v11 }
 0xb33   : > { %v4921_v22 = vadd.f32 %v4901_v24, %v4897_v23  ;;  %v4785_v0 = vsel %vm16311_vm0, %v4773_v14, %v4781_v37  ;;  %v4789_v44 = vsel %vm16338_vm1, %v14066_v48, %v4773_v14  ;;  %v4873_v37 = vadd.f32 %v4841_v10, %v4840_v43 }
 0xb34   : > { %v14154_v57 = vmax.f32 %v4918_v49, 1e-16  ;;  %v14156_v47 = vmax.f32 %v4919_v53, 1e-16  ;;  %v14158_v33 = vmax.f32 %v4920_v58, 1e-16  ;;  %v4844_v21 = vadd.f32 %v4789_v44, %v13831_v15 }
 0xb35   : > { %v14161_v32 = vmax.f32 %v4921_v22, 1e-16  ;;  %v4845_v13 = vadd.f32 %v4785_v0, %v13801_v31  ;;  %v4906_v34 = vadd.f32 %v4874_v26, %v4872_v20  ;;  %v4907_v11 = vadd.f32 %v4875_v51, %v4873_v37 }
 0xb36   : > { %6152 = vrsqrt.f32 %v14154_v57  ;;  %5388 = vrot.lane.b32.xlu2 %v14114_v62, %s6244_s21  ;;  %v4876_v3 = vadd.f32 %v4844_v21, %v4843_v5  ;;  %v4905_v40 = vadd.f32 %v4873_v37, %v4871_v4  ;;  %vm5028_vm13 = vweird.f32 %v14154_v57 }
 0xb37   : > { %6154 = vrsqrt.f32 %v14156_v47  ;;  %v4870_v48 = vadd.f32 %v4845_v13, %v4838_v27  ;;  %v4877_v15 = vadd.f32 %v4845_v13, %v4844_v21  ;;  %vm5038_vm15 = vweird.f32 %v14156_v47 }
 0xb38   : > { %6156 = vrsqrt.f32 %v14158_v33  ;;  %v14169_v1 = vpop.permute.xlu0 %4736  ;;  %v4908_v10 = vadd.f32 %v4876_v3, %v4874_v26  ;;  %vm5048_vm8 = vweird.f32 %v14158_v33  ;;  %vm5058_vm0 = vweird.f32 %v14161_v32 }
 0xb39   : > { %6158 = vrsqrt.f32 %v14161_v32  ;;  %v4902_v31 = vadd.f32 %v4876_v3, %v4870_v48  ;;  %v4904_v43 = vadd.f32 %v4872_v20, %v4870_v48  ;;  %v4903_v56 = vadd.f32 %v4877_v15, %v4871_v4  ;;  %v6226_v4 = vld [vmem:[%s6279_s18 + $0x3c0] sm:$0x1]  ;;  %v6227_v48 = vld [vmem:[%s6279_s18 + $0x3c8] sm:$0x1] }
 0xb3a   : > { %v4909_v8 = vadd.f32 %v4877_v15, %v4875_v51  ;;  %v14172_v60 = vpop.permute.xlu1 %4718  ;;  %v14207_v3 = vpack.c.bf16 %v6227_v48, %v6226_v4 }
 0xb3b   : > { %v4922_v41 = vadd.f32 %v4906_v34, %v4902_v31  ;;  %v4924_v39 = vadd.f32 %v4908_v10, %v4904_v43  ;;  %v4923_v23 = vadd.f32 %v4907_v11, %v4903_v56  ;;  %v6228_v31 = vld [vmem:[%s6279_s18 + $0x390] sm:$0xff]  ;;  %v6229_v43 = vld [vmem:[%s6279_s18 + $0x398] sm:$0xff] }
 0xb3c   : > { %v14174_v5 = vpop.eup %6152  ;;  %v4925_v24 = vadd.f32 %v4909_v8, %v4905_v40  ;;  %v14213_v10 = vpack.c.bf16 %v6229_v43, %v6228_v31 }
 0xb3d   : > { %v14176_v27 = vpop.eup %6154  ;;  %v5023_v49 = vmul.f32 %v14174_v5, %v14154_v57  ;;  %v14180_v53 = vmax.f32 %v4922_v41, 1e-16  ;;  %v14186_v61 = vmax.f32 %v4923_v23, 1e-16  ;;  %v14188_v26 = vmax.f32 %v4924_v39, 1e-16 }
 0xb3e   : > { %v14182_v58 = vpop.eup %6156  ;;  %v5033_v14 = vmul.f32 %v14176_v27, %v14156_v47  ;;  %v14195_v21 = vmax.f32 %v4925_v24, 1e-16  ;;  %v4806_v39 = vsel %vm16340_vm6, %v14172_v60, %v14142_v6  ;;  %vm5029_vm5 = vweird.f32 %v14174_v5 }
 0xb3f   : > { %v14190_v22 = vpop.eup %6158  ;;  %v5024_v0 = vmul.f32 %v14174_v5, %v5023_v49  ;;  %v5043_v44 = vmul.f32 %v14182_v58, %v14158_v33  ;;  %6160 = vrsqrt.f32 %v14180_v53  ;;  %vm5039_vm7 = vweird.f32 %v14176_v27  ;;  %vm14255_vm9 = vmor %vm5028_vm13, %vm5029_vm5 }
 0xb40   : > { %v5034_v20 = vmul.f32 %v14176_v27, %v5033_v14  ;;  %v5053_v13 = vmul.f32 %v14190_v22, %v14161_v32  ;;  %v14201_v37 = vpop.permute.xlu2 %4720  ;;  %v14203_v51 = vpop.permute.xlu0 %4750  ;;  %6162 = vrsqrt.f32 %v14186_v61  ;;  %vm5049_vm11 = vweird.f32 %v14182_v58  ;;  %vm14285_vm12 = vmor %vm5038_vm15, %vm5039_vm7 }
 0xb41   : > { %v5025_v34 = vmul.f32 0.5, %v5024_v0  ;;  %v5044_v15 = vmul.f32 %v14182_v58, %v5043_v44  ;;  %6164 = vrsqrt.f32 %v14188_v26  ;;  %vm5059_vm4 = vweird.f32 %v14190_v22  ;;  %vm16347_vm13 = vmmov %vm16341_vm3 }
 0xb42   : > { %v5035_v11 = vmul.f32 0.5, %v5034_v20  ;;  %v5054_v40 = vmul.f32 %v14190_v22, %v5053_v13  ;;  %v4729_v56 = vpop.permute.xlu1 %4728  ;;  %6166 = vrsqrt.f32 %v14195_v21  ;;  %v14241_v13 = vadd.f32 %v4806_v39, %v13823_v54  ;;  %vm16348_vm15 = vmmov %vm16341_vm3 }
 0xb43   : > { %v5026_v8 = vsub.f32 1.5, %v5025_v34  ;;  %v5045_v41 = vmul.f32 0.5, %v5044_v15  ;;  %v4803_v0 = vsel %vm16341_vm3, %v4729_v56, %v14169_v1  ;;  %v4807_v44 = vsel %vm16342_vm10, %v14201_v37, %v4729_v56 }
 0xb44   : > { %v5036_v23 = vsub.f32 1.5, %v5035_v11  ;;  %v14228_v14 = vmul.f32 0.5, %v5054_v40  ;;  %vm5068_vm2 = vweird.f32 %v14180_v53  ;;  %vm5078_vm14 = vweird.f32 %v14186_v61 }
 0xb45   : > { %v14225_v24 = vpop.eup %6160  ;;  %v5027_v49 = vmul.f32 %v14174_v5, %v5026_v8  ;;  %v5046_v34 = vsub.f32 1.5, %v5045_v41  ;;  %v14264_v11 = vadd.f32 %v4807_v44, %v13864_v16  ;;  %v14267_v40 = vadd.f32 %v4803_v0, %v13842_v30 }
 0xb46   : > { %v5063_v20 = vmul.f32 %v14225_v24, %v14180_v53  ;;  %v14243_v4 = vpop.eup %6162  ;;  %v5037_v48 = vmul.f32 %v14176_v27, %v5036_v23  ;;  %v5056_v41 = vsub.f32 1.5, %v14228_v14  ;;  %vm5069_vm1 = vweird.f32 %v14225_v24 }
 0xb47   : > { %v14249_v15 = vpop.eup %6164  ;;  %v5073_v43 = vmul.f32 %v14243_v4, %v14186_v61  ;;  %v5031_v16 = vsel %vm14255_vm9, %v14174_v5, %v5027_v49  ;;  %vm5088_vm6 = vweird.f32 %v14188_v26  ;;  %vm5098_vm5 = vweird.f32 %v14195_v21  ;;  %vm14321_vm7 = vmor %vm5068_vm2, %vm5069_vm1 }
 0xb48   : > { %v5064_v31 = vmul.f32 %v14225_v24, %v5063_v20  ;;  %v4735_v56 = vpop.permute.xlu2 %4734  ;;  %v14269_v8 = vpop.permute.xlu0 %4760  ;;  %v5083_v39 = vmul.f32 %v14249_v15, %v14188_v26  ;;  %v5041_v54 = vsel %vm14285_vm12, %v14176_v27, %v5037_v48  ;;  %vm5079_vm10 = vweird.f32 %v14243_v4  ;;  %vm14331_vm12 = vmor %vm5048_vm8, %vm5049_vm11 }
 0xb49   : > { %v14271_v57 = vpop.eup %6166  ;;  %v5074_v14 = vmul.f32 %v14243_v4, %v5073_v43  ;;  %v4802_v5 = vsel %vm16347_vm13, %v14142_v6, %v4735_v56  ;;  %v14314_v30 = vpack.c.bf16 %v5041_v54, %v5031_v16  ;;  %v5047_v27 = vmul.f32 %v14182_v58, %v5046_v34  ;;  %vm5080_vm11 = vmor %vm5078_vm14, %vm5079_vm10 }
 0xb4a   : > { %v5065_v23 = vmul.f32 0.5, %v5064_v31  ;;  %v5093_v0 = vmul.f32 %v14271_v57, %v14195_v21  ;;  %v4743_v49 = vpop.permute.xlu1 %4742  ;;  %v5084_v44 = vmul.f32 %v14249_v15, %v5083_v39  ;;  %v4816_v17 = vadd.f32 %v4802_v5, %v13943_v9  ;;  %vm16354_vm2 = vmmov %vm16341_vm3 }
 0xb4b   : > { %v4794_v47 = vsel %vm16348_vm15, %v4743_v49, %v14203_v51  ;;  %v4798_v20 = vsel %vm16341_vm3, %v4735_v56, %v4743_v49  ;;  %v5075_v43 = vmul.f32 0.5, %v5074_v14  ;;  %vm5089_vm9 = vweird.f32 %v14249_v15  ;;  %vm14356_vm1 = vmor %vm5058_vm0, %vm5059_vm4 }
 0xb4c   : > { %v5066_v31 = vsub.f32 1.5, %v5065_v23  ;;  %v5094_v6 = vmul.f32 %v14271_v57, %v5093_v0  ;;  %v4817_v62 = vadd.f32 %v4798_v20, %v13883_v52  ;;  %v5085_v39 = vmul.f32 0.5, %v5084_v44  ;;  %vm14370_vm14 = vmor %vm5088_vm6, %vm5089_vm9 }
 0xb4d   : > { %v14311_v63 = vadd.f32 %v4794_v47, %v13861_v45  ;;  %v5076_v49 = vsub.f32 1.5, %v5075_v43  ;;  %v16351_v45 = vld [vmem:[#allocation19_spill] sm:$0xff]  ;;  %v5057_v44 = vmul.f32 %v14190_v22, %v5056_v41  ;;  %vm5099_vm8 = vweird.f32 %v14271_v57  ;;  %vm16359_vm4 = vmmov %vm16354_vm2 }
 0xb4e   : > { %v5067_v56 = vmul.f32 %v14225_v24, %v5066_v31  ;;  %v5095_v19 = vmul.f32 0.5, %v5094_v6  ;;  %v5086_v9 = vsub.f32 1.5, %v5085_v39  ;;  %v5126_v48 = vunpack.c.l.bf16 %v16351_v45  ;;  %vm5100_vm0 = vmor %vm5098_vm5, %vm5099_vm8 }
 0xb4f   : > { %v5077_v34 = vmul.f32 %v14243_v4, %v5076_v49  ;;  %v14337_v23 = vadd.f32 %v14311_v63, %v4817_v62  ;;  %v14362_v61 = vadd.f32 %v4816_v17, %v14241_v13  ;;  %v5150_v54 = vunpack.c.l.bf16 %v14314_v30  ;;  %vm16360_vm6 = vmmov %vm16354_vm2 }
 0xb50   : > { %v5096_v53 = vsub.f32 1.5, %v5095_v19  ;;  %v4745_v14 = vpop.permute.xlu2 %4744  ;;  %v4775_v0 = vpop.permute.xlu0 %4774  ;;  %v5071_v5 = vsel %vm14321_vm7, %v14225_v24, %v5067_v56  ;;  %v5087_v33 = vmul.f32 %v14249_v15, %v5086_v9  ;;  %v5134_v43 = vunpack.c.l.bf16 %v14207_v3  ;;  %vm16362_vm13 = vmmov %vm16354_vm2 }
 0xb51   : > { %v4810_v19 = vsel %vm16354_vm2, %v4775_v0, %v14172_v60  ;;  %v5081_v20 = vsel %vm5080_vm11, %v14243_v4, %v5077_v34  ;;  %v4799_v60 = vsel %vm16359_vm4, %v14169_v1, %v4745_v14  ;;  %v5051_v4 = vsel %vm14331_vm12, %v14182_v58, %v5047_v27  ;;  %vm16363_vm5 = vmmov %vm16354_vm2 }
 0xb52   : > { %v5097_v41 = vmul.f32 %v14271_v57, %v5096_v53  ;;  %v4753_v47 = vpop.permute.xlu1 %4752  ;;  %v14377_v31 = vpack.c.bf16 %v5081_v20, %v5071_v5  ;;  %v14387_v26 = vadd.f32 %v14267_v40, %v14264_v11  ;;  %v4849_v6 = vadd.f32 %v4817_v62, %v4816_v17  ;;  %vm16364_vm15 = vmmov %vm16354_vm2 }
 0xb53   : > { %v14391_v39 = vadd.f32 %v14337_v23, %v14362_v61  ;;  %v4814_v1 = vadd.f32 %v4810_v19, %v13847_v7  ;;  %v5061_v58 = vsel %vm14356_vm1, %v14190_v22, %v5057_v44  ;;  %v5091_v21 = vsel %vm14370_vm14, %v14249_v15, %v5087_v33  ;;  %vm16365_vm3 = vmmov %vm16354_vm2 }
 0xb54   : > { %v5154_v56 = vunpack.c.l.bf16 %v14377_v31  ;;  %v5101_v49 = vsel %vm5100_vm0, %v14271_v57, %v5097_v41  ;;  %v14403_v62 = vadd.f32 %v4799_v60, %v13967_v38  ;;  %v4791_v17 = vsel %vm16360_vm6, %v4753_v47, %v14269_v8  ;;  %v16361_v57 = vld [vmem:[#allocation54_spill] sm:$0xff]  ;;  %vm16368_vm10 = vmmov %vm16354_vm2 }
 0xb55   : > { %v5174_v7 = vmul.f32 %v5150_v54, %v5126_v48  ;;  %v14410_v27 = vpack.c.bf16 %v5061_v58, %v5051_v4  ;;  %v14414_v52 = vpack.c.bf16 %v5101_v49, %v5091_v21  ;;  %v5129_v15 = vunpack.c.h.bf16 %v14213_v10  ;;  %vm16369_vm7 = vmmov %vm16354_vm2 }
 0xb56   : > { %v5182_v22 = vmul.f32 %v5154_v56, %v5134_v43  ;;  %v5137_v9 = vunpack.c.h.bf16 %v16361_v57  ;;  %v4847_v38 = vadd.f32 %v14241_v13, %v4814_v1  ;;  %v4795_v16 = vsel %vm16362_vm13, %v4745_v14, %v4753_v47  ;;  %vm16370_vm9 = vmmov %vm16354_vm2 }
 0xb57   : > { %v15423_v53 = vunpack.c.h.bf16 %v14410_v27  ;;  %v5127_v48 = vunpack.c.h.bf16 %v16351_v45  ;;  %v15422_v33 = vunpack.c.h.bf16 %v14414_v52  ;;  %v5135_v19 = vunpack.c.h.bf16 %v14207_v3  ;;  %vm16371_vm12 = vmmov %vm16354_vm2 }
 0xb58   : > { %v4759_v34 = vpop.permute.xlu2 %4758  ;;  %v5198_v44 = vpack.c.bf16 %v5182_v22, %v5174_v7  ;;  %v14431_v14 = vpop.permute.xlu0 %5360  ;;  %v5151_v41 = vunpack.c.h.bf16 %v14314_v30  ;;  %v5155_v45 = vunpack.c.h.bf16 %v14377_v31  ;;  %v5128_v20 = vunpack.c.l.bf16 %v14213_v10  ;;  %vm16372_vm11 = vmmov %vm16354_vm2  ;;  %v16375_v31 = vld [vmem:[#allocation51_spill] sm:$0xff] }
 0xb59   : > { %v4790_v5 = vsel %vm16363_vm5, %v14203_v51, %v4759_v34  ;;  %v5177_v13 = vmul.f32 %v15423_v53, %v5129_v15  ;;  %v5185_v51 = vmul.f32 %v15422_v33, %v5137_v9  ;;  %v5136_v3 = vunpack.c.l.bf16 %v16361_v57  ;;  %v16366_v9 = vld [vmem:[#allocation5_spill] sm:$0xff]  ;;  %vm16376_vm1 = vmmov %vm16354_vm2 }
 0xb5a   : > { %v4819_v24 = vadd.f32 %v4790_v5, %v13991_v25  ;;  %v4767_v47 = vpop.permute.xlu1 %4766  ;;  %5608 = vmatpush.bf16.xpose.msra.mxu3 %v5198_v44  ;;  %v15425_v25 = vunpack.c.l.bf16 %v14410_v27  ;;  %v4826_v32 = vadd.f32 %v4795_v16, %v13900_v55  ;;  %v5175_v60 = vmul.f32 %v5151_v41, %v5127_v48  ;;  %vm16377_vm14 = vmmov %vm16376_vm1 }
 0xb5b   : > { %v5183_v43 = vmul.f32 %v5155_v45, %v5135_v19  ;;  %v15424_v4 = vunpack.c.l.bf16 %v14414_v52  ;;  %v5201_v21 = vpack.c.bf16 %v5185_v51, %v5177_v13  ;;  %v4782_v10 = vsel %vm16364_vm15, %v4767_v47, %v4775_v0  ;;  %v16367_v0 = vld [vmem:[#allocation57_spill] sm:$0xff]  ;;  %vm16379_vm15 = vmmov %vm16376_vm1 }
 0xb5c   : > { %v4851_v58 = vadd.f32 %v4819_v24, %v14311_v63  ;;  %v4786_v49 = vsel %vm16365_vm3, %v4759_v34, %v4767_v47  ;;  %v5176_v55 = vmul.f32 %v15425_v25, %v5128_v20  ;;  %v4827_v57 = vadd.f32 %v4791_v17, %v13878_v18 }
 0xb5d   : > { %v5199_v7 = vpack.c.bf16 %v5183_v43, %v5175_v60  ;;  %v5184_v22 = vmul.f32 %v15424_v4, %v5136_v3  ;;  %v4820_v15 = vadd.f32 %v4786_v49, %v13927_v28  ;;  %5650 = vmatpush.bf16.xpose.msrb.mxu2 %v5201_v21  ;;  %v4821_v63 = vadd.f32 %v4782_v10, %v13897_v46 }
 0xb5e   : > { %v5130_v16 = vunpack.c.l.bf16 %v16366_v9  ;;  %v5138_v48 = vunpack.c.l.bf16 %v16367_v0  ;;  %v4881_v5 = vadd.f32 %v4849_v6, %v4847_v38  ;;  %v4858_v34 = vadd.f32 %v4826_v32, %v14403_v62 }
 0xb5f   : > { %5622 = vmatpush.bf16.xpose.msrb.mxu0 %v5199_v7  ;;  %v5200_v44 = vpack.c.bf16 %v5184_v22, %v5176_v55  ;;  %v4852_v19 = vadd.f32 %v4820_v15, %v4819_v24  ;;  %v4883_v47 = vadd.f32 %v4851_v58, %v4849_v6  ;;  %v4846_v51 = vadd.f32 %v4821_v63, %v4814_v1 }
 0xb60   : > { %v4769_v13 = vpop.permute.xlu2 %4768  ;;  %v4853_v20 = vadd.f32 %v4821_v63, %v4820_v15  ;;  %v14468_v3 = vmul.f32 %v5150_v54, %v5130_v16  ;;  %v14472_v24 = vmul.f32 %v5154_v56, %v5138_v48  ;;  %v14475_v21 = vpop.permute.xlu0 %5366  ;;  %v4890_v55 = vadd.f32 %v4858_v34, %v14387_v26 }
 0xb61   : > { %v4787_v18 = vsel %vm16368_vm10, %v14269_v8, %v4769_v13  ;;  %5636 = vmatpush.bf16.xpose.msrb.mxu1 %v5200_v44  ;;  %v4884_v46 = vadd.f32 %v4852_v19, %v14337_v23  ;;  %v4878_v6 = vadd.f32 %v4852_v19, %v4846_v51  ;;  %v4880_v60 = vadd.f32 %v14362_v61, %v4846_v51  ;;  %vm16381_vm10 = vmmov %vm16376_vm1 }
 0xb62   : > { %v4828_v28 = vadd.f32 %v4787_v18, %v14013_v50  ;;  %v4777_v17 = vpop.permute.xlu1 %4776  ;;  %v4879_v1 = vadd.f32 %v4853_v20, %v4847_v38  ;;  %v4885_v43 = vadd.f32 %v4853_v20, %v4851_v58  ;;  %v4859_v8 = vadd.f32 %v4827_v57, %v4826_v32 }
 0xb63   : > { %v4783_v50 = vsel %vm16369_vm7, %v4769_v13, %v4777_v17  ;;  %v4811_v23 = vsel %vm16370_vm9, %v4777_v17, %v14201_v37  ;;  %v5202_v54 = vpack.c.bf16 %v14472_v24, %v14468_v3  ;;  %v4910_v56 = vadd.f32 %v14391_v39, %v4878_v6  ;;  %vm16382_vm7 = vmmov %vm16376_vm1 }
 0xb64   : > { %v4911_v10 = vadd.f32 %v4883_v47, %v4879_v1  ;;  %v4912_v38 = vadd.f32 %v4884_v46, %v4880_v60  ;;  %v4913_v49 = vadd.f32 %v4885_v43, %v4881_v5  ;;  %v4857_v61 = vadd.f32 %v14403_v62, %v14267_v40 }
 0xb65   : > { %v4860_v32 = vadd.f32 %v4828_v28, %v4827_v57  ;;  %v4822_v58 = vadd.f32 %v4811_v23, %v13924_v42  ;;  %v4829_v7 = vadd.f32 %v4783_v50, %v13951_v2  ;;  %v14490_v22 = vmax.f32 %v4910_v56, 1e-16  ;;  %v16373_v56 = vld [vmem:[#allocation8_spill] sm:$0xff] }
 0xb66   : > { %v14492_v37 = vmax.f32 %v4911_v10, 1e-16  ;;  %v14494_v15 = vmax.f32 %v4912_v38, 1e-16  ;;  %v14496_v39 = vmax.f32 %v4913_v49, 1e-16  ;;  %v4891_v62 = vadd.f32 %v4859_v8, %v4857_v61 }
 0xb67   : > { %v4854_v63 = vadd.f32 %v4829_v7, %v4822_v58  ;;  %v4855_v16 = vadd.f32 %v14264_v11, %v4822_v58  ;;  %v4861_v48 = vadd.f32 %v4829_v7, %v4828_v28  ;;  %6168 = vrsqrt.f32 %v14490_v22  ;;  %v16374_v38 = vld [vmem:[#allocation60_spill] sm:$0xff]  ;;  %v16386_v49 = vld [vmem:[#allocation53_spill] sm:$0xff] }
 0xb68   : > { %v14499_v40 = vpop.permute.xlu2 %5358  ;;  %v5131_v42 = vunpack.c.h.bf16 %v16366_v9  ;;  %v5139_v2 = vunpack.c.h.bf16 %v16367_v0  ;;  %6170 = vrsqrt.f32 %v14492_v37  ;;  %v4892_v57 = vadd.f32 %v4860_v32, %v4858_v34 }
 0xb69   : > { %v4886_v5 = vadd.f32 %v4860_v32, %v4854_v63  ;;  %v4887_v44 = vadd.f32 %v4861_v48, %v4855_v16  ;;  %6172 = vrsqrt.f32 %v14494_v15  ;;  %v4888_v11 = vadd.f32 %v14387_v26, %v4854_v63  ;;  %v14518_v26 = vpop.permute.xlu0 %5372 }
 0xb6a   : > { %v5363_v19 = vpop.permute.xlu1 %5362  ;;  %v4889_v13 = vadd.f32 %v4857_v61, %v4855_v16  ;;  %v4893_v47 = vadd.f32 %v4861_v48, %v4859_v8  ;;  %6174 = vrsqrt.f32 %v14496_v39  ;;  %v14534_v8 = vmul.f32 %v5151_v41, %v5131_v42 }
 0xb6b   : > { %v4914_v51 = vadd.f32 %v4890_v55, %v4886_v5  ;;  %v4915_v20 = vadd.f32 %v4891_v62, %v4887_v44  ;;  %v5400_v9 = vsel %vm16371_vm12, %v5363_v19, %v14475_v21  ;;  %v4916_v0 = vadd.f32 %v4892_v57, %v4888_v11 }
 0xb6c   : > { %v4917_v18 = vadd.f32 %v4893_v47, %v4889_v13  ;;  %v5402_v34 = vsel %vm16372_vm11, %v14499_v40, %v5363_v19  ;;  %v14524_v6 = vadd.f32 %v5400_v9, %v13948_v35  ;;  %v14538_v50 = vmul.f32 %v5155_v45, %v5139_v2 }
 0xb6d   : > { %v14514_v46 = vmax.f32 %v4914_v51, 1e-16  ;;  %v14516_v28 = vmax.f32 %v4915_v20, 1e-16  ;;  %v14521_v17 = vadd.f32 %v5402_v34, %v13973_v59  ;;  %v14526_v1 = vpop.eup %6168  ;;  %v14528_v60 = vmax.f32 %v4916_v0, 1e-16 }
 0xb6e   : > { %v14530_v43 = vmax.f32 %v4917_v18, 1e-16  ;;  %v14540_v23 = vpop.eup %6170  ;;  %v4943_v35 = vmul.f32 %v14526_v1, %v14490_v22  ;;  %v5110_v10 = vunpack.c.l.bf16 %v16373_v56  ;;  %v5118_v41 = vunpack.c.l.bf16 %v16375_v31  ;;  %v16378_v20 = vld [vmem:[#allocation31_spill] sm:$0xff] }
 0xb6f   : > { %6176 = vrsqrt.f32 %v14514_v46  ;;  %v14547_v61 = vpop.eup %6172  ;;  %v4953_v30 = vmul.f32 %v14540_v23, %v14492_v37  ;;  %v5111_v45 = vunpack.c.h.bf16 %v16373_v56  ;;  %v14562_v55 = vadd.f32 %v14524_v6, %v14521_v17 }
 0xb70   : > { %v5365_v59 = vpop.permute.xlu2 %5364  ;;  %6178 = vrsqrt.f32 %v14516_v28  ;;  %v14554_v32 = vpop.eup %6174  ;;  %v4944_v58 = vmul.f32 %v14526_v1, %v4943_v35  ;;  %v4963_v7 = vmul.f32 %v14547_v61, %v14494_v15  ;;  %vm4948_vm8 = vweird.f32 %v14490_v22 }
 0xb71   : > { %6180 = vrsqrt.f32 %v14528_v60  ;;  %v4954_v16 = vmul.f32 %v14540_v23, %v4953_v30  ;;  %v4973_v48 = vmul.f32 %v14554_v32, %v14496_v39  ;;  %v5403_v62 = vsel %vm16354_vm2, %v14431_v14, %v5365_v59 }
 0xb72   : > { %v5369_v63 = vpop.permute.xlu1 %5368  ;;  %6182 = vrsqrt.f32 %v14530_v43  ;;  %v4945_v42 = vmul.f32 0.5, %v4944_v58  ;;  %v4964_v2 = vmul.f32 %v14547_v61, %v4963_v7  ;;  %v14574_v57 = vadd.f32 %v5403_v62, %v14053_v36  ;;  %v14605_v58 = vpop.permute.xlu0 %5378 }
 0xb73   : > { %v5399_v5 = vsel %vm16376_vm1, %v5369_v63, %v14518_v26  ;;  %v4955_v44 = vmul.f32 0.5, %v4954_v16  ;;  %v4974_v19 = vmul.f32 %v14554_v32, %v4973_v48  ;;  %v5401_v11 = vsel %vm16377_vm14, %v5365_v59, %v5369_v63  ;;  %vm16391_vm14 = vmmov %vm16382_vm7 }
 0xb74   : > { %v14583_v13 = vadd.f32 %v5399_v5, %v13970_v12  ;;  %v4946_v51 = vsub.f32 1.5, %v4945_v42  ;;  %vm4958_vm4 = vweird.f32 %v14492_v37  ;;  %v14588_v36 = vmul.f32 0.5, %v4964_v2 }
 0xb75   : > { %v14585_v47 = vpop.eup %6176  ;;  %v5416_v9 = vadd.f32 %v5401_v11, %v16378_v20  ;;  %vm4949_vm0 = vweird.f32 %v14526_v1  ;;  %v4956_v18 = vsub.f32 1.5, %v4955_v44  ;;  %v14594_v34 = vmul.f32 0.5, %v4974_v19  ;;  %v16380_v11 = vld [vmem:[#allocation13_spill] sm:$0xff] }
 0xb76   : > { %v14592_v0 = vpop.eup %6178  ;;  %v4983_v12 = vmul.f32 %v14585_v47, %v14514_v46  ;;  %vm4988_vm6 = vweird.f32 %v14514_v46  ;;  %vm4959_vm13 = vweird.f32 %v14540_v23  ;;  %v4966_v59 = vsub.f32 1.5, %v14588_v36  ;;  %vm14644_vm9 = vmor %vm4948_vm8, %vm4949_vm0 }
 0xb77   : > { %v14600_v35 = vpop.eup %6180  ;;  %v4993_v30 = vmul.f32 %v14592_v0, %v14516_v28  ;;  %v14608_v7 = vadd.f32 %v5416_v9, %v14574_v57  ;;  %v14611_v63 = vadd.f32 %v14583_v13, %v5416_v9  ;;  %v4976_v62 = vsub.f32 1.5, %v14594_v34  ;;  %vm14667_vm11 = vmor %vm4958_vm4, %vm4959_vm13 }
 0xb78   : > { %v5371_v16 = vpop.permute.xlu2 %5370  ;;  %v14613_v48 = vpop.eup %6182  ;;  %v4984_v42 = vmul.f32 %v14585_v47, %v4983_v12  ;;  %vm4998_vm5 = vweird.f32 %v14516_v28  ;;  %v5003_v2 = vmul.f32 %v14600_v35, %v14528_v60  ;;  %v4947_v9 = vmul.f32 %v14526_v1, %v4946_v51  ;;  %vm16393_vm13 = vmmov %vm16382_vm7 }
 0xb79   : > { %v5398_v5 = vsel %vm16379_vm15, %v14475_v21, %v5371_v16  ;;  %v4994_v44 = vmul.f32 %v14592_v0, %v4993_v30  ;;  %v5013_v19 = vmul.f32 %v14613_v48, %v14530_v43  ;;  %vm4968_vm3 = vweird.f32 %v14494_v15  ;;  %vm16394_vm15 = vmmov %vm16382_vm7 }
 0xb7a   : > { %v5409_v36 = vadd.f32 %v5398_v5, %v16380_v11  ;;  %v5375_v20 = vpop.permute.xlu1 %5374  ;;  %v4985_v12 = vmul.f32 0.5, %v4984_v42  ;;  %v5004_v33 = vmul.f32 %v14600_v35, %v5003_v2  ;;  %v16383_v11 = vld [vmem:[#allocation10_spill] sm:$0xff]  ;;  %v4957_v22 = vmul.f32 %v14540_v23, %v4956_v18 }
 0xb7b   : > { %v5394_v53 = vsel %vm16381_vm10, %v5375_v20, %v14605_v58  ;;  %v5396_v21 = vsel %vm16382_vm7, %v5371_v16, %v5375_v20  ;;  %v4995_v30 = vmul.f32 0.5, %v4994_v44  ;;  %v5014_v4 = vmul.f32 %v14613_v48, %v5013_v19 }
 0xb7c   : > { %v14637_v5 = vadd.f32 %v5409_v36, %v14524_v6  ;;  %v5410_v51 = vadd.f32 %v5396_v21, %v16383_v11  ;;  %v4986_v2 = vsub.f32 1.5, %v4985_v12  ;;  %v5005_v25 = vmul.f32 0.5, %v5004_v33 }
 0xb7d   : > { %v14649_v16 = vadd.f32 %v5394_v53, %v16386_v49  ;;  %v4951_v6 = vsel %vm14644_vm9, %v14526_v1, %v4947_v9  ;;  %v4996_v44 = vsub.f32 1.5, %v4995_v30  ;;  %v14654_v19 = vmul.f32 0.5, %v5014_v4  ;;  %v16392_v30 = vld [vmem:[#allocation28_spill] sm:$0xff]  ;;  %vm16399_vm9 = vmmov %vm16393_vm13 }
 0xb7e   : > { %v14656_v20 = vadd.f32 %v5410_v51, %v5409_v36  ;;  %vm4978_vm12 = vweird.f32 %v14496_v39  ;;  %v5006_v21 = vsub.f32 1.5, %v5005_v25  ;;  %v4987_v33 = vmul.f32 %v14585_v47, %v4986_v2  ;;  %v16396_v53 = vld [vmem:[#allocation24_spill] sm:$0xff] }
 0xb7f   : > { %v14661_v12 = vadd.f32 %v14649_v16, %v5410_v51  ;;  %vm4989_vm8 = vweird.f32 %v14585_v47  ;;  %v5016_v4 = vsub.f32 1.5, %v14654_v19  ;;  %v4961_v49 = vsel %vm14667_vm11, %v14540_v23, %v4957_v22  ;;  %v14701_v23 = vpop.permute.xlu0 %5384  ;;  %v16395_v22 = vld [vmem:[#allocation50_spill] sm:$0xff] }
 0xb80   : > { %v14676_v25 = vadd.f32 %v14656_v20, %v14562_v55  ;;  %v5377_v1 = vpop.permute.xlu2 %5376  ;;  %vm14683_vm2 = vmor %vm4988_vm6, %vm4989_vm8  ;;  %v4997_v18 = vmul.f32 %v14592_v0, %v4996_v44  ;;  %vm5008_vm1 = vweird.f32 %v14528_v60  ;;  %vm4999_vm4 = vweird.f32 %v14592_v0 }
 0xb81   : > { %v14691_v36 = vadd.f32 %v14661_v12, %v14637_v5  ;;  %v5397_v9 = vsel %vm16391_vm14, %v14518_v26, %v5377_v1  ;;  %v4991_v46 = vsel %vm14683_vm2, %v14585_v47, %v4987_v33  ;;  %vm5018_vm0 = vweird.f32 %v14530_v43  ;;  %vm5000_vm6 = vmor %vm4998_vm5, %vm4999_vm4 }
 0xb82   : > { %v5418_v11 = vadd.f32 %v5397_v9, %v16392_v30  ;;  %v5381_v51 = vpop.permute.xlu1 %5380  ;;  %v14706_v42 = vpack.c.bf16 %v4961_v49, %v4951_v6  ;;  %v5119_v26 = vunpack.c.h.bf16 %v16375_v31  ;;  %v4967_v2 = vmul.f32 %v14547_v61, %v4966_v59  ;;  %v16400_v31 = vld [vmem:[#allocation21_spill] sm:$0xff] }
 0xb83   : > { %v5393_v47 = vsel %vm16393_vm13, %v5381_v51, %v14701_v23  ;;  %v5395_v44 = vsel %vm16394_vm15, %v5377_v1, %v5381_v51  ;;  %v5001_v19 = vsel %vm5000_vm6, %v14592_v0, %v4997_v18  ;;  %vm4969_vm10 = vweird.f32 %v14547_v61 }
 0xb84   : > { %v5434_v28 = vadd.f32 %v5418_v11, %v14583_v13  ;;  %v5419_v6 = vadd.f32 %v5395_v44, %v16395_v22  ;;  %v14720_v33 = vadd.f32 %v5393_v47, %v16396_v53  ;;  %v14722_v49 = vpack.c.bf16 %v5001_v19, %v4991_v46  ;;  %vm14726_vm5 = vmor %vm4968_vm3, %vm4969_vm10  ;;  %v16402_v22 = vld [vmem:[#allocation9_spill] sm:$0xff] }
 0xb85   : > { %v5142_v1 = vunpack.c.l.bf16 %v14706_v42  ;;  %v5143_v0 = vunpack.c.h.bf16 %v14706_v42  ;;  %v4971_v13 = vsel %vm14726_vm5, %v14547_v61, %v4967_v2  ;;  %v4977_v37 = vmul.f32 %v14554_v32, %v4976_v62 }
 0xb86   : > { %v14739_v18 = vadd.f32 %v5434_v28, %v14608_v7  ;;  %v14741_v15 = vadd.f32 %v5419_v6, %v5418_v11  ;;  %v14744_v9 = vadd.f32 %v14720_v33, %v5419_v6  ;;  %v5146_v46 = vunpack.c.l.bf16 %v14722_v49 }
 0xb87   : > { %v5158_v30 = vmul.f32 %v5142_v1, %v5110_v10  ;;  %v5147_v61 = vunpack.c.h.bf16 %v14722_v49  ;;  %v5159_v34 = vmul.f32 %v5143_v0, %v5111_v45  ;;  %vm4979_vm3 = vweird.f32 %v14554_v32 }
 0xb88   : > { %v14759_v62 = vadd.f32 %v14741_v15, %v14611_v63  ;;  %v14762_v11 = vadd.f32 %v14744_v9, %v5434_v28  ;;  %v5383_v51 = vpop.permute.xlu2 %5382  ;;  %v5166_v10 = vmul.f32 %v5146_v46, %v5118_v41  ;;  %vm4980_vm7 = vmor %vm4978_vm12, %vm4979_vm3  ;;  %v5007_v56 = vmul.f32 %v14600_v35, %v5006_v21 }
 0xb89   : > { %v5392_v45 = vsel %vm16399_vm9, %v14605_v58, %v5383_v51  ;;  %v5167_v2 = vmul.f32 %v5147_v61, %v5119_v26  ;;  %v4981_v47 = vsel %vm4980_vm7, %v14554_v32, %v4977_v37  ;;  %vm5009_vm11 = vweird.f32 %v14600_v35  ;;  %v16401_v32 = vld [vmem:[#allocation6_spill] sm:$0xff]  ;;  %v16403_v37 = vld [vmem:[#allocation40_spill] sm:$0xff] }
 0xb8a   : > { %v5412_v44 = vadd.f32 %v5392_v45, %v16400_v31  ;;  %v5190_v19 = vpack.c.bf16 %v5166_v10, %v5158_v30  ;;  %vm5010_vm8 = vmor %vm5008_vm1, %vm5009_vm11  ;;  %v5017_v39 = vmul.f32 %v14613_v48, %v5016_v4  ;;  %vm5019_vm12 = vweird.f32 %v14613_v48 }
 0xb8b   : > { %v5191_v41 = vpack.c.bf16 %v5167_v2, %v5159_v34  ;;  %v5011_v58 = vsel %vm5010_vm8, %v14600_v35, %v5007_v56  ;;  %vm5020_vm2 = vmor %vm5018_vm0, %vm5019_vm12  ;;  %v14786_v21 = vpack.c.bf16 %v4981_v47, %v4971_v13  ;;  %v5112_v26 = vunpack.c.l.bf16 %v16401_v32 }
 0xb8c   : > { %v5428_v28 = vadd.f32 %v5412_v44, %v14649_v16  ;;  %5609 = vmatpush.bf16.xpose.msra.mxu3 %v5190_v19  ;;  %v5021_v60 = vsel %vm5020_vm2, %v14613_v48, %v5017_v39  ;;  %v5120_v6 = vunpack.c.l.bf16 %v16402_v22  ;;  %v5113_v4 = vunpack.c.h.bf16 %v16401_v32  ;;  %v5387_v16 = vpop.permute.xlu1 %5386  ;;  %vm16407_vm1 = vmmov %vm16399_vm9 }
 0xb8d   : > { %5623 = vmatpush.bf16.xpose.msrb.mxu0 %v5191_v41  ;;  %v14793_v53 = vpack.c.bf16 %v5021_v60, %v5011_v58  ;;  %v5144_v35 = vunpack.c.l.bf16 %v14786_v21  ;;  %v5121_v43 = vunpack.c.h.bf16 %v16402_v22  ;;  %v5145_v59 = vunpack.c.h.bf16 %v14786_v21  ;;  %vm16408_vm14 = vmmov %vm16407_vm1  ;;  %v16409_v58 = vld [vmem:[#allocation48_spill] sm:$0xff] }
 0xb8e   : > { %v5444_v48 = vadd.f32 %v5428_v28, %v14656_v20  ;;  %v5203_v13 = vpack.c.bf16 %v14538_v50, %v14534_v8  ;;  %v5140_v30 = vunpack.c.l.bf16 %v16403_v37  ;;  %v16404_v34 = vunpack.c.l.bf16 %v16374_v38  ;;  %vm16413_vm4 = vmmov %vm16407_vm1 }
 0xb8f   : > { %v16405_v10 = vunpack.c.l.bf16 %v14410_v27  ;;  %v5148_v45 = vunpack.c.l.bf16 %v14793_v53  ;;  %v5160_v2 = vmul.f32 %v5144_v35, %v5112_v26  ;;  %v5149_v3 = vunpack.c.h.bf16 %v14793_v53  ;;  %vm16414_vm0 = vmmov %vm16407_vm1  ;;  %v16428_v53 = vld [vmem:[#allocation52_spill] sm:$0xff] }
 0xb90   : > { %v5161_v24 = vmul.f32 %v5145_v59, %v5113_v4  ;;  %v5133_v50 = vunpack.c.h.bf16 %v16374_v38  ;;  %v5141_v20 = vunpack.c.h.bf16 %v16403_v37  ;;  %v5390_v47 = vsel %vm16407_vm1, %v5383_v51, %v5387_v16  ;;  %v5389_v31 = vpop.permute.xlu2 %5388  ;;  %v16412_v4 = vld [vmem:[#allocation3_spill] sm:$0xff] }
 0xb91   : > { %v5180_v56 = vmul.f32 %v16405_v10, %v16404_v34  ;;  %v5168_v19 = vmul.f32 %v5148_v45, %v5120_v6  ;;  %v5169_v39 = vmul.f32 %v5149_v3, %v5121_v43  ;;  %v5404_v41 = vsel %vm16408_vm14, %v5387_v16, %v14499_v40  ;;  %v16415_v10 = vld [vmem:[#allocation18_spill] sm:$0xff] }
 0xb92   : > { %v5413_v32 = vadd.f32 %v5390_v47, %v16409_v58  ;;  %v16410_v38 = vunpack.c.h.bf16 %v14410_v27  ;;  %v16411_v22 = vunpack.c.h.bf16 %v14414_v52  ;;  %v5391_v43 = vsel %vm16413_vm4, %v14701_v23, %v5389_v31 }
 0xb93   : > { %v5192_v37 = vpack.c.bf16 %v5168_v19, %v5160_v2  ;;  %v5193_v6 = vpack.c.bf16 %v5169_v39, %v5161_v24  ;;  %v5405_v27 = vsel %vm16414_vm0, %v5389_v31, %v14431_v14  ;;  %v16416_v2 = vld [vmem:[#allocation38_spill] sm:$0xff]  ;;  %v16418_v19 = vld [vmem:[#allocation29_spill] sm:$0xff] }
 0xb94   : > { %5664 = vmatpush.bf16.xpose.msrb.mxu3 %v5202_v54  ;;  %v16406_v54 = vunpack.c.l.bf16 %v14414_v52  ;;  %v5181_v60 = vmul.f32 %v16410_v38, %v5133_v50  ;;  %v5189_v51 = vmul.f32 %v16411_v22, %v5141_v20  ;;  %v5122_v39 = vunpack.c.l.bf16 %v16418_v19 }
 0xb95   : > { %5678 = vmatpush.bf16.xpose.msra.mxu0 %v5203_v13  ;;  %v5406_v13 = vadd.f32 %v5404_v41, %v16412_v4  ;;  %5637 = vmatpush.bf16.xpose.msrb.mxu1 %v5192_v37  ;;  %v5123_v22 = vunpack.c.h.bf16 %v16418_v19 }
 0xb96   : > { %v5188_v8 = vmul.f32 %v16406_v54, %v5140_v30  ;;  %v5429_v30 = vadd.f32 %v5413_v32, %v5412_v44  ;;  %v5205_v34 = vpack.c.bf16 %v5189_v51, %v5181_v60  ;;  %5651 = vmatpush.bf16.xpose.msrb.mxu2 %v5193_v6  ;;  %v5421_v44 = vadd.f32 %v5391_v43, %v16416_v2 }
 0xb97   : > { %v5422_v40 = vadd.f32 %v5413_v32, %v5406_v13  ;;  %v5423_v16 = vadd.f32 %v14521_v17, %v5406_v13  ;;  %v16420_v13 = vld [vmem:[#allocation61_spill] sm:$0xff] }
 0xb98   : > { %v5204_v26 = vpack.c.bf16 %v5188_v8, %v5180_v56  ;;  %v5445_v52 = vadd.f32 %v5429_v30, %v14661_v12  ;;  %v5414_v56 = vadd.f32 %v5405_v27, %v16415_v10  ;;  %v16417_v8 = vld [vmem:[#allocation34_spill] sm:$0xff]  ;;  %v5437_v20 = vadd.f32 %v5421_v44, %v14720_v33 }
 0xb99   : > { %v5438_v24 = vadd.f32 %v5428_v28, %v5422_v40  ;;  %v5439_v23 = vadd.f32 %v5429_v30, %v5423_v16  ;;  %v5440_v54 = vadd.f32 %v14562_v55, %v5422_v40  ;;  %v5114_v17 = vunpack.c.l.bf16 %v16417_v8 }
 0xb9a   : > { %v5441_v50 = vadd.f32 %v14637_v5, %v5423_v16  ;;  %v5430_v29 = vadd.f32 %v5421_v44, %v5414_v56  ;;  %v5431_v14 = vadd.f32 %v14574_v57, %v5414_v56  ;;  %v5124_v37 = vunpack.c.l.bf16 %v16420_v13 }
 0xb9b   : > { %v5454_v12 = vadd.f32 %v14676_v25, %v5438_v24  ;;  %v5455_v47 = vadd.f32 %v14691_v36, %v5439_v23  ;;  %v5456_v31 = vadd.f32 %v5444_v48, %v5440_v54  ;;  %v5453_v36 = vadd.f32 %v5437_v20, %v14741_v15 }
 0xb9c   : > { %v5457_v28 = vadd.f32 %v5445_v52, %v5441_v50  ;;  %v5446_v41 = vadd.f32 %v14744_v9, %v5430_v29  ;;  %v5447_v55 = vadd.f32 %v5437_v20, %v5431_v14  ;;  %v5448_v58 = vadd.f32 %v14608_v7, %v5430_v29 }
 0xb9d   : > { %5692 = vmatpush.bf16.xpose.msra.mxu1 %v5204_v26  ;;  %v14854_v32 = vmax.f32 %v5454_v12, 1e-16  ;;  %v14856_v5 = vmax.f32 %v5455_v47, 1e-16  ;;  %v14858_v57 = vmax.f32 %v5456_v31, 1e-16  ;;  %v5449_v33 = vadd.f32 %v14611_v63, %v5431_v14 }
 0xb9e   : > { %5706 = vmatpush.bf16.xpose.msra.mxu2 %v5205_v34  ;;  %v14861_v25 = vmax.f32 %v5457_v28, 1e-16  ;;  %v5458_v48 = vadd.f32 %v14739_v18, %v5446_v41  ;;  %v5459_v26 = vadd.f32 %v14759_v62, %v5447_v55  ;;  %v5460_v7 = vadd.f32 %v14762_v11, %v5448_v58 }
 0xb9f   : > { %6184 = vrsqrt.f32 %v14854_v32  ;;  %v5461_v9 = vadd.f32 %v5453_v36, %v5449_v33  ;;  %v5162_v38 = vmul.f32 %v5142_v1, %v5114_v17  ;;  %v5170_v18 = vmul.f32 %v5146_v46, %v5122_v39  ;;  %v16419_v46 = vld [vmem:[#allocation32_spill] sm:$0xff] }
 0xba0   : > { %6186 = vrsqrt.f32 %v14856_v5  ;;  %v14872_v63 = vmax.f32 %v5458_v48, 1e-16  ;;  %v14874_v60 = vmax.f32 %v5459_v26, 1e-16  ;;  %v14879_v15 = vmax.f32 %v5460_v7, 1e-16 }
 0xba1   : > { %6188 = vrsqrt.f32 %v14858_v57  ;;  %v14881_v62 = vmax.f32 %v5461_v9, 1e-16  ;;  %v5115_v11 = vunpack.c.h.bf16 %v16417_v8  ;;  %v5194_v1 = vpack.c.bf16 %v5170_v18, %v5162_v38 }
 0xba2   : > { %6190 = vrsqrt.f32 %v14861_v25  ;;  %v5116_v4 = vunpack.c.l.bf16 %v16419_v46  ;;  %v5171_v34 = vmul.f32 %v5147_v61, %v5123_v22  ;;  %v5172_v52 = vmul.f32 %v5148_v45, %v5124_v37 }
 0xba3   : > { %6192 = vrsqrt.f32 %v14872_v63  ;;  %5665 = vmatpush.bf16.xpose.msrb.mxu3 %v5194_v1  ;;  %v5163_v43 = vmul.f32 %v5143_v0, %v5115_v11  ;;  %vm5476_vm6 = vweird.f32 %v14854_v32  ;;  %vm5486_vm15 = vweird.f32 %v14856_v5 }
 0xba4   : > { %6194 = vrsqrt.f32 %v14874_v60  ;;  %v5164_v27 = vmul.f32 %v5144_v35, %v5116_v4  ;;  %vm5516_vm3 = vweird.f32 %v14872_v63  ;;  %vm5526_vm11 = vweird.f32 %v14874_v60 }
 0xba5   : > { %v14887_v51 = vpop.eup %6184  ;;  %6196 = vrsqrt.f32 %v14879_v15  ;;  %v5195_v49 = vpack.c.bf16 %v5171_v34, %v5163_v43  ;;  %vm5496_vm12 = vweird.f32 %v14858_v57  ;;  %vm5506_vm2 = vweird.f32 %v14861_v25 }
 0xba6   : > { %v14892_v6 = vpop.eup %6186  ;;  %v5471_v30 = vmul.f32 %v14887_v51, %v14854_v32  ;;  %6198 = vrsqrt.f32 %v14881_v62  ;;  %vm5477_vm13 = vweird.f32 %v14887_v51  ;;  %v5196_v45 = vpack.c.bf16 %v5172_v52, %v5164_v27 }
 0xba7   : > { %v14901_v40 = vpop.eup %6188  ;;  %v5481_v16 = vmul.f32 %v14892_v6, %v14856_v5  ;;  %vm5487_vm10 = vweird.f32 %v14892_v6  ;;  %5679 = vmatpush.bf16.xpose.msra.mxu0 %v5195_v49  ;;  %vm14961_vm14 = vmor %vm5476_vm6, %vm5477_vm13  ;;  %v5117_v4 = vunpack.c.h.bf16 %v16419_v46  ;;  %v5125_v32 = vunpack.c.h.bf16 %v16420_v13 }
 0xba8   : > { %v14909_v10 = vpop.eup %6190  ;;  %v5472_v56 = vmul.f32 %v14887_v51, %v5471_v30  ;;  %v5491_v42 = vmul.f32 %v14901_v40, %v14858_v57  ;;  %vm5497_vm5 = vweird.f32 %v14901_v40  ;;  %5693 = vmatpush.bf16.xpose.msra.mxu1 %v5196_v45  ;;  %vm5488_vm4 = vmor %vm5486_vm15, %vm5487_vm10 }
 0xba9   : > { %v14916_v0 = vpop.eup %6192  ;;  %v5482_v61 = vmul.f32 %v14892_v6, %v5481_v16  ;;  %v5501_v35 = vmul.f32 %v14909_v10, %v14861_v25  ;;  %vm5507_vm9 = vweird.f32 %v14909_v10  ;;  %v5165_v16 = vmul.f32 %v5145_v59, %v5117_v4  ;;  %vm15003_vm15 = vmor %vm5496_vm12, %vm5497_vm5 }
 0xbaa   : > { %v14923_v2 = vpop.eup %6194  ;;  %v5473_v44 = vmul.f32 0.5, %v5472_v56  ;;  %v5492_v24 = vmul.f32 %v14901_v40, %v5491_v42  ;;  %v5511_v23 = vmul.f32 %v14916_v0, %v14872_v63  ;;  %vm5517_vm7 = vweird.f32 %v14916_v0  ;;  %vm15014_vm10 = vmor %vm5506_vm2, %vm5507_vm9 }
 0xbab   : > { %v14931_v54 = vpop.eup %6196  ;;  %v5483_v8 = vmul.f32 0.5, %v5482_v61  ;;  %v5502_v17 = vmul.f32 %v14909_v10, %v5501_v35  ;;  %v5521_v50 = vmul.f32 %v14923_v2, %v14874_v60  ;;  %vm5527_vm8 = vweird.f32 %v14923_v2  ;;  %vm14981_vm6 = vmor %vm5516_vm3, %vm5517_vm7 }
 0xbac   : > { %v14939_v29 = vpop.eup %6198  ;;  %v5474_v14 = vsub.f32 1.5, %v5473_v44  ;;  %v5493_v20 = vmul.f32 0.5, %v5492_v24  ;;  %v5512_v12 = vmul.f32 %v14916_v0, %v5511_v23  ;;  %v5531_v47 = vmul.f32 %v14931_v54, %v14879_v15  ;;  %vm5528_vm13 = vmor %vm5526_vm11, %vm5527_vm8 }
 0xbad   : > { %v5484_v31 = vsub.f32 1.5, %v5483_v8  ;;  %v5503_v19 = vmul.f32 0.5, %v5502_v17  ;;  %v5522_v39 = vmul.f32 %v14923_v2, %v5521_v50  ;;  %vm5537_vm1 = vweird.f32 %v14931_v54 }
 0xbae   : > { %v5475_v28 = vmul.f32 %v14887_v51, %v5474_v14  ;;  %v5494_v41 = vsub.f32 1.5, %v5493_v20  ;;  %v5513_v55 = vmul.f32 0.5, %v5512_v12  ;;  %v5532_v58 = vmul.f32 %v14931_v54, %v5531_v47  ;;  %v16435_v47 = vld [vmem:[#allocation35_spill] sm:$0xff] }
 0xbaf   : > { %v5485_v33 = vmul.f32 %v14892_v6, %v5484_v31  ;;  %v5504_v36 = vsub.f32 1.5, %v5503_v19  ;;  %v5523_v48 = vmul.f32 0.5, %v5522_v39  ;;  %v5541_v26 = vmul.f32 %v14939_v29, %v14881_v62  ;;  %v16436_v19 = vld [vmem:[#allocation20_spill] sm:$0xff] }
 0xbb0   : > { %v5495_v7 = vmul.f32 %v14901_v40, %v5494_v41  ;;  %v5514_v9 = vsub.f32 1.5, %v5513_v55  ;;  %v5533_v38 = vmul.f32 0.5, %v5532_v58  ;;  %vm5547_vm0 = vweird.f32 %v14939_v29 }
 0xbb1   : > { %v5505_v11 = vmul.f32 %v14909_v10, %v5504_v36  ;;  %v5524_v1 = vsub.f32 1.5, %v5523_v48  ;;  %v5542_v22 = vmul.f32 %v14939_v29, %v5541_v26  ;;  %v5479_v43 = vsel %vm14961_vm14, %v14887_v51, %v5475_v28 }
 0xbb2   : > { %v5515_v37 = vmul.f32 %v14916_v0, %v5514_v9  ;;  %v5534_v30 = vsub.f32 1.5, %v5533_v38  ;;  %v5489_v13 = vsel %vm5488_vm4, %v14892_v6, %v5485_v33  ;;  %v5173_v63 = vmul.f32 %v5149_v3, %v5125_v32  ;;  %v16427_v6 = vld [vmem:[#allocation58_spill] sm:$0xff] }
 0xbb3   : > { %v5525_v5 = vmul.f32 %v14923_v2, %v5524_v1  ;;  %v5543_v34 = vmul.f32 0.5, %v5542_v22  ;;  %v5550_v52 = vpack.c.bf16 %v5489_v13, %v5479_v43  ;;  %v5554_v56 = vunpack.c.l.bf16 %v16427_v6  ;;  %v6230_v43 = vld [vmem:[%s15079_s2 + $0x18] sm:$0x1] }
 0xbb4   : > { %v5535_v51 = vmul.f32 %v14931_v54, %v5534_v30  ;;  %v5519_v27 = vsel %vm14981_vm6, %v14916_v0, %v5515_v37  ;;  %v5562_v3 = vunpack.c.l.bf16 %v16428_v53  ;;  %v5197_v57 = vpack.c.bf16 %v5173_v63, %v5165_v16  ;;  %v16439_v30 = vld [vmem:[#allocation22_spill] sm:$0xff]  ;;  %v16441_v16 = vld [vmem:[#allocation17_spill] sm:$0xff] }
 0xbb5   : > { %v5544_v59 = vsub.f32 1.5, %v5543_v34  ;;  %v5529_v60 = vsel %vm5528_vm13, %v14923_v2, %v5525_v5  ;;  %v5570_v0 = vunpack.c.l.bf16 %v5550_v52  ;;  %v5555_v61 = vunpack.c.h.bf16 %v16427_v6 }
 0xbb6   : > { %v5552_v49 = vpack.c.bf16 %v5529_v60, %v5519_v27  ;;  %vm16431_vm5 = vweird.f32 %v14879_v15  ;;  %v5563_v25 = vunpack.c.h.bf16 %v16428_v53  ;;  %v5571_v2 = vunpack.c.h.bf16 %v5550_v52  ;;  %5707 = vmatpush.bf16.xpose.msra.mxu2 %v5197_v57  ;;  %v6231_v52 = vld [vmem:[%s15079_s2 + $0x10] sm:$0xff]  ;;  %v6233_v57 = vld [vmem:[%s15079_s2] sm:$0xff] }
 0xbb7   : > { %vm15023_vm3 = vmor %vm16431_vm5, %vm5537_vm1  ;;  %v5545_v45 = vmul.f32 %v14939_v29, %v5544_v59  ;;  %v5499_v44 = vsel %vm15003_vm15, %v14901_v40, %v5495_v7  ;;  %vm16434_vm7 = vweird.f32 %v14881_v62  ;;  %v5578_v24 = vmul.f32 %v5570_v0, %v5554_v56  ;;  %v16438_v7 = vld [vmem:[#allocation27_spill] sm:$0xff] }
 0xbb8   : > { %vm5548_vm9 = vmor %vm16434_vm7, %vm5547_vm0  ;;  %v5574_v15 = vunpack.c.l.bf16 %v5552_v49  ;;  %v5575_v23 = vunpack.c.h.bf16 %v5552_v49  ;;  %v5509_v8 = vsel %vm15014_vm10, %v14909_v10, %v5505_v11  ;;  %v5579_v17 = vmul.f32 %v5571_v2, %v5555_v61  ;;  %v6232_v56 = vld [vmem:[%s15079_s2 + $0x8] sm:$0xff] }
 0xbb9   : > { %v5539_v50 = vsel %vm15023_vm3, %v14931_v54, %v5535_v51  ;;  %v5549_v40 = vsel %vm5548_vm9, %v14939_v29, %v5545_v45  ;;  %v5551_v14 = vpack.c.bf16 %v5509_v8, %v5499_v44  ;;  %v5556_v31 = vunpack.c.l.bf16 %v16435_v47  ;;  %v16437_v29 = vld [vmem:[#allocation4_spill] sm:$0xff] }
 0xbba   : > { %v5586_v20 = vmul.f32 %v5574_v15, %v5562_v3  ;;  %v5587_v12 = vmul.f32 %v5575_v23, %v5563_v25  ;;  %v5553_v62 = vpack.c.bf16 %v5549_v40, %v5539_v50  ;;  %v5564_v39 = vunpack.c.l.bf16 %v16436_v19 }
 0xbbb   : > { %v5572_v28 = vunpack.c.l.bf16 %v5551_v14  ;;  %v5557_v41 = vunpack.c.h.bf16 %v16435_v47  ;;  %v5565_v10 = vunpack.c.h.bf16 %v16436_v19  ;;  %v5573_v36 = vunpack.c.h.bf16 %v5551_v14 }
 0xbbc   : > { %v5594_v55 = vpack.c.bf16 %v5586_v20, %v5578_v24  ;;  %v5595_v58 = vpack.c.bf16 %v5587_v12, %v5579_v17  ;;  %v5576_v33 = vunpack.c.l.bf16 %v5553_v62  ;;  %v5577_v48 = vunpack.c.h.bf16 %v5553_v62 }
 0xbbd   : > { %v5580_v54 = vmul.f32 %v5572_v28, %v5556_v31  ;;  %v5558_v26 = vunpack.c.l.bf16 %v16437_v29  ;;  %v5566_v9 = vunpack.c.l.bf16 %v16438_v7  ;;  %v5581_v18 = vmul.f32 %v5573_v36, %v5557_v41 }
 0xbbe   : > { %5610 = vmatmul.bf16.vlgmr.msra.gmra.mxu3 %v5594_v55  ;;  %5624 = vmatmul.bf16.vlgmr.msrb.gmra.mxu0 %v5595_v58  ;;  %v5588_v38 = vmul.f32 %v5576_v33, %v5564_v39  ;;  %v5559_v11 = vunpack.c.h.bf16 %v16437_v29  ;;  %v5567_v1 = vunpack.c.h.bf16 %v16438_v7  ;;  %v5589_v22 = vmul.f32 %v5577_v48, %v5565_v10 }
 0xbbf   : > { %v5582_v4 = vmul.f32 %v5570_v0, %v5558_v26  ;;  %v5590_v37 = vmul.f32 %v5574_v15, %v5566_v9  ;;  %v5560_v32 = vunpack.c.l.bf16 %v16439_v30  ;;  %vm16440_vm11 = vcmask 1040384  }
 0xbc0   : > { %5987 = vmatpush.msk.msra.mxu3 %vm16440_vm11, %v6230_v43  ;;  %v5596_v46 = vpack.c.bf16 %v5588_v38, %v5580_v54  ;;  %v5583_v5 = vmul.f32 %v5571_v2, %v5559_v11  ;;  %v5591_v34 = vmul.f32 %v5575_v23, %v5567_v1  ;;  %v5568_v13 = vunpack.c.l.bf16 %v16441_v16 }
 0xbc1   : > { %v5597_v51 = vpack.c.bf16 %v5589_v22, %v5581_v18  ;;  %v5598_v63 = vpack.c.bf16 %v5590_v37, %v5582_v4  ;;  %v5561_v27 = vunpack.c.h.bf16 %v16439_v30  ;;  %v5584_v59 = vmul.f32 %v5572_v28, %v5560_v32 }
 0xbc2   : > { %5733 = vmatpush.msra.mxu3 %v6231_v52  ;;  %5638 = vmatmul.bf16.vlgmr.msrb.gmra.mxu1 %v5596_v46  ;;  %v5599_v21 = vpack.c.bf16 %v5591_v34, %v5583_v5  ;;  %v5592_v60 = vmul.f32 %v5576_v33, %v5568_v13  ;;  %v5569_v6 = vunpack.c.h.bf16 %v16441_v16  ;;  %vm16442_vm8 = vcmask 203776  }
 0xbc3   : > { %5652 = vmatmul.bf16.vlgmr.msrb.gmra.mxu2 %v5597_v51  ;;  %v5585_v3 = vmul.f32 %v5573_v36, %v5561_v27  ;;  %vm16443_vm12 = vmmov %vm16442_vm8  ;;  %vm16444_vm2 = vcmask 39936   ;;  %vm16445_vm1 = vcmask 33792  }
 0xbc4   : > { %5734 = vmatpush.msra.mxu3 %v6232_v56  ;;  %v5600_v53 = vpack.c.bf16 %v5592_v60, %v5584_v59  ;;  %v5593_v42 = vmul.f32 %v5577_v48, %v5569_v6 }
 0xbc6   : > { %5735 = vmatpush.msra.mxu3 %v6233_v57  ;;  %v5601_v49 = vpack.c.bf16 %v5593_v42, %v5585_v3 }
 0xbce   : > { %5666 = vmatmul.bf16.vlgmr.msrb.gmra.mxu3 %v5598_v63  ;;  %5680 = vmatmul.bf16.vlgmr.msra.gmra.mxu0 %v5599_v21 }
 0xbd2   : > { %5694 = vmatmul.bf16.vlgmr.msra.gmra.mxu1 %v5600_v53 }
 0xbd3   : > { %5708 = vmatmul.bf16.vlgmr.msra.gmra.mxu2 %v5601_v49 }
 0xc3b   : > { %v5625_v0 = vpop.f32.mrf.mxu0 }
 0xc3f   : > { %v5639_v61 = vpop.f32.mrf.mxu1 }
 0xc41   : > { %v5611_v35 = vpop.f32.mrf.mxu3 }
 0xc42   : > { %v5626_v2 = vadd.f32 %v5625_v0, %v5611_v35 }
 0xc43   : > { %v5627_v25 = vpop.f32.mrf.mxu0 }
 0xc44   : > { %v5640_v24 = vadd.f32 %v5639_v61, %v5626_v2 }
 0xc46   : > { %v5653_v45 = vpop.f32.mrf.mxu2 }
 0xc47   : > { %v5641_v44 = vpop.f32.mrf.mxu1  ;;  %v5654_v8 = vadd.f32 %v5653_v45, %v5640_v24 }
 0xc49   : > { %v5613_v15 = vpop.f32.mrf.mxu3 }
 0xc4a   : > { %v5628_v17 = vadd.f32 %v5627_v25, %v5613_v15 }
 0xc4b   : > { %v5681_v50 = vpop.f32.mrf.mxu0 }
 0xc4c   : > { %v5642_v12 = vadd.f32 %v5641_v44, %v5628_v17 }
 0xc4e   : > { %v5655_v23 = vpop.f32.mrf.mxu2 }
 0xc4f   : > { %v5695_v20 = vpop.f32.mrf.mxu1  ;;  %v5656_v19 = vadd.f32 %v5655_v23, %v5642_v12 }
 0xc51   : > { %v5667_v40 = vpop.f32.mrf.mxu3 }
 0xc52   : > { %v5668_v14 = vadd.f32 %v5667_v40, %v5654_v8 }
 0xc53   : > { %v5683_v10 = vpop.f32.mrf.mxu0 }
 0xc54   : > { %v5682_v62 = vadd.f32 %v5681_v50, %v5668_v14 }
 0xc56   : > { %v5696_v47 = vadd.f32 %v5695_v20, %v5682_v62  ;;  %v5709_v31 = vpop.f32.mrf.mxu2 }
 0xc57   : > { %v5697_v58 = vpop.f32.mrf.mxu1 }
 0xc58   : > { %v5710_v39 = vadd.f32 %v5709_v31, %v5696_v47 }
 0xc59   : > { %v5669_v28 = vpop.f32.mrf.mxu3 }
 0xc5a   : > { %v5670_v41 = vadd.f32 %v5669_v28, %v5656_v19  ;;  %5988 = vmatmul.msk.f32.vlgmr.msra.gmra.mxu3 %vm16442_vm8, %v5710_v39 }
 0xc5c   : > { %v5684_v55 = vadd.f32 %v5683_v10, %v5670_v41 }
 0xc5e   : > { %v5698_v33 = vadd.f32 %v5697_v58, %v5684_v55  ;;  %v5711_v36 = vpop.f32.mrf.mxu2 }
 0xc60   : > { %v5712_v54 = vadd.f32 %v5711_v36, %v5698_v33 }
 0xc62   : > { %5989 = vmatmul.msk.f32.gmra.mxu3 %vm16443_vm12, %v5712_v54 }
 0xcdd   : > { %v5737_v48 = vpop.f32.mrf.mxu3 }
 0xcde   : > { %5990 = vst.msk [vmem:[%s9192_s10 + $0x30] sm:$0xff] %vm16444_vm2, %v5737_v48 }
 0xce5   : > { %v5740_v29 = vpop.f32.mrf.mxu3 }
 0xce6   : > { %5991 = vst.msk [vmem:[%s9192_s10 + $0x38] sm:$0x3] %vm16445_vm1, %v5740_v29 }
 0xce7 PF: > { %s13_s12 = sadd.s32 1, %s6240_s12  }
 0xce8   : > { %p10_p4 = scmp.ge.s32.totalorder %s13_s12, 4  }
 0xcea   :  { %12 = sbr.rel (!%p10_p4) target bundleno = 1 (0x1), region = 74 }

</bundles_post_ra>
